<compile_context>
chip_gen: v7x
topology: tpu7x:2x2x1
jax: 0.10.0
libtpu: 0.0.40
codegen_flags: <defaults>
</compile_context>

<pallas_src>
import functools

import numpy as np
import jax
import jax.numpy as jnp
from jax.experimental import pallas as pl
from jax.experimental.pallas import tpu as pltpu


def _round_up(x, m):
    return ((x + m - 1) // m) * m


MID = 512  # hard-coded 512 channels in the PyTorch module


# --------------------------------------------------------------------------------------
# Pallas kernel 1: fused matmul + shift (folded BN / bias) + optional ReLU
#   - bf16 operands on the MXU, f32 accumulation directly in the resident output block
#   - used once for all four PSP-branch 1x1 convs (weights stacked along N)
# --------------------------------------------------------------------------------------
def _mm_shift_relu_kernel(x_ref, w_ref, shift_ref, o_ref, *, relu):
    k = pl.program_id(2)

    @pl.when(k == 0)
    def _():
        o_ref[...] = jnp.zeros_like(o_ref)

    o_ref[...] += jnp.dot(x_ref[...], w_ref[...], preferred_element_type=jnp.float32)

    @pl.when(k == pl.num_programs(2) - 1)
    def _():
        y = o_ref[...] + shift_ref[...]
        if relu:
            y = jnp.maximum(y, 0.0)
        o_ref[...] = y


def fused_matmul_shift(x, w, shift, relu=True, tm=256, tn=512, tk=512):
    """(M,K) @ (K,N) + shift[N], optional ReLU.  BN scale must be pre-folded into w."""
    M, K = x.shape
    _, Ncols = w.shape
    tm = min(tm, _round_up(M, 128))
    tk = min(tk, _round_up(K, 128))
    tn = min(tn, _round_up(Ncols, 128))
    Mp, Kp, Np = _round_up(M, tm), _round_up(K, tk), _round_up(Ncols, tn)

    xp = jnp.pad(x, ((0, Mp - M), (0, Kp - K))).astype(jnp.bfloat16)
    wp = jnp.pad(w, ((0, Kp - K), (0, Np - Ncols))).astype(jnp.bfloat16)
    sp = jnp.pad(shift.reshape(1, -1).astype(jnp.float32), ((0, 0), (0, Np - Ncols)))
    grid = (Mp // tm, Np // tn, Kp // tk)

    out = pl.pallas_call(
        functools.partial(_mm_shift_relu_kernel, relu=relu),
        out_shape=jax.ShapeDtypeStruct((Mp, Np), jnp.float32),
        grid_spec=pltpu.PrefetchScalarGridSpec(
            num_scalar_prefetch=0,
            grid=grid,
            in_specs=[
                pl.BlockSpec((tm, tk), lambda i, j, k: (i, k)),
                pl.BlockSpec((tk, tn), lambda i, j, k: (k, j)),
                pl.BlockSpec((1, tn), lambda i, j, k: (0, j)),
            ],
            out_specs=pl.BlockSpec((tm, tn), lambda i, j, k: (i, j)),
        ),
        compiler_params=pltpu.CompilerParams(
            dimension_semantics=("parallel", "parallel", "arbitrary")),
    )(xp, wp, sp)
    return out[:M, :Ncols]


# --------------------------------------------------------------------------------------
# Pallas kernel 2: fused conv_last = 3x3 conv (no 9x im2col) + BN(shift) + ReLU + 1x1 conv
#   x_ref:   (1, (H+2)*W, tk)  bf16   flattened H-padded rows; channel axis already holds
#                                     the three W-taps (3*Cin, zero-padded to Kp)
#   w3_ref:  (3, tk, 512)      bf16   per-H-tap weight chunk, BN scale folded in
#   shift:   (1, 512)          f32    folded BN shift
#   w1_ref:  (512, Ncp)        bf16   classifier weights (zero-padded classes)
#   b1_ref:  (1, Ncp)          f32    classifier bias
#   o_ref:   (1, H*W, Ncp)     f32    class logits
# --------------------------------------------------------------------------------------
def _conv_last_kernel(x_ref, w3_ref, shift_ref, w1_ref, b1_ref, o_ref, acc_ref, *, H, W):
    k = pl.program_id(1)

    @pl.when(k == 0)
    def _():
        acc_ref[...] = jnp.zeros_like(acc_ref)

    # Three H-taps: whole-row shifts (offsets 0, W, 2W are sublane-tile aligned).
    for dh in range(3):
        acc_ref[...] += jnp.dot(
            x_ref[0, dh * W:dh * W + H * W, :], w3_ref[dh],
            preferred_element_type=jnp.float32)

    @pl.when(k == pl.num_programs(1) - 1)
    def _():
        hidden = jnp.maximum(acc_ref[...] + shift_ref[...], 0.0)   # BN shift + ReLU
        # Dropout(0.1) is identity in eval mode; 1x1 classifier conv fused here.
        logits = jnp.dot(hidden.astype(jnp.bfloat16), w1_ref[...],
                         preferred_element_type=jnp.float32) + b1_ref[...]
        o_ref[0] = logits.astype(o_ref.dtype)


def conv_last_fused(feat, w3, shift, w1, b1, *, tk=512):
    """feat: (N,H,W,cin) f32; w3: (3,3,cin,512) scale-folded; returns (N,H,W,ncls) f32."""
    N, H, W, cin = feat.shape
    mid = w3.shape[-1]
    ncls = w1.shape[-1]
    Cp = _round_up(cin, 128)
    tk = min(tk, 3 * Cp)
    Kp = _round_up(3 * Cp, tk)
    Ncp = _round_up(ncls, 128)

    # Activations: pad channels, fold the three W-taps into the channel axis (3x, not 9x),
    # pad H by one row of zeros top/bottom, flatten spatial rows.  All cheap XLA glue.
    xb = jnp.pad(feat, ((0, 0), (0, 0), (0, 0), (0, Cp - cin))).astype(jnp.bfloat16)
    xw = jnp.pad(xb, ((0, 0), (0, 0), (1, 1), (0, 0)))                       # pad W
    xw = jnp.concatenate([xw[:, :, d:d + W, :] for d in range(3)], axis=-1)  # (N,H,W,3Cp)
    xw = jnp.pad(xw, ((0, 0), (1, 1), (0, 0), (0, Kp - 3 * Cp)))             # pad H, K
    x_flat = xw.reshape(N, (H + 2) * W, Kp)

    # Weights: (3,3,Cp,512) -> (dh, dw*Cp + c, out), matching the activation channel order.
    w3p = jnp.pad(w3, ((0, 0), (0, 0), (0, Cp - cin), (0, 0)))
    w3r = w3p.reshape(3, 3 * Cp, mid)
    w3r = jnp.pad(w3r, ((0, 0), (0, Kp - 3 * Cp), (0, 0))).astype(jnp.bfloat16)

    shift2 = shift.reshape(1, mid).astype(jnp.float32)
    w1p = jnp.pad(w1, ((0, 0), (0, Ncp - ncls))).astype(jnp.bfloat16)
    b1p = jnp.pad(b1.reshape(1, -1).astype(jnp.float32), ((0, 0), (0, Ncp - ncls)))

    grid = (N, Kp // tk)
    out = pl.pallas_call(
        functools.partial(_conv_last_kernel, H=H, W=W),
        out_shape=jax.ShapeDtypeStruct((N, H * W, Ncp), jnp.float32),
        grid_spec=pltpu.PrefetchScalarGridSpec(
            num_scalar_prefetch=0,
            grid=grid,
            in_specs=[
                pl.BlockSpec((1, (H + 2) * W, tk), lambda n, k: (n, 0, k)),
                pl.BlockSpec((3, tk, mid), lambda n, k: (0, k, 0)),
                pl.BlockSpec((1, mid), lambda n, k: (0, 0)),
                pl.BlockSpec((mid, Ncp), lambda n, k: (0, 0)),
                pl.BlockSpec((1, Ncp), lambda n, k: (0, 0)),
            ],
            out_specs=pl.BlockSpec((1, H * W, Ncp), lambda n, k: (n, 0, 0)),
            scratch_shapes=[pltpu.VMEM((H * W, mid), jnp.float32)],
        ),
        compiler_params=pltpu.CompilerParams(
            dimension_semantics=("parallel", "arbitrary")),
    )(x_flat, w3r, shift2, w1p, b1p)
    return out[:, :, :ncls].reshape(N, H, W, ncls)


# --------------------------------------------------------------------------------------
# Pallas kernel 3: row-wise log_softmax / softmax over the last (class) axis
# --------------------------------------------------------------------------------------
def _log_softmax_kernel(x_ref, o_ref, *, softmax):
    x = x_ref[...]
    m = jnp.max(x, axis=-1, keepdims=True)
    s = x - m
    lse = jnp.log(jnp.sum(jnp.exp(s), axis=-1, keepdims=True))
    y = s - lse
    if softmax:
        y = jnp.exp(y)
    o_ref[...] = y


def log_softmax_rows(x, softmax=False, tm=1024):
    M, C = x.shape
    Cp = _round_up(C, 128)
    tm = min(tm, _round_up(M, 128))
    Mp = _round_up(M, tm)
    # Channel padding uses -1e30 so exp() of the padding contributes 0 to the sum.
    xp = jnp.pad(x.astype(jnp.float32), ((0, Mp - M), (0, Cp - C)),
                 constant_values=-1e30)
    out = pl.pallas_call(
        functools.partial(_log_softmax_kernel, softmax=softmax),
        out_shape=jax.ShapeDtypeStruct((Mp, Cp), jnp.float32),
        grid_spec=pltpu.PrefetchScalarGridSpec(
            num_scalar_prefetch=0,
            grid=(Mp // tm,),
            in_specs=[pl.BlockSpec((tm, Cp), lambda i: (i, 0))],
            out_specs=pl.BlockSpec((tm, Cp), lambda i: (i, 0)),
        ),
        compiler_params=pltpu.CompilerParams(dimension_semantics=("parallel",)),
    )(xp)
    return out[:M, :C]


# --------------------------------------------------------------------------------------
# JAX glue: exact linear operators for adaptive avg-pool and bilinear resize
# --------------------------------------------------------------------------------------
def _adaptive_pool_matrix(out_size, in_size):
    # Matches torch.nn.AdaptiveAvgPool2d bin boundaries.
    p = np.zeros((out_size, in_size), dtype=np.float32)
    for i in range(out_size):
        start = (i * in_size) // out_size
        end = -((-(i + 1) * in_size) // out_size)  # ceil
        p[i, start:end] = 1.0 / (end - start)
    return jnp.asarray(p)


def _bilinear_matrix(out_size, in_size):
    # Matches F.interpolate(mode='bilinear', align_corners=False).
    w = np.zeros((out_size, in_size), dtype=np.float32)
    if in_size == 1:
        w[:, 0] = 1.0
        return jnp.asarray(w)
    scale = in_size / out_size
    for i in range(out_size):
        src = max((i + 0.5) * scale - 0.5, 0.0)
        i0 = min(int(np.floor(src)), in_size - 1)
        i1 = min(i0 + 1, in_size - 1)
        frac = src - i0
        w[i, i0] += 1.0 - frac
        w[i, i1] += frac
    return jnp.asarray(w)


def _bn_fold(gamma, beta, mean, var, eps=1e-5):
    scale = gamma / jnp.sqrt(var + eps)
    shift = beta - mean * scale
    return scale, shift


# --------------------------------------------------------------------------------------
# Parameters (deterministic synthetic init; shapes follow the PyTorch module __init__)
# --------------------------------------------------------------------------------------
def init_params(key, fc_dim, num_class, pool_scales):
    keys = iter(jax.random.split(key, 5 * len(pool_scales) + 10))

    def nxt():
        return next(keys)

    psp = []
    for _ in pool_scales:
        psp.append(dict(
            w=jax.random.normal(nxt(), (MID, fc_dim, 1, 1), jnp.float32)
              * (1.0 / np.sqrt(fc_dim)),                               # Conv2d(fc_dim,512,1,bias=False)
            gamma=1.0 + 0.1 * jax.random.normal(nxt(), (MID,), jnp.float32),
            beta=0.1 * jax.random.normal(nxt(), (MID,), jnp.float32),
            mean=0.1 * jax.random.normal(nxt(), (MID,), jnp.float32),
            var=1.0 + 0.1 * jnp.abs(jax.random.normal(nxt(), (MID,), jnp.float32)),
        ))

    cin = fc_dim + len(pool_scales) * MID
    conv_last = dict(
        w3=jax.random.normal(nxt(), (MID, cin, 3, 3), jnp.float32)
           * (1.0 / np.sqrt(9 * cin)),                                 # Conv2d(cin,512,3,pad=1,bias=False)
        gamma=1.0 + 0.1 * jax.random.normal(nxt(), (MID,), jnp.float32),
        beta=0.1 * jax.random.normal(nxt(), (MID,), jnp.float32),
        mean=0.1 * jax.random.normal(nxt(), (MID,), jnp.float32),
        var=1.0 + 0.1 * jnp.abs(jax.random.normal(nxt(), (MID,), jnp.float32)),
        w1=jax.random.normal(nxt(), (num_class, MID, 1, 1), jnp.float32)
           * (1.0 / np.sqrt(MID)),                                     # Conv2d(512,num_class,1)
        b1=0.1 * jax.random.normal(nxt(), (num_class,), jnp.float32),
    )
    return dict(psp=psp, conv_last=conv_last)


# --------------------------------------------------------------------------------------
# Forward pass
# --------------------------------------------------------------------------------------
def psp_bilinear_forward(x_nchw, params, *, pool_scales, seg_size, use_softmax=False):
    N, C, H, W = x_nchw.shape
    x = jnp.transpose(x_nchw, (0, 2, 3, 1)).astype(jnp.float32)  # -> NHWC

    # ---------------- PSP branches ----------------
    # Adaptive avg-pool (exact linear operator, glue), then ALL four 1x1 convs + folded BN
    # + ReLU in one fused Pallas matmul (weights stacked along the output column axis).
    rows_list, w_cols, shift_cols = [], [], []
    for scale, p in zip(pool_scales, params["psp"]):
        ph = _adaptive_pool_matrix(scale, H)
        pw = _adaptive_pool_matrix(scale, W)
        pooled = jnp.einsum("ah,bw,nhwc->nabc", ph, pw, x)        # (N, s, s, C)
        rows_list.append(pooled.reshape(N * scale * scale, C))
        bn_s, bn_b = _bn_fold(p["gamma"], p["beta"], p["mean"], p["var"])
        w_cols.append(p["w"][:, :, 0, 0].T * bn_s[None, :])       # scale folded into weights
        shift_cols.append(bn_b)
    rows_all = jnp.concatenate(rows_list, axis=0)                 # (N*sum(s^2), C)
    w_all = jnp.concatenate(w_cols, axis=1)                       # (C, 4*512)
    shift_all = jnp.concatenate(shift_cols, axis=0)               # (4*512,)
    y_all = fused_matmul_shift(rows_all, w_all, shift_all, relu=True)

    psp_out = [x]
    roff = 0
    for j, scale in enumerate(pool_scales):
        nrows = N * scale * scale
        y = y_all[roff:roff + nrows, j * MID:(j + 1) * MID].reshape(N, scale, scale, MID)
        roff += nrows
        uh = _bilinear_matrix(H, scale)
        uw = _bilinear_matrix(W, scale)
        psp_out.append(jnp.einsum("Ha,Wb,nabc->nHWc", uh, uw, y))  # bilinear upsample (glue)

    feat = jnp.concatenate(psp_out, axis=-1)                      # (N, H, W, fc_dim + 4*512)

    # ---------------- conv_last ----------------
    # 3x3 conv + BN + ReLU + Dropout(identity) + 1x1 classifier conv, fused in one kernel.
    cl = params["conv_last"]
    bn_s, bn_b = _bn_fold(cl["gamma"], cl["beta"], cl["mean"], cl["var"])
    w3 = jnp.transpose(cl["w3"], (2, 3, 1, 0)) * bn_s             # (3,3,cin,512), scale folded
    w1 = cl["w1"][:, :, 0, 0].T                                   # (512, num_class)
    num_class = w1.shape[1]
    y = conv_last_fused(feat, w3, bn_b, w1, cl["b1"])             # (N, H, W, num_class) f32

    # Final bilinear upsample to segSize (if the sizes differ), as in the module.
    ho, wo = seg_size
    if (H, W) != (ho, wo):
        uh = _bilinear_matrix(ho, H)
        uw = _bilinear_matrix(wo, W)
        y = jnp.einsum("Ha,Wb,nabc->nHWc", uh, uw, y)

    rows = y.reshape(N * ho * wo, num_class)
    out = log_softmax_rows(rows, softmax=use_softmax)             # Pallas (log_)softmax
    out = out.reshape(N, ho, wo, num_class)
    return jnp.transpose(out, (0, 3, 1, 2))                       # back to NCHW


# --------------------------------------------------------------------------------------
if __name__ == "__main__":
    key = jax.random.PRNGKey(0)
    k_param, k_x = jax.random.split(key)

    # Small shapes consistent with the module: NCHW input with fc_dim channels.
    N, fc_dim, H, W = 2, 32, 16, 16
    num_class = 8
    pool_scales = (1, 2, 3, 6)
    seg_size = (32, 32)  # differs from (H, W) -> exercises the final bilinear upsample

    params = init_params(k_param, fc_dim, num_class, pool_scales)
    x = jax.random.normal(k_x, (N, fc_dim, H, W), jnp.float32)

    fwd = jax.jit(functools.partial(psp_bilinear_forward,
                                    pool_scales=pool_scales,
                                    seg_size=seg_size,
                                    use_softmax=False))
    out = fwd(x, params)
    out = jax.block_until_ready(out)

    assert out.shape == (N, num_class, seg_size[0], seg_size[1]), out.shape
    assert bool(jnp.all(jnp.isfinite(out)))
    # log_softmax sanity: exp over class dim sums to 1
    sums = jnp.sum(jnp.exp(out), axis=1)
    assert bool(jnp.all(jnp.abs(sums - 1.0) < 1e-3))

    print("KERNEL_OK")
</pallas_src>

<mosaic_0001>
module attributes {stable_mosaic.version = 11 : i64} {
  func.func @_mm_shift_relu_kernel(%arg0: i32, %arg1: i32, %arg2: i32, %arg3: memref<128x128xbf16, #tpu.memory_space<vmem>>, %arg4: memref<128x512xbf16, #tpu.memory_space<vmem>>, %arg5: memref<1x512xf32, #tpu.memory_space<vmem>>, %arg6: memref<128x512xf32, #tpu.memory_space<vmem>>) attributes {dimension_semantics = [#tpu.dimension_semantics<parallel>, #tpu.dimension_semantics<parallel>, #tpu.dimension_semantics<arbitrary>], iteration_bounds = array<i64: 1, 4, 1>, scalar_prefetch = 0 : i64, scratch_operands = 0 : i64, tpu.core_type = #tpu.core_type<tc>, window_params = [{transform_indices = @transform_0, window_bounds = array<i64: 128, 128>}, {transform_indices = @transform_1, window_bounds = array<i64: 128, 512>}, {transform_indices = @transform_2, window_bounds = array<i64: 1, 512>}, {transform_indices = @transform_3, window_bounds = array<i64: 128, 512>}]} {
    %c0_i32 = arith.constant 0 : i32
    %0 = arith.cmpi eq, %arg2, %c0_i32 : i32
    %1 = arith.extui %0 : i1 to i32
    %c0_i32_0 = arith.constant 0 : i32
    %2 = arith.cmpi ne, %1, %c0_i32_0 : i32
    scf.if %2 {
      %cst_10 = arith.constant 0.000000e+00 : f32
      %12 = vector.broadcast %cst_10 : f32 to vector<128x512xf32>
      %c0_11 = arith.constant 0 : index
      %c0_12 = arith.constant 0 : index
      %13 = vector.load %arg6[%c0_11, %c0_12] : memref<128x512xf32, #tpu.memory_space<vmem>>, vector<128x512xf32>
      tpu.vector_store %arg6[%c0_11, %c0_12], %12 {strides = array<i32>} : memref<128x512xf32, #tpu.memory_space<vmem>>, vector<128x512xf32>,
    } else {
    }
    %c0 = arith.constant 0 : index
    %c0_1 = arith.constant 0 : index
    %3 = vector.load %arg6[%c0, %c0_1] : memref<128x512xf32, #tpu.memory_space<vmem>>, vector<128x512xf32>
    %c0_2 = arith.constant 0 : index
    %c0_3 = arith.constant 0 : index
    %4 = vector.load %arg3[%c0_2, %c0_3] : memref<128x128xbf16, #tpu.memory_space<vmem>>, vector<128x128xbf16>
    %c0_4 = arith.constant 0 : index
    %c0_5 = arith.constant 0 : index
    %5 = vector.load %arg4[%c0_4, %c0_5] : memref<128x512xbf16, #tpu.memory_space<vmem>>, vector<128x512xbf16>
    %cst = arith.constant dense<0.000000e+00> : vector<128x512xf32>
    %6 = tpu.matmul %4, %5, %cst {dimension_numbers = #tpu.dot_dimension_numbers<[1], [0], [0], [1], [0, 0, 1, 1], [], []>} : vector<128x128xbf16>, vector<128x512xbf16>, vector<128x512xf32> -> vector<128x512xf32>
    %7 = arith.addf %3, %6 : vector<128x512xf32>
    %c0_6 = arith.constant 0 : index
    %c0_7 = arith.constant 0 : index
    %8 = vector.load %arg6[%c0_6, %c0_7] : memref<128x512xf32, #tpu.memory_space<vmem>>, vector<128x512xf32>
    tpu.vector_store %arg6[%c0_6, %c0_7], %7 {strides = array<i32>} : memref<128x512xf32, #tpu.memory_space<vmem>>, vector<128x512xf32>,
    %c0_i32_8 = arith.constant 0 : i32
    %9 = arith.cmpi eq, %arg2, %c0_i32_8 : i32
    %10 = arith.extui %9 : i1 to i32
    %c0_i32_9 = arith.constant 0 : i32
    %11 = arith.cmpi ne, %10, %c0_i32_9 : i32
    scf.if %11 {
      %c0_10 = arith.constant 0 : index
      %c0_11 = arith.constant 0 : index
      %12 = vector.load %arg6[%c0_10, %c0_11] : memref<128x512xf32, #tpu.memory_space<vmem>>, vector<128x512xf32>
      %c0_12 = arith.constant 0 : index
      %c0_13 = arith.constant 0 : index
      %13 = vector.load %arg5[%c0_12, %c0_13] : memref<1x512xf32, #tpu.memory_space<vmem>>, vector<1x512xf32>
      %14 = vector.broadcast %13 : vector<1x512xf32> to vector<128x512xf32>
      %15 = arith.addf %12, %14 : vector<128x512xf32>
      %cst_14 = arith.constant 0.000000e+00 : f32
      %16 = vector.broadcast %cst_14 : f32 to vector<128x512xf32>
      %17 = arith.maximumf %15, %16 : vector<128x512xf32>
      %c0_15 = arith.constant 0 : index
      %c0_16 = arith.constant 0 : index
      %18 = vector.load %arg6[%c0_15, %c0_16] : memref<128x512xf32, #tpu.memory_space<vmem>>, vector<128x512xf32>
      tpu.vector_store %arg6[%c0_15, %c0_16], %17 {strides = array<i32>} : memref<128x512xf32, #tpu.memory_space<vmem>>, vector<128x512xf32>,
    } else {
    }
    return
  }
  func.func @transform_0(%arg0: i32, %arg1: i32, %arg2: i32) -> (i32, i32) {
    %c0_i32 = arith.constant 0 : i32
    return %arg0, %arg2 : i32, i32
  }
  func.func @transform_1(%arg0: i32, %arg1: i32, %arg2: i32) -> (i32, i32) {
    %c0_i32 = arith.constant 0 : i32
    return %arg2, %arg1 : i32, i32
  }
  func.func @transform_2(%arg0: i32, %arg1: i32, %arg2: i32) -> (i32, i32) {
    %c0_i32 = arith.constant 0 : i32
    %c0_i32_0 = arith.constant 0 : i32
    return %c0_i32, %arg1 : i32, i32
  }
  func.func @transform_3(%arg0: i32, %arg1: i32, %arg2: i32) -> (i32, i32) {
    %c0_i32 = arith.constant 0 : i32
    return %arg0, %arg1 : i32, i32
  }
}

module attributes {stable_mosaic.version = 11 : i64} {
  func.func @_conv_last_kernel(%arg0: i32, %arg1: i32, %arg2: memref<1x288x512xbf16, #tpu.memory_space<vmem>>, %arg3: memref<3x512x512xbf16, #tpu.memory_space<vmem>>, %arg4: memref<1x512xf32, #tpu.memory_space<vmem>>, %arg5: memref<512x128xbf16, #tpu.memory_space<vmem>>, %arg6: memref<1x128xf32, #tpu.memory_space<vmem>>, %arg7: memref<1x256x128xf32, #tpu.memory_space<vmem>>, %arg8: memref<256x512xf32, #tpu.memory_space<vmem>>) attributes {dimension_semantics = [#tpu.dimension_semantics<parallel>, #tpu.dimension_semantics<arbitrary>], iteration_bounds = array<i64: 2, 13>, scalar_prefetch = 0 : i64, scratch_operands = 1 : i64, tpu.core_type = #tpu.core_type<tc>, window_params = [{transform_indices = @transform_0, window_bounds = array<i64: 1, 288, 512>}, {transform_indices = @transform_1, window_bounds = array<i64: 3, 512, 512>}, {pipeline_mode = #tpu.pipeline_mode<synchronous>, transform_indices = @transform_2, window_bounds = array<i64: 1, 512>}, {pipeline_mode = #tpu.pipeline_mode<synchronous>, transform_indices = @transform_3, window_bounds = array<i64: 512, 128>}, {pipeline_mode = #tpu.pipeline_mode<synchronous>, transform_indices = @transform_4, window_bounds = array<i64: 1, 128>}, {transform_indices = @transform_5, window_bounds = array<i64: 1, 256, 128>}]} {
    %c0_i32 = arith.constant 0 : i32
    %0 = arith.cmpi eq, %arg1, %c0_i32 : i32
    %1 = arith.extui %0 : i1 to i32
    %c0_i32_0 = arith.constant 0 : i32
    %2 = arith.cmpi ne, %1, %c0_i32_0 : i32
    scf.if %2 {
      %cst_29 = arith.constant 0.000000e+00 : f32
      %30 = vector.broadcast %cst_29 : f32 to vector<256x512xf32>
      %c0_30 = arith.constant 0 : index
      %c0_31 = arith.constant 0 : index
      %31 = vector.load %arg8[%c0_30, %c0_31] : memref<256x512xf32, #tpu.memory_space<vmem>>, vector<256x512xf32>
      tpu.vector_store %arg8[%c0_30, %c0_31], %30 {strides = array<i32>} : memref<256x512xf32, #tpu.memory_space<vmem>>, vector<256x512xf32>,
    } else {
    }
    %c0 = arith.constant 0 : index
    %c0_1 = arith.constant 0 : index
    %3 = vector.load %arg8[%c0, %c0_1] : memref<256x512xf32, #tpu.memory_space<vmem>>, vector<256x512xf32>
    %c0_2 = arith.constant 0 : index
    %c0_3 = arith.constant 0 : index
    %c0_4 = arith.constant 0 : index
    %4 = vector.load %arg2[%c0_2, %c0_3, %c0_4] : memref<1x288x512xbf16, #tpu.memory_space<vmem>>, vector<1x256x512xbf16>
    %5 = vector.shape_cast %4 : vector<1x256x512xbf16> to vector<256x512xbf16>
    %c0_5 = arith.constant 0 : index
    %c0_6 = arith.constant 0 : index
    %c0_7 = arith.constant 0 : index
    %6 = vector.load %arg3[%c0_5, %c0_6, %c0_7] : memref<3x512x512xbf16, #tpu.memory_space<vmem>>, vector<1x512x512xbf16>
    %7 = vector.shape_cast %6 : vector<1x512x512xbf16> to vector<512x512xbf16>
    %cst = arith.constant dense<0.000000e+00> : vector<256x512xf32>
    %8 = tpu.matmul %5, %7, %cst {dimension_numbers = #tpu.dot_dimension_numbers<[1], [0], [0], [1], [0, 0, 1, 1], [], []>} : vector<256x512xbf16>, vector<512x512xbf16>, vector<256x512xf32> -> vector<256x512xf32>
    %9 = arith.addf %3, %8 : vector<256x512xf32>
    %c0_8 = arith.constant 0 : index
    %c0_9 = arith.constant 0 : index
    %10 = vector.load %arg8[%c0_8, %c0_9] : memref<256x512xf32, #tpu.memory_space<vmem>>, vector<256x512xf32>
    tpu.vector_store %arg8[%c0_8, %c0_9], %9 {strides = array<i32>} : memref<256x512xf32, #tpu.memory_space<vmem>>, vector<256x512xf32>,
    %c0_10 = arith.constant 0 : index
    %c0_11 = arith.constant 0 : index
    %11 = vector.load %arg8[%c0_10, %c0_11] : memref<256x512xf32, #tpu.memory_space<vmem>>, vector<256x512xf32>
    %c0_12 = arith.constant 0 : index
    %c16 = arith.constant 16 : index
    %c0_13 = arith.constant 0 : index
    %12 = vector.load %arg2[%c0_12, %c16, %c0_13] : memref<1x288x512xbf16, #tpu.memory_space<vmem>>, vector<1x256x512xbf16>
    %13 = vector.shape_cast %12 : vector<1x256x512xbf16> to vector<256x512xbf16>
    %c1 = arith.constant 1 : index
    %c0_14 = arith.constant 0 : index
    %c0_15 = arith.constant 0 : index
    %14 = vector.load %arg3[%c1, %c0_14, %c0_15] : memref<3x512x512xbf16, #tpu.memory_space<vmem>>, vector<1x512x512xbf16>
    %15 = vector.shape_cast %14 : vector<1x512x512xbf16> to vector<512x512xbf16>
    %cst_16 = arith.constant dense<0.000000e+00> : vector<256x512xf32>
    %16 = tpu.matmul %13, %15, %cst_16 {dimension_numbers = #tpu.dot_dimension_numbers<[1], [0], [0], [1], [0, 0, 1, 1], [], []>} : vector<256x512xbf16>, vector<512x512xbf16>, vector<256x512xf32> -> vector<256x512xf32>
    %17 = arith.addf %11, %16 : vector<256x512xf32>
    %c0_17 = arith.constant 0 : index
    %c0_18 = arith.constant 0 : index
    %18 = vector.load %arg8[%c0_17, %c0_18] : memref<256x512xf32, #tpu.memory_space<vmem>>, vector<256x512xf32>
    tpu.vector_store %arg8[%c0_17, %c0_18], %17 {strides = array<i32>} : memref<256x512xf32, #tpu.memory_space<vmem>>, vector<256x512xf32>,
    %c0_19 = arith.constant 0 : index
    %c0_20 = arith.constant 0 : index
    %19 = vector.load %arg8[%c0_19, %c0_20] : memref<256x512xf32, #tpu.memory_space<vmem>>, vector<256x512xf32>
    %c0_21 = arith.constant 0 : index
    %c32 = arith.constant 32 : index
    %c0_22 = arith.constant 0 : index
    %20 = vector.load %arg2[%c0_21, %c32, %c0_22] : memref<1x288x512xbf16, #tpu.memory_space<vmem>>, vector<1x256x512xbf16>
    %21 = vector.shape_cast %20 : vector<1x256x512xbf16> to vector<256x512xbf16>
    %c2 = arith.constant 2 : index
    %c0_23 = arith.constant 0 : index
    %c0_24 = arith.constant 0 : index
    %22 = vector.load %arg3[%c2, %c0_23, %c0_24] : memref<3x512x512xbf16, #tpu.memory_space<vmem>>, vector<1x512x512xbf16>
    %23 = vector.shape_cast %22 : vector<1x512x512xbf16> to vector<512x512xbf16>
    %cst_25 = arith.constant dense<0.000000e+00> : vector<256x512xf32>
    %24 = tpu.matmul %21, %23, %cst_25 {dimension_numbers = #tpu.dot_dimension_numbers<[1], [0], [0], [1], [0, 0, 1, 1], [], []>} : vector<256x512xbf16>, vector<512x512xbf16>, vector<256x512xf32> -> vector<256x512xf32>
    %25 = arith.addf %19, %24 : vector<256x512xf32>
    %c0_26 = arith.constant 0 : index
    %c0_27 = arith.constant 0 : index
    %26 = vector.load %arg8[%c0_26, %c0_27] : memref<256x512xf32, #tpu.memory_space<vmem>>, vector<256x512xf32>
    tpu.vector_store %arg8[%c0_26, %c0_27], %25 {strides = array<i32>} : memref<256x512xf32, #tpu.memory_space<vmem>>, vector<256x512xf32>,
    %c12_i32 = arith.constant 12 : i32
    %27 = arith.cmpi eq, %arg1, %c12_i32 : i32
    %28 = arith.extui %27 : i1 to i32
    %c0_i32_28 = arith.constant 0 : i32
    %29 = arith.cmpi ne, %28, %c0_i32_28 : i32
    scf.if %29 {
      %c0_29 = arith.constant 0 : index
      %c0_30 = arith.constant 0 : index
      %30 = vector.load %arg8[%c0_29, %c0_30] : memref<256x512xf32, #tpu.memory_space<vmem>>, vector<256x512xf32>
      %c0_31 = arith.constant 0 : index
      %c0_32 = arith.constant 0 : index
      %31 = vector.load %arg4[%c0_31, %c0_32] : memref<1x512xf32, #tpu.memory_space<vmem>>, vector<1x512xf32>
      %32 = vector.broadcast %31 : vector<1x512xf32> to vector<256x512xf32>
      %33 = arith.addf %30, %32 : vector<256x512xf32>
      %cst_33 = arith.constant 0.000000e+00 : f32
      %34 = vector.broadcast %cst_33 : f32 to vector<256x512xf32>
      %35 = arith.maximumf %33, %34 : vector<256x512xf32>
      %36 = arith.truncf %35 : vector<256x512xf32> to vector<256x512xbf16>
      %c0_34 = arith.constant 0 : index
      %c0_35 = arith.constant 0 : index
      %37 = vector.load %arg5[%c0_34, %c0_35] : memref<512x128xbf16, #tpu.memory_space<vmem>>, vector<512x128xbf16>
      %cst_36 = arith.constant dense<0.000000e+00> : vector<256x128xf32>
      %38 = tpu.matmul %36, %37, %cst_36 {dimension_numbers = #tpu.dot_dimension_numbers<[1], [0], [0], [1], [0, 0, 1, 1], [], []>} : vector<256x512xbf16>, vector<512x128xbf16>, vector<256x128xf32> -> vector<256x128xf32>
      %c0_37 = arith.constant 0 : index
      %c0_38 = arith.constant 0 : index
      %39 = vector.load %arg6[%c0_37, %c0_38] : memref<1x128xf32, #tpu.memory_space<vmem>>, vector<1x128xf32>
      %40 = vector.broadcast %39 : vector<1x128xf32> to vector<256x128xf32>
      %41 = arith.addf %38, %40 : vector<256x128xf32>
      %c0_39 = arith.constant 0 : index
      %c0_40 = arith.constant 0 : index
      %c0_41 = arith.constant 0 : index
      %42 = vector.load %arg7[%c0_39, %c0_40, %c0_41] : memref<1x256x128xf32, #tpu.memory_space<vmem>>, vector<1x256x128xf32>
      %43 = vector.shape_cast %42 : vector<1x256x128xf32> to vector<256x128xf32>
      %44 = vector.shape_cast %41 : vector<256x128xf32> to vector<1x256x128xf32>
      tpu.vector_store %arg7[%c0_39, %c0_40, %c0_41], %44 {strides = array<i32>} : memref<1x256x128xf32, #tpu.memory_space<vmem>>, vector<1x256x128xf32>,
    } else {
    }
    return
  }
  func.func @transform_0(%arg0: i32, %arg1: i32) -> (i32, i32, i32) {
    %c0_i32 = arith.constant 0 : i32
    %c0_i32_0 = arith.constant 0 : i32
    return %arg0, %c0_i32, %arg1 : i32, i32, i32
  }
  func.func @transform_1(%arg0: i32, %arg1: i32) -> (i32, i32, i32) {
    %c0_i32 = arith.constant 0 : i32
    %c0_i32_0 = arith.constant 0 : i32
    %c0_i32_1 = arith.constant 0 : i32
    return %c0_i32, %arg1, %c0_i32_0 : i32, i32, i32
  }
  func.func @transform_2(%arg0: i32, %arg1: i32) -> (i32, i32) {
    %c0_i32 = arith.constant 0 : i32
    %c0_i32_0 = arith.constant 0 : i32
    %c0_i32_1 = arith.constant 0 : i32
    return %c0_i32, %c0_i32_0 : i32, i32
  }
  func.func @transform_3(%arg0: i32, %arg1: i32) -> (i32, i32) {
    %c0_i32 = arith.constant 0 : i32
    %c0_i32_0 = arith.constant 0 : i32
    %c0_i32_1 = arith.constant 0 : i32
    return %c0_i32, %c0_i32_0 : i32, i32
  }
  func.func @transform_4(%arg0: i32, %arg1: i32) -> (i32, i32) {
    %c0_i32 = arith.constant 0 : i32
    %c0_i32_0 = arith.constant 0 : i32
    %c0_i32_1 = arith.constant 0 : i32
    return %c0_i32, %c0_i32_0 : i32, i32
  }
  func.func @transform_5(%arg0: i32, %arg1: i32) -> (i32, i32, i32) {
    %c0_i32 = arith.constant 0 : i32
    %c0_i32_0 = arith.constant 0 : i32
    %c0_i32_1 = arith.constant 0 : i32
    return %arg0, %c0_i32, %c0_i32_0 : i32, i32, i32
  }
}

module attributes {stable_mosaic.version = 11 : i64} {
  func.func @_log_softmax_kernel(%arg0: i32, %arg1: memref<1024x128xf32, #tpu.memory_space<vmem>>, %arg2: memref<1024x128xf32, #tpu.memory_space<vmem>>) attributes {dimension_semantics = [#tpu.dimension_semantics<parallel>], iteration_bounds = array<i64: 2>, scalar_prefetch = 0 : i64, scratch_operands = 0 : i64, tpu.core_type = #tpu.core_type<tc>, window_params = [{transform_indices = @transform_0, window_bounds = array<i64: 1024, 128>}, {transform_indices = @transform_1, window_bounds = array<i64: 1024, 128>}]} {
    %c0 = arith.constant 0 : index
    %c0_0 = arith.constant 0 : index
    %0 = vector.load %arg1[%c0, %c0_0] : memref<1024x128xf32, #tpu.memory_space<vmem>>, vector<1024x128xf32>
    %cst = arith.constant dense<0xFF800000> : vector<1024xf32>
    %1 = vector.multi_reduction <maximumf>, %0, %cst [1] : vector<1024x128xf32> to vector<1024xf32>
    %2 = vector.shape_cast %1 : vector<1024xf32> to vector<1024x1xf32>
    %3 = vector.broadcast %2 : vector<1024x1xf32> to vector<1024x128xf32>
    %4 = arith.subf %0, %3 : vector<1024x128xf32>
    %5 = math.exp %4 : vector<1024x128xf32>
    %cst_1 = arith.constant dense<0.000000e+00> : vector<1024xf32>
    %6 = vector.multi_reduction <add>, %5, %cst_1 [1] : vector<1024x128xf32> to vector<1024xf32>
    %7 = vector.shape_cast %6 : vector<1024xf32> to vector<1024x1xf32>
    %8 = math.log %7 : vector<1024x1xf32>
    %9 = vector.broadcast %8 : vector<1024x1xf32> to vector<1024x128xf32>
    %10 = arith.subf %4, %9 : vector<1024x128xf32>
    %c0_2 = arith.constant 0 : index
    %c0_3 = arith.constant 0 : index
    %11 = vector.load %arg2[%c0_2, %c0_3] : memref<1024x128xf32, #tpu.memory_space<vmem>>, vector<1024x128xf32>
    tpu.vector_store %arg2[%c0_2, %c0_3], %10 {strides = array<i32>} : memref<1024x128xf32, #tpu.memory_space<vmem>>, vector<1024x128xf32>,
    return
  }
  func.func @transform_0(%arg0: i32) -> (i32, i32) {
    %c0_i32 = arith.constant 0 : i32
    %c0_i32_0 = arith.constant 0 : i32
    return %arg0, %c0_i32 : i32, i32
  }
  func.func @transform_1(%arg0: i32) -> (i32, i32) {
    %c0_i32 = arith.constant 0 : i32
    %c0_i32_0 = arith.constant 0 : i32
    return %arg0, %c0_i32 : i32, i32
  }
}

</mosaic_0001>

<bundles_post_ra>
// kernel: psp_bilinear_forward.3
= control target key start
LH: loop header
LB: loop body
LE: loop exit
PB: predicated region body
PF: predicated region fallthrough
CT: control target
= control target key end

     0   :  { %s1828_s12 = smov 0   ;;  %s1830_s13 = smov 0   ;;  %s2318_s0 = inlined_call_operand.vmem [shape: bf16[128,128], index: 0, kind: input, shape index: {}]   ;;  %s2319_s1 = inlined_call_operand.vmem [shape: bf16[128,2048], index: 1, kind: input, shape index: {}]   ;;  %s2320_s2 = inlined_call_operand.vmem [shape: f32[1,2048], index: 2, kind: input, shape index: {}]   ;;  %s2321_s3 = inlined_call_operand.vmem [shape: f32[128,2048], index: 3, kind: output, shape index: {}]  }
   0x1   :  { %s1832_s14 = smov 0   ;;  %s1834_s15 = smov 0  }
   0x2   :  { %s1836_s16 = smov 0  }
   0x3 LB: > { %s28_s17 = sadd.s32 1, %s1801_s15  ;;  %s1610_s18 = sadd.s32 4294967295, %s1805_s16   ;;  %s1805_s16 = sphi %s1836_s16, %s13_s16   ;;  %s1801_s15 = sphi %s1834_s15, %s2326_s15   ;;  %s1797_s14 = sphi %s1832_s14, %s2325_s14   ;;  %s1793_s13 = sphi %s1830_s13, %s2324_s13   ;;  %s1789_s12 = sphi %s1828_s12, %s2323_s12  }
   0x4   : > { %p30_p0 = scmp.ge.s32.totalorder %s28_s17, 4  ;;  %p76_p1 = scmp.ne.s32.totalorder %s1793_s13, %s1789_s12 }
   0x5   : > { %p77_p2 = scmp.eq.s32.totalorder %s1805_s16, 0  ;;  %p134_p4 = scmp.eq.s32.totalorder %s1610_s18, 3 }
   0x6   : > { %s2328_s17 = smov (%p30_p0, %s28_s17), 0  ;;  %s69_s20 = sadd.s32 1, %s1793_s13 }
   0x7   : > { %p78_p3 = por %p77_p2, %p76_p1  ;;  %s65_s19 = ssub.s32 %s1801_s15, %s2328_s17 }
   0x8   : > { %p67_p5 = scmp.eq.s32.totalorder %s65_s19, 0  ;;  %p1863_p6 = por %p134_p4, %p76_p1 }
   0x9   : > { %p1614_p7 = scmp.ge.s32.totalorder %s1805_s16, 4 }
   0xa   : > { %s1868_s22 = scalar_select %p67_p5, %s1793_s13, %s69_s20  }
   0xb   : > { %168 = sbr.rel (%p1614_p7) target bundleno = 38 (0x26), region = 20 }
  0x12   : > { %171 = sbr.rel (!%p78_p3) target bundleno = 38 (0x26), region = 24  ;;  %s173_s23 = sand.u32 (%p78_p3), 1, %s1793_s13  }
  0x13   : > { %s1667_s24 = sshll.u32 (%p78_p3), %s1801_s15, 4  ;;  %s1615_s25 = sshll.u32 (%p78_p3), %s173_s23, 8 }
  0x14   : > { %s1876_s28 = scalar_lea.vmem (%p78_p3), %s2319_s1, %s1667_s24  ;;  %s1881_s29 = scalar_lea.vmem (%p78_p3), [#allocation2], %s1615_s25 }
  0x15   : > { %v194_v0 = vld [vmem:[%s1876_s28] sm:$0xff] (%p78_p3)  ;;  %v196_v1 = vld [vmem:[%s1876_s28 + $0x8] sm:$0xff] (%p78_p3) }
  0x16   : > { %v198_v2 = vld [vmem:[%s1876_s28 + $0x40] sm:$0xff] (%p78_p3)  ;;  %195 = vst [vmem:[%s1881_s29] sm:$0xff] (%p78_p3), %v194_v0  ;;  %197 = vst [vmem:[%s1881_s29 + $0x8] sm:$0xff] (%p78_p3), %v196_v1  ;;  %v200_v3 = vld [vmem:[%s1876_s28 + $0x48] sm:$0xff] (%p78_p3) }
  0x17   : > { %199 = vst [vmem:[%s1881_s29 + $0x10] sm:$0xff] (%p78_p3), %v198_v2  ;;  %v202_v4 = vld [vmem:[%s1876_s28 + $0x80] sm:$0xff] (%p78_p3)  ;;  %v204_v5 = vld [vmem:[%s1876_s28 + $0x88] sm:$0xff] (%p78_p3)  ;;  %201 = vst [vmem:[%s1881_s29 + $0x18] sm:$0xff] (%p78_p3), %v200_v3 }
  0x18   : > { %203 = vst [vmem:[%s1881_s29 + $0x20] sm:$0xff] (%p78_p3), %v202_v4  ;;  %205 = vst [vmem:[%s1881_s29 + $0x28] sm:$0xff] (%p78_p3), %v204_v5  ;;  %v206_v6 = vld [vmem:[%s1876_s28 + $0xc0] sm:$0xff] (%p78_p3)  ;;  %v208_v7 = vld [vmem:[%s1876_s28 + $0xc8] sm:$0xff] (%p78_p3) }
  0x19   : > { %v210_v8 = vld [vmem:[%s1876_s28 + $0x100] sm:$0xff]  ;;  %207 = vst [vmem:[%s1881_s29 + $0x30] sm:$0xff] %v206_v6  ;;  %209 = vst [vmem:[%s1881_s29 + $0x38] sm:$0xff] %v208_v7  ;;  %v212_v9 = vld [vmem:[%s1876_s28 + $0x108] sm:$0xff] }
  0x1a   : > { %211 = vst [vmem:[%s1881_s29 + $0x40] sm:$0xff] %v210_v8  ;;  %v214_v10 = vld [vmem:[%s1876_s28 + $0x140] sm:$0xff]  ;;  %v216_v11 = vld [vmem:[%s1876_s28 + $0x148] sm:$0xff]  ;;  %213 = vst [vmem:[%s1881_s29 + $0x48] sm:$0xff] %v212_v9 }
  0x1b   : > { %215 = vst [vmem:[%s1881_s29 + $0x50] sm:$0xff] %v214_v10  ;;  %217 = vst [vmem:[%s1881_s29 + $0x58] sm:$0xff] %v216_v11  ;;  %v218_v12 = vld [vmem:[%s1876_s28 + $0x180] sm:$0xff]  ;;  %v220_v13 = vld [vmem:[%s1876_s28 + $0x188] sm:$0xff] }
  0x1c   : > { %v222_v14 = vld [vmem:[%s1876_s28 + $0x1c0] sm:$0xff]  ;;  %219 = vst [vmem:[%s1881_s29 + $0x60] sm:$0xff] %v218_v12  ;;  %221 = vst [vmem:[%s1881_s29 + $0x68] sm:$0xff] %v220_v13  ;;  %v224_v15 = vld [vmem:[%s1876_s28 + $0x1c8] sm:$0xff] }
  0x1d   : > { %223 = vst [vmem:[%s1881_s29 + $0x70] sm:$0xff] %v222_v14  ;;  %v226_v16 = vld [vmem:[%s1876_s28 + $0x200] sm:$0xff]  ;;  %v228_v17 = vld [vmem:[%s1876_s28 + $0x208] sm:$0xff]  ;;  %225 = vst [vmem:[%s1881_s29 + $0x78] sm:$0xff] %v224_v15 }
  0x1e   : > { %227 = vst [vmem:[%s1881_s29 + $0x80] sm:$0xff] %v226_v16  ;;  %229 = vst [vmem:[%s1881_s29 + $0x88] sm:$0xff] %v228_v17  ;;  %v230_v18 = vld [vmem:[%s1876_s28 + $0x240] sm:$0xff]  ;;  %v232_v19 = vld [vmem:[%s1876_s28 + $0x248] sm:$0xff] }
  0x1f   : > { %v234_v20 = vld [vmem:[%s1876_s28 + $0x280] sm:$0xff]  ;;  %231 = vst [vmem:[%s1881_s29 + $0x90] sm:$0xff] %v230_v18  ;;  %233 = vst [vmem:[%s1881_s29 + $0x98] sm:$0xff] %v232_v19  ;;  %v236_v21 = vld [vmem:[%s1876_s28 + $0x288] sm:$0xff] }
  0x20   : > { %235 = vst [vmem:[%s1881_s29 + $0xa0] sm:$0xff] %v234_v20  ;;  %v238_v22 = vld [vmem:[%s1876_s28 + $0x2c0] sm:$0xff]  ;;  %v240_v23 = vld [vmem:[%s1876_s28 + $0x2c8] sm:$0xff]  ;;  %237 = vst [vmem:[%s1881_s29 + $0xa8] sm:$0xff] %v236_v21 }
  0x21   : > { %239 = vst [vmem:[%s1881_s29 + $0xb0] sm:$0xff] %v238_v22  ;;  %241 = vst [vmem:[%s1881_s29 + $0xb8] sm:$0xff] %v240_v23  ;;  %v242_v24 = vld [vmem:[%s1876_s28 + $0x300] sm:$0xff]  ;;  %v244_v25 = vld [vmem:[%s1876_s28 + $0x308] sm:$0xff] }
  0x22   : > { %v246_v26 = vld [vmem:[%s1876_s28 + $0x340] sm:$0xff]  ;;  %243 = vst [vmem:[%s1881_s29 + $0xc0] sm:$0xff] %v242_v24  ;;  %245 = vst [vmem:[%s1881_s29 + $0xc8] sm:$0xff] %v244_v25  ;;  %v248_v27 = vld [vmem:[%s1876_s28 + $0x348] sm:$0xff] }
  0x23   : > { %247 = vst [vmem:[%s1881_s29 + $0xd0] sm:$0xff] %v246_v26  ;;  %v250_v28 = vld [vmem:[%s1876_s28 + $0x380] sm:$0xff]  ;;  %v252_v29 = vld [vmem:[%s1876_s28 + $0x388] sm:$0xff]  ;;  %249 = vst [vmem:[%s1881_s29 + $0xd8] sm:$0xff] %v248_v27 }
  0x24   : > { %251 = vst [vmem:[%s1881_s29 + $0xe0] sm:$0xff] %v250_v28  ;;  %253 = vst [vmem:[%s1881_s29 + $0xe8] sm:$0xff] %v252_v29  ;;  %v254_v30 = vld [vmem:[%s1876_s28 + $0x3c0] sm:$0xff]  ;;  %v256_v31 = vld [vmem:[%s1876_s28 + $0x3c8] sm:$0xff] }
  0x25   : > { %255 = vst [vmem:[%s1881_s29 + $0xf0] sm:$0xff] %v254_v30  ;;  %257 = vst [vmem:[%s1881_s29 + $0xf8] sm:$0xff] %v256_v31 }
  0x26 PF: > { %p1618_p8 = scmp.ge.s32.totalorder %s1805_s16, 1  ;;  %p270_p9 = scmp.lt.s32.totalorder %s1805_s16, 5 }
  0x28   : > { %p271_p10 = pnand %p1618_p8, %p270_p9 }
  0x29   : > { %s277_s30 = sand.u32 (!%p271_p10), 1, %s1789_s12   ;;  %v1807_v32 = vmov (!%p271_p10), 0   ;;  %v1759_v1 = vld [vmem:[%s2318_s0] sm:$0xff] (!%p271_p10)   ;;  %v1760_v2 = vld [vmem:[%s2318_s0 + $0x8] sm:$0xff] (!%p271_p10)   ;;  %v1761_v3 = vld [vmem:[%s2318_s0 + $0x10] sm:$0xff] (!%p271_p10)   ;;  %v1141_v9 = vlaneseq (!%p271_p10) }
  0x2a   : > { %274 = sbr.rel (%p271_p10) target bundleno = 378 (0x17a), region = 51  ;;  %s1619_s4 = sshll.u32 (!%p271_p10), %s277_s30, 8  ;;  %750 = vmatprep.mubr.bf16.mxu0 (!%p271_p10), %v1807_v32  ;;  %863 = vmatprep.mubr.bf16.mxu1 (!%p271_p10), %v1807_v32  ;;  %v1762_v4 = vld [vmem:[%s2318_s0 + $0x18] sm:$0xff] (!%p271_p10)   ;;  %v1763_v5 = vld [vmem:[%s2318_s0 + $0x20] sm:$0xff] (!%p271_p10)   ;;  %v1764_v6 = vld [vmem:[%s2318_s0 + $0x28] sm:$0xff] (!%p271_p10)  }
  0x2b   : > { %s1951_s5 = scalar_lea.vmem (!%p271_p10), [#allocation2], %s1619_s4  ;;  %v1765_v7 = vld [vmem:[%s2318_s0 + $0x30] sm:$0xff] (!%p271_p10)   ;;  %v1766_v8 = vld [vmem:[%s2318_s0 + $0x38] sm:$0xff] (!%p271_p10)   ;;  %s1621_s4 = sshll.u32 (!%p271_p10), %s1797_s14, 2  ;;  %v1142_v10 = vshrl.u32 (!%p271_p10), %v1141_v9, 7 }
  0x2c   : > { %v1711_v33 = vld [vmem:[%s1951_s5 + $0x4] ss:$16 sps:$4 sm:$0xff] (!%p271_p10)   ;;  %v1713_v34 = vld [vmem:[%s1951_s5 + $0xc] ss:$16 sps:$4 sm:$0xff] (!%p271_p10)   ;;  %v1715_v35 = vld [vmem:[%s1951_s5] ss:$16 sps:$4 sm:$0xff] (!%p271_p10)  }
  0x2d   : > { %718 = vmatprep.subr.bf16.mxu0 (!%p271_p10), %v1711_v33  ;;  %v1716_v36 = vld [vmem:[%s1951_s5 + $0x8] ss:$16 sps:$4 sm:$0xff] (!%p271_p10)   ;;  %831 = vmatprep.subr.bf16.mxu1 (!%p271_p10), %v1713_v34  ;;  %v1717_v37 = vld [vmem:[%s1951_s5 + $0x24] ss:$16 sps:$4 sm:$0xff] (!%p271_p10)   ;;  %v1719_v38 = vld [vmem:[%s1951_s5 + $0x2c] ss:$16 sps:$4 sm:$0xff] (!%p271_p10)  }
  0x2e   : > { %719 = vmatpush1.bf16.msra.mxu0 (!%p271_p10), %v1715_v35  ;;  %832 = vmatpush1.bf16.msra.mxu1 (!%p271_p10), %v1716_v36  ;;  %v1721_v39 = vld [vmem:[%s1951_s5 + $0x20] ss:$16 sps:$4 sm:$0xff] (!%p271_p10)   ;;  %v1722_v40 = vld [vmem:[%s1951_s5 + $0x28] ss:$16 sps:$4 sm:$0xff] (!%p271_p10)   ;;  %v1723_v41 = vld [vmem:[%s1951_s5 + $0x44] ss:$16 sps:$4 sm:$0xff] (!%p271_p10)  }
  0x2f   : > { %720 = vmatprep.subr.bf16.mxu0 (!%p271_p10), %v1717_v37  ;;  %833 = vmatprep.subr.bf16.mxu1 (!%p271_p10), %v1719_v38  ;;  %v1725_v42 = vld [vmem:[%s1951_s5 + $0x4c] ss:$16 sps:$4 sm:$0xff] (!%p271_p10)   ;;  %v1727_v43 = vld [vmem:[%s1951_s5 + $0x40] ss:$16 sps:$4 sm:$0xff] (!%p271_p10)   ;;  %v1728_v44 = vld [vmem:[%s1951_s5 + $0x48] ss:$16 sps:$4 sm:$0xff] (!%p271_p10)  }
  0x30   : > { %v1729_v45 = vld [vmem:[%s1951_s5 + $0x64] ss:$16 sps:$4 sm:$0xff] (!%p271_p10)   ;;  %v1731_v46 = vld [vmem:[%s1951_s5 + $0x6c] ss:$16 sps:$4 sm:$0xff] (!%p271_p10)   ;;  %v1733_v47 = vld [vmem:[%s1951_s5 + $0x60] ss:$16 sps:$4 sm:$0xff] (!%p271_p10)  }
  0x31   : > { %v1734_v48 = vld [vmem:[%s1951_s5 + $0x68] ss:$16 sps:$4 sm:$0xff]   ;;  %v1735_v49 = vld [vmem:[%s1951_s5 + $0x84] ss:$16 sps:$4 sm:$0xff]   ;;  %v1737_v50 = vld [vmem:[%s1951_s5 + $0x8c] ss:$16 sps:$4 sm:$0xff]  }
  0x32   : > { %721 = vmatpush1.bf16.msra.mxu0 %v1721_v39  ;;  %834 = vmatpush1.bf16.msra.mxu1 %v1722_v40  ;;  %v1739_v51 = vld [vmem:[%s1951_s5 + $0x80] ss:$16 sps:$4 sm:$0xff]   ;;  %v1740_v52 = vld [vmem:[%s1951_s5 + $0x88] ss:$16 sps:$4 sm:$0xff]   ;;  %v1741_v53 = vld [vmem:[%s1951_s5 + $0xa4] ss:$16 sps:$4 sm:$0xff]  }
  0x33   : > { %722 = vmatprep.subr.bf16.mxu0 %v1723_v41  ;;  %835 = vmatprep.subr.bf16.mxu1 %v1725_v42  ;;  %v1743_v54 = vld [vmem:[%s1951_s5 + $0xac] ss:$16 sps:$4 sm:$0xff]   ;;  %v1745_v55 = vld [vmem:[%s1951_s5 + $0xa0] ss:$16 sps:$4 sm:$0xff]   ;;  %v1746_v56 = vld [vmem:[%s1951_s5 + $0xa8] ss:$16 sps:$4 sm:$0xff]  }
  0x34   : > { %v1747_v57 = vld [vmem:[%s1951_s5 + $0xc4] ss:$16 sps:$4 sm:$0xff]   ;;  %v1749_v58 = vld [vmem:[%s1951_s5 + $0xcc] ss:$16 sps:$4 sm:$0xff]   ;;  %v1751_v59 = vld [vmem:[%s1951_s5 + $0xc0] ss:$16 sps:$4 sm:$0xff]  }
  0x35   : > { %v1752_v60 = vld [vmem:[%s1951_s5 + $0xc8] ss:$16 sps:$4 sm:$0xff]   ;;  %v1753_v61 = vld [vmem:[%s1951_s5 + $0xe4] ss:$16 sps:$4 sm:$0xff]   ;;  %v1755_v62 = vld [vmem:[%s1951_s5 + $0xec] ss:$16 sps:$4 sm:$0xff]  }
  0x36   : > { %723 = vmatpush1.bf16.msra.mxu0 %v1727_v43  ;;  %836 = vmatpush1.bf16.msra.mxu1 %v1728_v44  ;;  %v1757_v63 = vld [vmem:[%s1951_s5 + $0xe0] ss:$16 sps:$4 sm:$0xff]   ;;  %v1758_v0 = vld [vmem:[%s1951_s5 + $0xe8] ss:$16 sps:$4 sm:$0xff]   ;;  %p323_p11 = scmp.lt.s32.totalorder %s1621_s4, 15  ;;  %v1143_v11 = vsub.s32 0, %v1142_v10 }
  0x37   : > { %724 = vmatprep.subr.bf16.mxu0 %v1729_v45  ;;  %837 = vmatprep.subr.bf16.mxu1 %v1731_v46  ;;  %v1151_v12 = vsub.s32 2, %v1142_v10  ;;  %v1147_v14 = vsub.s32 1, %v1142_v10  ;;  %v1155_v15 = vsub.s32 3, %v1142_v10  ;;  %s1620_s8 = sshll.u32 %s277_s30, 9  ;;  %s1668_s30 = sshll.u32 (%p1863_p6), %s1797_s14, 5 }
  0x38   : > { %s2330_s4 = smov (!%p323_p11, %s1621_s4), 15  ;;  %s2045_s12 = scalar_lea.vmem [#allocation3], %s1620_s8 }
  0x39   : > { %s325_s7 = scalar_lea.vmem %s2320_s2, %s2330_s4  ;;  %s2176_s11 = scalar_lea.vmem (%p1863_p6), %s2321_s3, %s1668_s30 }
  0x3a   : > { %725 = vmatpush1.bf16.msra.mxu0 %v1733_v47  ;;  %838 = vmatpush1.bf16.msra.mxu1 %v1734_v48  ;;  %v1139_v13 = vld [vmem:[%s325_s7] sm:$0xf] }
  0x3b   : > { %726 = vmatprep.subr.bf16.mxu0 %v1735_v49  ;;  %839 = vmatprep.subr.bf16.mxu1 %v1737_v50  ;;  %v2027_v16 = vrot.slane %v1139_v13, %v1143_v11  ;;  %v2029_v17 = vrot.slane %v1139_v13, %v1151_v12  ;;  %v2031_v20 = vrot.slane %v1139_v13, %v1147_v14 }
  0x3c   : > { %v2033_v21 = vrot.slane %v1139_v13, %v1155_v15 }
  0x3e   : > { %727 = vmatpush1.bf16.msra.mxu0 %v1739_v51  ;;  %840 = vmatpush1.bf16.msra.mxu1 %v1740_v52 }
  0x3f   : > { %728 = vmatprep.subr.bf16.mxu0 %v1741_v53  ;;  %841 = vmatprep.subr.bf16.mxu1 %v1743_v54 }
  0x42   : > { %729 = vmatpush1.bf16.msra.mxu0 %v1745_v55  ;;  %842 = vmatpush1.bf16.msra.mxu1 %v1746_v56 }
  0x43   : > { %730 = vmatprep.subr.bf16.mxu0 %v1747_v57  ;;  %843 = vmatprep.subr.bf16.mxu1 %v1749_v58 }
  0x46   : > { %731 = vmatpush1.bf16.msra.mxu0 %v1751_v59  ;;  %844 = vmatpush1.bf16.msra.mxu1 %v1752_v60 }
  0x47   : > { %732 = vmatprep.subr.bf16.mxu0 %v1753_v61  ;;  %845 = vmatprep.subr.bf16.mxu1 %v1755_v62 }
  0x4a   : > { %733 = vmatpush1.bf16.msra.mxu0 %v1757_v63  ;;  %846 = vmatpush1.bf16.msra.mxu1 %v1758_v0 }
  0x4d   : > { %751 = vmatmul.mubr.bf16.vlgmr.msra.gmra.mrb[0].mxu0 %v1759_v1  ;;  %864 = vmatmul.mubr.bf16.vlgmr.msra.gmra.mrb[0].mxu1 %v1759_v1 }
  0x4e   : > { %760 = vmatprep.mubr.bf16.mxu0 %v1807_v32  ;;  %873 = vmatprep.mubr.bf16.mxu1 %v1807_v32 }
  0x55   : > { %761 = vmatmul.mubr.bf16.gmra.mrb[4].mxu0 %v1760_v2  ;;  %874 = vmatmul.mubr.bf16.gmra.mrb[4].mxu1 %v1760_v2 }
  0x56   : > { %770 = vmatprep.mubr.bf16.mxu0 %v1807_v32  ;;  %883 = vmatprep.mubr.bf16.mxu1 %v1807_v32 }
  0x5d   : > { %771 = vmatmul.mubr.bf16.gmra.mrb[8].mxu0 %v1761_v3  ;;  %884 = vmatmul.mubr.bf16.gmra.mrb[8].mxu1 %v1761_v3 }
  0x5e   : > { %780 = vmatprep.mubr.bf16.mxu0 %v1807_v32  ;;  %893 = vmatprep.mubr.bf16.mxu1 %v1807_v32 }
  0x65   : > { %781 = vmatmul.mubr.bf16.gmra.mrb[12].mxu0 %v1762_v4  ;;  %894 = vmatmul.mubr.bf16.gmra.mrb[12].mxu1 %v1762_v4 }
  0x66   : > { %790 = vmatprep.mubr.bf16.mxu0 %v1807_v32  ;;  %903 = vmatprep.mubr.bf16.mxu1 %v1807_v32 }
  0x6d   : > { %791 = vmatmul.mubr.bf16.gmra.mrb[16].mxu0 %v1763_v5  ;;  %904 = vmatmul.mubr.bf16.gmra.mrb[16].mxu1 %v1763_v5 }
  0x6e   : > { %800 = vmatprep.mubr.bf16.mxu0 %v1807_v32  ;;  %913 = vmatprep.mubr.bf16.mxu1 %v1807_v32 }
  0x75   : > { %801 = vmatmul.mubr.bf16.gmra.mrb[20].mxu0 %v1764_v6  ;;  %914 = vmatmul.mubr.bf16.gmra.mrb[20].mxu1 %v1764_v6 }
  0x76   : > { %810 = vmatprep.mubr.bf16.mxu0 %v1807_v32  ;;  %923 = vmatprep.mubr.bf16.mxu1 %v1807_v32 }
  0x7d   : > { %811 = vmatmul.mubr.bf16.gmra.mrb[24].mxu0 %v1765_v7  ;;  %924 = vmatmul.mubr.bf16.gmra.mrb[24].mxu1 %v1765_v7 }
  0x7e   : > { %820 = vmatprep.mubr.bf16.mxu0 %v1807_v32  ;;  %933 = vmatprep.mubr.bf16.mxu1 %v1807_v32 }
  0x85   : > { %821 = vmatmul.mubr.bf16.gmra.mrb[28].mxu0 %v1766_v8  ;;  %934 = vmatmul.mubr.bf16.gmra.mrb[28].mxu1 %v1766_v8 }
 0x120   : > { %v752_v18 = vpop.f32.mrb[0].mxu0  ;;  %v865_v19 = vpop.f32.mrb[0].mxu1 }
 0x121   : > { %v754_v22 = vpop.f32.mrb[1].mxu0  ;;  %v867_v23 = vpop.f32.mrb[1].mxu1  ;;  %v1161_v26 = vadd.f32 %v2027_v16, %v752_v18  ;;  %v1163_v27 = vadd.f32 %v2029_v17, %v865_v19 }
 0x122   : > { %v756_v24 = vpop.f32.mrb[2].mxu0  ;;  %v869_v25 = vpop.f32.mrb[2].mxu1  ;;  %v1162_v30 = vadd.f32 %v2031_v20, %v754_v22  ;;  %v1164_v31 = vadd.f32 %v2033_v21, %v867_v23 }
 0x123   : > { %v758_v28 = vpop.f32.mrb[3].mxu0  ;;  %v871_v29 = vpop.f32.mrb[3].mxu1  ;;  %v1225_v32 = vmax.f32 %v1161_v26, 0.0  ;;  %v1227_v33 = vmax.f32 %v1163_v27, 0.0  ;;  %v1165_v34 = vadd.f32 %v2027_v16, %v756_v24  ;;  %v1167_v35 = vadd.f32 %v2029_v17, %v869_v25 }
 0x124   : > { %v1226_v36 = vmax.f32 %v1162_v30, 0.0  ;;  %v1228_v37 = vmax.f32 %v1164_v31, 0.0  ;;  %v1166_v38 = vadd.f32 %v2031_v20, %v758_v28  ;;  %v1168_v39 = vadd.f32 %v2033_v21, %v871_v29 }
 0x125   : > { %1289 = vst [vmem:[%s2045_s12] sm:$0xff] %v1225_v32  ;;  %1291 = vst [vmem:[%s2045_s12 + $0x10] sm:$0xff] %v1227_v33  ;;  %v1229_v40 = vmax.f32 %v1165_v34, 0.0  ;;  %v1231_v41 = vmax.f32 %v1167_v35, 0.0 }
 0x126   : > { %1290 = vst [vmem:[%s2045_s12 + $0x8] sm:$0xff] %v1226_v36  ;;  %1292 = vst [vmem:[%s2045_s12 + $0x18] sm:$0xff] %v1228_v37  ;;  %v1230_v42 = vmax.f32 %v1166_v38, 0.0  ;;  %v1232_v43 = vmax.f32 %v1168_v39, 0.0 }
 0x127   : > { %1293 = vst [vmem:[%s2045_s12 + $0x20] sm:$0xff] %v1229_v40  ;;  %1295 = vst [vmem:[%s2045_s12 + $0x30] sm:$0xff] %v1231_v41 }
 0x128   : > { %v762_v44 = vpop.f32.mrb[4].mxu0  ;;  %v875_v45 = vpop.f32.mrb[4].mxu1  ;;  %1294 = vst [vmem:[%s2045_s12 + $0x28] sm:$0xff] %v1230_v42  ;;  %1296 = vst [vmem:[%s2045_s12 + $0x38] sm:$0xff] %v1232_v43 }
 0x129   : > { %v764_v46 = vpop.f32.mrb[5].mxu0  ;;  %v877_v47 = vpop.f32.mrb[5].mxu1  ;;  %v1169_v50 = vadd.f32 %v2027_v16, %v762_v44  ;;  %v1171_v51 = vadd.f32 %v2029_v17, %v875_v45 }
 0x12a   : > { %v766_v48 = vpop.f32.mrb[6].mxu0  ;;  %v879_v49 = vpop.f32.mrb[6].mxu1  ;;  %v1170_v54 = vadd.f32 %v2031_v20, %v764_v46  ;;  %v1172_v55 = vadd.f32 %v2033_v21, %v877_v47 }
 0x12b   : > { %v768_v52 = vpop.f32.mrb[7].mxu0  ;;  %v881_v53 = vpop.f32.mrb[7].mxu1  ;;  %v1233_v56 = vmax.f32 %v1169_v50, 0.0  ;;  %v1235_v57 = vmax.f32 %v1171_v51, 0.0  ;;  %v1173_v58 = vadd.f32 %v2027_v16, %v766_v48  ;;  %v1175_v59 = vadd.f32 %v2029_v17, %v879_v49 }
 0x12c   : > { %v1234_v60 = vmax.f32 %v1170_v54, 0.0  ;;  %v1236_v61 = vmax.f32 %v1172_v55, 0.0  ;;  %v1174_v62 = vadd.f32 %v2031_v20, %v768_v52  ;;  %v1176_v63 = vadd.f32 %v2033_v21, %v881_v53 }
 0x12d   : > { %1297 = vst [vmem:[%s2045_s12 + $0x40] sm:$0xff] %v1233_v56  ;;  %1299 = vst [vmem:[%s2045_s12 + $0x50] sm:$0xff] %v1235_v57  ;;  %v1237_v0 = vmax.f32 %v1173_v58, 0.0  ;;  %v1239_v1 = vmax.f32 %v1175_v59, 0.0 }
 0x12e   : > { %1298 = vst [vmem:[%s2045_s12 + $0x48] sm:$0xff] %v1234_v60  ;;  %1300 = vst [vmem:[%s2045_s12 + $0x58] sm:$0xff] %v1236_v61  ;;  %v1238_v2 = vmax.f32 %v1174_v62, 0.0  ;;  %v1240_v3 = vmax.f32 %v1176_v63, 0.0 }
 0x12f   : > { %1301 = vst [vmem:[%s2045_s12 + $0x60] sm:$0xff] %v1237_v0  ;;  %1303 = vst [vmem:[%s2045_s12 + $0x70] sm:$0xff] %v1239_v1 }
 0x130   : > { %v772_v4 = vpop.f32.mrb[8].mxu0  ;;  %v885_v5 = vpop.f32.mrb[8].mxu1  ;;  %1302 = vst [vmem:[%s2045_s12 + $0x68] sm:$0xff] %v1238_v2  ;;  %1304 = vst [vmem:[%s2045_s12 + $0x78] sm:$0xff] %v1240_v3 }
 0x131   : > { %v774_v6 = vpop.f32.mrb[9].mxu0  ;;  %v887_v7 = vpop.f32.mrb[9].mxu1  ;;  %v1177_v10 = vadd.f32 %v2027_v16, %v772_v4  ;;  %v1179_v11 = vadd.f32 %v2029_v17, %v885_v5 }
 0x132   : > { %v776_v8 = vpop.f32.mrb[10].mxu0  ;;  %v889_v9 = vpop.f32.mrb[10].mxu1  ;;  %v1178_v14 = vadd.f32 %v2031_v20, %v774_v6  ;;  %v1180_v15 = vadd.f32 %v2033_v21, %v887_v7 }
 0x133   : > { %v778_v12 = vpop.f32.mrb[11].mxu0  ;;  %v891_v13 = vpop.f32.mrb[11].mxu1  ;;  %v1241_v18 = vmax.f32 %v1177_v10, 0.0  ;;  %v1243_v19 = vmax.f32 %v1179_v11, 0.0  ;;  %v1181_v22 = vadd.f32 %v2027_v16, %v776_v8  ;;  %v1183_v23 = vadd.f32 %v2029_v17, %v889_v9 }
 0x134   : > { %v1242_v24 = vmax.f32 %v1178_v14, 0.0  ;;  %v1244_v25 = vmax.f32 %v1180_v15, 0.0  ;;  %v1182_v26 = vadd.f32 %v2031_v20, %v778_v12  ;;  %v1184_v27 = vadd.f32 %v2033_v21, %v891_v13 }
 0x135   : > { %1305 = vst [vmem:[%s2045_s12 + $0x80] sm:$0xff] %v1241_v18  ;;  %1307 = vst [vmem:[%s2045_s12 + $0x90] sm:$0xff] %v1243_v19  ;;  %v1245_v28 = vmax.f32 %v1181_v22, 0.0  ;;  %v1247_v29 = vmax.f32 %v1183_v23, 0.0 }
 0x136   : > { %1306 = vst [vmem:[%s2045_s12 + $0x88] sm:$0xff] %v1242_v24  ;;  %1308 = vst [vmem:[%s2045_s12 + $0x98] sm:$0xff] %v1244_v25  ;;  %v1246_v30 = vmax.f32 %v1182_v26, 0.0  ;;  %v1248_v31 = vmax.f32 %v1184_v27, 0.0 }
 0x137   : > { %1309 = vst [vmem:[%s2045_s12 + $0xa0] sm:$0xff] %v1245_v28  ;;  %1311 = vst [vmem:[%s2045_s12 + $0xb0] sm:$0xff] %v1247_v29 }
 0x138   : > { %v782_v32 = vpop.f32.mrb[12].mxu0  ;;  %v895_v33 = vpop.f32.mrb[12].mxu1  ;;  %1310 = vst [vmem:[%s2045_s12 + $0xa8] sm:$0xff] %v1246_v30  ;;  %1312 = vst [vmem:[%s2045_s12 + $0xb8] sm:$0xff] %v1248_v31 }
 0x139   : > { %v784_v34 = vpop.f32.mrb[13].mxu0  ;;  %v897_v35 = vpop.f32.mrb[13].mxu1  ;;  %v1185_v38 = vadd.f32 %v2027_v16, %v782_v32  ;;  %v1187_v39 = vadd.f32 %v2029_v17, %v895_v33 }
 0x13a   : > { %v786_v36 = vpop.f32.mrb[14].mxu0  ;;  %v899_v37 = vpop.f32.mrb[14].mxu1  ;;  %v1186_v42 = vadd.f32 %v2031_v20, %v784_v34  ;;  %v1188_v43 = vadd.f32 %v2033_v21, %v897_v35 }
 0x13b   : > { %v788_v40 = vpop.f32.mrb[15].mxu0  ;;  %v901_v41 = vpop.f32.mrb[15].mxu1  ;;  %v1249_v44 = vmax.f32 %v1185_v38, 0.0  ;;  %v1251_v45 = vmax.f32 %v1187_v39, 0.0  ;;  %v1189_v46 = vadd.f32 %v2027_v16, %v786_v36  ;;  %v1191_v47 = vadd.f32 %v2029_v17, %v899_v37 }
 0x13c   : > { %v1250_v48 = vmax.f32 %v1186_v42, 0.0  ;;  %v1252_v49 = vmax.f32 %v1188_v43, 0.0  ;;  %v1190_v50 = vadd.f32 %v2031_v20, %v788_v40  ;;  %v1192_v51 = vadd.f32 %v2033_v21, %v901_v41 }
 0x13d   : > { %1313 = vst [vmem:[%s2045_s12 + $0xc0] sm:$0xff] %v1249_v44  ;;  %1315 = vst [vmem:[%s2045_s12 + $0xd0] sm:$0xff] %v1251_v45  ;;  %v1253_v52 = vmax.f32 %v1189_v46, 0.0  ;;  %v1255_v53 = vmax.f32 %v1191_v47, 0.0 }
 0x13e   : > { %1314 = vst [vmem:[%s2045_s12 + $0xc8] sm:$0xff] %v1250_v48  ;;  %1316 = vst [vmem:[%s2045_s12 + $0xd8] sm:$0xff] %v1252_v49  ;;  %v1254_v54 = vmax.f32 %v1190_v50, 0.0  ;;  %v1256_v55 = vmax.f32 %v1192_v51, 0.0 }
 0x13f   : > { %1317 = vst [vmem:[%s2045_s12 + $0xe0] sm:$0xff] %v1253_v52  ;;  %1319 = vst [vmem:[%s2045_s12 + $0xf0] sm:$0xff] %v1255_v53 }
 0x140   : > { %v792_v56 = vpop.f32.mrb[16].mxu0  ;;  %v905_v57 = vpop.f32.mrb[16].mxu1  ;;  %1318 = vst [vmem:[%s2045_s12 + $0xe8] sm:$0xff] %v1254_v54  ;;  %1320 = vst [vmem:[%s2045_s12 + $0xf8] sm:$0xff] %v1256_v55 }
 0x141   : > { %v794_v58 = vpop.f32.mrb[17].mxu0  ;;  %v907_v59 = vpop.f32.mrb[17].mxu1  ;;  %v1193_v62 = vadd.f32 %v2027_v16, %v792_v56  ;;  %v1195_v63 = vadd.f32 %v2029_v17, %v905_v57 }
 0x142   : > { %v796_v60 = vpop.f32.mrb[18].mxu0  ;;  %v909_v61 = vpop.f32.mrb[18].mxu1  ;;  %v1194_v2 = vadd.f32 %v2031_v20, %v794_v58  ;;  %v1196_v3 = vadd.f32 %v2033_v21, %v907_v59 }
 0x143   : > { %v798_v0 = vpop.f32.mrb[19].mxu0  ;;  %v911_v1 = vpop.f32.mrb[19].mxu1  ;;  %v1257_v4 = vmax.f32 %v1193_v62, 0.0  ;;  %v1259_v5 = vmax.f32 %v1195_v63, 0.0  ;;  %v1197_v6 = vadd.f32 %v2027_v16, %v796_v60  ;;  %v1199_v7 = vadd.f32 %v2029_v17, %v909_v61 }
 0x144   : > { %v1258_v8 = vmax.f32 %v1194_v2, 0.0  ;;  %v1260_v9 = vmax.f32 %v1196_v3, 0.0  ;;  %v1198_v10 = vadd.f32 %v2031_v20, %v798_v0  ;;  %v1200_v11 = vadd.f32 %v2033_v21, %v911_v1 }
 0x145   : > { %1321 = vst [vmem:[%s2045_s12 + $0x100] sm:$0xff] %v1257_v4  ;;  %1323 = vst [vmem:[%s2045_s12 + $0x110] sm:$0xff] %v1259_v5  ;;  %v1261_v12 = vmax.f32 %v1197_v6, 0.0  ;;  %v1263_v13 = vmax.f32 %v1199_v7, 0.0 }
 0x146   : > { %1322 = vst [vmem:[%s2045_s12 + $0x108] sm:$0xff] %v1258_v8  ;;  %1324 = vst [vmem:[%s2045_s12 + $0x118] sm:$0xff] %v1260_v9  ;;  %v1262_v14 = vmax.f32 %v1198_v10, 0.0  ;;  %v1264_v15 = vmax.f32 %v1200_v11, 0.0 }
 0x147   : > { %1325 = vst [vmem:[%s2045_s12 + $0x120] sm:$0xff] %v1261_v12  ;;  %1327 = vst [vmem:[%s2045_s12 + $0x130] sm:$0xff] %v1263_v13 }
 0x148   : > { %v802_v18 = vpop.f32.mrb[20].mxu0  ;;  %v915_v19 = vpop.f32.mrb[20].mxu1  ;;  %1326 = vst [vmem:[%s2045_s12 + $0x128] sm:$0xff] %v1262_v14  ;;  %1328 = vst [vmem:[%s2045_s12 + $0x138] sm:$0xff] %v1264_v15 }
 0x149   : > { %v804_v22 = vpop.f32.mrb[21].mxu0  ;;  %v917_v23 = vpop.f32.mrb[21].mxu1  ;;  %v1201_v26 = vadd.f32 %v2027_v16, %v802_v18  ;;  %v1203_v27 = vadd.f32 %v2029_v17, %v915_v19 }
 0x14a   : > { %v806_v24 = vpop.f32.mrb[22].mxu0  ;;  %v919_v25 = vpop.f32.mrb[22].mxu1  ;;  %v1202_v30 = vadd.f32 %v2031_v20, %v804_v22  ;;  %v1204_v31 = vadd.f32 %v2033_v21, %v917_v23 }
 0x14b   : > { %v808_v28 = vpop.f32.mrb[23].mxu0  ;;  %v921_v29 = vpop.f32.mrb[23].mxu1  ;;  %v1265_v32 = vmax.f32 %v1201_v26, 0.0  ;;  %v1267_v33 = vmax.f32 %v1203_v27, 0.0  ;;  %v1205_v34 = vadd.f32 %v2027_v16, %v806_v24  ;;  %v1207_v35 = vadd.f32 %v2029_v17, %v919_v25 }
 0x14c   : > { %v1266_v36 = vmax.f32 %v1202_v30, 0.0  ;;  %v1268_v37 = vmax.f32 %v1204_v31, 0.0  ;;  %v1206_v38 = vadd.f32 %v2031_v20, %v808_v28  ;;  %v1208_v39 = vadd.f32 %v2033_v21, %v921_v29 }
 0x14d   : > { %1329 = vst [vmem:[%s2045_s12 + $0x140] sm:$0xff] %v1265_v32  ;;  %1331 = vst [vmem:[%s2045_s12 + $0x150] sm:$0xff] %v1267_v33  ;;  %v1269_v40 = vmax.f32 %v1205_v34, 0.0  ;;  %v1271_v41 = vmax.f32 %v1207_v35, 0.0  ;;  %v1386_v32 = vld [vmem:[%s2045_s12 + $0x20] sm:$0xff] (%p1863_p6)  ;;  %v1388_v33 = vld [vmem:[%s2045_s12 + $0x28] sm:$0xff] (%p1863_p6) }
 0x14e   : > { %1330 = vst [vmem:[%s2045_s12 + $0x148] sm:$0xff] %v1266_v36  ;;  %1332 = vst [vmem:[%s2045_s12 + $0x158] sm:$0xff] %v1268_v37  ;;  %v1270_v42 = vmax.f32 %v1206_v38, 0.0  ;;  %v1272_v43 = vmax.f32 %v1208_v39, 0.0  ;;  %v1390_v34 = vld [vmem:[%s2045_s12 + $0x30] sm:$0xff] (%p1863_p6)  ;;  %v1392_v35 = vld [vmem:[%s2045_s12 + $0x38] sm:$0xff] (%p1863_p6) }
 0x14f   : > { %1333 = vst [vmem:[%s2045_s12 + $0x160] sm:$0xff] %v1269_v40  ;;  %1335 = vst [vmem:[%s2045_s12 + $0x170] sm:$0xff] %v1271_v41  ;;  %v1394_v36 = vld [vmem:[%s2045_s12 + $0x40] sm:$0xff] (%p1863_p6)  ;;  %v1396_v37 = vld [vmem:[%s2045_s12 + $0x48] sm:$0xff] (%p1863_p6) }
 0x150   : > { %v812_v44 = vpop.f32.mrb[24].mxu0  ;;  %v925_v45 = vpop.f32.mrb[24].mxu1  ;;  %1334 = vst [vmem:[%s2045_s12 + $0x168] sm:$0xff] %v1270_v42  ;;  %1336 = vst [vmem:[%s2045_s12 + $0x178] sm:$0xff] %v1272_v43  ;;  %v1398_v38 = vld [vmem:[%s2045_s12 + $0x50] sm:$0xff] (%p1863_p6)  ;;  %v1400_v39 = vld [vmem:[%s2045_s12 + $0x58] sm:$0xff] (%p1863_p6) }
 0x151   : > { %v814_v46 = vpop.f32.mrb[25].mxu0  ;;  %v927_v47 = vpop.f32.mrb[25].mxu1  ;;  %v1209_v50 = vadd.f32 %v2027_v16, %v812_v44  ;;  %v1211_v51 = vadd.f32 %v2029_v17, %v925_v45  ;;  %1387 = vst [vmem:[%s2176_s11 + $0x80] sm:$0xff] (%p1863_p6), %v1386_v32  ;;  %1389 = vst [vmem:[%s2176_s11 + $0x88] sm:$0xff] (%p1863_p6), %v1388_v33  ;;  %v1402_v40 = vld [vmem:[%s2045_s12 + $0x60] sm:$0xff] (%p1863_p6)  ;;  %v1404_v41 = vld [vmem:[%s2045_s12 + $0x68] sm:$0xff] (%p1863_p6) }
 0x152   : > { %v816_v48 = vpop.f32.mrb[26].mxu0  ;;  %v929_v49 = vpop.f32.mrb[26].mxu1  ;;  %v1210_v54 = vadd.f32 %v2031_v20, %v814_v46  ;;  %v1212_v55 = vadd.f32 %v2033_v21, %v927_v47  ;;  %1391 = vst [vmem:[%s2176_s11 + $0x90] sm:$0xff] (%p1863_p6), %v1390_v34  ;;  %1393 = vst [vmem:[%s2176_s11 + $0x98] sm:$0xff] (%p1863_p6), %v1392_v35  ;;  %v1406_v42 = vld [vmem:[%s2045_s12 + $0x70] sm:$0xff] (%p1863_p6)  ;;  %v1408_v43 = vld [vmem:[%s2045_s12 + $0x78] sm:$0xff] (%p1863_p6) }
 0x153   : > { %v818_v52 = vpop.f32.mrb[27].mxu0  ;;  %v931_v53 = vpop.f32.mrb[27].mxu1  ;;  %v1273_v56 = vmax.f32 %v1209_v50, 0.0  ;;  %v1275_v57 = vmax.f32 %v1211_v51, 0.0  ;;  %v1213_v58 = vadd.f32 %v2027_v16, %v816_v48  ;;  %v1215_v59 = vadd.f32 %v2029_v17, %v929_v49  ;;  %1395 = vst [vmem:[%s2176_s11 + $0x100] sm:$0xff] (%p1863_p6), %v1394_v36  ;;  %1397 = vst [vmem:[%s2176_s11 + $0x108] sm:$0xff] (%p1863_p6), %v1396_v37 }
 0x154   : > { %v1274_v60 = vmax.f32 %v1210_v54, 0.0  ;;  %v1276_v61 = vmax.f32 %v1212_v55, 0.0  ;;  %v1214_v62 = vadd.f32 %v2031_v20, %v818_v52  ;;  %v1216_v63 = vadd.f32 %v2033_v21, %v931_v53  ;;  %1399 = vst [vmem:[%s2176_s11 + $0x110] sm:$0xff] (%p1863_p6), %v1398_v38  ;;  %1401 = vst [vmem:[%s2176_s11 + $0x118] sm:$0xff] (%p1863_p6), %v1400_v39  ;;  %v1410_v44 = vld [vmem:[%s2045_s12 + $0x80] sm:$0xff] (%p1863_p6)  ;;  %v1412_v45 = vld [vmem:[%s2045_s12 + $0x88] sm:$0xff] (%p1863_p6) }
 0x155   : > { %1337 = vst [vmem:[%s2045_s12 + $0x180] sm:$0xff] %v1273_v56  ;;  %1339 = vst [vmem:[%s2045_s12 + $0x190] sm:$0xff] %v1275_v57  ;;  %v1277_v0 = vmax.f32 %v1213_v58, 0.0  ;;  %v1279_v1 = vmax.f32 %v1215_v59, 0.0  ;;  %v1414_v46 = vld [vmem:[%s2045_s12 + $0x90] sm:$0xff] (%p1863_p6)  ;;  %v1416_v47 = vld [vmem:[%s2045_s12 + $0x98] sm:$0xff] (%p1863_p6) }
 0x156   : > { %1338 = vst [vmem:[%s2045_s12 + $0x188] sm:$0xff] %v1274_v60  ;;  %1340 = vst [vmem:[%s2045_s12 + $0x198] sm:$0xff] %v1276_v61  ;;  %v1278_v2 = vmax.f32 %v1214_v62, 0.0  ;;  %v1280_v3 = vmax.f32 %v1216_v63, 0.0  ;;  %v1418_v48 = vld [vmem:[%s2045_s12 + $0xa0] sm:$0xff] (%p1863_p6)  ;;  %v1420_v49 = vld [vmem:[%s2045_s12 + $0xa8] sm:$0xff] (%p1863_p6) }
 0x157   : > { %1341 = vst [vmem:[%s2045_s12 + $0x1a0] sm:$0xff] %v1277_v0  ;;  %1343 = vst [vmem:[%s2045_s12 + $0x1b0] sm:$0xff] %v1279_v1  ;;  %v1422_v50 = vld [vmem:[%s2045_s12 + $0xb0] sm:$0xff] (%p1863_p6)  ;;  %v1424_v51 = vld [vmem:[%s2045_s12 + $0xb8] sm:$0xff] (%p1863_p6) }
 0x158   : > { %v822_v4 = vpop.f32.mrb[28].mxu0  ;;  %v935_v5 = vpop.f32.mrb[28].mxu1  ;;  %1342 = vst [vmem:[%s2045_s12 + $0x1a8] sm:$0xff] %v1278_v2  ;;  %1344 = vst [vmem:[%s2045_s12 + $0x1b8] sm:$0xff] %v1280_v3  ;;  %v1426_v52 = vld [vmem:[%s2045_s12 + $0xc0] sm:$0xff] (%p1863_p6)  ;;  %v1428_v53 = vld [vmem:[%s2045_s12 + $0xc8] sm:$0xff] (%p1863_p6) }
 0x159   : > { %v824_v6 = vpop.f32.mrb[29].mxu0  ;;  %v937_v7 = vpop.f32.mrb[29].mxu1  ;;  %v1217_v10 = vadd.f32 %v2027_v16, %v822_v4  ;;  %v1219_v11 = vadd.f32 %v2029_v17, %v935_v5  ;;  %1403 = vst [vmem:[%s2176_s11 + $0x180] sm:$0xff] (%p1863_p6), %v1402_v40  ;;  %1405 = vst [vmem:[%s2176_s11 + $0x188] sm:$0xff] (%p1863_p6), %v1404_v41  ;;  %v1430_v54 = vld [vmem:[%s2045_s12 + $0xd0] sm:$0xff] (%p1863_p6)  ;;  %v1432_v55 = vld [vmem:[%s2045_s12 + $0xd8] sm:$0xff] (%p1863_p6) }
 0x15a   : > { %v826_v8 = vpop.f32.mrb[30].mxu0  ;;  %v939_v9 = vpop.f32.mrb[30].mxu1  ;;  %v1218_v14 = vadd.f32 %v2031_v20, %v824_v6  ;;  %v1220_v15 = vadd.f32 %v2033_v21, %v937_v7  ;;  %1359 = sbr.rel (!%p1863_p6) target bundleno = 378 (0x17a), region = 67  ;;  %1407 = vst [vmem:[%s2176_s11 + $0x190] sm:$0xff] (%p1863_p6), %v1406_v42  ;;  %1409 = vst [vmem:[%s2176_s11 + $0x198] sm:$0xff] (%p1863_p6), %v1408_v43  ;;  %v1434_v56 = vld [vmem:[%s2045_s12 + $0xe0] sm:$0xff] (%p1863_p6) }
 0x15b   : > { %v828_v12 = vpop.f32.mrb[31].mxu0  ;;  %v941_v13 = vpop.f32.mrb[31].mxu1  ;;  %v1281_v18 = vmax.f32 %v1217_v10, 0.0  ;;  %v1283_v19 = vmax.f32 %v1219_v11, 0.0  ;;  %v1221_v22 = vadd.f32 %v2027_v16, %v826_v8  ;;  %v1223_v23 = vadd.f32 %v2029_v17, %v939_v9  ;;  %v1378_v16 = vld [vmem:[%s2045_s12] sm:$0xff] (%p1863_p6)  ;;  %v1380_v17 = vld [vmem:[%s2045_s12 + $0x8] sm:$0xff] (%p1863_p6) }
 0x15c   : > { %v1282_v24 = vmax.f32 %v1218_v14, 0.0  ;;  %v1284_v25 = vmax.f32 %v1220_v15, 0.0  ;;  %v1222_v26 = vadd.f32 %v2031_v20, %v828_v12  ;;  %v1224_v27 = vadd.f32 %v2033_v21, %v941_v13  ;;  %v1382_v20 = vld [vmem:[%s2045_s12 + $0x10] sm:$0xff] (%p1863_p6)  ;;  %v1384_v21 = vld [vmem:[%s2045_s12 + $0x18] sm:$0xff] (%p1863_p6)  ;;  %1379 = vst [vmem:[%s2176_s11] sm:$0xff] (%p1863_p6), %v1378_v16  ;;  %1381 = vst [vmem:[%s2176_s11 + $0x8] sm:$0xff] (%p1863_p6), %v1380_v17 }
 0x15d   : > { %1345 = vst [vmem:[%s2045_s12 + $0x1c0] sm:$0xff] %v1281_v18  ;;  %1347 = vst [vmem:[%s2045_s12 + $0x1d0] sm:$0xff] %v1283_v19  ;;  %v1285_v28 = vmax.f32 %v1221_v22, 0.0  ;;  %v1287_v29 = vmax.f32 %v1223_v23, 0.0  ;;  %v1436_v57 = vld [vmem:[%s2045_s12 + $0xe8] sm:$0xff] (%p1863_p6)  ;;  %v1438_v58 = vld [vmem:[%s2045_s12 + $0xf0] sm:$0xff] (%p1863_p6) }
 0x15e   : > { %1346 = vst [vmem:[%s2045_s12 + $0x1c8] sm:$0xff] %v1282_v24  ;;  %1348 = vst [vmem:[%s2045_s12 + $0x1d8] sm:$0xff] %v1284_v25  ;;  %v1286_v30 = vmax.f32 %v1222_v26, 0.0  ;;  %v1288_v31 = vmax.f32 %v1224_v27, 0.0  ;;  %v1440_v59 = vld [vmem:[%s2045_s12 + $0xf8] sm:$0xff] (%p1863_p6)  ;;  %v1442_v60 = vld [vmem:[%s2045_s12 + $0x100] sm:$0xff] (%p1863_p6) }
 0x15f   : > { %1349 = vst [vmem:[%s2045_s12 + $0x1e0] sm:$0xff] %v1285_v28  ;;  %1351 = vst [vmem:[%s2045_s12 + $0x1f0] sm:$0xff] %v1287_v29  ;;  %v1444_v61 = vld [vmem:[%s2045_s12 + $0x108] sm:$0xff] (%p1863_p6)  ;;  %v1446_v62 = vld [vmem:[%s2045_s12 + $0x110] sm:$0xff] (%p1863_p6) }
 0x160   : > { %1350 = vst [vmem:[%s2045_s12 + $0x1e8] sm:$0xff] %v1286_v30  ;;  %1352 = vst [vmem:[%s2045_s12 + $0x1f8] sm:$0xff] %v1288_v31  ;;  %v1448_v63 = vld [vmem:[%s2045_s12 + $0x118] sm:$0xff] (%p1863_p6)  ;;  %v1450_v0 = vld [vmem:[%s2045_s12 + $0x120] sm:$0xff] (%p1863_p6) }
 0x161   : > { %1383 = vst [vmem:[%s2176_s11 + $0x10] sm:$0xff] %v1382_v20  ;;  %1385 = vst [vmem:[%s2176_s11 + $0x18] sm:$0xff] %v1384_v21  ;;  %v1452_v1 = vld [vmem:[%s2045_s12 + $0x128] sm:$0xff]  ;;  %v1454_v2 = vld [vmem:[%s2045_s12 + $0x130] sm:$0xff] }
 0x162   : > { %1411 = vst [vmem:[%s2176_s11 + $0x200] sm:$0xff] %v1410_v44  ;;  %1413 = vst [vmem:[%s2176_s11 + $0x208] sm:$0xff] %v1412_v45  ;;  %v1456_v3 = vld [vmem:[%s2045_s12 + $0x138] sm:$0xff]  ;;  %v1458_v4 = vld [vmem:[%s2045_s12 + $0x140] sm:$0xff] }
 0x163   : > { %1415 = vst [vmem:[%s2176_s11 + $0x210] sm:$0xff] %v1414_v46  ;;  %1417 = vst [vmem:[%s2176_s11 + $0x218] sm:$0xff] %v1416_v47  ;;  %v1460_v5 = vld [vmem:[%s2045_s12 + $0x148] sm:$0xff]  ;;  %v1462_v6 = vld [vmem:[%s2045_s12 + $0x150] sm:$0xff] }
 0x164   : > { %1419 = vst [vmem:[%s2176_s11 + $0x280] sm:$0xff] %v1418_v48  ;;  %1421 = vst [vmem:[%s2176_s11 + $0x288] sm:$0xff] %v1420_v49  ;;  %v1464_v7 = vld [vmem:[%s2045_s12 + $0x158] sm:$0xff]  ;;  %v1466_v8 = vld [vmem:[%s2045_s12 + $0x160] sm:$0xff] }
 0x165   : > { %1423 = vst [vmem:[%s2176_s11 + $0x290] sm:$0xff] %v1422_v50  ;;  %1425 = vst [vmem:[%s2176_s11 + $0x298] sm:$0xff] %v1424_v51  ;;  %v1468_v9 = vld [vmem:[%s2045_s12 + $0x168] sm:$0xff]  ;;  %v1470_v10 = vld [vmem:[%s2045_s12 + $0x170] sm:$0xff] }
 0x166   : > { %1427 = vst [vmem:[%s2176_s11 + $0x300] sm:$0xff] %v1426_v52  ;;  %1429 = vst [vmem:[%s2176_s11 + $0x308] sm:$0xff] %v1428_v53  ;;  %v1472_v11 = vld [vmem:[%s2045_s12 + $0x178] sm:$0xff]  ;;  %v1474_v12 = vld [vmem:[%s2045_s12 + $0x180] sm:$0xff] }
 0x167   : > { %1431 = vst [vmem:[%s2176_s11 + $0x310] sm:$0xff] %v1430_v54  ;;  %1433 = vst [vmem:[%s2176_s11 + $0x318] sm:$0xff] %v1432_v55  ;;  %v1476_v13 = vld [vmem:[%s2045_s12 + $0x188] sm:$0xff]  ;;  %v1478_v14 = vld [vmem:[%s2045_s12 + $0x190] sm:$0xff] }
 0x168   : > { %1435 = vst [vmem:[%s2176_s11 + $0x380] sm:$0xff] %v1434_v56  ;;  %1437 = vst [vmem:[%s2176_s11 + $0x388] sm:$0xff] %v1436_v57  ;;  %v1480_v15 = vld [vmem:[%s2045_s12 + $0x198] sm:$0xff]  ;;  %v1482_v18 = vld [vmem:[%s2045_s12 + $0x1a0] sm:$0xff] }
 0x169   : > { %1439 = vst [vmem:[%s2176_s11 + $0x390] sm:$0xff] %v1438_v58  ;;  %1441 = vst [vmem:[%s2176_s11 + $0x398] sm:$0xff] %v1440_v59  ;;  %v1484_v19 = vld [vmem:[%s2045_s12 + $0x1a8] sm:$0xff]  ;;  %v1486_v22 = vld [vmem:[%s2045_s12 + $0x1b0] sm:$0xff] }
 0x16a   : > { %1443 = vst [vmem:[%s2176_s11 + $0x400] sm:$0xff] %v1442_v60  ;;  %1445 = vst [vmem:[%s2176_s11 + $0x408] sm:$0xff] %v1444_v61  ;;  %v1488_v23 = vld [vmem:[%s2045_s12 + $0x1b8] sm:$0xff]  ;;  %v1490_v24 = vld [vmem:[%s2045_s12 + $0x1c0] sm:$0xff] }
 0x16b   : > { %1447 = vst [vmem:[%s2176_s11 + $0x410] sm:$0xff] %v1446_v62  ;;  %1449 = vst [vmem:[%s2176_s11 + $0x418] sm:$0xff] %v1448_v63  ;;  %v1492_v25 = vld [vmem:[%s2045_s12 + $0x1c8] sm:$0xff]  ;;  %v1494_v26 = vld [vmem:[%s2045_s12 + $0x1d0] sm:$0xff] }
 0x16c   : > { %1451 = vst [vmem:[%s2176_s11 + $0x480] sm:$0xff] %v1450_v0  ;;  %1453 = vst [vmem:[%s2176_s11 + $0x488] sm:$0xff] %v1452_v1  ;;  %v1496_v27 = vld [vmem:[%s2045_s12 + $0x1d8] sm:$0xff]  ;;  %v1498_v28 = vld [vmem:[%s2045_s12 + $0x1e0] sm:$0xff] }
 0x16d   : > { %1455 = vst [vmem:[%s2176_s11 + $0x490] sm:$0xff] %v1454_v2  ;;  %1457 = vst [vmem:[%s2176_s11 + $0x498] sm:$0xff] %v1456_v3  ;;  %v1500_v29 = vld [vmem:[%s2045_s12 + $0x1e8] sm:$0xff]  ;;  %v1502_v30 = vld [vmem:[%s2045_s12 + $0x1f0] sm:$0xff] }
 0x16e   : > { %1459 = vst [vmem:[%s2176_s11 + $0x500] sm:$0xff] %v1458_v4  ;;  %1461 = vst [vmem:[%s2176_s11 + $0x508] sm:$0xff] %v1460_v5  ;;  %v1504_v31 = vld [vmem:[%s2045_s12 + $0x1f8] sm:$0xff] }
 0x16f   : > { %1463 = vst [vmem:[%s2176_s11 + $0x510] sm:$0xff] %v1462_v6  ;;  %1465 = vst [vmem:[%s2176_s11 + $0x518] sm:$0xff] %v1464_v7 }
 0x170   : > { %1467 = vst [vmem:[%s2176_s11 + $0x580] sm:$0xff] %v1466_v8  ;;  %1469 = vst [vmem:[%s2176_s11 + $0x588] sm:$0xff] %v1468_v9 }
 0x171   : > { %1471 = vst [vmem:[%s2176_s11 + $0x590] sm:$0xff] %v1470_v10  ;;  %1473 = vst [vmem:[%s2176_s11 + $0x598] sm:$0xff] %v1472_v11 }
 0x172   : > { %1475 = vst [vmem:[%s2176_s11 + $0x600] sm:$0xff] %v1474_v12  ;;  %1477 = vst [vmem:[%s2176_s11 + $0x608] sm:$0xff] %v1476_v13 }
 0x173   : > { %1479 = vst [vmem:[%s2176_s11 + $0x610] sm:$0xff] %v1478_v14  ;;  %1481 = vst [vmem:[%s2176_s11 + $0x618] sm:$0xff] %v1480_v15 }
 0x174   : > { %1483 = vst [vmem:[%s2176_s11 + $0x680] sm:$0xff] %v1482_v18  ;;  %1485 = vst [vmem:[%s2176_s11 + $0x688] sm:$0xff] %v1484_v19 }
 0x175   : > { %1487 = vst [vmem:[%s2176_s11 + $0x690] sm:$0xff] %v1486_v22  ;;  %1489 = vst [vmem:[%s2176_s11 + $0x698] sm:$0xff] %v1488_v23 }
 0x176   : > { %1491 = vst [vmem:[%s2176_s11 + $0x700] sm:$0xff] %v1490_v24  ;;  %1493 = vst [vmem:[%s2176_s11 + $0x708] sm:$0xff] %v1492_v25 }
 0x177   : > { %1495 = vst [vmem:[%s2176_s11 + $0x710] sm:$0xff] %v1494_v26  ;;  %1497 = vst [vmem:[%s2176_s11 + $0x718] sm:$0xff] %v1496_v27 }
 0x178   : > { %1499 = vst [vmem:[%s2176_s11 + $0x780] sm:$0xff] %v1498_v28  ;;  %1501 = vst [vmem:[%s2176_s11 + $0x788] sm:$0xff] %v1500_v29 }
 0x179   : > { %1503 = vst [vmem:[%s2176_s11 + $0x790] sm:$0xff] %v1502_v30  ;;  %1505 = vst [vmem:[%s2176_s11 + $0x798] sm:$0xff] %v1504_v31 }
 0x17a PF: > { %s13_s16 = sadd.s32 1, %s1805_s16   ;;  %s2323_s12 = smov %s1793_s13 }
 0x17b   : > { %p10_p12 = scmp.ge.s32.totalorder %s13_s16, 6   ;;  %s2324_s13 = smov %s1868_s22 }
 0x17c   : > { %s2325_s14 = smov %s1801_s15  ;;  %s2326_s15 = smov %s2328_s17 }
 0x17d   :  { %12 = sbr.rel (!%p10_p12) target bundleno = 3 (0x3), region = 127 }

// kernel: psp_bilinear_forward.5
= control target key start
LH: loop header
LB: loop body
LE: loop exit
PB: predicated region body
PF: predicated region fallthrough
CT: control target
= control target key end

     0   :  { %s2331_s6 = smov 0   ;;  %s3813_s0 = inlined_call_operand.vmem [shape: f32[2048,128], index: 0, kind: input, shape index: {}]   ;;  %s3814_s1 = inlined_call_operand.vmem [shape: f32[2048,128], index: 1, kind: output, shape index: {}]  }
   0x1 LB: > { %s1712_s7 = sadd.s32 4294967295, %s2319_s6   ;;  %p1716_p0 = scmp.ge.s32.totalorder %s2319_s6, 1  ;;  %s2319_s6 = sphi %s2331_s6, %s11_s6  }
   0x2   : > { %p88_p1 = scmp.lt.s32.totalorder %s2319_s6, 3 }
   0x4   : > { %p89_p2 = pnand %p1716_p0, %p88_p1 }
   0x6   : > { %92 = sbr.rel (%p89_p2) target bundleno = 687 (0x2af), region = 24 }
   0xd   : > { %s1717_s8 = sshll.u32 %s1712_s7, 7 }
   0xe   : > { %p109_p3 = scmp.lt.s32.totalorder %s1717_s8, 255 }
  0x10   : > { %s4195_s8 = smov (!%p109_p3, %s1717_s8), 255 }
  0x11   : > { %s1718_s9 = sshll.u32 %s4195_s8, 3 }
  0x12   : > { %s2347_s12 = scalar_lea.vmem %s3813_s0, %s1718_s9  ;;  %s3350_s15 = scalar_lea.vmem %s3814_s1, %s1718_s9 }
  0x13   : > { %v2350_v0 = vld [vmem:[%s2347_s12 + $0x10] sm:$0xff]  ;;  %v2353_v1 = vld [vmem:[%s2347_s12] sm:$0xff]  ;;  %v2358_v2 = vld [vmem:[%s2347_s12 + $0x18] sm:$0xff] }
  0x14   : > { %252 = vmax.xlane.f32.xlu1 %v2350_v0  ;;  %248 = vmax.xlane.f32.xlu0 %v2353_v1  ;;  %v2361_v3 = vld [vmem:[%s2347_s12 + $0x8] sm:$0xff]  ;;  %v2369_v5 = vld [vmem:[%s2347_s12 + $0x20] sm:$0xff]  ;;  %v2374_v6 = vld [vmem:[%s2347_s12 + $0x38] sm:$0xff] }
  0x15   : > { %v2366_v4 = vld [vmem:[%s2347_s12 + $0x28] sm:$0xff]  ;;  %v2377_v7 = vld [vmem:[%s2347_s12 + $0x30] sm:$0xff]  ;;  %v2385_v9 = vld [vmem:[%s2347_s12 + $0x40] sm:$0xff] }
  0x16   : > { %v2382_v8 = vld [vmem:[%s2347_s12 + $0x48] sm:$0xff]  ;;  %v2390_v10 = vld [vmem:[%s2347_s12 + $0x58] sm:$0xff]  ;;  %v2393_v11 = vld [vmem:[%s2347_s12 + $0x50] sm:$0xff] }
  0x17   : > { %v2398_v12 = vld [vmem:[%s2347_s12 + $0x68] sm:$0xff]  ;;  %v2401_v13 = vld [vmem:[%s2347_s12 + $0x60] sm:$0xff]  ;;  %v2406_v14 = vld [vmem:[%s2347_s12 + $0x78] sm:$0xff] }
  0x18   : > { %254 = vmax.xlane.f32.xlu1 %v2358_v2  ;;  %250 = vmax.xlane.f32.xlu0 %v2361_v3  ;;  %v2409_v15 = vld [vmem:[%s2347_s12 + $0x70] sm:$0xff]  ;;  %v2414_v16 = vld [vmem:[%s2347_s12 + $0x88] sm:$0xff]  ;;  %v2417_v17 = vld [vmem:[%s2347_s12 + $0x80] sm:$0xff] }
  0x19   : > { %v2422_v18 = vld [vmem:[%s2347_s12 + $0x98] sm:$0xff]  ;;  %v2425_v19 = vld [vmem:[%s2347_s12 + $0x90] sm:$0xff]  ;;  %v2430_v20 = vld [vmem:[%s2347_s12 + $0xa8] sm:$0xff] }
  0x1a   : > { %v2433_v21 = vld [vmem:[%s2347_s12 + $0xa0] sm:$0xff]  ;;  %v2438_v22 = vld [vmem:[%s2347_s12 + $0xb8] sm:$0xff]  ;;  %v2441_v23 = vld [vmem:[%s2347_s12 + $0xb0] sm:$0xff] }
  0x1b   : > { %v2446_v24 = vld [vmem:[%s2347_s12 + $0xc8] sm:$0xff]  ;;  %v2449_v25 = vld [vmem:[%s2347_s12 + $0xc0] sm:$0xff]  ;;  %v2454_v26 = vld [vmem:[%s2347_s12 + $0xd8] sm:$0xff] }
  0x1c   : > { %258 = vmax.xlane.f32.xlu1 %v2366_v4  ;;  %256 = vmax.xlane.f32.xlu0 %v2369_v5  ;;  %v2457_v27 = vld [vmem:[%s2347_s12 + $0xd0] sm:$0xff]  ;;  %v2462_v28 = vld [vmem:[%s2347_s12 + $0xe8] sm:$0xff]  ;;  %v2465_v29 = vld [vmem:[%s2347_s12 + $0xe0] sm:$0xff] }
  0x1d   : > { %3926 = vst [vmem:[#allocation2_spill] sm:$0xff] %v2457_v27  ;;  %3927 = vst [vmem:[#allocation3_spill] sm:$0xff] %v2462_v28  ;;  %v2470_v30 = vld [vmem:[%s2347_s12 + $0xf8] sm:$0xff]  ;;  %v2473_v31 = vld [vmem:[%s2347_s12 + $0xf0] sm:$0xff] }
  0x1e   : > { %3928 = vst [vmem:[#allocation4_spill] sm:$0xff] %v2465_v29  ;;  %3929 = vst [vmem:[#allocation5_spill] sm:$0xff] %v2470_v30  ;;  %v2478_v32 = vld [vmem:[%s2347_s12 + $0x108] sm:$0xff]  ;;  %v2481_v33 = vld [vmem:[%s2347_s12 + $0x100] sm:$0xff] }
  0x1f   : > { %3930 = vst [vmem:[#allocation6_spill] sm:$0xff] %v2473_v31  ;;  %3931 = vst [vmem:[#allocation7_spill] sm:$0xff] %v2478_v32  ;;  %v2486_v34 = vld [vmem:[%s2347_s12 + $0x118] sm:$0xff]  ;;  %v2489_v35 = vld [vmem:[%s2347_s12 + $0x110] sm:$0xff] }
  0x20   : > { %262 = vmax.xlane.f32.xlu1 %v2374_v6  ;;  %260 = vmax.xlane.f32.xlu0 %v2377_v7  ;;  %3932 = vst [vmem:[#allocation8_spill] sm:$0xff] %v2481_v33  ;;  %3933 = vst [vmem:[#allocation9_spill] sm:$0xff] %v2486_v34  ;;  %v2494_v36 = vld [vmem:[%s2347_s12 + $0x128] sm:$0xff]  ;;  %v2497_v37 = vld [vmem:[%s2347_s12 + $0x120] sm:$0xff] }
  0x21   : > { %3934 = vst [vmem:[#allocation10_spill] sm:$0xff] %v2489_v35  ;;  %3935 = vst [vmem:[#allocation11_spill] sm:$0xff] %v2494_v36  ;;  %v2502_v38 = vld [vmem:[%s2347_s12 + $0x138] sm:$0xff]  ;;  %v2505_v39 = vld [vmem:[%s2347_s12 + $0x130] sm:$0xff] }
  0x22   : > { %3936 = vst [vmem:[#allocation12_spill] sm:$0xff] %v2497_v37  ;;  %3937 = vst [vmem:[#allocation13_spill] sm:$0xff] %v2502_v38  ;;  %v2510_v40 = vld [vmem:[%s2347_s12 + $0x148] sm:$0xff]  ;;  %v2513_v41 = vld [vmem:[%s2347_s12 + $0x140] sm:$0xff] }
  0x23   : > { %3938 = vst [vmem:[#allocation14_spill] sm:$0xff] %v2505_v39  ;;  %3939 = vst [vmem:[#allocation15_spill] sm:$0xff] %v2510_v40  ;;  %v2518_v42 = vld [vmem:[%s2347_s12 + $0x158] sm:$0xff]  ;;  %v2521_v43 = vld [vmem:[%s2347_s12 + $0x150] sm:$0xff] }
  0x24   : > { %266 = vmax.xlane.f32.xlu1 %v2382_v8  ;;  %264 = vmax.xlane.f32.xlu0 %v2385_v9  ;;  %3940 = vst [vmem:[#allocation16_spill] sm:$0xff] %v2513_v41  ;;  %3941 = vst [vmem:[#allocation17_spill] sm:$0xff] %v2518_v42  ;;  %v2526_v44 = vld [vmem:[%s2347_s12 + $0x168] sm:$0xff]  ;;  %v2529_v45 = vld [vmem:[%s2347_s12 + $0x160] sm:$0xff] }
  0x25   : > { %3942 = vst [vmem:[#allocation18_spill] sm:$0xff] %v2521_v43  ;;  %3943 = vst [vmem:[#allocation19_spill] sm:$0xff] %v2526_v44  ;;  %v2534_v46 = vld [vmem:[%s2347_s12 + $0x178] sm:$0xff]  ;;  %v2537_v47 = vld [vmem:[%s2347_s12 + $0x170] sm:$0xff] }
  0x26   : > { %3944 = vst [vmem:[#allocation20_spill] sm:$0xff] %v2529_v45  ;;  %3945 = vst [vmem:[#allocation21_spill] sm:$0xff] %v2534_v46  ;;  %v2542_v48 = vld [vmem:[%s2347_s12 + $0x188] sm:$0xff]  ;;  %v2545_v49 = vld [vmem:[%s2347_s12 + $0x180] sm:$0xff] }
  0x27   : > { %3946 = vst [vmem:[#allocation22_spill] sm:$0xff] %v2537_v47  ;;  %3947 = vst [vmem:[#allocation23_spill] sm:$0xff] %v2542_v48  ;;  %v2550_v50 = vld [vmem:[%s2347_s12 + $0x198] sm:$0xff]  ;;  %v2553_v51 = vld [vmem:[%s2347_s12 + $0x190] sm:$0xff] }
  0x28   : > { %270 = vmax.xlane.f32.xlu1 %v2390_v10  ;;  %268 = vmax.xlane.f32.xlu0 %v2393_v11  ;;  %3948 = vst [vmem:[#allocation24_spill] sm:$0xff] %v2545_v49  ;;  %3949 = vst [vmem:[#allocation25_spill] sm:$0xff] %v2550_v50  ;;  %v2558_v52 = vld [vmem:[%s2347_s12 + $0x1a8] sm:$0xff]  ;;  %v2561_v53 = vld [vmem:[%s2347_s12 + $0x1a0] sm:$0xff] }
  0x29   : > { %3950 = vst [vmem:[#allocation26_spill] sm:$0xff] %v2553_v51  ;;  %3951 = vst [vmem:[#allocation27_spill] sm:$0xff] %v2558_v52  ;;  %v2566_v54 = vld [vmem:[%s2347_s12 + $0x1b8] sm:$0xff]  ;;  %v2569_v55 = vld [vmem:[%s2347_s12 + $0x1b0] sm:$0xff] }
  0x2a   : > { %3952 = vst [vmem:[#allocation28_spill] sm:$0xff] %v2561_v53  ;;  %3953 = vst [vmem:[#allocation29_spill] sm:$0xff] %v2566_v54  ;;  %v2574_v56 = vld [vmem:[%s2347_s12 + $0x1c8] sm:$0xff]  ;;  %v2577_v57 = vld [vmem:[%s2347_s12 + $0x1c0] sm:$0xff] }
  0x2b   : > { %3954 = vst [vmem:[#allocation30_spill] sm:$0xff] %v2569_v55  ;;  %3955 = vst [vmem:[#allocation31_spill] sm:$0xff] %v2574_v56  ;;  %v179_v58 = vld [vmem:[%s2347_s12 + $0x1d8] sm:$0xff]  ;;  %v178_v59 = vld [vmem:[%s2347_s12 + $0x1d0] sm:$0xff] }
  0x2c   : > { %274 = vmax.xlane.f32.xlu1 %v2398_v12  ;;  %272 = vmax.xlane.f32.xlu0 %v2401_v13  ;;  %3956 = vst [vmem:[#allocation32_spill] sm:$0xff] %v2577_v57  ;;  %v181_v60 = vld [vmem:[%s2347_s12 + $0x1e8] sm:$0xff]  ;;  %v180_v61 = vld [vmem:[%s2347_s12 + $0x1e0] sm:$0xff]  ;;  %v183_v62 = vld [vmem:[%s2347_s12 + $0x1f8] sm:$0xff] }
  0x2d   : > { %v182_v63 = vld [vmem:[%s2347_s12 + $0x1f0] sm:$0xff] }
  0x30   : > { %278 = vmax.xlane.f32.xlu1 %v2406_v14  ;;  %276 = vmax.xlane.f32.xlu0 %v2409_v15 }
  0x34   : > { %282 = vmax.xlane.f32.xlu1 %v2414_v16  ;;  %280 = vmax.xlane.f32.xlu0 %v2417_v17 }
  0x38   : > { %286 = vmax.xlane.f32.xlu1 %v2422_v18  ;;  %284 = vmax.xlane.f32.xlu0 %v2425_v19 }
  0x3c   : > { %290 = vmax.xlane.f32.xlu1 %v2430_v20  ;;  %288 = vmax.xlane.f32.xlu0 %v2433_v21 }
  0x40   : > { %294 = vmax.xlane.f32.xlu1 %v2438_v22  ;;  %292 = vmax.xlane.f32.xlu0 %v2441_v23 }
  0x44   : > { %298 = vmax.xlane.f32.xlu1 %v2446_v24  ;;  %296 = vmax.xlane.f32.xlu0 %v2449_v25 }
  0x48   : > { %302 = vmax.xlane.f32.xlu1 %v2454_v26  ;;  %300 = vmax.xlane.f32.xlu0 %v2457_v27  ;;  %v223_v27 = vld [vmem:[%s2347_s12 + $0x338] sm:$0xff] }
  0x4c   : > { %306 = vmax.xlane.f32.xlu1 %v2462_v28  ;;  %304 = vmax.xlane.f32.xlu0 %v2465_v29  ;;  %v221_v29 = vld [vmem:[%s2347_s12 + $0x328] sm:$0xff]  ;;  %v220_v28 = vld [vmem:[%s2347_s12 + $0x320] sm:$0xff] }
  0x50   : > { %310 = vmax.xlane.f32.xlu1 %v2470_v30  ;;  %308 = vmax.xlane.f32.xlu0 %v2473_v31  ;;  %v219_v31 = vld [vmem:[%s2347_s12 + $0x318] sm:$0xff]  ;;  %v218_v30 = vld [vmem:[%s2347_s12 + $0x310] sm:$0xff] }
  0x54   : > { %314 = vmax.xlane.f32.xlu1 %v2478_v32  ;;  %312 = vmax.xlane.f32.xlu0 %v2481_v33  ;;  %v217_v33 = vld [vmem:[%s2347_s12 + $0x308] sm:$0xff]  ;;  %v216_v32 = vld [vmem:[%s2347_s12 + $0x300] sm:$0xff] }
  0x58   : > { %318 = vmax.xlane.f32.xlu1 %v2486_v34  ;;  %316 = vmax.xlane.f32.xlu0 %v2489_v35  ;;  %v215_v35 = vld [vmem:[%s2347_s12 + $0x2f8] sm:$0xff]  ;;  %v214_v34 = vld [vmem:[%s2347_s12 + $0x2f0] sm:$0xff] }
  0x5c   : > { %322 = vmax.xlane.f32.xlu1 %v2494_v36  ;;  %320 = vmax.xlane.f32.xlu0 %v2497_v37  ;;  %v213_v37 = vld [vmem:[%s2347_s12 + $0x2e8] sm:$0xff]  ;;  %v212_v36 = vld [vmem:[%s2347_s12 + $0x2e0] sm:$0xff] }
  0x60   : > { %326 = vmax.xlane.f32.xlu1 %v2502_v38  ;;  %324 = vmax.xlane.f32.xlu0 %v2505_v39  ;;  %v211_v39 = vld [vmem:[%s2347_s12 + $0x2d8] sm:$0xff]  ;;  %v210_v38 = vld [vmem:[%s2347_s12 + $0x2d0] sm:$0xff] }
  0x64   : > { %330 = vmax.xlane.f32.xlu1 %v2510_v40  ;;  %328 = vmax.xlane.f32.xlu0 %v2513_v41  ;;  %v209_v41 = vld [vmem:[%s2347_s12 + $0x2c8] sm:$0xff]  ;;  %v208_v40 = vld [vmem:[%s2347_s12 + $0x2c0] sm:$0xff] }
  0x68   : > { %334 = vmax.xlane.f32.xlu1 %v2518_v42  ;;  %332 = vmax.xlane.f32.xlu0 %v2521_v43  ;;  %v207_v43 = vld [vmem:[%s2347_s12 + $0x2b8] sm:$0xff]  ;;  %v206_v42 = vld [vmem:[%s2347_s12 + $0x2b0] sm:$0xff] }
  0x6c   : > { %338 = vmax.xlane.f32.xlu1 %v2526_v44  ;;  %336 = vmax.xlane.f32.xlu0 %v2529_v45  ;;  %v205_v45 = vld [vmem:[%s2347_s12 + $0x2a8] sm:$0xff]  ;;  %v204_v44 = vld [vmem:[%s2347_s12 + $0x2a0] sm:$0xff] }
  0x70   : > { %342 = vmax.xlane.f32.xlu1 %v2534_v46  ;;  %340 = vmax.xlane.f32.xlu0 %v2537_v47  ;;  %v203_v47 = vld [vmem:[%s2347_s12 + $0x298] sm:$0xff]  ;;  %v202_v46 = vld [vmem:[%s2347_s12 + $0x290] sm:$0xff] }
  0x74   : > { %346 = vmax.xlane.f32.xlu1 %v2542_v48  ;;  %344 = vmax.xlane.f32.xlu0 %v2545_v49  ;;  %v201_v49 = vld [vmem:[%s2347_s12 + $0x288] sm:$0xff]  ;;  %v200_v48 = vld [vmem:[%s2347_s12 + $0x280] sm:$0xff] }
  0x78   : > { %350 = vmax.xlane.f32.xlu1 %v2550_v50  ;;  %348 = vmax.xlane.f32.xlu0 %v2553_v51  ;;  %v199_v51 = vld [vmem:[%s2347_s12 + $0x278] sm:$0xff]  ;;  %v198_v50 = vld [vmem:[%s2347_s12 + $0x270] sm:$0xff] }
  0x7c   : > { %354 = vmax.xlane.f32.xlu1 %v2558_v52  ;;  %352 = vmax.xlane.f32.xlu0 %v2561_v53  ;;  %v197_v53 = vld [vmem:[%s2347_s12 + $0x268] sm:$0xff]  ;;  %v196_v52 = vld [vmem:[%s2347_s12 + $0x260] sm:$0xff] }
  0x80   : > { %358 = vmax.xlane.f32.xlu1 %v2566_v54  ;;  %356 = vmax.xlane.f32.xlu0 %v2569_v55  ;;  %v189_v55 = vld [vmem:[%s2347_s12 + $0x228] sm:$0xff]  ;;  %v190_v54 = vld [vmem:[%s2347_s12 + $0x230] sm:$0xff] }
  0x84   : > { %362 = vmax.xlane.f32.xlu1 %v2574_v56  ;;  %360 = vmax.xlane.f32.xlu0 %v2577_v57  ;;  %v185_v56 = vld [vmem:[%s2347_s12 + $0x208] sm:$0xff]  ;;  %v184_v57 = vld [vmem:[%s2347_s12 + $0x200] sm:$0xff] }
  0x88   : > { %366 = vmax.xlane.f32.xlu1 %v179_v58  ;;  %364 = vmax.xlane.f32.xlu0 %v178_v59  ;;  %v187_v58 = vld [vmem:[%s2347_s12 + $0x218] sm:$0xff]  ;;  %v186_v59 = vld [vmem:[%s2347_s12 + $0x210] sm:$0xff] }
  0x8c   : > { %370 = vmax.xlane.f32.xlu1 %v181_v60  ;;  %368 = vmax.xlane.f32.xlu0 %v180_v61  ;;  %v188_v60 = vld [vmem:[%s2347_s12 + $0x220] sm:$0xff]  ;;  %v191_v61 = vld [vmem:[%s2347_s12 + $0x238] sm:$0xff] }
  0x90   : > { %374 = vmax.xlane.f32.xlu1 %v183_v62  ;;  %372 = vmax.xlane.f32.xlu0 %v182_v63  ;;  %v193_v62 = vld [vmem:[%s2347_s12 + $0x248] sm:$0xff]  ;;  %v192_v63 = vld [vmem:[%s2347_s12 + $0x240] sm:$0xff] }
  0x94   : > { %378 = vmax.xlane.f32.xlu1 %v185_v56  ;;  %376 = vmax.xlane.f32.xlu0 %v184_v57 }
  0x98   : > { %382 = vmax.xlane.f32.xlu1 %v187_v58  ;;  %380 = vmax.xlane.f32.xlu0 %v186_v59  ;;  %v195_v59 = vld [vmem:[%s2347_s12 + $0x258] sm:$0xff] }
  0x9c   : > { %386 = vmax.xlane.f32.xlu1 %v189_v55  ;;  %384 = vmax.xlane.f32.xlu0 %v188_v60  ;;  %v194_v60 = vld [vmem:[%s2347_s12 + $0x250] sm:$0xff] }
  0xa0   : > { %390 = vmax.xlane.f32.xlu1 %v191_v61  ;;  %388 = vmax.xlane.f32.xlu0 %v190_v54 }
  0xa1   : > { %v2595_v56 = vpop.xlane.xlu1 %252  ;;  %v2597_v57 = vpop.xlane.xlu0 %248 }
  0xa4   : > { %394 = vmax.xlane.f32.xlu1 %v193_v62  ;;  %392 = vmax.xlane.f32.xlu0 %v192_v63 }
  0xa5   : > { %v2601_v58 = vpop.xlane.xlu1 %254  ;;  %v2603_v55 = vpop.xlane.xlu0 %250 }
  0xa8   : > { %398 = vmax.xlane.f32.xlu1 %v195_v59  ;;  %396 = vmax.xlane.f32.xlu0 %v194_v60 }
  0xa9   : > { %v2607_v54 = vpop.xlane.xlu1 %258  ;;  %v2609_v61 = vpop.xlane.xlu0 %256 }
  0xac   : > { %402 = vmax.xlane.f32.xlu1 %v197_v53  ;;  %400 = vmax.xlane.f32.xlu0 %v196_v52 }
  0xad   : > { %v2613_v62 = vpop.xlane.xlu1 %262  ;;  %v2615_v63 = vpop.xlane.xlu0 %260 }
  0xb0   : > { %406 = vmax.xlane.f32.xlu1 %v199_v51  ;;  %404 = vmax.xlane.f32.xlu0 %v198_v50 }
  0xb1   : > { %v2619_v59 = vpop.xlane.xlu1 %266  ;;  %v2621_v60 = vpop.xlane.xlu0 %264 }
  0xb4   : > { %410 = vmax.xlane.f32.xlu1 %v201_v49  ;;  %408 = vmax.xlane.f32.xlu0 %v200_v48 }
  0xb5   : > { %v2625_v52 = vpop.xlane.xlu1 %270  ;;  %v2627_v53 = vpop.xlane.xlu0 %268 }
  0xb8   : > { %414 = vmax.xlane.f32.xlu1 %v203_v47  ;;  %412 = vmax.xlane.f32.xlu0 %v202_v46 }
  0xb9   : > { %v2631_v50 = vpop.xlane.xlu1 %274  ;;  %v2633_v51 = vpop.xlane.xlu0 %272 }
  0xbc   : > { %418 = vmax.xlane.f32.xlu1 %v205_v45  ;;  %416 = vmax.xlane.f32.xlu0 %v204_v44 }
  0xbd   : > { %v2637_v48 = vpop.xlane.xlu1 %278  ;;  %v2639_v49 = vpop.xlane.xlu0 %276 }
  0xc0   : > { %422 = vmax.xlane.f32.xlu1 %v207_v43  ;;  %420 = vmax.xlane.f32.xlu0 %v206_v42 }
  0xc1   : > { %v2643_v46 = vpop.xlane.xlu1 %282  ;;  %v2645_v47 = vpop.xlane.xlu0 %280 }
  0xc4   : > { %426 = vmax.xlane.f32.xlu1 %v209_v41  ;;  %424 = vmax.xlane.f32.xlu0 %v208_v40 }
  0xc5   : > { %v2649_v44 = vpop.xlane.xlu1 %286  ;;  %v2651_v45 = vpop.xlane.xlu0 %284 }
  0xc8   : > { %430 = vmax.xlane.f32.xlu1 %v211_v39  ;;  %428 = vmax.xlane.f32.xlu0 %v210_v38 }
  0xc9   : > { %v2655_v42 = vpop.xlane.xlu1 %290  ;;  %v2657_v43 = vpop.xlane.xlu0 %288 }
  0xcc   : > { %434 = vmax.xlane.f32.xlu1 %v213_v37  ;;  %432 = vmax.xlane.f32.xlu0 %v212_v36 }
  0xcd   : > { %v2661_v40 = vpop.xlane.xlu1 %294  ;;  %v2663_v41 = vpop.xlane.xlu0 %292 }
  0xd0   : > { %438 = vmax.xlane.f32.xlu1 %v215_v35  ;;  %436 = vmax.xlane.f32.xlu0 %v214_v34 }
  0xd1   : > { %v2667_v38 = vpop.xlane.xlu1 %298  ;;  %v2669_v39 = vpop.xlane.xlu0 %296 }
  0xd4   : > { %442 = vmax.xlane.f32.xlu1 %v217_v33  ;;  %440 = vmax.xlane.f32.xlu0 %v216_v32 }
  0xd5   : > { %v2673_v36 = vpop.xlane.xlu1 %302  ;;  %v2675_v37 = vpop.xlane.xlu0 %300 }
  0xd6   : > { %3957 = vst [vmem:[#allocation33_spill] sm:$0xff] %v2675_v37  ;;  %v222_v37 = vld [vmem:[%s2347_s12 + $0x330] sm:$0xff] }
  0xd8   : > { %446 = vmax.xlane.f32.xlu1 %v219_v31  ;;  %444 = vmax.xlane.f32.xlu0 %v218_v30 }
  0xd9   : > { %v2679_v34 = vpop.xlane.xlu1 %306  ;;  %v2681_v35 = vpop.xlane.xlu0 %304 }
  0xda   : > { %3958 = vst [vmem:[#allocation34_spill] sm:$0xff] %v2679_v34  ;;  %3959 = vst [vmem:[#allocation35_spill] sm:$0xff] %v2681_v35  ;;  %v225_v35 = vld [vmem:[%s2347_s12 + $0x348] sm:$0xff]  ;;  %v224_v34 = vld [vmem:[%s2347_s12 + $0x340] sm:$0xff] }
  0xdc   : > { %450 = vmax.xlane.f32.xlu1 %v221_v29  ;;  %448 = vmax.xlane.f32.xlu0 %v220_v28 }
  0xdd   : > { %v2685_v32 = vpop.xlane.xlu1 %310  ;;  %v2687_v33 = vpop.xlane.xlu0 %308 }
  0xde   : > { %3960 = vst [vmem:[#allocation36_spill] sm:$0xff] %v2685_v32  ;;  %3961 = vst [vmem:[#allocation37_spill] sm:$0xff] %v2687_v33  ;;  %v227_v33 = vld [vmem:[%s2347_s12 + $0x358] sm:$0xff]  ;;  %v226_v32 = vld [vmem:[%s2347_s12 + $0x350] sm:$0xff] }
  0xe0   : > { %454 = vmax.xlane.f32.xlu1 %v223_v27  ;;  %452 = vmax.xlane.f32.xlu0 %v222_v37 }
  0xe1   : > { %v2691_v30 = vpop.xlane.xlu1 %314  ;;  %v2693_v31 = vpop.xlane.xlu0 %312 }
  0xe2   : > { %3962 = vst [vmem:[#allocation38_spill] sm:$0xff] %v2691_v30  ;;  %3963 = vst [vmem:[#allocation39_spill] sm:$0xff] %v2693_v31  ;;  %v229_v31 = vld [vmem:[%s2347_s12 + $0x368] sm:$0xff]  ;;  %v228_v30 = vld [vmem:[%s2347_s12 + $0x360] sm:$0xff] }
  0xe4   : > { %458 = vmax.xlane.f32.xlu1 %v225_v35  ;;  %456 = vmax.xlane.f32.xlu0 %v224_v34 }
  0xe5   : > { %v2697_v28 = vpop.xlane.xlu1 %318  ;;  %v2699_v29 = vpop.xlane.xlu0 %316 }
  0xe6   : > { %3964 = vst [vmem:[#allocation40_spill] sm:$0xff] %v2697_v28  ;;  %3965 = vst [vmem:[#allocation41_spill] sm:$0xff] %v2699_v29  ;;  %v231_v29 = vld [vmem:[%s2347_s12 + $0x378] sm:$0xff]  ;;  %v230_v28 = vld [vmem:[%s2347_s12 + $0x370] sm:$0xff] }
  0xe8   : > { %462 = vmax.xlane.f32.xlu1 %v227_v33  ;;  %460 = vmax.xlane.f32.xlu0 %v226_v32 }
  0xe9   : > { %v2703_v27 = vpop.xlane.xlu1 %322  ;;  %v2705_v37 = vpop.xlane.xlu0 %320 }
  0xea   : > { %3966 = vst [vmem:[#allocation42_spill] sm:$0xff] %v2703_v27  ;;  %3967 = vst [vmem:[#allocation43_spill] sm:$0xff] %v2705_v37  ;;  %v233_v37 = vld [vmem:[%s2347_s12 + $0x388] sm:$0xff]  ;;  %v232_v27 = vld [vmem:[%s2347_s12 + $0x380] sm:$0xff] }
  0xec   : > { %466 = vmax.xlane.f32.xlu1 %v229_v31  ;;  %464 = vmax.xlane.f32.xlu0 %v228_v30 }
  0xed   : > { %v2709_v34 = vpop.xlane.xlu1 %326  ;;  %v2711_v35 = vpop.xlane.xlu0 %324 }
  0xee   : > { %3968 = vst [vmem:[#allocation44_spill] sm:$0xff] %v2709_v34  ;;  %3969 = vst [vmem:[#allocation45_spill] sm:$0xff] %v2711_v35  ;;  %v235_v35 = vld [vmem:[%s2347_s12 + $0x398] sm:$0xff]  ;;  %v234_v34 = vld [vmem:[%s2347_s12 + $0x390] sm:$0xff] }
  0xf0   : > { %470 = vmax.xlane.f32.xlu1 %v231_v29  ;;  %468 = vmax.xlane.f32.xlu0 %v230_v28 }
  0xf1   : > { %v2715_v32 = vpop.xlane.xlu1 %330  ;;  %v2717_v33 = vpop.xlane.xlu0 %328 }
  0xf2   : > { %3970 = vst [vmem:[#allocation46_spill] sm:$0xff] %v2715_v32  ;;  %3971 = vst [vmem:[#allocation47_spill] sm:$0xff] %v2717_v33  ;;  %v237_v33 = vld [vmem:[%s2347_s12 + $0x3a8] sm:$0xff]  ;;  %v236_v32 = vld [vmem:[%s2347_s12 + $0x3a0] sm:$0xff] }
  0xf4   : > { %474 = vmax.xlane.f32.xlu1 %v233_v37  ;;  %472 = vmax.xlane.f32.xlu0 %v232_v27 }
  0xf5   : > { %v2721_v30 = vpop.xlane.xlu1 %334  ;;  %v2723_v31 = vpop.xlane.xlu0 %332 }
  0xf6   : > { %3972 = vst [vmem:[#allocation48_spill] sm:$0xff] %v2721_v30  ;;  %3973 = vst [vmem:[#allocation49_spill] sm:$0xff] %v2723_v31  ;;  %v239_v30 = vld [vmem:[%s2347_s12 + $0x3b8] sm:$0xff]  ;;  %v238_v31 = vld [vmem:[%s2347_s12 + $0x3b0] sm:$0xff] }
  0xf8   : > { %478 = vmax.xlane.f32.xlu1 %v235_v35  ;;  %476 = vmax.xlane.f32.xlu0 %v234_v34  ;;  %v2741_v35 = vsub.f32 %v2353_v1, %v2597_v57  ;;  %v2745_v34 = vsub.f32 %v2361_v3, %v2603_v55  ;;  %v2760_v57 = vsub.f32 %v2358_v2, %v2601_v58 }
  0xf9   : > { %v2727_v28 = vpop.xlane.xlu1 %338  ;;  %v2729_v29 = vpop.xlane.xlu0 %336  ;;  %v2777_v58 = vsub.f32 %v2369_v5, %v2609_v61  ;;  %v2793_v61 = vsub.f32 %v2377_v7, %v2615_v63  ;;  %v2809_v7 = vsub.f32 %v2385_v9, %v2621_v60  ;;  %v2823_v9 = vsub.f32 %v2393_v11, %v2627_v53 }
  0xfa   : > { %3974 = vst [vmem:[#allocation50_spill] sm:$0xff] %v2729_v29  ;;  %v2755_v29 = vsub.f32 %v2350_v0, %v2595_v56  ;;  %v632_v1 = vmul.f32 1.442695, %v2741_v35  ;;  %v634_v3 = vmul.f32 1.442695, %v2745_v34  ;;  %v2772_v56 = vsub.f32 %v2366_v4, %v2607_v54 }
  0xfb   : > { %v638_v2 = vmul.f32 1.442695, %v2760_v57  ;;  %3980 = vst [vmem:[#allocation56_spill] sm:$0xff] %v2777_v58  ;;  %v2788_v54 = vsub.f32 %v2374_v6, %v2613_v62  ;;  %v640_v5 = vmul.f32 1.442695, %v2777_v58  ;;  %3982 = vst [vmem:[#allocation58_spill] sm:$0xff] %v2793_v61  ;;  %v2804_v6 = vsub.f32 %v2382_v8, %v2619_v59 }
  0xfc   : > { %482 = vmax.xlane.f32.xlu1 %v237_v33  ;;  %480 = vmax.xlane.f32.xlu0 %v236_v32  ;;  %3978 = vst [vmem:[#allocation54_spill] sm:$0xff] %v2755_v29  ;;  %v636_v0 = vmul.f32 1.442695, %v2755_v29  ;;  %1731 = vpow2.f32 %v632_v1  ;;  %3979 = vst [vmem:[#allocation55_spill] sm:$0xff] %v2772_v56  ;;  %v245_v1 = vld [vmem:[%s2347_s12 + $0x3e8] sm:$0xff]  ;;  %v244_v29 = vld [vmem:[%s2347_s12 + $0x3e0] sm:$0xff]  ;;  %v2818_v8 = vsub.f32 %v2390_v10, %v2625_v52 }
  0xfd   : > { %v2733_v27 = vpop.xlane.xlu1 %342  ;;  %v2735_v37 = vpop.xlane.xlu0 %340  ;;  %1733 = vpow2.f32 %v634_v3  ;;  %v642_v4 = vmul.f32 1.442695, %v2772_v56  ;;  %3981 = vst [vmem:[#allocation57_spill] sm:$0xff] %v2788_v54  ;;  %v646_v56 = vmul.f32 1.442695, %v2788_v54  ;;  %3983 = vst [vmem:[#allocation59_spill] sm:$0xff] %v2804_v6  ;;  %v2832_v10 = vsub.f32 %v2398_v12, %v2631_v50 }
  0xfe   : > { %3975 = vst [vmem:[#allocation51_spill] sm:$0xff] %v2733_v27  ;;  %3976 = vst [vmem:[#allocation52_spill] sm:$0xff] %v2735_v37  ;;  %v241_v27 = vld [vmem:[%s2347_s12 + $0x3c8] sm:$0xff]  ;;  %v240_v37 = vld [vmem:[%s2347_s12 + $0x3c0] sm:$0xff]  ;;  %1735 = vpow2.f32 %v636_v0  ;;  %v644_v62 = vmul.f32 1.442695, %v2793_v61  ;;  %v2837_v11 = vsub.f32 %v2401_v13, %v2633_v51  ;;  %v2846_v12 = vsub.f32 %v2406_v14, %v2637_v48 }
  0xff   : > { %1737 = vpow2.f32 %v638_v2  ;;  %v246_v0 = vld [vmem:[%s2347_s12 + $0x3f0] sm:$0xff]  ;;  %3984 = vst [vmem:[#allocation60_spill] sm:$0xff] %v2809_v7  ;;  %3985 = vst [vmem:[#allocation61_spill] sm:$0xff] %v2818_v8  ;;  %v648_v59 = vmul.f32 1.442695, %v2809_v7  ;;  %v2851_v13 = vsub.f32 %v2409_v15, %v2639_v49  ;;  %v2860_v14 = vsub.f32 %v2414_v16, %v2643_v46 }
 0x100   : > { %486 = vmax.xlane.f32.xlu1 %v239_v30  ;;  %484 = vmax.xlane.f32.xlu0 %v238_v31  ;;  %v243_v31 = vld [vmem:[%s2347_s12 + $0x3d8] sm:$0xff]  ;;  %1739 = vpow2.f32 %v642_v4  ;;  %v650_v4 = vmul.f32 1.442695, %v2804_v6  ;;  %3986 = vst [vmem:[#allocation62_spill] sm:$0xff] %v2823_v9  ;;  %3987 = vst [vmem:[#allocation63_spill] sm:$0xff] %v2832_v10  ;;  %v2865_v15 = vsub.f32 %v2417_v17, %v2645_v47 }
 0x101   : > { %v2747_v33 = vpop.xlane.xlu1 %346  ;;  %v2749_v32 = vpop.xlane.xlu0 %344  ;;  %1741 = vpow2.f32 %v640_v5  ;;  %v652_v52 = vmul.f32 1.442695, %v2823_v9  ;;  %3988 = vst [vmem:[#allocation64_spill] sm:$0xff] %v2837_v11  ;;  %3989 = vst [vmem:[#allocation65_spill] sm:$0xff] %v2846_v12  ;;  %v656_v50 = vmul.f32 1.442695, %v2837_v11  ;;  %v2874_v16 = vsub.f32 %v2422_v18, %v2649_v44 }
 0x102   : > { %3977 = vst [vmem:[#allocation53_spill] sm:$0xff] %v2749_v32  ;;  %v242_v32 = vld [vmem:[%s2347_s12 + $0x3d0] sm:$0xff]  ;;  %1743 = vpow2.f32 %v646_v56  ;;  %3990 = vst [vmem:[#allocation66_spill] sm:$0xff] %v2851_v13  ;;  %v660_v48 = vmul.f32 1.442695, %v2851_v13  ;;  %v2879_v17 = vsub.f32 %v2425_v19, %v2651_v45  ;;  %v2888_v18 = vsub.f32 %v2430_v20, %v2655_v42 }
 0x103   : > { %1745 = vpow2.f32 %v644_v62  ;;  %3991 = vst [vmem:[#allocation67_spill] sm:$0xff] %v2860_v14  ;;  %3992 = vst [vmem:[#allocation68_spill] sm:$0xff] %v2865_v15  ;;  %v664_v46 = vmul.f32 1.442695, %v2865_v15  ;;  %v2893_v19 = vsub.f32 %v2433_v21, %v2657_v43  ;;  %v2902_v20 = vsub.f32 %v2438_v22, %v2661_v40 }
 0x104   : > { %490 = vmax.xlane.f32.xlu1 %v241_v27  ;;  %488 = vmax.xlane.f32.xlu0 %v240_v37  ;;  %1747 = vpow2.f32 %v650_v4  ;;  %v658_v4 = vmul.f32 1.442695, %v2832_v10  ;;  %3993 = vst [vmem:[#allocation69_spill] sm:$0xff] %v2874_v16  ;;  %3994 = vst [vmem:[#allocation70_spill] sm:$0xff] %v2879_v17  ;;  %v668_v44 = vmul.f32 1.442695, %v2879_v17  ;;  %v2907_v21 = vsub.f32 %v2441_v23, %v2663_v41 }
 0x105   : > { %v2763_v55 = vpop.xlane.xlu1 %350  ;;  %v2765_v30 = vpop.xlane.xlu0 %348  ;;  %1749 = vpow2.f32 %v648_v59  ;;  %3995 = vst [vmem:[#allocation71_spill] sm:$0xff] %v2888_v18  ;;  %3996 = vst [vmem:[#allocation72_spill] sm:$0xff] %v2893_v19  ;;  %v672_v42 = vmul.f32 1.442695, %v2893_v19  ;;  %v2916_v22 = vsub.f32 %v2446_v24, %v2667_v38  ;;  %v2921_v23 = vsub.f32 %v2449_v25, %v2669_v39  ;;  %v4002_v25 = vld [vmem:[#allocation33_spill] sm:$0xff]  ;;  %v4003_v39 = vld [vmem:[#allocation2_spill] sm:$0xff] }
 0x106   : > { %v1732_v2 = vpop.eup %1731  ;;  %3997 = vst [vmem:[#allocation73_spill] sm:$0xff] %v2902_v20  ;;  %3998 = vst [vmem:[#allocation74_spill] sm:$0xff] %v2907_v21  ;;  %v676_v40 = vmul.f32 1.442695, %v2907_v21  ;;  %v2930_v24 = vsub.f32 %v2454_v26, %v2673_v36  ;;  %v4005_v26 = vld [vmem:[#allocation34_spill] sm:$0xff]  ;;  %v4006_v36 = vld [vmem:[#allocation3_spill] sm:$0xff] }
 0x107   : > { %3999 = vst [vmem:[#allocation75_spill] sm:$0xff] %v2916_v22  ;;  %4000 = vst [vmem:[#allocation76_spill] sm:$0xff] %v2921_v23  ;;  %v680_v38 = vmul.f32 1.442695, %v2921_v23 }
 0x108   : > { %494 = vmax.xlane.f32.xlu1 %v243_v31  ;;  %492 = vmax.xlane.f32.xlu0 %v242_v32  ;;  %v247_v31 = vld [vmem:[%s2347_s12 + $0x3f8] sm:$0xff]  ;;  %4001 = vst [vmem:[#allocation77_spill] sm:$0xff] %v2930_v24 }
 0x109   : > { %v2779_v27 = vpop.xlane.xlu1 %354  ;;  %v2781_v37 = vpop.xlane.xlu0 %352 }
 0x10c   : > { %498 = vmax.xlane.f32.xlu1 %v245_v1  ;;  %496 = vmax.xlane.f32.xlu0 %v244_v29  ;;  %v1734_v1 = vpop.eup %1733 }
 0x10d   : > { %v2795_v32 = vpop.xlane.xlu1 %358  ;;  %v2797_v3 = vpop.xlane.xlu0 %356 }
 0x10e   : > { %v1736_v56 = vpop.eup %1735 }
 0x110   : > { %502 = vmax.xlane.f32.xlu1 %v247_v31  ;;  %500 = vmax.xlane.f32.xlu0 %v246_v0  ;;  %v1738_v31 = vpop.eup %1737  ;;  %v654_v0 = vmul.f32 1.442695, %v2818_v8 }
 0x111   : > { %v2811_v63 = vpop.xlane.xlu1 %362  ;;  %v2813_v29 = vpop.xlane.xlu0 %360 }
 0x112   : > { %1751 = vpow2.f32 %v654_v0  ;;  %v662_v0 = vmul.f32 1.442695, %v2846_v12 }
 0x113   : > { %1753 = vpow2.f32 %v652_v52 }
 0x114   : > { %890 = vadd.xlane.f32.xlu1 %v1734_v1  ;;  %888 = vadd.xlane.f32.xlu0 %v1732_v2  ;;  %v1740_v2 = vpop.eup %1739  ;;  %1755 = vpow2.f32 %v658_v4  ;;  %v666_v4 = vmul.f32 1.442695, %v2860_v14 }
 0x115   : > { %v2825_v60 = vpop.xlane.xlu1 %366  ;;  %v2827_v5 = vpop.xlane.xlu0 %364  ;;  %1757 = vpow2.f32 %v656_v50 }
 0x116   : > { %v1742_v1 = vpop.eup %1741  ;;  %1759 = vpow2.f32 %v662_v0  ;;  %v670_v0 = vmul.f32 1.442695, %v2874_v16 }
 0x117   : > { %1761 = vpow2.f32 %v660_v48 }
 0x118   : > { %894 = vadd.xlane.f32.xlu1 %v1738_v31  ;;  %892 = vadd.xlane.f32.xlu0 %v1736_v56  ;;  %v1744_v56 = vpop.eup %1743  ;;  %1763 = vpow2.f32 %v666_v4  ;;  %v674_v4 = vmul.f32 1.442695, %v2888_v18 }
 0x119   : > { %v2839_v53 = vpop.xlane.xlu1 %370  ;;  %v2841_v62 = vpop.xlane.xlu0 %368  ;;  %1765 = vpow2.f32 %v664_v46 }
 0x11a   : > { %v1746_v31 = vpop.eup %1745  ;;  %1767 = vpow2.f32 %v670_v0  ;;  %v678_v0 = vmul.f32 1.442695, %v2902_v20 }
 0x11b   : > { %1769 = vpow2.f32 %v668_v44 }
 0x11c   : > { %898 = vadd.xlane.f32.xlu1 %v1740_v2  ;;  %896 = vadd.xlane.f32.xlu0 %v1742_v1  ;;  %v1748_v2 = vpop.eup %1747  ;;  %1771 = vpow2.f32 %v674_v4  ;;  %v682_v4 = vmul.f32 1.442695, %v2916_v22  ;;  %v686_v22 = vmul.f32 1.442695, %v2930_v24 }
 0x11d   : > { %v2853_v51 = vpop.xlane.xlu1 %374  ;;  %v2855_v59 = vpop.xlane.xlu0 %372  ;;  %1773 = vpow2.f32 %v672_v42  ;;  %v2935_v42 = vsub.f32 %v4003_v39, %v4002_v25  ;;  %v4009_v25 = vld [vmem:[#allocation4_spill] sm:$0xff] }
 0x11e   : > { %v1750_v1 = vpop.eup %1749  ;;  %1775 = vpow2.f32 %v678_v0 }
 0x11f   : > { %1777 = vpow2.f32 %v676_v40  ;;  %4004 = vst [vmem:[#allocation33_spill] sm:$0xff] %v2935_v42  ;;  %v684_v40 = vmul.f32 1.442695, %v2935_v42 }
 0x120   : > { %902 = vadd.xlane.f32.xlu1 %v1744_v56  ;;  %900 = vadd.xlane.f32.xlu0 %v1746_v31  ;;  %v1752_v56 = vpop.eup %1751  ;;  %1779 = vpow2.f32 %v682_v4 }
 0x121   : > { %v2867_v49 = vpop.xlane.xlu1 %378  ;;  %v2869_v52 = vpop.xlane.xlu0 %376  ;;  %1781 = vpow2.f32 %v680_v38  ;;  %v4014_v38 = vld [vmem:[#allocation37_spill] sm:$0xff] }
 0x122   : > { %v1754_v31 = vpop.eup %1753  ;;  %1783 = vpow2.f32 %v686_v22 }
 0x123   : > { %1785 = vpow2.f32 %v684_v40  ;;  %v4020_v40 = vld [vmem:[#allocation39_spill] sm:$0xff] }
 0x124   : > { %906 = vadd.xlane.f32.xlu1 %v1748_v2  ;;  %904 = vadd.xlane.f32.xlu0 %v1750_v1  ;;  %v1756_v2 = vpop.eup %1755 }
 0x125   : > { %v2881_v47 = vpop.xlane.xlu1 %382  ;;  %v2883_v50 = vpop.xlane.xlu0 %380 }
 0x126   : > { %v1758_v1 = vpop.eup %1757 }
 0x128   : > { %910 = vadd.xlane.f32.xlu1 %v1752_v56  ;;  %908 = vadd.xlane.f32.xlu0 %v1754_v31  ;;  %v1760_v56 = vpop.eup %1759 }
 0x129   : > { %v2895_v45 = vpop.xlane.xlu1 %386  ;;  %v2897_v48 = vpop.xlane.xlu0 %384 }
 0x12a   : > { %v1762_v31 = vpop.eup %1761 }
 0x12c   : > { %914 = vadd.xlane.f32.xlu1 %v1756_v2  ;;  %912 = vadd.xlane.f32.xlu0 %v1758_v1  ;;  %v1764_v2 = vpop.eup %1763 }
 0x12d   : > { %v2909_v43 = vpop.xlane.xlu1 %390  ;;  %v2911_v46 = vpop.xlane.xlu0 %388 }
 0x12e   : > { %v1766_v1 = vpop.eup %1765 }
 0x12f   : > { %v1768_v0 = vpop.eup %1767 }
 0x130   : > { %918 = vadd.xlane.f32.xlu1 %v1760_v56  ;;  %916 = vadd.xlane.f32.xlu0 %v1762_v31  ;;  %v1770_v21 = vpop.eup %1769 }
 0x131   : > { %v2923_v41 = vpop.xlane.xlu1 %394  ;;  %v2925_v44 = vpop.xlane.xlu0 %392 }
 0x132   : > { %v1772_v4 = vpop.eup %1771 }
 0x133   : > { %v1774_v19 = vpop.eup %1773 }
 0x134   : > { %922 = vadd.xlane.f32.xlu1 %v1764_v2  ;;  %920 = vadd.xlane.f32.xlu0 %v1766_v1  ;;  %v2944_v2 = vsub.f32 %v4006_v36, %v4005_v26  ;;  %v4008_v1 = vld [vmem:[#allocation35_spill] sm:$0xff]  ;;  %v4011_v26 = vld [vmem:[#allocation36_spill] sm:$0xff]  ;;  %v4012_v36 = vld [vmem:[#allocation5_spill] sm:$0xff]  ;;  %v1776_v22 = vpop.eup %1775 }
 0x135   : > { %v2937_v56 = vpop.xlane.xlu1 %398  ;;  %v2939_v31 = vpop.xlane.xlu0 %396  ;;  %v2949_v39 = vsub.f32 %v4009_v25, %v4008_v1  ;;  %v4015_v1 = vld [vmem:[#allocation6_spill] sm:$0xff] }
 0x136   : > { %4007 = vst [vmem:[#allocation2_spill] sm:$0xff] %v2944_v2  ;;  %v690_v24 = vmul.f32 1.442695, %v2944_v2  ;;  %v2963_v25 = vsub.f32 %v4015_v1, %v4014_v38  ;;  %v1778_v17 = vpop.eup %1777  ;;  %v4021_v38 = vld [vmem:[#allocation8_spill] sm:$0xff] }
 0x137   : > { %4010 = vst [vmem:[#allocation34_spill] sm:$0xff] %v2949_v39  ;;  %v2977_v1 = vsub.f32 %v4021_v38, %v4020_v40  ;;  %v4027_v40 = vld [vmem:[#allocation10_spill] sm:$0xff] }
 0x138   : > { %926 = vadd.xlane.f32.xlu1 %v1768_v0  ;;  %924 = vadd.xlane.f32.xlu0 %v1770_v21  ;;  %v2958_v0 = vsub.f32 %v4012_v36, %v4011_v26  ;;  %v688_v21 = vmul.f32 1.442695, %v2949_v39  ;;  %4016 = vst [vmem:[#allocation35_spill] sm:$0xff] %v2963_v25  ;;  %1787 = vpow2.f32 %v690_v24  ;;  %v4017_v26 = vld [vmem:[#allocation38_spill] sm:$0xff]  ;;  %v4018_v36 = vld [vmem:[#allocation7_spill] sm:$0xff]  ;;  %v1780_v24 = vpop.eup %1779 }
 0x139   : > { %v2951_v23 = vpop.xlane.xlu1 %402  ;;  %v2953_v20 = vpop.xlane.xlu0 %400  ;;  %4022 = vst [vmem:[#allocation36_spill] sm:$0xff] %v2977_v1 }
 0x13a   : > { %4013 = vst [vmem:[#allocation3_spill] sm:$0xff] %v2958_v0  ;;  %v694_v2 = vmul.f32 1.442695, %v2958_v0  ;;  %1789 = vpow2.f32 %v688_v21  ;;  %v1782_v15 = vpop.eup %1781  ;;  %v4026_v21 = vld [vmem:[#allocation41_spill] sm:$0xff] }
 0x13b   : > { %v2991_v38 = vsub.f32 %v4027_v40, %v4026_v21  ;;  %v4033_v21 = vld [vmem:[#allocation12_spill] sm:$0xff] }
 0x13c   : > { %930 = vadd.xlane.f32.xlu1 %v1772_v4  ;;  %928 = vadd.xlane.f32.xlu0 %v1774_v19  ;;  %v2972_v4 = vsub.f32 %v4018_v36, %v4017_v26  ;;  %v692_v19 = vmul.f32 1.442695, %v2963_v25  ;;  %1791 = vpow2.f32 %v694_v2  ;;  %v4023_v26 = vld [vmem:[#allocation40_spill] sm:$0xff]  ;;  %v4024_v36 = vld [vmem:[#allocation9_spill] sm:$0xff]  ;;  %v1784_v2 = vpop.eup %1783 }
 0x13d   : > { %v2965_v42 = vpop.xlane.xlu1 %406  ;;  %v2967_v18 = vpop.xlane.xlu0 %404  ;;  %4028 = vst [vmem:[#allocation37_spill] sm:$0xff] %v2991_v38 }
 0x13e   : > { %4019 = vst [vmem:[#allocation4_spill] sm:$0xff] %v2972_v4  ;;  %v698_v0 = vmul.f32 1.442695, %v2972_v4  ;;  %1793 = vpow2.f32 %v692_v19  ;;  %v1786_v13 = vpop.eup %1785  ;;  %v4032_v19 = vld [vmem:[#allocation43_spill] sm:$0xff] }
 0x13f   : > { %v3005_v40 = vsub.f32 %v4033_v21, %v4032_v19  ;;  %v4039_v19 = vld [vmem:[#allocation14_spill] sm:$0xff] }
 0x140   : > { %934 = vadd.xlane.f32.xlu1 %v1776_v22  ;;  %932 = vadd.xlane.f32.xlu0 %v1778_v17  ;;  %v2986_v22 = vsub.f32 %v4024_v36, %v4023_v26  ;;  %v696_v17 = vmul.f32 1.442695, %v2977_v1  ;;  %1795 = vpow2.f32 %v698_v0  ;;  %v4029_v26 = vld [vmem:[#allocation42_spill] sm:$0xff]  ;;  %v4030_v36 = vld [vmem:[#allocation11_spill] sm:$0xff] }
 0x141   : > { %v2979_v39 = vpop.xlane.xlu1 %410  ;;  %v2981_v16 = vpop.xlane.xlu0 %408  ;;  %4034 = vst [vmem:[#allocation38_spill] sm:$0xff] %v3005_v40 }
 0x142   : > { %4025 = vst [vmem:[#allocation5_spill] sm:$0xff] %v2986_v22  ;;  %v702_v4 = vmul.f32 1.442695, %v2986_v22  ;;  %1797 = vpow2.f32 %v696_v17  ;;  %v1788_v0 = vpop.eup %1787  ;;  %v4038_v17 = vld [vmem:[#allocation45_spill] sm:$0xff] }
 0x143   : > { %v3019_v21 = vsub.f32 %v4039_v19, %v4038_v17  ;;  %v4045_v17 = vld [vmem:[#allocation16_spill] sm:$0xff] }
 0x144   : > { %938 = vadd.xlane.f32.xlu1 %v1780_v24  ;;  %936 = vadd.xlane.f32.xlu0 %v1782_v15  ;;  %v3000_v24 = vsub.f32 %v4030_v36, %v4029_v26  ;;  %v700_v15 = vmul.f32 1.442695, %v2991_v38  ;;  %v1790_v11 = vpop.eup %1789  ;;  %1799 = vpow2.f32 %v702_v4  ;;  %v4035_v26 = vld [vmem:[#allocation44_spill] sm:$0xff]  ;;  %v4036_v36 = vld [vmem:[#allocation13_spill] sm:$0xff] }
 0x145   : > { %v2993_v25 = vpop.xlane.xlu1 %414  ;;  %v2995_v14 = vpop.xlane.xlu0 %412  ;;  %4040 = vst [vmem:[#allocation39_spill] sm:$0xff] %v3019_v21 }
 0x146   : > { %4031 = vst [vmem:[#allocation6_spill] sm:$0xff] %v3000_v24  ;;  %v706_v22 = vmul.f32 1.442695, %v3000_v24  ;;  %1801 = vpow2.f32 %v700_v15  ;;  %v1792_v4 = vpop.eup %1791  ;;  %v4044_v15 = vld [vmem:[#allocation47_spill] sm:$0xff] }
 0x147   : > { %v3033_v19 = vsub.f32 %v4045_v17, %v4044_v15  ;;  %v4051_v15 = vld [vmem:[#allocation18_spill] sm:$0xff] }
 0x148   : > { %942 = vadd.xlane.f32.xlu1 %v1784_v2  ;;  %940 = vadd.xlane.f32.xlu0 %v1786_v13  ;;  %v3014_v2 = vsub.f32 %v4036_v36, %v4035_v26  ;;  %v704_v13 = vmul.f32 1.442695, %v3005_v40  ;;  %v1794_v9 = vpop.eup %1793  ;;  %1803 = vpow2.f32 %v706_v22  ;;  %v4041_v26 = vld [vmem:[#allocation46_spill] sm:$0xff]  ;;  %v4042_v36 = vld [vmem:[#allocation15_spill] sm:$0xff] }
 0x149   : > { %v3007_v1 = vpop.xlane.xlu1 %418  ;;  %v3009_v12 = vpop.xlane.xlu0 %416  ;;  %4046 = vst [vmem:[#allocation40_spill] sm:$0xff] %v3033_v19 }
 0x14a   : > { %4037 = vst [vmem:[#allocation7_spill] sm:$0xff] %v3014_v2  ;;  %v710_v24 = vmul.f32 1.442695, %v3014_v2  ;;  %1805 = vpow2.f32 %v704_v13  ;;  %v1796_v22 = vpop.eup %1795  ;;  %v4050_v13 = vld [vmem:[#allocation49_spill] sm:$0xff] }
 0x14b   : > { %v3047_v17 = vsub.f32 %v4051_v15, %v4050_v13 }
 0x14c   : > { %946 = vadd.xlane.f32.xlu1 %v1788_v0  ;;  %944 = vadd.xlane.f32.xlu0 %v1790_v11  ;;  %v3028_v0 = vsub.f32 %v4042_v36, %v4041_v26  ;;  %v708_v11 = vmul.f32 1.442695, %v3019_v21  ;;  %v1798_v7 = vpop.eup %1797  ;;  %1807 = vpow2.f32 %v710_v24  ;;  %v4047_v26 = vld [vmem:[#allocation48_spill] sm:$0xff]  ;;  %v4048_v36 = vld [vmem:[#allocation17_spill] sm:$0xff] }
 0x14d   : > { %v3021_v38 = vpop.xlane.xlu1 %422  ;;  %v3023_v10 = vpop.xlane.xlu0 %420  ;;  %4052 = vst [vmem:[#allocation41_spill] sm:$0xff] %v3047_v17 }
 0x14e   : > { %4043 = vst [vmem:[#allocation8_spill] sm:$0xff] %v3028_v0  ;;  %v714_v2 = vmul.f32 1.442695, %v3028_v0  ;;  %1809 = vpow2.f32 %v708_v11  ;;  %v1800_v24 = vpop.eup %1799  ;;  %v4055_v11 = vld [vmem:[#allocation50_spill] sm:$0xff] }
 0x150   : > { %950 = vadd.xlane.f32.xlu1 %v1792_v4  ;;  %948 = vadd.xlane.f32.xlu0 %v1794_v9  ;;  %v3042_v4 = vsub.f32 %v4048_v36, %v4047_v26  ;;  %v712_v9 = vmul.f32 1.442695, %v3033_v19  ;;  %v1802_v61 = vpop.eup %1801  ;;  %1811 = vpow2.f32 %v714_v2  ;;  %v4053_v26 = vld [vmem:[#allocation19_spill] sm:$0xff]  ;;  %v4056_v36 = vld [vmem:[#allocation20_spill] sm:$0xff] }
 0x151   : > { %v3035_v40 = vpop.xlane.xlu1 %426  ;;  %v3037_v8 = vpop.xlane.xlu0 %424  ;;  %v3061_v13 = vsub.f32 %v4056_v36, %v4055_v11  ;;  %v4063_v11 = vld [vmem:[#allocation22_spill] sm:$0xff] }
 0x152   : > { %4049 = vst [vmem:[#allocation9_spill] sm:$0xff] %v3042_v4  ;;  %v718_v0 = vmul.f32 1.442695, %v3042_v4  ;;  %1813 = vpow2.f32 %v712_v9  ;;  %v1804_v2 = vpop.eup %1803  ;;  %v4062_v9 = vld [vmem:[#allocation52_spill] sm:$0xff] }
 0x153   : > { %4057 = vst [vmem:[#allocation42_spill] sm:$0xff] %v3061_v13  ;;  %v3075_v36 = vsub.f32 %v4063_v11, %v4062_v9 }
 0x154   : > { %954 = vadd.xlane.f32.xlu1 %v1796_v22  ;;  %952 = vadd.xlane.f32.xlu0 %v1798_v7  ;;  %v3056_v22 = vsub.f32 %v4053_v26, %v2727_v28  ;;  %v716_v7 = vmul.f32 1.442695, %v3047_v17  ;;  %v1806_v54 = vpop.eup %1805  ;;  %1815 = vpow2.f32 %v718_v0  ;;  %v4059_v28 = vld [vmem:[#allocation51_spill] sm:$0xff]  ;;  %v4060_v26 = vld [vmem:[#allocation21_spill] sm:$0xff] }
 0x155   : > { %v3049_v21 = vpop.xlane.xlu1 %430  ;;  %v3051_v6 = vpop.xlane.xlu0 %428  ;;  %4064 = vst [vmem:[#allocation12_spill] sm:$0xff] %v3075_v36 }
 0x156   : > { %4054 = vst [vmem:[#allocation10_spill] sm:$0xff] %v3056_v22  ;;  %v722_v4 = vmul.f32 1.442695, %v3056_v22  ;;  %1817 = vpow2.f32 %v716_v7  ;;  %v1808_v0 = vpop.eup %1807  ;;  %v4068_v7 = vld [vmem:[#allocation53_spill] sm:$0xff] }
 0x158   : > { %958 = vadd.xlane.f32.xlu1 %v1800_v24  ;;  %956 = vadd.xlane.f32.xlu0 %v1802_v61  ;;  %v3070_v24 = vsub.f32 %v4060_v26, %v4059_v28  ;;  %v720_v61 = vmul.f32 1.442695, %v3061_v13  ;;  %v1810_v58 = vpop.eup %1809  ;;  %1819 = vpow2.f32 %v722_v4  ;;  %v4066_v28 = vld [vmem:[#allocation23_spill] sm:$0xff]  ;;  %v4069_v26 = vld [vmem:[#allocation24_spill] sm:$0xff] }
 0x159   : > { %v3063_v15 = vpop.xlane.xlu1 %434  ;;  %v3065_v19 = vpop.xlane.xlu0 %432  ;;  %v3089_v9 = vsub.f32 %v4069_v26, %v4068_v7 }
 0x15a   : > { %4058 = vst [vmem:[#allocation11_spill] sm:$0xff] %v3065_v19  ;;  %4061 = vst [vmem:[#allocation43_spill] sm:$0xff] %v3070_v24  ;;  %v726_v22 = vmul.f32 1.442695, %v3070_v24  ;;  %1821 = vpow2.f32 %v720_v61  ;;  %v1812_v4 = vpop.eup %1811  ;;  %v4073_v61 = vld [vmem:[#allocation26_spill] sm:$0xff] }
 0x15b   : > { %4070 = vst [vmem:[#allocation45_spill] sm:$0xff] %v3089_v9 }
 0x15c   : > { %962 = vadd.xlane.f32.xlu1 %v1804_v2  ;;  %960 = vadd.xlane.f32.xlu0 %v1806_v54  ;;  %v3084_v2 = vsub.f32 %v4066_v28, %v2747_v33  ;;  %v724_v54 = vmul.f32 1.442695, %v3075_v36  ;;  %1823 = vpow2.f32 %v726_v22  ;;  %v4071_v33 = vld [vmem:[#allocation25_spill] sm:$0xff]  ;;  %v3103_v28 = vsub.f32 %v4073_v61, %v2765_v30  ;;  %v4077_v30 = vld [vmem:[#allocation28_spill] sm:$0xff] }
 0x15d   : > { %v3077_v17 = vpop.xlane.xlu1 %438  ;;  %v3079_v19 = vpop.xlane.xlu0 %436 }
 0x15e   : > { %4065 = vst [vmem:[#allocation44_spill] sm:$0xff] %v3079_v19  ;;  %4067 = vst [vmem:[#allocation13_spill] sm:$0xff] %v3084_v2  ;;  %v1814_v19 = vpop.eup %1813  ;;  %v730_v24 = vmul.f32 1.442695, %v3084_v2  ;;  %1825 = vpow2.f32 %v724_v54  ;;  %v3117_v54 = vsub.f32 %v4077_v30, %v2781_v37  ;;  %v4081_v37 = vld [vmem:[#allocation30_spill] sm:$0xff] }
 0x15f   : > { %4074 = vst [vmem:[#allocation46_spill] sm:$0xff] %v3103_v28  ;;  %v1816_v22 = vpop.eup %1815 }
 0x160   : > { %966 = vadd.xlane.f32.xlu1 %v1808_v0  ;;  %964 = vadd.xlane.f32.xlu0 %v1810_v58  ;;  %v3098_v0 = vsub.f32 %v4071_v33, %v2763_v55  ;;  %v728_v58 = vmul.f32 1.442695, %v3089_v9  ;;  %v1818_v36 = vpop.eup %1817  ;;  %1827 = vpow2.f32 %v730_v24  ;;  %v4075_v55 = vld [vmem:[#allocation27_spill] sm:$0xff]  ;;  %4078 = vst [vmem:[#allocation47_spill] sm:$0xff] %v3117_v54 }
 0x161   : > { %v3091_v11 = vpop.xlane.xlu1 %442  ;;  %v3093_v13 = vpop.xlane.xlu0 %440 }
 0x162   : > { %4072 = vst [vmem:[#allocation14_spill] sm:$0xff] %v3098_v0  ;;  %v734_v2 = vmul.f32 1.442695, %v3098_v0  ;;  %1829 = vpow2.f32 %v728_v58  ;;  %v1820_v24 = vpop.eup %1819  ;;  %v3131_v58 = vsub.f32 %v4081_v37, %v2797_v3 }
 0x164   : > { %970 = vadd.xlane.f32.xlu1 %v1812_v4  ;;  %968 = vadd.xlane.f32.xlu0 %v1814_v19  ;;  %v3112_v4 = vsub.f32 %v4075_v55, %v2779_v27  ;;  %v732_v19 = vmul.f32 1.442695, %v3103_v28  ;;  %v1822_v9 = vpop.eup %1821  ;;  %1831 = vpow2.f32 %v734_v2  ;;  %v4079_v27 = vld [vmem:[#allocation29_spill] sm:$0xff]  ;;  %4082 = vst [vmem:[#allocation48_spill] sm:$0xff] %v3131_v58  ;;  %v740_v3 = vmul.f32 1.442695, %v3131_v58 }
 0x165   : > { %v3105_v7 = vpop.xlane.xlu1 %446  ;;  %v3107_v26 = vpop.xlane.xlu0 %444  ;;  %v2261_v28 = vld [vmem:[%s2347_s12 + $0x268] sm:$0xff] }
 0x166   : > { %4076 = vst [vmem:[#allocation15_spill] sm:$0xff] %v3112_v4  ;;  %v738_v0 = vmul.f32 1.442695, %v3112_v4  ;;  %1833 = vpow2.f32 %v732_v19  ;;  %v1824_v2 = vpop.eup %1823  ;;  %v4085_v19 = vld [vmem:[#allocation32_spill] sm:$0xff] }
 0x168   : > { %974 = vadd.xlane.f32.xlu1 %v1816_v22  ;;  %972 = vadd.xlane.f32.xlu0 %v1818_v36  ;;  %v3126_v22 = vsub.f32 %v4079_v27, %v2795_v32  ;;  %v736_v36 = vmul.f32 1.442695, %v3117_v54  ;;  %v1826_v4 = vpop.eup %1825  ;;  %1835 = vpow2.f32 %v738_v0  ;;  %v3145_v27 = vsub.f32 %v4085_v19, %v2813_v29 }
 0x169   : > { %v3119_v33 = vpop.xlane.xlu1 %450  ;;  %v3121_v61 = vpop.xlane.xlu0 %448 }
 0x16a   : > { %4080 = vst [vmem:[#allocation16_spill] sm:$0xff] %v3126_v22  ;;  %v742_v32 = vmul.f32 1.442695, %v3126_v22  ;;  %1837 = vpow2.f32 %v736_v36  ;;  %4086 = vst [vmem:[#allocation49_spill] sm:$0xff] %v3145_v27  ;;  %v1828_v0 = vpop.eup %1827  ;;  %v744_v29 = vmul.f32 1.442695, %v3145_v27 }
 0x16b   : > { %v2244_v36 = vld [vmem:[%s2347_s12 + $0x1d0] sm:$0xff] }
 0x16c   : > { %978 = vadd.xlane.f32.xlu1 %v1820_v24  ;;  %976 = vadd.xlane.f32.xlu0 %v1822_v9  ;;  %v4083_v24 = vld [vmem:[#allocation31_spill] sm:$0xff]  ;;  %v1830_v22 = vpop.eup %1829  ;;  %1839 = vpow2.f32 %v742_v32 }
 0x16d   : > { %v3133_v55 = vpop.xlane.xlu1 %454  ;;  %v3135_v30 = vpop.xlane.xlu0 %452  ;;  %v3140_v9 = vsub.f32 %v4083_v24, %v2811_v63  ;;  %1841 = vpow2.f32 %v740_v3  ;;  %v3159_v24 = vsub.f32 %v2244_v36, %v2827_v5  ;;  %v2246_v3 = vld [vmem:[%s2347_s12 + $0x1e0] sm:$0xff] }
 0x16e   : > { %v1832_v58 = vpop.eup %1831 }
 0x16f   : > { %4084 = vst [vmem:[#allocation17_spill] sm:$0xff] %v3140_v9  ;;  %v746_v63 = vmul.f32 1.442695, %v3140_v9  ;;  %4088 = vst [vmem:[#allocation19_spill] sm:$0xff] %v3159_v24  ;;  %v748_v5 = vmul.f32 1.442695, %v3159_v24 }
 0x170   : > { %982 = vadd.xlane.f32.xlu1 %v1824_v2  ;;  %980 = vadd.xlane.f32.xlu0 %v1826_v4  ;;  %v2243_v2 = vld [vmem:[%s2347_s12 + $0x1d8] sm:$0xff]  ;;  %v1834_v9 = vpop.eup %1833 }
 0x171   : > { %v3147_v37 = vpop.xlane.xlu1 %458  ;;  %v3149_v54 = vpop.xlane.xlu0 %456  ;;  %v3154_v4 = vsub.f32 %v2243_v2, %v2825_v60  ;;  %1843 = vpow2.f32 %v746_v63  ;;  %v3173_v2 = vsub.f32 %v2246_v3, %v2841_v62 }
 0x172   : > { %1845 = vpow2.f32 %v744_v29  ;;  %v1836_v27 = vpop.eup %1835  ;;  %v2248_v29 = vld [vmem:[%s2347_s12 + $0x1f0] sm:$0xff] }
 0x173   : > { %4087 = vst [vmem:[#allocation18_spill] sm:$0xff] %v3154_v4  ;;  %v750_v60 = vmul.f32 1.442695, %v3154_v4  ;;  %4090 = vst [vmem:[#allocation20_spill] sm:$0xff] %v3173_v2  ;;  %v752_v62 = vmul.f32 1.442695, %v3173_v2 }
 0x174   : > { %986 = vadd.xlane.f32.xlu1 %v1828_v0  ;;  %984 = vadd.xlane.f32.xlu0 %v1830_v22  ;;  %v2245_v0 = vld [vmem:[%s2347_s12 + $0x1e8] sm:$0xff]  ;;  %v1838_v4 = vpop.eup %1837 }
 0x175   : > { %v3161_v19 = vpop.xlane.xlu1 %462  ;;  %v3163_v32 = vpop.xlane.xlu0 %460  ;;  %v3168_v22 = vsub.f32 %v2245_v0, %v2839_v53  ;;  %1847 = vpow2.f32 %v750_v60  ;;  %v3187_v0 = vsub.f32 %v2248_v29, %v2855_v59 }
 0x176   : > { %1849 = vpow2.f32 %v748_v5  ;;  %v1840_v24 = vpop.eup %1839  ;;  %v2250_v5 = vld [vmem:[%s2347_s12 + $0x200] sm:$0xff] }
 0x177   : > { %4089 = vst [vmem:[#allocation50_spill] sm:$0xff] %v3168_v22  ;;  %v754_v53 = vmul.f32 1.442695, %v3168_v22  ;;  %4092 = vst [vmem:[#allocation21_spill] sm:$0xff] %v3187_v0  ;;  %v1842_v22 = vpop.eup %1841  ;;  %v756_v59 = vmul.f32 1.442695, %v3187_v0 }
 0x178   : > { %990 = vadd.xlane.f32.xlu1 %v1832_v58  ;;  %988 = vadd.xlane.f32.xlu0 %v1834_v9  ;;  %v2247_v58 = vld [vmem:[%s2347_s12 + $0x1f8] sm:$0xff] }
 0x179   : > { %v3175_v36 = vpop.xlane.xlu1 %466  ;;  %v3177_v63 = vpop.xlane.xlu0 %464  ;;  %v3182_v9 = vsub.f32 %v2247_v58, %v2853_v51  ;;  %1851 = vpow2.f32 %v754_v53  ;;  %v3201_v58 = vsub.f32 %v2250_v5, %v2869_v52 }
 0x17a   : > { %1853 = vpow2.f32 %v752_v62  ;;  %v2252_v62 = vld [vmem:[%s2347_s12 + $0x210] sm:$0xff] }
 0x17b   : > { %4091 = vst [vmem:[#allocation51_spill] sm:$0xff] %v3182_v9  ;;  %v758_v51 = vmul.f32 1.442695, %v3182_v9  ;;  %4094 = vst [vmem:[#allocation22_spill] sm:$0xff] %v3201_v58  ;;  %v1844_v2 = vpop.eup %1843  ;;  %v760_v52 = vmul.f32 1.442695, %v3201_v58 }
 0x17c   : > { %994 = vadd.xlane.f32.xlu1 %v1836_v27  ;;  %992 = vadd.xlane.f32.xlu0 %v1838_v4  ;;  %v2249_v27 = vld [vmem:[%s2347_s12 + $0x208] sm:$0xff]  ;;  %v1846_v9 = vpop.eup %1845 }
 0x17d   : > { %v3189_v3 = vpop.xlane.xlu1 %470  ;;  %v3191_v60 = vpop.xlane.xlu0 %468  ;;  %v3196_v4 = vsub.f32 %v2249_v27, %v2867_v49  ;;  %1855 = vpow2.f32 %v758_v51  ;;  %v3215_v27 = vsub.f32 %v2252_v62, %v2883_v50 }
 0x17e   : > { %1857 = vpow2.f32 %v756_v59  ;;  %v2254_v59 = vld [vmem:[%s2347_s12 + $0x220] sm:$0xff] }
 0x17f   : > { %4093 = vst [vmem:[#allocation52_spill] sm:$0xff] %v3196_v4  ;;  %v762_v49 = vmul.f32 1.442695, %v3196_v4  ;;  %4096 = vst [vmem:[#allocation53_spill] sm:$0xff] %v3215_v27  ;;  %v1848_v0 = vpop.eup %1847  ;;  %v764_v50 = vmul.f32 1.442695, %v3215_v27 }
 0x180   : > { %998 = vadd.xlane.f32.xlu1 %v1840_v24  ;;  %996 = vadd.xlane.f32.xlu0 %v1842_v22  ;;  %v2251_v24 = vld [vmem:[%s2347_s12 + $0x218] sm:$0xff]  ;;  %v1850_v4 = vpop.eup %1849 }
 0x181   : > { %v3203_v29 = vpop.xlane.xlu1 %474  ;;  %v3205_v53 = vpop.xlane.xlu0 %472  ;;  %v3210_v22 = vsub.f32 %v2251_v24, %v2881_v47  ;;  %1859 = vpow2.f32 %v762_v49  ;;  %v3229_v24 = vsub.f32 %v2254_v59, %v2897_v48 }
 0x182   : > { %1861 = vpow2.f32 %v760_v52  ;;  %v2256_v52 = vld [vmem:[%s2347_s12 + $0x230] sm:$0xff] }
 0x183   : > { %4095 = vst [vmem:[#allocation23_spill] sm:$0xff] %v3210_v22  ;;  %v766_v47 = vmul.f32 1.442695, %v3210_v22  ;;  %4098 = vst [vmem:[#allocation25_spill] sm:$0xff] %v3229_v24  ;;  %v1852_v58 = vpop.eup %1851  ;;  %v768_v48 = vmul.f32 1.442695, %v3229_v24 }
 0x184   : > { %1002 = vadd.xlane.f32.xlu1 %v1844_v2  ;;  %1000 = vadd.xlane.f32.xlu0 %v1846_v9  ;;  %v2253_v2 = vld [vmem:[%s2347_s12 + $0x228] sm:$0xff]  ;;  %v1854_v22 = vpop.eup %1853 }
 0x185   : > { %v3217_v5 = vpop.xlane.xlu1 %478  ;;  %v3219_v51 = vpop.xlane.xlu0 %476  ;;  %v3224_v9 = vsub.f32 %v2253_v2, %v2895_v45  ;;  %1863 = vpow2.f32 %v766_v47  ;;  %v3243_v2 = vsub.f32 %v2256_v52, %v2911_v46 }
 0x186   : > { %1865 = vpow2.f32 %v764_v50  ;;  %v2258_v50 = vld [vmem:[%s2347_s12 + $0x240] sm:$0xff] }
 0x187   : > { %4097 = vst [vmem:[#allocation24_spill] sm:$0xff] %v3224_v9  ;;  %v770_v45 = vmul.f32 1.442695, %v3224_v9  ;;  %4100 = vst [vmem:[#allocation27_spill] sm:$0xff] %v3243_v2  ;;  %v1856_v27 = vpop.eup %1855  ;;  %v772_v46 = vmul.f32 1.442695, %v3243_v2 }
 0x188   : > { %1006 = vadd.xlane.f32.xlu1 %v1848_v0  ;;  %1004 = vadd.xlane.f32.xlu0 %v1850_v4  ;;  %v2255_v0 = vld [vmem:[%s2347_s12 + $0x238] sm:$0xff]  ;;  %v1858_v9 = vpop.eup %1857 }
 0x189   : > { %v3231_v62 = vpop.xlane.xlu1 %482  ;;  %v3233_v49 = vpop.xlane.xlu0 %480  ;;  %v3238_v4 = vsub.f32 %v2255_v0, %v2909_v43  ;;  %1867 = vpow2.f32 %v770_v45  ;;  %v3257_v0 = vsub.f32 %v2258_v50, %v2925_v44 }
 0x18a   : > { %1869 = vpow2.f32 %v768_v48  ;;  %v2260_v48 = vld [vmem:[%s2347_s12 + $0x250] sm:$0xff] }
 0x18b   : > { %4099 = vst [vmem:[#allocation26_spill] sm:$0xff] %v3238_v4  ;;  %v774_v43 = vmul.f32 1.442695, %v3238_v4  ;;  %4102 = vst [vmem:[#allocation29_spill] sm:$0xff] %v3257_v0  ;;  %v1860_v24 = vpop.eup %1859  ;;  %v776_v44 = vmul.f32 1.442695, %v3257_v0 }
 0x18c   : > { %1010 = vadd.xlane.f32.xlu1 %v1852_v58  ;;  %1008 = vadd.xlane.f32.xlu0 %v1854_v22  ;;  %v2257_v58 = vld [vmem:[%s2347_s12 + $0x248] sm:$0xff]  ;;  %v1862_v4 = vpop.eup %1861 }
 0x18d   : > { %v3245_v59 = vpop.xlane.xlu1 %486  ;;  %v3247_v47 = vpop.xlane.xlu0 %484  ;;  %v3252_v22 = vsub.f32 %v2257_v58, %v2923_v41  ;;  %1871 = vpow2.f32 %v774_v43  ;;  %v3271_v58 = vsub.f32 %v2260_v48, %v2939_v31 }
 0x18e   : > { %1873 = vpow2.f32 %v772_v46 }
 0x18f   : > { %4101 = vst [vmem:[#allocation28_spill] sm:$0xff] %v3252_v22  ;;  %v778_v41 = vmul.f32 1.442695, %v3252_v22  ;;  %4104 = vst [vmem:[#allocation31_spill] sm:$0xff] %v3271_v58  ;;  %v1864_v22 = vpop.eup %1863  ;;  %v780_v31 = vmul.f32 1.442695, %v3271_v58 }
 0x190   : > { %1014 = vadd.xlane.f32.xlu1 %v1856_v27  ;;  %1012 = vadd.xlane.f32.xlu0 %v1858_v9  ;;  %v2259_v27 = vld [vmem:[%s2347_s12 + $0x258] sm:$0xff]  ;;  %v1866_v2 = vpop.eup %1865 }
 0x191   : > { %v3259_v52 = vpop.xlane.xlu1 %490  ;;  %v3261_v45 = vpop.xlane.xlu0 %488  ;;  %v3266_v9 = vsub.f32 %v2259_v27, %v2937_v56  ;;  %v3279_v56 = vsub.f32 %v2261_v28, %v2951_v23  ;;  %1875 = vpow2.f32 %v778_v41  ;;  %v2263_v27 = vld [vmem:[%s2347_s12 + $0x278] sm:$0xff]  ;;  %v2264_v41 = vld [vmem:[%s2347_s12 + $0x270] sm:$0xff] }
 0x192   : > { %1877 = vpow2.f32 %v776_v44  ;;  %v3289_v48 = vsub.f32 %v2263_v27, %v2965_v42 }
 0x193   : > { %4103 = vst [vmem:[#allocation30_spill] sm:$0xff] %v3266_v9  ;;  %4105 = vst [vmem:[#allocation32_spill] sm:$0xff] %v3279_v56  ;;  %v1868_v28 = vpop.eup %1867 }
 0x194   : > { %1018 = vadd.xlane.f32.xlu1 %v1860_v24  ;;  %1016 = vadd.xlane.f32.xlu0 %v1862_v4  ;;  %v782_v24 = vmul.f32 1.442695, %v3266_v9  ;;  %v2262_v4 = vld [vmem:[%s2347_s12 + $0x260] sm:$0xff]  ;;  %4106 = vst [vmem:[#allocation78_spill] sm:$0xff] %v3289_v48  ;;  %v3297_v9 = vsub.f32 %v2264_v41, %v2967_v18 }
 0x195   : > { %v3273_v50 = vpop.xlane.xlu1 %494  ;;  %v3275_v43 = vpop.xlane.xlu0 %492  ;;  %v3284_v46 = vsub.f32 %v2262_v4, %v2953_v20  ;;  %v790_v4 = vmul.f32 1.442695, %v3289_v48 }
 0x196   : > { %4107 = vst [vmem:[#allocation79_spill] sm:$0xff] %v3297_v9  ;;  %v1870_v20 = vpop.eup %1869  ;;  %1879 = vpow2.f32 %v782_v24  ;;  %v2266_v24 = vld [vmem:[%s2347_s12 + $0x280] sm:$0xff] }
 0x197   : > { %v784_v42 = vmul.f32 1.442695, %v3284_v46  ;;  %1881 = vpow2.f32 %v780_v31  ;;  %v1872_v41 = vpop.eup %1871  ;;  %v2267_v31 = vld [vmem:[%s2347_s12 + $0x298] sm:$0xff] }
 0x198   : > { %1022 = vadd.xlane.f32.xlu1 %v1864_v22  ;;  %1020 = vadd.xlane.f32.xlu0 %v1866_v2  ;;  %v786_v22 = vmul.f32 1.442695, %v3279_v56  ;;  %v2265_v2 = vld [vmem:[%s2347_s12 + $0x288] sm:$0xff]  ;;  %v788_v56 = vmul.f32 1.442695, %v3297_v9  ;;  %v1874_v58 = vpop.eup %1873 }
 0x199   : > { %v3291_v0 = vpop.xlane.xlu1 %498  ;;  %v3293_v23 = vpop.xlane.xlu0 %496  ;;  %v3302_v44 = vsub.f32 %v2265_v2, %v2979_v39 }
 0x19a   : > { %1883 = vpow2.f32 %v786_v22 }
 0x19b   : > { %4108 = vst [vmem:[#allocation80_spill] sm:$0xff] %v3302_v44  ;;  %v794_v39 = vmul.f32 1.442695, %v3302_v44  ;;  %1885 = vpow2.f32 %v784_v42  ;;  %v1876_v48 = vpop.eup %1875  ;;  %v2268_v44 = vld [vmem:[%s2347_s12 + $0x290] sm:$0xff] }
 0x19c   : > { %1026 = vadd.xlane.f32.xlu1 %v1868_v28  ;;  %1024 = vadd.xlane.f32.xlu0 %v1870_v20  ;;  %v3314_v28 = vsub.f32 %v2266_v24, %v2981_v16  ;;  %1887 = vpow2.f32 %v790_v4  ;;  %v3318_v20 = vsub.f32 %v2267_v31, %v2993_v25  ;;  %v1878_v22 = vpop.eup %1877  ;;  %v3323_v16 = vsub.f32 %v2268_v44, %v2995_v14  ;;  %v2269_v25 = vld [vmem:[%s2347_s12 + $0x2a8] sm:$0xff]  ;;  %v2270_v44 = vld [vmem:[%s2347_s12 + $0x2a0] sm:$0xff] }
 0x19d   : > { %v3306_v27 = vpop.xlane.xlu1 %502  ;;  %v3308_v18 = vpop.xlane.xlu0 %500  ;;  %1889 = vpow2.f32 %v788_v56  ;;  %v3328_v4 = vsub.f32 %v2269_v25, %v3007_v1 }
 0x19e   : > { %1891 = vpow2.f32 %v794_v39  ;;  %v792_v42 = vmul.f32 1.442695, %v3314_v28  ;;  %v796_v14 = vmul.f32 1.442695, %v3323_v16 }
 0x19f   : > { %4109 = vst [vmem:[#allocation81_spill] sm:$0xff] %v3328_v4  ;;  %v802_v1 = vmul.f32 1.442695, %v3328_v4 }
 0x1a0   : > { %1030 = vadd.xlane.f32.xlu1 %v1872_v41  ;;  %1028 = vadd.xlane.f32.xlu0 %v1874_v58  ;;  %v798_v58 = vmul.f32 1.442695, %v3318_v20  ;;  %v1880_v39 = vpop.eup %1879 }
 0x1a1   : > { %v891_v2 = vpop.xlane.xlu1 %890  ;;  %v889_v9 = vpop.xlane.xlu0 %888 }
 0x1a2   : > { %1893 = vlog2.f32 %v891_v2  ;;  %v1882_v24 = vpop.eup %1881 }
 0x1a3   : > { %1895 = vlog2.f32 %v889_v9 }
 0x1a4   : > { %1034 = vadd.xlane.f32.xlu1 %v1876_v48  ;;  %1032 = vadd.xlane.f32.xlu0 %v1878_v22  ;;  %v3333_v48 = vsub.f32 %v2270_v44, %v3009_v12  ;;  %v1884_v31 = vpop.eup %1883 }
 0x1a5   : > { %v895_v56 = vpop.xlane.xlu1 %894  ;;  %v893_v41 = vpop.xlane.xlu0 %892 }
 0x1a6   : > { %1897 = vlog2.f32 %v895_v56  ;;  %4110 = vst [vmem:[#allocation82_spill] sm:$0xff] %v3333_v48  ;;  %v1886_v22 = vpop.eup %1885  ;;  %v800_v56 = vmul.f32 1.442695, %v3333_v48 }
 0x1a7   : > { %1899 = vlog2.f32 %v893_v41  ;;  %v1888_v25 = vpop.eup %1887  ;;  %v2271_v41 = vld [vmem:[%s2347_s12 + $0x2b8] sm:$0xff] }
 0x1a8   : > { %1901 = vpow2.f32 %v792_v42  ;;  %1038 = vadd.xlane.f32.xlu1 %v1880_v39  ;;  %1036 = vadd.xlane.f32.xlu0 %v1882_v24  ;;  %v1890_v42 = vpop.eup %1889  ;;  %v3339_v12 = vsub.f32 %v2271_v41, %v3021_v38  ;;  %v2272_v39 = vld [vmem:[%s2347_s12 + $0x2b0] sm:$0xff] }
 0x1a9   : > { %1903 = vpow2.f32 %v798_v58  ;;  %v899_v9 = vpop.xlane.xlu1 %898  ;;  %v897_v2 = vpop.xlane.xlu0 %896  ;;  %v3343_v24 = vsub.f32 %v2272_v39, %v3023_v10  ;;  %v2273_v10 = vld [vmem:[%s2347_s12 + $0x2c8] sm:$0xff]  ;;  %v2274_v39 = vld [vmem:[%s2347_s12 + $0x2c0] sm:$0xff] }
 0x1aa   : > { %1905 = vlog2.f32 %v899_v9  ;;  %4111 = vst [vmem:[#allocation83_spill] sm:$0xff] %v3339_v12  ;;  %v1892_v58 = vpop.eup %1891  ;;  %v806_v38 = vmul.f32 1.442695, %v3339_v12 }
 0x1ab   : > { %1907 = vlog2.f32 %v897_v2  ;;  %v804_v41 = vmul.f32 1.442695, %v3343_v24 }
 0x1ac   : > { %1909 = vpow2.f32 %v796_v14  ;;  %1042 = vadd.xlane.f32.xlu1 %v1884_v31  ;;  %1040 = vadd.xlane.f32.xlu0 %v1886_v22  ;;  %v1894_v2 = vpop.eup %1893  ;;  %v3355_v31 = vsub.f32 %v2273_v10, %v3035_v40 }
 0x1ad   : > { %1911 = vpow2.f32 %v802_v1  ;;  %v903_v44 = vpop.xlane.xlu1 %902  ;;  %v901_v9 = vpop.xlane.xlu0 %900  ;;  %v1147_v48 = vmul.f32 0.6931472, %v1894_v2 }
 0x1ae   : > { %1913 = vlog2.f32 %v903_v44  ;;  %v1896_v14 = vpop.eup %1895  ;;  %v3360_v44 = vsub.f32 %v2274_v39, %v3037_v8  ;;  %v2276_v39 = vld [vmem:[%s2347_s12 + $0x2d0] sm:$0xff] }
 0x1af   : > { %1915 = vlog2.f32 %v901_v9  ;;  %v1145_v1 = vmul.f32 0.6931472, %v1896_v14 }
 0x1b0   : > { %v1898_v4 = vpop.eup %1897  ;;  %1917 = vpow2.f32 %v800_v56  ;;  %1046 = vadd.xlane.f32.xlu1 %v1888_v25  ;;  %1044 = vadd.xlane.f32.xlu0 %v1890_v42  ;;  %v1401_v56 = vsub.f32 %v2745_v34, %v1147_v48  ;;  %v810_v34 = vmul.f32 1.442695, %v3355_v31 }
 0x1b1   : > { %v1900_v22 = vpop.eup %1899  ;;  %v1151_v9 = vmul.f32 0.6931472, %v1898_v4  ;;  %v907_v2 = vpop.xlane.xlu1 %906  ;;  %v1400_v14 = vsub.f32 %v2741_v35, %v1145_v1  ;;  %v2275_v4 = vld [vmem:[%s2347_s12 + $0x2d8] sm:$0xff]  ;;  %v4112_v35 = vld [vmem:[#allocation54_spill] sm:$0xff] }
 0x1b2   : > { %v905_v12 = vpop.xlane.xlu0 %904  ;;  %v1902_v40 = vpop.eup %1901  ;;  %v1149_v10 = vmul.f32 0.6931472, %v1900_v22  ;;  %1919 = vlog2.f32 %v907_v2  ;;  %1529 = vst [vmem:[%s3350_s15 + $0x8] sm:$0xff] %v1401_v56  ;;  %v3369_v48 = vsub.f32 %v2275_v4, %v3049_v21 }
 0x1b3   : > { %v1904_v25 = vpop.eup %1903  ;;  %v1403_v42 = vsub.f32 %v2760_v57, %v1151_v9  ;;  %1921 = vlog2.f32 %v905_v12  ;;  %1528 = vst [vmem:[%s3350_s15] sm:$0xff] %v1400_v14  ;;  %v808_v57 = vmul.f32 1.442695, %v3360_v44  ;;  %v3376_v12 = vsub.f32 %v2276_v39, %v3051_v6  ;;  %v2277_v6 = vld [vmem:[%s2347_s12 + $0x2e8] sm:$0xff] }
 0x1b4   : > { %v1906_v8 = vpop.eup %1905  ;;  %1923 = vpow2.f32 %v806_v38  ;;  %v1402_v1 = vsub.f32 %v4112_v35, %v1149_v10  ;;  %1050 = vadd.xlane.f32.xlu1 %v1892_v58  ;;  %1048 = vadd.xlane.f32.xlu0 %v1902_v40  ;;  %v4113_v40 = vld [vmem:[#allocation55_spill] sm:$0xff]  ;;  %v814_v10 = vmul.f32 1.442695, %v3369_v48 }
 0x1b5   : > { %v1908_v22 = vpop.eup %1907  ;;  %1925 = vpow2.f32 %v804_v41  ;;  %1531 = vst [vmem:[%s3350_s15 + $0x18] sm:$0xff] %v1403_v42  ;;  %v1155_v38 = vmul.f32 0.6931472, %v1906_v8  ;;  %v911_v56 = vpop.xlane.xlu1 %910  ;;  %v3384_v42 = vsub.f32 %v2277_v6, %v3063_v15  ;;  %v4114_v8 = vld [vmem:[#allocation56_spill] sm:$0xff]  ;;  %v4115_v39 = vld [vmem:[#allocation11_spill] sm:$0xff]  ;;  %v2279_v6 = vld [vmem:[%s2347_s12 + $0x2f8] sm:$0xff] }
 0x1b6   : > { %v909_v9 = vpop.xlane.xlu0 %908  ;;  %v1910_v21 = vpop.eup %1909  ;;  %1530 = vst [vmem:[%s3350_s15 + $0x10] sm:$0xff] %v1402_v1  ;;  %v1153_v2 = vmul.f32 0.6931472, %v1908_v22  ;;  %1927 = vlog2.f32 %v911_v56  ;;  %v812_v1 = vmul.f32 1.442695, %v3376_v12  ;;  %v2278_v22 = vld [vmem:[%s2347_s12 + $0x2e0] sm:$0xff] }
 0x1b7   : > { %v1912_v58 = vpop.eup %1911  ;;  %v1405_v41 = vsub.f32 %v4113_v40, %v1155_v38  ;;  %1929 = vlog2.f32 %v909_v9  ;;  %v3390_v38 = vsub.f32 %v2278_v22, %v4115_v39  ;;  %v2280_v22 = vld [vmem:[%s2347_s12 + $0x2f0] sm:$0xff] }
 0x1b8   : > { %v1914_v14 = vpop.eup %1913  ;;  %1931 = vpow2.f32 %v810_v34  ;;  %v1404_v4 = vsub.f32 %v4114_v8, %v1153_v2  ;;  %1054 = vadd.xlane.f32.xlu1 %v1904_v25  ;;  %1052 = vadd.xlane.f32.xlu0 %v1910_v21  ;;  %v4116_v25 = vld [vmem:[#allocation57_spill] sm:$0xff]  ;;  %v818_v2 = vmul.f32 1.442695, %v3384_v42  ;;  %v4118_v39 = vld [vmem:[#allocation44_spill] sm:$0xff] }
 0x1b9   : > { %v1916_v35 = vpop.eup %1915  ;;  %1933 = vpow2.f32 %v808_v57  ;;  %1533 = vst [vmem:[%s3350_s15 + $0x28] sm:$0xff] %v1405_v41  ;;  %v1159_v34 = vmul.f32 0.6931472, %v1914_v14  ;;  %v915_v56 = vpop.xlane.xlu1 %914  ;;  %v3398_v41 = vsub.f32 %v2279_v6, %v3077_v17  ;;  %v4117_v14 = vld [vmem:[#allocation58_spill] sm:$0xff] }
 0x1ba   : > { %v913_v9 = vpop.xlane.xlu0 %912  ;;  %v1918_v40 = vpop.eup %1917  ;;  %1532 = vst [vmem:[%s3350_s15 + $0x20] sm:$0xff] %v1404_v4  ;;  %v1157_v15 = vmul.f32 0.6931472, %v1916_v35  ;;  %1935 = vlog2.f32 %v915_v56  ;;  %v816_v35 = vmul.f32 1.442695, %v3390_v38 }
 0x1bb   : > { %v1407_v21 = vsub.f32 %v4116_v25, %v1159_v34  ;;  %1937 = vlog2.f32 %v913_v9  ;;  %v3404_v34 = vsub.f32 %v2280_v22, %v4118_v39  ;;  %v822_v6 = vmul.f32 1.442695, %v3398_v41  ;;  %v2282_v39 = vld [vmem:[%s2347_s12 + $0x300] sm:$0xff] }
 0x1bc   : > { %v1920_v57 = vpop.eup %1919  ;;  %1939 = vpow2.f32 %v814_v10  ;;  %v1406_v8 = vsub.f32 %v4117_v14, %v1157_v15  ;;  %1058 = vadd.xlane.f32.xlu1 %v1912_v58  ;;  %1056 = vadd.xlane.f32.xlu0 %v1918_v40  ;;  %v4119_v40 = vld [vmem:[#allocation59_spill] sm:$0xff] }
 0x1bd   : > { %v1922_v4 = vpop.eup %1921  ;;  %1941 = vpow2.f32 %v812_v1  ;;  %1535 = vst [vmem:[%s3350_s15 + $0x38] sm:$0xff] %v1407_v21  ;;  %v1163_v10 = vmul.f32 0.6931472, %v1920_v57  ;;  %v919_v56 = vpop.xlane.xlu1 %918  ;;  %v2281_v14 = vld [vmem:[%s2347_s12 + $0x308] sm:$0xff]  ;;  %v4120_v57 = vld [vmem:[#allocation60_spill] sm:$0xff] }
 0x1be   : > { %v917_v9 = vpop.xlane.xlu0 %916  ;;  %v1924_v25 = vpop.eup %1923  ;;  %1534 = vst [vmem:[%s3350_s15 + $0x30] sm:$0xff] %v1406_v8  ;;  %v1161_v17 = vmul.f32 0.6931472, %v1922_v4  ;;  %1943 = vlog2.f32 %v919_v56  ;;  %v3412_v21 = vsub.f32 %v2281_v14, %v3091_v11  ;;  %v820_v4 = vmul.f32 1.442695, %v3404_v34 }
 0x1bf   : > { %v1926_v58 = vpop.eup %1925  ;;  %v1409_v1 = vsub.f32 %v4119_v40, %v1163_v10  ;;  %1945 = vlog2.f32 %v917_v9  ;;  %v3418_v10 = vsub.f32 %v2282_v39, %v3093_v13  ;;  %v2283_v13 = vld [vmem:[%s2347_s12 + $0x318] sm:$0xff]  ;;  %v2284_v39 = vld [vmem:[%s2347_s12 + $0x310] sm:$0xff] }
 0x1c0   : > { %v1928_v15 = vpop.eup %1927  ;;  %1947 = vpow2.f32 %v818_v2  ;;  %v1408_v22 = vsub.f32 %v4120_v57, %v1161_v17  ;;  %1062 = vadd.xlane.f32.xlu1 %v1924_v25  ;;  %1060 = vadd.xlane.f32.xlu0 %v1926_v58  ;;  %v4121_v17 = vld [vmem:[#allocation61_spill] sm:$0xff]  ;;  %v826_v14 = vmul.f32 1.442695, %v3412_v21 }
 0x1c1   : > { %v1930_v8 = vpop.eup %1929  ;;  %1949 = vpow2.f32 %v816_v35  ;;  %1537 = vst [vmem:[%s3350_s15 + $0x48] sm:$0xff] %v1409_v1  ;;  %v1167_v2 = vmul.f32 0.6931472, %v1928_v15  ;;  %v923_v56 = vpop.xlane.xlu1 %922  ;;  %v3426_v1 = vsub.f32 %v2283_v13, %v3105_v7  ;;  %v4122_v15 = vld [vmem:[#allocation62_spill] sm:$0xff] }
 0x1c2   : > { %v921_v9 = vpop.xlane.xlu0 %920  ;;  %v1932_v40 = vpop.eup %1931  ;;  %1536 = vst [vmem:[%s3350_s15 + $0x40] sm:$0xff] %v1408_v22  ;;  %v1165_v11 = vmul.f32 0.6931472, %v1930_v8  ;;  %1951 = vlog2.f32 %v923_v56  ;;  %v824_v8 = vmul.f32 1.442695, %v3418_v10 }
 0x1c3   : > { %v1934_v25 = vpop.eup %1933  ;;  %v1411_v35 = vsub.f32 %v4121_v17, %v1167_v2  ;;  %1953 = vlog2.f32 %v921_v9  ;;  %v3432_v2 = vsub.f32 %v2284_v39, %v3107_v26  ;;  %v830_v13 = vmul.f32 1.442695, %v3426_v1  ;;  %v2285_v26 = vld [vmem:[%s2347_s12 + $0x328] sm:$0xff]  ;;  %v2286_v39 = vld [vmem:[%s2347_s12 + $0x320] sm:$0xff] }
 0x1c4   : > { %v1936_v58 = vpop.eup %1935  ;;  %1955 = vpow2.f32 %v822_v6  ;;  %v1410_v57 = vsub.f32 %v4122_v15, %v1165_v11  ;;  %1066 = vadd.xlane.f32.xlu1 %v1932_v40  ;;  %1064 = vadd.xlane.f32.xlu0 %v1934_v25  ;;  %v4123_v11 = vld [vmem:[#allocation63_spill] sm:$0xff] }
 0x1c5   : > { %v1938_v22 = vpop.eup %1937  ;;  %1957 = vpow2.f32 %v820_v4  ;;  %1539 = vst [vmem:[%s3350_s15 + $0x58] sm:$0xff] %v1411_v35  ;;  %v1171_v6 = vmul.f32 0.6931472, %v1936_v58  ;;  %v927_v56 = vpop.xlane.xlu1 %926  ;;  %v3440_v35 = vsub.f32 %v2285_v26, %v3119_v33  ;;  %v4124_v58 = vld [vmem:[#allocation64_spill] sm:$0xff] }
 0x1c6   : > { %v925_v9 = vpop.xlane.xlu0 %924  ;;  %v1940_v17 = vpop.eup %1939  ;;  %1538 = vst [vmem:[%s3350_s15 + $0x50] sm:$0xff] %v1410_v57  ;;  %v1169_v7 = vmul.f32 0.6931472, %v1938_v22  ;;  %1959 = vlog2.f32 %v927_v56  ;;  %v828_v22 = vmul.f32 1.442695, %v3432_v2 }
 0x1c7   : > { %v1942_v40 = vpop.eup %1941  ;;  %v1413_v4 = vsub.f32 %v4123_v11, %v1171_v6  ;;  %1961 = vlog2.f32 %v925_v9  ;;  %v3446_v6 = vsub.f32 %v2286_v39, %v3121_v61  ;;  %v834_v26 = vmul.f32 1.442695, %v3440_v35  ;;  %v2287_v61 = vld [vmem:[%s2347_s12 + $0x338] sm:$0xff]  ;;  %v2288_v39 = vld [vmem:[%s2347_s12 + $0x330] sm:$0xff] }
 0x1c8   : > { %v1944_v25 = vpop.eup %1943  ;;  %1963 = vpow2.f32 %v826_v14  ;;  %v1412_v15 = vsub.f32 %v4124_v58, %v1169_v7  ;;  %1070 = vadd.xlane.f32.xlu1 %v1940_v17  ;;  %1068 = vadd.xlane.f32.xlu0 %v1942_v40  ;;  %v4125_v7 = vld [vmem:[#allocation65_spill] sm:$0xff] }
 0x1c9   : > { %v1946_v57 = vpop.eup %1945  ;;  %1965 = vpow2.f32 %v824_v8  ;;  %1541 = vst [vmem:[%s3350_s15 + $0x68] sm:$0xff] %v1413_v4  ;;  %v1175_v14 = vmul.f32 0.6931472, %v1944_v25  ;;  %v931_v56 = vpop.xlane.xlu1 %930  ;;  %v3454_v4 = vsub.f32 %v2287_v61, %v3133_v55  ;;  %v4126_v25 = vld [vmem:[#allocation66_spill] sm:$0xff] }
 0x1ca   : > { %v929_v9 = vpop.xlane.xlu0 %928  ;;  %v1948_v11 = vpop.eup %1947  ;;  %1540 = vst [vmem:[%s3350_s15 + $0x60] sm:$0xff] %v1412_v15  ;;  %v1173_v33 = vmul.f32 0.6931472, %v1946_v57  ;;  %1967 = vlog2.f32 %v931_v56  ;;  %v832_v57 = vmul.f32 1.442695, %v3446_v6 }
 0x1cb   : > { %v1950_v17 = vpop.eup %1949  ;;  %v1415_v8 = vsub.f32 %v4125_v7, %v1175_v14  ;;  %1969 = vlog2.f32 %v929_v9  ;;  %v3460_v14 = vsub.f32 %v2288_v39, %v3135_v30  ;;  %v838_v61 = vmul.f32 1.442695, %v3454_v4  ;;  %v2289_v30 = vld [vmem:[%s2347_s12 + $0x348] sm:$0xff]  ;;  %v2290_v39 = vld [vmem:[%s2347_s12 + $0x340] sm:$0xff] }
 0x1cc   : > { %v1952_v40 = vpop.eup %1951  ;;  %1971 = vpow2.f32 %v830_v13  ;;  %v1414_v58 = vsub.f32 %v4126_v25, %v1173_v33  ;;  %1074 = vadd.xlane.f32.xlu1 %v1948_v11  ;;  %1072 = vadd.xlane.f32.xlu0 %v1950_v17  ;;  %v4127_v33 = vld [vmem:[#allocation67_spill] sm:$0xff] }
 0x1cd   : > { %v1954_v15 = vpop.eup %1953  ;;  %1973 = vpow2.f32 %v828_v22  ;;  %1543 = vst [vmem:[%s3350_s15 + $0x78] sm:$0xff] %v1415_v8  ;;  %v1179_v13 = vmul.f32 0.6931472, %v1952_v40  ;;  %v935_v56 = vpop.xlane.xlu1 %934  ;;  %v3468_v8 = vsub.f32 %v2289_v30, %v3147_v37  ;;  %v4128_v40 = vld [vmem:[#allocation68_spill] sm:$0xff] }
 0x1ce   : > { %v933_v9 = vpop.xlane.xlu0 %932  ;;  %v1956_v7 = vpop.eup %1955  ;;  %1542 = vst [vmem:[%s3350_s15 + $0x70] sm:$0xff] %v1414_v58  ;;  %v1177_v55 = vmul.f32 0.6931472, %v1954_v15  ;;  %1975 = vlog2.f32 %v935_v56  ;;  %v836_v15 = vmul.f32 1.442695, %v3460_v14 }
 0x1cf   : > { %v1958_v11 = vpop.eup %1957  ;;  %v1417_v22 = vsub.f32 %v4127_v33, %v1179_v13  ;;  %1977 = vlog2.f32 %v933_v9  ;;  %v3474_v13 = vsub.f32 %v2290_v39, %v3149_v54  ;;  %v842_v30 = vmul.f32 1.442695, %v3468_v8  ;;  %v2291_v54 = vld [vmem:[%s2347_s12 + $0x358] sm:$0xff]  ;;  %v2292_v39 = vld [vmem:[%s2347_s12 + $0x350] sm:$0xff] }
 0x1d0   : > { %v1960_v17 = vpop.eup %1959  ;;  %1979 = vpow2.f32 %v834_v26  ;;  %v1416_v25 = vsub.f32 %v4128_v40, %v1177_v55  ;;  %1078 = vadd.xlane.f32.xlu1 %v1956_v7  ;;  %1076 = vadd.xlane.f32.xlu0 %v1958_v11  ;;  %v4129_v55 = vld [vmem:[#allocation69_spill] sm:$0xff] }
 0x1d1   : > { %v1962_v58 = vpop.eup %1961  ;;  %1981 = vpow2.f32 %v832_v57  ;;  %1545 = vst [vmem:[%s3350_s15 + $0x88] sm:$0xff] %v1417_v22  ;;  %v1183_v26 = vmul.f32 0.6931472, %v1960_v17  ;;  %v939_v56 = vpop.xlane.xlu1 %938  ;;  %v3482_v22 = vsub.f32 %v2291_v54, %v3161_v19  ;;  %v4130_v17 = vld [vmem:[#allocation70_spill] sm:$0xff] }
 0x1d2   : > { %v937_v9 = vpop.xlane.xlu0 %936  ;;  %v1964_v33 = vpop.eup %1963  ;;  %1544 = vst [vmem:[%s3350_s15 + $0x80] sm:$0xff] %v1416_v25  ;;  %v1181_v37 = vmul.f32 0.6931472, %v1962_v58  ;;  %1983 = vlog2.f32 %v939_v56  ;;  %v840_v58 = vmul.f32 1.442695, %v3474_v13 }
 0x1d3   : > { %v1966_v7 = vpop.eup %1965  ;;  %v1419_v57 = vsub.f32 %v4129_v55, %v1183_v26  ;;  %1985 = vlog2.f32 %v937_v9  ;;  %v3488_v26 = vsub.f32 %v2292_v39, %v3163_v32  ;;  %v846_v54 = vmul.f32 1.442695, %v3482_v22  ;;  %v2293_v32 = vld [vmem:[%s2347_s12 + $0x368] sm:$0xff]  ;;  %v2294_v39 = vld [vmem:[%s2347_s12 + $0x360] sm:$0xff] }
 0x1d4   : > { %v1968_v11 = vpop.eup %1967  ;;  %1987 = vpow2.f32 %v838_v61  ;;  %v1418_v40 = vsub.f32 %v4130_v17, %v1181_v37  ;;  %1082 = vadd.xlane.f32.xlu1 %v1964_v33  ;;  %1080 = vadd.xlane.f32.xlu0 %v1966_v7  ;;  %v4131_v37 = vld [vmem:[#allocation71_spill] sm:$0xff] }
 0x1d5   : > { %v1970_v25 = vpop.eup %1969  ;;  %1989 = vpow2.f32 %v836_v15  ;;  %1547 = vst [vmem:[%s3350_s15 + $0x98] sm:$0xff] %v1419_v57  ;;  %v1187_v61 = vmul.f32 0.6931472, %v1968_v11  ;;  %v943_v56 = vpop.xlane.xlu1 %942  ;;  %v3496_v57 = vsub.f32 %v2293_v32, %v3175_v36  ;;  %v4132_v11 = vld [vmem:[#allocation72_spill] sm:$0xff] }
 0x1d6   : > { %v941_v9 = vpop.xlane.xlu0 %940  ;;  %v1972_v55 = vpop.eup %1971  ;;  %1546 = vst [vmem:[%s3350_s15 + $0x90] sm:$0xff] %v1418_v40  ;;  %v1185_v19 = vmul.f32 0.6931472, %v1970_v25  ;;  %1991 = vlog2.f32 %v943_v56  ;;  %v844_v25 = vmul.f32 1.442695, %v3488_v26 }
 0x1d7   : > { %v1974_v33 = vpop.eup %1973  ;;  %v1421_v15 = vsub.f32 %v4131_v37, %v1187_v61  ;;  %1993 = vlog2.f32 %v941_v9  ;;  %v3502_v61 = vsub.f32 %v2294_v39, %v3177_v63  ;;  %v850_v32 = vmul.f32 1.442695, %v3496_v57  ;;  %v2295_v63 = vld [vmem:[%s2347_s12 + $0x378] sm:$0xff]  ;;  %v2296_v39 = vld [vmem:[%s2347_s12 + $0x370] sm:$0xff] }
 0x1d8   : > { %v1976_v7 = vpop.eup %1975  ;;  %1995 = vpow2.f32 %v842_v30  ;;  %v1420_v17 = vsub.f32 %v4132_v11, %v1185_v19  ;;  %1086 = vadd.xlane.f32.xlu1 %v1972_v55  ;;  %1084 = vadd.xlane.f32.xlu0 %v1974_v33  ;;  %v4133_v19 = vld [vmem:[#allocation73_spill] sm:$0xff] }
 0x1d9   : > { %v1978_v40 = vpop.eup %1977  ;;  %1997 = vpow2.f32 %v840_v58  ;;  %1549 = vst [vmem:[%s3350_s15 + $0xa8] sm:$0xff] %v1421_v15  ;;  %v1191_v30 = vmul.f32 0.6931472, %v1976_v7  ;;  %v947_v56 = vpop.xlane.xlu1 %946  ;;  %v3510_v15 = vsub.f32 %v2295_v63, %v3189_v3  ;;  %v4134_v7 = vld [vmem:[#allocation74_spill] sm:$0xff] }
 0x1da   : > { %v945_v9 = vpop.xlane.xlu0 %944  ;;  %v1980_v37 = vpop.eup %1979  ;;  %1548 = vst [vmem:[%s3350_s15 + $0xa0] sm:$0xff] %v1420_v17  ;;  %v1189_v36 = vmul.f32 0.6931472, %v1978_v40  ;;  %1999 = vlog2.f32 %v947_v56  ;;  %v848_v40 = vmul.f32 1.442695, %v3502_v61 }
 0x1db   : > { %v1982_v55 = vpop.eup %1981  ;;  %v1423_v58 = vsub.f32 %v4133_v19, %v1191_v30  ;;  %2001 = vlog2.f32 %v945_v9  ;;  %v3516_v30 = vsub.f32 %v2296_v39, %v3191_v60  ;;  %v854_v63 = vmul.f32 1.442695, %v3510_v15  ;;  %v2297_v60 = vld [vmem:[%s2347_s12 + $0x388] sm:$0xff]  ;;  %v2298_v39 = vld [vmem:[%s2347_s12 + $0x380] sm:$0xff] }
 0x1dc   : > { %v1984_v33 = vpop.eup %1983  ;;  %2003 = vpow2.f32 %v846_v54  ;;  %v1422_v11 = vsub.f32 %v4134_v7, %v1189_v36  ;;  %1090 = vadd.xlane.f32.xlu1 %v1980_v37  ;;  %1088 = vadd.xlane.f32.xlu0 %v1982_v55  ;;  %v4135_v36 = vld [vmem:[#allocation75_spill] sm:$0xff] }
 0x1dd   : > { %v1986_v17 = vpop.eup %1985  ;;  %2005 = vpow2.f32 %v844_v25  ;;  %1551 = vst [vmem:[%s3350_s15 + $0xb8] sm:$0xff] %v1423_v58  ;;  %v1195_v54 = vmul.f32 0.6931472, %v1984_v33  ;;  %v951_v56 = vpop.xlane.xlu1 %950  ;;  %v3524_v58 = vsub.f32 %v2297_v60, %v3203_v29  ;;  %v4136_v33 = vld [vmem:[#allocation76_spill] sm:$0xff] }
 0x1de   : > { %v949_v9 = vpop.xlane.xlu0 %948  ;;  %v1988_v19 = vpop.eup %1987  ;;  %1550 = vst [vmem:[%s3350_s15 + $0xb0] sm:$0xff] %v1422_v11  ;;  %v1193_v3 = vmul.f32 0.6931472, %v1986_v17  ;;  %2007 = vlog2.f32 %v951_v56  ;;  %v852_v17 = vmul.f32 1.442695, %v3516_v30 }
 0x1df   : > { %v1990_v37 = vpop.eup %1989  ;;  %v1425_v25 = vsub.f32 %v4135_v36, %v1195_v54  ;;  %2009 = vlog2.f32 %v949_v9  ;;  %v3530_v54 = vsub.f32 %v2298_v39, %v3205_v53  ;;  %v858_v60 = vmul.f32 1.442695, %v3524_v58  ;;  %v2299_v53 = vld [vmem:[%s2347_s12 + $0x398] sm:$0xff]  ;;  %v2300_v39 = vld [vmem:[%s2347_s12 + $0x390] sm:$0xff] }
 0x1e0   : > { %v1992_v55 = vpop.eup %1991  ;;  %2011 = vpow2.f32 %v850_v32  ;;  %v1424_v7 = vsub.f32 %v4136_v33, %v1193_v3  ;;  %1094 = vadd.xlane.f32.xlu1 %v1988_v19  ;;  %1092 = vadd.xlane.f32.xlu0 %v1990_v37  ;;  %v4137_v3 = vld [vmem:[#allocation77_spill] sm:$0xff] }
 0x1e1   : > { %v1994_v11 = vpop.eup %1993  ;;  %2013 = vpow2.f32 %v848_v40  ;;  %1553 = vst [vmem:[%s3350_s15 + $0xc8] sm:$0xff] %v1425_v25  ;;  %v1199_v32 = vmul.f32 0.6931472, %v1992_v55  ;;  %v955_v56 = vpop.xlane.xlu1 %954  ;;  %v3538_v25 = vsub.f32 %v2299_v53, %v3217_v5  ;;  %v4138_v55 = vld [vmem:[#allocation33_spill] sm:$0xff] }
 0x1e2   : > { %v953_v9 = vpop.xlane.xlu0 %952  ;;  %v1996_v36 = vpop.eup %1995  ;;  %1552 = vst [vmem:[%s3350_s15 + $0xc0] sm:$0xff] %v1424_v7  ;;  %v1197_v29 = vmul.f32 0.6931472, %v1994_v11  ;;  %2015 = vlog2.f32 %v955_v56  ;;  %v856_v11 = vmul.f32 1.442695, %v3530_v54 }
 0x1e3   : > { %v1998_v19 = vpop.eup %1997  ;;  %v1427_v40 = vsub.f32 %v4137_v3, %v1199_v32  ;;  %2017 = vlog2.f32 %v953_v9  ;;  %v3544_v32 = vsub.f32 %v2300_v39, %v3219_v51  ;;  %v862_v53 = vmul.f32 1.442695, %v3538_v25  ;;  %v2301_v51 = vld [vmem:[%s2347_s12 + $0x3a8] sm:$0xff]  ;;  %v2302_v39 = vld [vmem:[%s2347_s12 + $0x3a0] sm:$0xff] }
 0x1e4   : > { %v2000_v37 = vpop.eup %1999  ;;  %2019 = vpow2.f32 %v854_v63  ;;  %v1426_v33 = vsub.f32 %v4138_v55, %v1197_v29  ;;  %1098 = vadd.xlane.f32.xlu1 %v1996_v36  ;;  %1096 = vadd.xlane.f32.xlu0 %v1998_v19  ;;  %v4139_v29 = vld [vmem:[#allocation2_spill] sm:$0xff] }
 0x1e5   : > { %v2002_v7 = vpop.eup %2001  ;;  %2021 = vpow2.f32 %v852_v17  ;;  %1555 = vst [vmem:[%s3350_s15 + $0xd8] sm:$0xff] %v1427_v40  ;;  %v1203_v63 = vmul.f32 0.6931472, %v2000_v37  ;;  %v959_v56 = vpop.xlane.xlu1 %958  ;;  %v3552_v40 = vsub.f32 %v2301_v51, %v3231_v62  ;;  %v4140_v37 = vld [vmem:[#allocation34_spill] sm:$0xff] }
 0x1e6   : > { %v957_v9 = vpop.xlane.xlu0 %956  ;;  %v2004_v3 = vpop.eup %2003  ;;  %1554 = vst [vmem:[%s3350_s15 + $0xd0] sm:$0xff] %v1426_v33  ;;  %v1201_v5 = vmul.f32 0.6931472, %v2002_v7  ;;  %2023 = vlog2.f32 %v959_v56  ;;  %v860_v7 = vmul.f32 1.442695, %v3544_v32 }
 0x1e7   : > { %v2006_v36 = vpop.eup %2005  ;;  %v1429_v17 = vsub.f32 %v4139_v29, %v1203_v63  ;;  %2025 = vlog2.f32 %v957_v9  ;;  %v3558_v63 = vsub.f32 %v2302_v39, %v3233_v49  ;;  %v866_v51 = vmul.f32 1.442695, %v3552_v40  ;;  %v2303_v49 = vld [vmem:[%s2347_s12 + $0x3b8] sm:$0xff]  ;;  %v2304_v39 = vld [vmem:[%s2347_s12 + $0x3b0] sm:$0xff] }
 0x1e8   : > { %v2008_v19 = vpop.eup %2007  ;;  %2027 = vpow2.f32 %v858_v60  ;;  %v1428_v55 = vsub.f32 %v4140_v37, %v1201_v5  ;;  %1102 = vadd.xlane.f32.xlu1 %v2004_v3  ;;  %1100 = vadd.xlane.f32.xlu0 %v2006_v36  ;;  %v4141_v5 = vld [vmem:[#allocation3_spill] sm:$0xff] }
 0x1e9   : > { %v2010_v33 = vpop.eup %2009  ;;  %2029 = vpow2.f32 %v856_v11  ;;  %1557 = vst [vmem:[%s3350_s15 + $0xe8] sm:$0xff] %v1429_v17  ;;  %v1207_v60 = vmul.f32 0.6931472, %v2008_v19  ;;  %v963_v56 = vpop.xlane.xlu1 %962  ;;  %v3566_v17 = vsub.f32 %v2303_v49, %v3245_v59  ;;  %v4142_v19 = vld [vmem:[#allocation35_spill] sm:$0xff] }
 0x1ea   : > { %v961_v9 = vpop.xlane.xlu0 %960  ;;  %v2012_v29 = vpop.eup %2011  ;;  %1556 = vst [vmem:[%s3350_s15 + $0xe0] sm:$0xff] %v1428_v55  ;;  %v1205_v62 = vmul.f32 0.6931472, %v2010_v33  ;;  %2031 = vlog2.f32 %v963_v56  ;;  %v864_v33 = vmul.f32 1.442695, %v3558_v63 }
 0x1eb   : > { %v2014_v3 = vpop.eup %2013  ;;  %v1431_v11 = vsub.f32 %v4141_v5, %v1207_v60  ;;  %2033 = vlog2.f32 %v961_v9  ;;  %v3572_v60 = vsub.f32 %v2304_v39, %v3247_v47  ;;  %v870_v49 = vmul.f32 1.442695, %v3566_v17  ;;  %v2305_v47 = vld [vmem:[%s2347_s12 + $0x3c8] sm:$0xff]  ;;  %v2306_v39 = vld [vmem:[%s2347_s12 + $0x3c0] sm:$0xff] }
 0x1ec   : > { %v2016_v36 = vpop.eup %2015  ;;  %2035 = vpow2.f32 %v862_v53  ;;  %v1430_v37 = vsub.f32 %v4142_v19, %v1205_v62  ;;  %1106 = vadd.xlane.f32.xlu1 %v2012_v29  ;;  %1104 = vadd.xlane.f32.xlu0 %v2014_v3  ;;  %v4143_v62 = vld [vmem:[#allocation4_spill] sm:$0xff] }
 0x1ed   : > { %v2018_v55 = vpop.eup %2017  ;;  %2037 = vpow2.f32 %v860_v7  ;;  %1559 = vst [vmem:[%s3350_s15 + $0xf8] sm:$0xff] %v1431_v11  ;;  %v1211_v53 = vmul.f32 0.6931472, %v2016_v36  ;;  %v967_v56 = vpop.xlane.xlu1 %966  ;;  %v3580_v11 = vsub.f32 %v2305_v47, %v3259_v52  ;;  %v4144_v36 = vld [vmem:[#allocation36_spill] sm:$0xff] }
 0x1ee   : > { %v965_v9 = vpop.xlane.xlu0 %964  ;;  %v2020_v5 = vpop.eup %2019  ;;  %1558 = vst [vmem:[%s3350_s15 + $0xf0] sm:$0xff] %v1430_v37  ;;  %v1209_v59 = vmul.f32 0.6931472, %v2018_v55  ;;  %2039 = vlog2.f32 %v967_v56  ;;  %v868_v55 = vmul.f32 1.442695, %v3572_v60 }
 0x1ef   : > { %v2022_v29 = vpop.eup %2021  ;;  %v1433_v7 = vsub.f32 %v4143_v62, %v1211_v53  ;;  %2041 = vlog2.f32 %v965_v9  ;;  %v3586_v53 = vsub.f32 %v2306_v39, %v3261_v45  ;;  %v874_v47 = vmul.f32 1.442695, %v3580_v11  ;;  %v2307_v45 = vld [vmem:[%s2347_s12 + $0x3d8] sm:$0xff]  ;;  %v2308_v39 = vld [vmem:[%s2347_s12 + $0x3d0] sm:$0xff] }
 0x1f0   : > { %v2024_v3 = vpop.eup %2023  ;;  %2043 = vpow2.f32 %v866_v51  ;;  %v1432_v19 = vsub.f32 %v4144_v36, %v1209_v59  ;;  %1110 = vadd.xlane.f32.xlu1 %v2020_v5  ;;  %1108 = vadd.xlane.f32.xlu0 %v2022_v29  ;;  %v4145_v59 = vld [vmem:[#allocation5_spill] sm:$0xff] }
 0x1f1   : > { %v2026_v37 = vpop.eup %2025  ;;  %2045 = vpow2.f32 %v864_v33  ;;  %1561 = vst [vmem:[%s3350_s15 + $0x108] sm:$0xff] %v1433_v7  ;;  %v1215_v51 = vmul.f32 0.6931472, %v2024_v3  ;;  %v971_v56 = vpop.xlane.xlu1 %970  ;;  %v3594_v7 = vsub.f32 %v2307_v45, %v3273_v50  ;;  %v4146_v3 = vld [vmem:[#allocation37_spill] sm:$0xff] }
 0x1f2   : > { %v969_v9 = vpop.xlane.xlu0 %968  ;;  %v2028_v62 = vpop.eup %2027  ;;  %1560 = vst [vmem:[%s3350_s15 + $0x100] sm:$0xff] %v1432_v19  ;;  %v1213_v52 = vmul.f32 0.6931472, %v2026_v37  ;;  %2047 = vlog2.f32 %v971_v56  ;;  %v872_v37 = vmul.f32 1.442695, %v3586_v53 }
 0x1f3   : > { %v2030_v5 = vpop.eup %2029  ;;  %v1435_v33 = vsub.f32 %v4145_v59, %v1215_v51  ;;  %2049 = vlog2.f32 %v969_v9  ;;  %v3600_v51 = vsub.f32 %v2308_v39, %v3275_v43  ;;  %v878_v45 = vmul.f32 1.442695, %v3594_v7  ;;  %v2309_v43 = vld [vmem:[%s2347_s12 + $0x3e8] sm:$0xff]  ;;  %v2310_v39 = vld [vmem:[%s2347_s12 + $0x3e0] sm:$0xff] }
 0x1f4   : > { %v2032_v29 = vpop.eup %2031  ;;  %2051 = vpow2.f32 %v870_v49  ;;  %v1434_v36 = vsub.f32 %v4146_v3, %v1213_v52  ;;  %1114 = vadd.xlane.f32.xlu1 %v2028_v62  ;;  %1112 = vadd.xlane.f32.xlu0 %v2030_v5  ;;  %v4147_v52 = vld [vmem:[#allocation6_spill] sm:$0xff] }
 0x1f5   : > { %v2034_v19 = vpop.eup %2033  ;;  %2053 = vpow2.f32 %v868_v55  ;;  %1563 = vst [vmem:[%s3350_s15 + $0x118] sm:$0xff] %v1435_v33  ;;  %v1219_v49 = vmul.f32 0.6931472, %v2032_v29  ;;  %v975_v56 = vpop.xlane.xlu1 %974  ;;  %v3608_v33 = vsub.f32 %v2309_v43, %v3291_v0  ;;  %v4148_v29 = vld [vmem:[#allocation38_spill] sm:$0xff] }
 0x1f6   : > { %v973_v9 = vpop.xlane.xlu0 %972  ;;  %v2036_v59 = vpop.eup %2035  ;;  %1562 = vst [vmem:[%s3350_s15 + $0x110] sm:$0xff] %v1434_v36  ;;  %v1217_v50 = vmul.f32 0.6931472, %v2034_v19  ;;  %2055 = vlog2.f32 %v975_v56  ;;  %v876_v19 = vmul.f32 1.442695, %v3600_v51 }
 0x1f7   : > { %v2038_v62 = vpop.eup %2037  ;;  %v1437_v55 = vsub.f32 %v4147_v52, %v1219_v49  ;;  %2057 = vlog2.f32 %v973_v9  ;;  %v3614_v49 = vsub.f32 %v2310_v39, %v3293_v23  ;;  %v882_v43 = vmul.f32 1.442695, %v3608_v33  ;;  %v2311_v23 = vld [vmem:[%s2347_s12 + $0x3f8] sm:$0xff]  ;;  %v2312_v39 = vld [vmem:[%s2347_s12 + $0x3f0] sm:$0xff] }
 0x1f8   : > { %v2040_v5 = vpop.eup %2039  ;;  %2059 = vpow2.f32 %v874_v47  ;;  %v1436_v3 = vsub.f32 %v4148_v29, %v1217_v50  ;;  %1118 = vadd.xlane.f32.xlu1 %v2036_v59  ;;  %1116 = vadd.xlane.f32.xlu0 %v2038_v62  ;;  %v4149_v50 = vld [vmem:[#allocation7_spill] sm:$0xff] }
 0x1f9   : > { %v2042_v36 = vpop.eup %2041  ;;  %2061 = vpow2.f32 %v872_v37  ;;  %1565 = vst [vmem:[%s3350_s15 + $0x128] sm:$0xff] %v1437_v55  ;;  %v1223_v47 = vmul.f32 0.6931472, %v2040_v5  ;;  %v979_v56 = vpop.xlane.xlu1 %978  ;;  %v3622_v55 = vsub.f32 %v2311_v23, %v3306_v27  ;;  %v4150_v5 = vld [vmem:[#allocation39_spill] sm:$0xff] }
 0x1fa   : > { %v977_v9 = vpop.xlane.xlu0 %976  ;;  %v2044_v52 = vpop.eup %2043  ;;  %1564 = vst [vmem:[%s3350_s15 + $0x120] sm:$0xff] %v1436_v3  ;;  %v1221_v0 = vmul.f32 0.6931472, %v2042_v36  ;;  %2063 = vlog2.f32 %v979_v56  ;;  %v880_v36 = vmul.f32 1.442695, %v3614_v49 }
 0x1fb   : > { %v2046_v59 = vpop.eup %2045  ;;  %v1439_v37 = vsub.f32 %v4149_v50, %v1223_v47  ;;  %2065 = vlog2.f32 %v977_v9  ;;  %v3628_v47 = vsub.f32 %v2312_v39, %v3308_v18  ;;  %v886_v23 = vmul.f32 1.442695, %v3622_v55  ;;  %v4152_v18 = vld [vmem:[#allocation40_spill] sm:$0xff] }
 0x1fc   : > { %v2048_v62 = vpop.eup %2047  ;;  %2067 = vpow2.f32 %v878_v45  ;;  %v1438_v29 = vsub.f32 %v4150_v5, %v1221_v0  ;;  %1122 = vadd.xlane.f32.xlu1 %v2044_v52  ;;  %1120 = vadd.xlane.f32.xlu0 %v2046_v59  ;;  %v4151_v52 = vld [vmem:[#allocation8_spill] sm:$0xff] }
 0x1fd   : > { %v2050_v3 = vpop.eup %2049  ;;  %2069 = vpow2.f32 %v876_v19  ;;  %1567 = vst [vmem:[%s3350_s15 + $0x138] sm:$0xff] %v1439_v37  ;;  %v1227_v45 = vmul.f32 0.6931472, %v2048_v62  ;;  %v983_v56 = vpop.xlane.xlu1 %982  ;;  %v884_v62 = vmul.f32 1.442695, %v3628_v47 }
 0x1fe   : > { %v981_v9 = vpop.xlane.xlu0 %980  ;;  %v2052_v50 = vpop.eup %2051  ;;  %1566 = vst [vmem:[%s3350_s15 + $0x130] sm:$0xff] %v1438_v29  ;;  %v1225_v27 = vmul.f32 0.6931472, %v2050_v3  ;;  %2071 = vlog2.f32 %v983_v56 }
 0x1ff   : > { %v2054_v0 = vpop.eup %2053  ;;  %v1441_v59 = vsub.f32 %v4151_v52, %v1227_v45  ;;  %2073 = vlog2.f32 %v981_v9  ;;  %v4153_v9 = vld [vmem:[#allocation9_spill] sm:$0xff] }
 0x200   : > { %v2056_v19 = vpop.eup %2055  ;;  %2075 = vpow2.f32 %v882_v43  ;;  %v1440_v5 = vsub.f32 %v4152_v18, %v1225_v27  ;;  %1126 = vadd.xlane.f32.xlu1 %v2052_v50  ;;  %1124 = vadd.xlane.f32.xlu0 %v2054_v0  ;;  %v4154_v27 = vld [vmem:[#allocation41_spill] sm:$0xff] }
 0x201   : > { %v2058_v37 = vpop.eup %2057  ;;  %2077 = vpow2.f32 %v880_v36  ;;  %1569 = vst [vmem:[%s3350_s15 + $0x148] sm:$0xff] %v1441_v59  ;;  %v1231_v29 = vmul.f32 0.6931472, %v2056_v19  ;;  %v987_v3 = vpop.xlane.xlu1 %986 }
 0x202   : > { %v985_v39 = vpop.xlane.xlu0 %984  ;;  %v2060_v45 = vpop.eup %2059  ;;  %1568 = vst [vmem:[%s3350_s15 + $0x140] sm:$0xff] %v1440_v5  ;;  %v1229_v56 = vmul.f32 0.6931472, %v2058_v37  ;;  %2079 = vlog2.f32 %v987_v3  ;;  %v4155_v3 = vld [vmem:[#allocation10_spill] sm:$0xff] }
 0x203   : > { %v2062_v43 = vpop.eup %2061  ;;  %v1443_v52 = vsub.f32 %v4153_v9, %v1231_v29  ;;  %2081 = vlog2.f32 %v985_v39 }
 0x204   : > { %v2064_v50 = vpop.eup %2063  ;;  %2083 = vpow2.f32 %v886_v23  ;;  %v1442_v36 = vsub.f32 %v4154_v27, %v1229_v56  ;;  %1130 = vadd.xlane.f32.xlu1 %v2060_v45  ;;  %1128 = vadd.xlane.f32.xlu0 %v2062_v43  ;;  %v4156_v56 = vld [vmem:[#allocation42_spill] sm:$0xff] }
 0x205   : > { %v2066_v0 = vpop.eup %2065  ;;  %2085 = vpow2.f32 %v884_v62  ;;  %1571 = vst [vmem:[%s3350_s15 + $0x158] sm:$0xff] %v1443_v52  ;;  %v1235_v59 = vmul.f32 0.6931472, %v2064_v50  ;;  %v991_v19 = vpop.xlane.xlu1 %990 }
 0x206   : > { %v989_v18 = vpop.xlane.xlu0 %988  ;;  %v2068_v5 = vpop.eup %2067  ;;  %1570 = vst [vmem:[%s3350_s15 + $0x150] sm:$0xff] %v1442_v36  ;;  %v1233_v37 = vmul.f32 0.6931472, %v2066_v0  ;;  %2087 = vlog2.f32 %v991_v19  ;;  %v4157_v0 = vld [vmem:[#allocation43_spill] sm:$0xff] }
 0x207   : > { %v2070_v29 = vpop.eup %2069  ;;  %v1445_v39 = vsub.f32 %v4155_v3, %v1235_v59  ;;  %2089 = vlog2.f32 %v989_v18  ;;  %v4158_v18 = vld [vmem:[#allocation12_spill] sm:$0xff] }
 0x208   : > { %v2072_v23 = vpop.eup %2071  ;;  %v1444_v45 = vsub.f32 %v4156_v56, %v1233_v37  ;;  %1134 = vadd.xlane.f32.xlu1 %v2068_v5  ;;  %1132 = vadd.xlane.f32.xlu0 %v2070_v29 }
 0x209   : > { %v2074_v62 = vpop.eup %2073  ;;  %1573 = vst [vmem:[%s3350_s15 + $0x168] sm:$0xff] %v1445_v39  ;;  %v1239_v43 = vmul.f32 0.6931472, %v2072_v23  ;;  %v995_v9 = vpop.xlane.xlu1 %994 }
 0x20a   : > { %v993_v52 = vpop.xlane.xlu0 %992  ;;  %v2076_v50 = vpop.eup %2075  ;;  %1572 = vst [vmem:[%s3350_s15 + $0x160] sm:$0xff] %v1444_v45  ;;  %v1237_v27 = vmul.f32 0.6931472, %v2074_v62  ;;  %2091 = vlog2.f32 %v995_v9  ;;  %v4159_v62 = vld [vmem:[#allocation13_spill] sm:$0xff] }
 0x20b   : > { %v2078_v36 = vpop.eup %2077  ;;  %v1447_v59 = vsub.f32 %v4157_v0, %v1239_v43  ;;  %2093 = vlog2.f32 %v993_v52  ;;  %v4160_v52 = vld [vmem:[#allocation45_spill] sm:$0xff] }
 0x20c   : > { %v2080_v19 = vpop.eup %2079  ;;  %v1446_v37 = vsub.f32 %v4158_v18, %v1237_v27  ;;  %1138 = vadd.xlane.f32.xlu1 %v2076_v50  ;;  %1136 = vadd.xlane.f32.xlu0 %v2078_v36  ;;  %v4161_v18 = vld [vmem:[#allocation14_spill] sm:$0xff] }
 0x20d   : > { %v2082_v5 = vpop.eup %2081  ;;  %1575 = vst [vmem:[%s3350_s15 + $0x178] sm:$0xff] %v1447_v59  ;;  %v1243_v29 = vmul.f32 0.6931472, %v2080_v19  ;;  %v999_v3 = vpop.xlane.xlu1 %998 }
 0x20e   : > { %v997_v39 = vpop.xlane.xlu0 %996  ;;  %v2084_v23 = vpop.eup %2083  ;;  %1574 = vst [vmem:[%s3350_s15 + $0x170] sm:$0xff] %v1446_v37  ;;  %v1241_v56 = vmul.f32 0.6931472, %v2082_v5  ;;  %2095 = vlog2.f32 %v999_v3 }
 0x20f   : > { %v2086_v45 = vpop.eup %2085  ;;  %v1449_v43 = vsub.f32 %v4159_v62, %v1243_v29  ;;  %2097 = vlog2.f32 %v997_v39  ;;  %v4162_v29 = vld [vmem:[#allocation46_spill] sm:$0xff] }
 0x210   : > { %v2088_v9 = vpop.eup %2087  ;;  %v1448_v27 = vsub.f32 %v4160_v52, %v1241_v56  ;;  %1142 = vadd.xlane.f32.xlu1 %v2084_v23  ;;  %1140 = vadd.xlane.f32.xlu0 %v2086_v45 }
 0x211   : > { %v2090_v50 = vpop.eup %2089  ;;  %1577 = vst [vmem:[%s3350_s15 + $0x188] sm:$0xff] %v1449_v43  ;;  %v1247_v36 = vmul.f32 0.6931472, %v2088_v9  ;;  %v1003_v0 = vpop.xlane.xlu1 %1002  ;;  %v4163_v43 = vld [vmem:[#allocation15_spill] sm:$0xff] }
 0x212   : > { %v1001_v59 = vpop.xlane.xlu0 %1000  ;;  %1576 = vst [vmem:[%s3350_s15 + $0x180] sm:$0xff] %v1448_v27  ;;  %v1245_v19 = vmul.f32 0.6931472, %v2090_v50  ;;  %2099 = vlog2.f32 %v1003_v0  ;;  %v4164_v27 = vld [vmem:[#allocation47_spill] sm:$0xff] }
 0x213   : > { %v1451_v37 = vsub.f32 %v4161_v18, %v1247_v36  ;;  %2101 = vlog2.f32 %v1001_v59 }
 0x214   : > { %v2092_v5 = vpop.eup %2091  ;;  %v1450_v3 = vsub.f32 %v4162_v29, %v1245_v19 }
 0x215   : > { %v2094_v39 = vpop.eup %2093  ;;  %1579 = vst [vmem:[%s3350_s15 + $0x198] sm:$0xff] %v1451_v37  ;;  %v1251_v23 = vmul.f32 0.6931472, %v2092_v5  ;;  %v1007_v56 = vpop.xlane.xlu1 %1006  ;;  %v4165_v37 = vld [vmem:[#allocation16_spill] sm:$0xff] }
 0x216   : > { %v1005_v45 = vpop.xlane.xlu0 %1004  ;;  %1578 = vst [vmem:[%s3350_s15 + $0x190] sm:$0xff] %v1450_v3  ;;  %v1249_v62 = vmul.f32 0.6931472, %v2094_v39  ;;  %2103 = vlog2.f32 %v1007_v56  ;;  %v4166_v3 = vld [vmem:[#allocation48_spill] sm:$0xff] }
 0x217   : > { %v1453_v9 = vsub.f32 %v4163_v43, %v1251_v23  ;;  %2105 = vlog2.f32 %v1005_v45 }
 0x218   : > { %v2096_v52 = vpop.eup %2095  ;;  %v1452_v50 = vsub.f32 %v4164_v27, %v1249_v62 }
 0x219   : > { %v2098_v36 = vpop.eup %2097  ;;  %1581 = vst [vmem:[%s3350_s15 + $0x1a8] sm:$0xff] %v1453_v9  ;;  %v1255_v0 = vmul.f32 0.6931472, %v2096_v52  ;;  %v1011_v59 = vpop.xlane.xlu1 %1010  ;;  %v4167_v9 = vld [vmem:[#allocation17_spill] sm:$0xff] }
 0x21a   : > { %v1009_v19 = vpop.xlane.xlu0 %1008  ;;  %1580 = vst [vmem:[%s3350_s15 + $0x1a0] sm:$0xff] %v1452_v50  ;;  %v1253_v18 = vmul.f32 0.6931472, %v2098_v36  ;;  %2107 = vlog2.f32 %v1011_v59  ;;  %v4168_v50 = vld [vmem:[#allocation49_spill] sm:$0xff] }
 0x21b   : > { %v1455_v5 = vsub.f32 %v4165_v37, %v1255_v0  ;;  %2109 = vlog2.f32 %v1009_v19 }
 0x21c   : > { %v2100_v29 = vpop.eup %2099  ;;  %v1454_v39 = vsub.f32 %v4166_v3, %v1253_v18 }
 0x21d   : > { %v2102_v23 = vpop.eup %2101  ;;  %1583 = vst [vmem:[%s3350_s15 + $0x1b8] sm:$0xff] %v1455_v5  ;;  %v1259_v56 = vmul.f32 0.6931472, %v2100_v29  ;;  %v1015_v45 = vpop.xlane.xlu1 %1014  ;;  %v4169_v5 = vld [vmem:[#allocation18_spill] sm:$0xff] }
 0x21e   : > { %v1013_v62 = vpop.xlane.xlu0 %1012  ;;  %1582 = vst [vmem:[%s3350_s15 + $0x1b0] sm:$0xff] %v1454_v39  ;;  %v1257_v43 = vmul.f32 0.6931472, %v2102_v23  ;;  %2111 = vlog2.f32 %v1015_v45  ;;  %v4170_v39 = vld [vmem:[#allocation19_spill] sm:$0xff] }
 0x21f   : > { %v1457_v52 = vsub.f32 %v4167_v9, %v1259_v56  ;;  %2113 = vlog2.f32 %v1013_v62 }
 0x220   : > { %v2104_v27 = vpop.eup %2103  ;;  %v1456_v36 = vsub.f32 %v4168_v50, %v1257_v43 }
 0x221   : > { %v2106_v0 = vpop.eup %2105  ;;  %1585 = vst [vmem:[%s3350_s15 + $0x1c8] sm:$0xff] %v1457_v52  ;;  %v1263_v59 = vmul.f32 0.6931472, %v2104_v27  ;;  %v1019_v19 = vpop.xlane.xlu1 %1018  ;;  %v4171_v52 = vld [vmem:[#allocation50_spill] sm:$0xff] }
 0x222   : > { %v1017_v18 = vpop.xlane.xlu0 %1016  ;;  %1584 = vst [vmem:[%s3350_s15 + $0x1c0] sm:$0xff] %v1456_v36  ;;  %v1261_v37 = vmul.f32 0.6931472, %v2106_v0  ;;  %2115 = vlog2.f32 %v1019_v19  ;;  %v4172_v36 = vld [vmem:[#allocation20_spill] sm:$0xff] }
 0x223   : > { %v1459_v29 = vsub.f32 %v4169_v5, %v1263_v59  ;;  %2117 = vlog2.f32 %v1017_v18 }
 0x224   : > { %v2108_v3 = vpop.eup %2107  ;;  %v1458_v23 = vsub.f32 %v4170_v39, %v1261_v37 }
 0x225   : > { %v2110_v56 = vpop.eup %2109  ;;  %1587 = vst [vmem:[%s3350_s15 + $0x1d8] sm:$0xff] %v1459_v29  ;;  %v1267_v45 = vmul.f32 0.6931472, %v2108_v3  ;;  %v1023_v62 = vpop.xlane.xlu1 %1022  ;;  %v4173_v29 = vld [vmem:[#allocation51_spill] sm:$0xff] }
 0x226   : > { %v1021_v43 = vpop.xlane.xlu0 %1020  ;;  %1586 = vst [vmem:[%s3350_s15 + $0x1d0] sm:$0xff] %v1458_v23  ;;  %v1265_v9 = vmul.f32 0.6931472, %v2110_v56  ;;  %2119 = vlog2.f32 %v1023_v62  ;;  %v4174_v23 = vld [vmem:[#allocation21_spill] sm:$0xff] }
 0x227   : > { %v1461_v27 = vsub.f32 %v4171_v52, %v1267_v45  ;;  %2121 = vlog2.f32 %v1021_v43 }
 0x228   : > { %v2112_v50 = vpop.eup %2111  ;;  %v1460_v0 = vsub.f32 %v4172_v36, %v1265_v9 }
 0x229   : > { %v2114_v59 = vpop.eup %2113  ;;  %1589 = vst [vmem:[%s3350_s15 + $0x1e8] sm:$0xff] %v1461_v27  ;;  %v1271_v19 = vmul.f32 0.6931472, %v2112_v50  ;;  %v1027_v18 = vpop.xlane.xlu1 %1026  ;;  %v4175_v27 = vld [vmem:[#allocation52_spill] sm:$0xff] }
 0x22a   : > { %v1025_v37 = vpop.xlane.xlu0 %1024  ;;  %1588 = vst [vmem:[%s3350_s15 + $0x1e0] sm:$0xff] %v1460_v0  ;;  %v1269_v5 = vmul.f32 0.6931472, %v2114_v59  ;;  %2123 = vlog2.f32 %v1027_v18  ;;  %v4176_v0 = vld [vmem:[#allocation22_spill] sm:$0xff] }
 0x22b   : > { %v1463_v3 = vsub.f32 %v4173_v29, %v1271_v19  ;;  %2125 = vlog2.f32 %v1025_v37 }
 0x22c   : > { %v2116_v39 = vpop.eup %2115  ;;  %v1462_v56 = vsub.f32 %v4174_v23, %v1269_v5 }
 0x22d   : > { %v2118_v45 = vpop.eup %2117  ;;  %1591 = vst [vmem:[%s3350_s15 + $0x1f8] sm:$0xff] %v1463_v3  ;;  %v1275_v62 = vmul.f32 0.6931472, %v2116_v39  ;;  %v1031_v43 = vpop.xlane.xlu1 %1030  ;;  %v4177_v3 = vld [vmem:[#allocation23_spill] sm:$0xff] }
 0x22e   : > { %v1029_v9 = vpop.xlane.xlu0 %1028  ;;  %1590 = vst [vmem:[%s3350_s15 + $0x1f0] sm:$0xff] %v1462_v56  ;;  %v1273_v52 = vmul.f32 0.6931472, %v2118_v45  ;;  %2127 = vlog2.f32 %v1031_v43  ;;  %v4178_v56 = vld [vmem:[#allocation53_spill] sm:$0xff] }
 0x22f   : > { %v1465_v50 = vsub.f32 %v4175_v27, %v1275_v62  ;;  %2129 = vlog2.f32 %v1029_v9 }
 0x230   : > { %v2120_v36 = vpop.eup %2119  ;;  %v1464_v59 = vsub.f32 %v4176_v0, %v1273_v52 }
 0x231   : > { %v2122_v19 = vpop.eup %2121  ;;  %1593 = vst [vmem:[%s3350_s15 + $0x208] sm:$0xff] %v1465_v50  ;;  %v1279_v18 = vmul.f32 0.6931472, %v2120_v36  ;;  %v1035_v37 = vpop.xlane.xlu1 %1034  ;;  %v4179_v50 = vld [vmem:[#allocation24_spill] sm:$0xff] }
 0x232   : > { %v1033_v5 = vpop.xlane.xlu0 %1032  ;;  %1592 = vst [vmem:[%s3350_s15 + $0x200] sm:$0xff] %v1464_v59  ;;  %v1277_v29 = vmul.f32 0.6931472, %v2122_v19  ;;  %2131 = vlog2.f32 %v1035_v37  ;;  %v4180_v59 = vld [vmem:[#allocation25_spill] sm:$0xff] }
 0x233   : > { %v1467_v39 = vsub.f32 %v4177_v3, %v1279_v18  ;;  %2133 = vlog2.f32 %v1033_v5 }
 0x234   : > { %v2124_v23 = vpop.eup %2123  ;;  %v1466_v45 = vsub.f32 %v4178_v56, %v1277_v29 }
 0x235   : > { %v2126_v62 = vpop.eup %2125  ;;  %1595 = vst [vmem:[%s3350_s15 + $0x218] sm:$0xff] %v1467_v39  ;;  %v1283_v43 = vmul.f32 0.6931472, %v2124_v23  ;;  %v1039_v9 = vpop.xlane.xlu1 %1038  ;;  %v4181_v39 = vld [vmem:[#allocation26_spill] sm:$0xff] }
 0x236   : > { %v1037_v52 = vpop.xlane.xlu0 %1036  ;;  %1594 = vst [vmem:[%s3350_s15 + $0x210] sm:$0xff] %v1466_v45  ;;  %v1281_v27 = vmul.f32 0.6931472, %v2126_v62  ;;  %2135 = vlog2.f32 %v1039_v9  ;;  %v4182_v45 = vld [vmem:[#allocation27_spill] sm:$0xff] }
 0x237   : > { %v1469_v36 = vsub.f32 %v4179_v50, %v1283_v43  ;;  %2137 = vlog2.f32 %v1037_v52 }
 0x238   : > { %v2128_v0 = vpop.eup %2127  ;;  %v1468_v19 = vsub.f32 %v4180_v59, %v1281_v27 }
 0x239   : > { %v2130_v18 = vpop.eup %2129  ;;  %1597 = vst [vmem:[%s3350_s15 + $0x228] sm:$0xff] %v1469_v36  ;;  %v1287_v37 = vmul.f32 0.6931472, %v2128_v0  ;;  %v1043_v5 = vpop.xlane.xlu1 %1042  ;;  %v4183_v36 = vld [vmem:[#allocation28_spill] sm:$0xff] }
 0x23a   : > { %v1041_v29 = vpop.xlane.xlu0 %1040  ;;  %1596 = vst [vmem:[%s3350_s15 + $0x220] sm:$0xff] %v1468_v19  ;;  %v1285_v3 = vmul.f32 0.6931472, %v2130_v18  ;;  %2139 = vlog2.f32 %v1043_v5  ;;  %v4184_v19 = vld [vmem:[#allocation29_spill] sm:$0xff] }
 0x23b   : > { %v1471_v23 = vsub.f32 %v4181_v39, %v1287_v37  ;;  %2141 = vlog2.f32 %v1041_v29 }
 0x23c   : > { %v2132_v56 = vpop.eup %2131  ;;  %v1470_v62 = vsub.f32 %v4182_v45, %v1285_v3 }
 0x23d   : > { %v2134_v43 = vpop.eup %2133  ;;  %1599 = vst [vmem:[%s3350_s15 + $0x238] sm:$0xff] %v1471_v23  ;;  %v1291_v9 = vmul.f32 0.6931472, %v2132_v56  ;;  %v1047_v52 = vpop.xlane.xlu1 %1046  ;;  %v4185_v23 = vld [vmem:[#allocation30_spill] sm:$0xff] }
 0x23e   : > { %v1045_v27 = vpop.xlane.xlu0 %1044  ;;  %1598 = vst [vmem:[%s3350_s15 + $0x230] sm:$0xff] %v1470_v62  ;;  %v1289_v50 = vmul.f32 0.6931472, %v2134_v43  ;;  %2143 = vlog2.f32 %v1047_v52  ;;  %v4186_v62 = vld [vmem:[#allocation31_spill] sm:$0xff] }
 0x23f   : > { %v1473_v0 = vsub.f32 %v4183_v36, %v1291_v9  ;;  %2145 = vlog2.f32 %v1045_v27 }
 0x240   : > { %v2136_v59 = vpop.eup %2135  ;;  %v1472_v18 = vsub.f32 %v4184_v19, %v1289_v50 }
 0x241   : > { %v2138_v37 = vpop.eup %2137  ;;  %1601 = vst [vmem:[%s3350_s15 + $0x248] sm:$0xff] %v1473_v0  ;;  %v1295_v5 = vmul.f32 0.6931472, %v2136_v59  ;;  %v1051_v29 = vpop.xlane.xlu1 %1050  ;;  %v4187_v0 = vld [vmem:[#allocation32_spill] sm:$0xff] }
 0x242   : > { %v1049_v3 = vpop.xlane.xlu0 %1048  ;;  %1600 = vst [vmem:[%s3350_s15 + $0x240] sm:$0xff] %v1472_v18  ;;  %v1293_v39 = vmul.f32 0.6931472, %v2138_v37  ;;  %2147 = vlog2.f32 %v1051_v29 }
 0x243   : > { %v1475_v56 = vsub.f32 %v4185_v23, %v1295_v5  ;;  %2149 = vlog2.f32 %v1049_v3  ;;  %v4188_v23 = vld [vmem:[#allocation78_spill] sm:$0xff] }
 0x244   : > { %v2140_v45 = vpop.eup %2139  ;;  %v1474_v43 = vsub.f32 %v4186_v62, %v1293_v39  ;;  %v4189_v62 = vld [vmem:[#allocation79_spill] sm:$0xff] }
 0x245   : > { %v2142_v9 = vpop.eup %2141  ;;  %1603 = vst [vmem:[%s3350_s15 + $0x258] sm:$0xff] %v1475_v56  ;;  %v1299_v52 = vmul.f32 0.6931472, %v2140_v45  ;;  %v1055_v27 = vpop.xlane.xlu1 %1054 }
 0x246   : > { %v1053_v50 = vpop.xlane.xlu0 %1052  ;;  %1602 = vst [vmem:[%s3350_s15 + $0x250] sm:$0xff] %v1474_v43  ;;  %v1297_v36 = vmul.f32 0.6931472, %v2142_v9  ;;  %2151 = vlog2.f32 %v1055_v27 }
 0x247   : > { %v1477_v59 = vsub.f32 %v4187_v0, %v1299_v52  ;;  %2153 = vlog2.f32 %v1053_v50 }
 0x248   : > { %v2144_v19 = vpop.eup %2143  ;;  %v1476_v18 = vsub.f32 %v3284_v46, %v1297_v36  ;;  %v4190_v36 = vld [vmem:[#allocation80_spill] sm:$0xff] }
 0x249   : > { %v2146_v37 = vpop.eup %2145  ;;  %1605 = vst [vmem:[%s3350_s15 + $0x268] sm:$0xff] %v1477_v59  ;;  %v1303_v5 = vmul.f32 0.6931472, %v2144_v19  ;;  %v1059_v29 = vpop.xlane.xlu1 %1058 }
 0x24a   : > { %v1057_v3 = vpop.xlane.xlu0 %1056  ;;  %1604 = vst [vmem:[%s3350_s15 + $0x260] sm:$0xff] %v1476_v18  ;;  %v1301_v39 = vmul.f32 0.6931472, %v2146_v37  ;;  %2155 = vlog2.f32 %v1059_v29 }
 0x24b   : > { %v1479_v56 = vsub.f32 %v4188_v23, %v1303_v5  ;;  %2157 = vlog2.f32 %v1057_v3 }
 0x24c   : > { %v2148_v45 = vpop.eup %2147  ;;  %v1478_v43 = vsub.f32 %v4189_v62, %v1301_v39 }
 0x24d   : > { %v2150_v9 = vpop.eup %2149  ;;  %1607 = vst [vmem:[%s3350_s15 + $0x278] sm:$0xff] %v1479_v56  ;;  %v1307_v46 = vmul.f32 0.6931472, %v2148_v45  ;;  %v1063_v52 = vpop.xlane.xlu1 %1062 }
 0x24e   : > { %v1061_v27 = vpop.xlane.xlu0 %1060  ;;  %1606 = vst [vmem:[%s3350_s15 + $0x270] sm:$0xff] %v1478_v43  ;;  %v1305_v50 = vmul.f32 0.6931472, %v2150_v9  ;;  %2159 = vlog2.f32 %v1063_v52 }
 0x24f   : > { %v1481_v0 = vsub.f32 %v4190_v36, %v1307_v46  ;;  %2161 = vlog2.f32 %v1061_v27  ;;  %v4191_v46 = vld [vmem:[#allocation81_spill] sm:$0xff] }
 0x250   : > { %v2152_v59 = vpop.eup %2151  ;;  %v1480_v19 = vsub.f32 %v3314_v28, %v1305_v50 }
 0x251   : > { %v2154_v18 = vpop.eup %2153  ;;  %1609 = vst [vmem:[%s3350_s15 + $0x288] sm:$0xff] %v1481_v0  ;;  %v1311_v37 = vmul.f32 0.6931472, %v2152_v59  ;;  %v1067_v5 = vpop.xlane.xlu1 %1066 }
 0x252   : > { %v1065_v29 = vpop.xlane.xlu0 %1064  ;;  %1608 = vst [vmem:[%s3350_s15 + $0x280] sm:$0xff] %v1480_v19  ;;  %v1309_v3 = vmul.f32 0.6931472, %v2154_v18  ;;  %2163 = vlog2.f32 %v1067_v5  ;;  %v4193_v18 = vld [vmem:[#allocation83_spill] sm:$0xff] }
 0x253   : > { %v1483_v39 = vsub.f32 %v3318_v20, %v1311_v37  ;;  %2165 = vlog2.f32 %v1065_v29  ;;  %v4192_v20 = vld [vmem:[#allocation82_spill] sm:$0xff] }
 0x254   : > { %v2156_v23 = vpop.eup %2155  ;;  %v1482_v56 = vsub.f32 %v3323_v16, %v1309_v3 }
 0x255   : > { %v2158_v45 = vpop.eup %2157  ;;  %1611 = vst [vmem:[%s3350_s15 + $0x298] sm:$0xff] %v1483_v39  ;;  %v1315_v28 = vmul.f32 0.6931472, %v2156_v23  ;;  %v1071_v62 = vpop.xlane.xlu1 %1070 }
 0x256   : > { %v1069_v43 = vpop.xlane.xlu0 %1068  ;;  %1610 = vst [vmem:[%s3350_s15 + $0x290] sm:$0xff] %v1482_v56  ;;  %v1313_v9 = vmul.f32 0.6931472, %v2158_v45  ;;  %2167 = vlog2.f32 %v1071_v62 }
 0x257   : > { %v1485_v52 = vsub.f32 %v4191_v46, %v1315_v28  ;;  %2169 = vlog2.f32 %v1069_v43 }
 0x258   : > { %v2160_v27 = vpop.eup %2159  ;;  %v1484_v50 = vsub.f32 %v4192_v20, %v1313_v9 }
 0x259   : > { %v2162_v36 = vpop.eup %2161  ;;  %1613 = vst [vmem:[%s3350_s15 + $0x2a8] sm:$0xff] %v1485_v52  ;;  %v1319_v16 = vmul.f32 0.6931472, %v2160_v27  ;;  %v1075_v0 = vpop.xlane.xlu1 %1074 }
 0x25a   : > { %v1073_v59 = vpop.xlane.xlu0 %1072  ;;  %1612 = vst [vmem:[%s3350_s15 + $0x2a0] sm:$0xff] %v1484_v50  ;;  %v1317_v19 = vmul.f32 0.6931472, %v2162_v36  ;;  %2171 = vlog2.f32 %v1075_v0 }
 0x25b   : > { %v1487_v37 = vsub.f32 %v4193_v18, %v1319_v16  ;;  %2173 = vlog2.f32 %v1073_v59 }
 0x25c   : > { %v2164_v5 = vpop.eup %2163  ;;  %v1486_v29 = vsub.f32 %v3343_v24, %v1317_v19 }
 0x25d   : > { %v2166_v3 = vpop.eup %2165  ;;  %1615 = vst [vmem:[%s3350_s15 + $0x2b8] sm:$0xff] %v1487_v37  ;;  %v1323_v39 = vmul.f32 0.6931472, %v2164_v5  ;;  %v1079_v23 = vpop.xlane.xlu1 %1078 }
 0x25e   : > { %v1077_v56 = vpop.xlane.xlu0 %1076  ;;  %1614 = vst [vmem:[%s3350_s15 + $0x2b0] sm:$0xff] %v1486_v29  ;;  %v1321_v45 = vmul.f32 0.6931472, %v2166_v3  ;;  %2175 = vlog2.f32 %v1079_v23 }
 0x25f   : > { %v1489_v28 = vsub.f32 %v3355_v31, %v1323_v39  ;;  %2177 = vlog2.f32 %v1077_v56 }
 0x260   : > { %v2168_v62 = vpop.eup %2167  ;;  %v1488_v43 = vsub.f32 %v3360_v44, %v1321_v45 }
 0x261   : > { %v2170_v9 = vpop.eup %2169  ;;  %1617 = vst [vmem:[%s3350_s15 + $0x2c8] sm:$0xff] %v1489_v28  ;;  %v1327_v24 = vmul.f32 0.6931472, %v2168_v62  ;;  %v1083_v46 = vpop.xlane.xlu1 %1082 }
 0x262   : > { %v1081_v52 = vpop.xlane.xlu0 %1080  ;;  %1616 = vst [vmem:[%s3350_s15 + $0x2c0] sm:$0xff] %v1488_v43  ;;  %v1325_v27 = vmul.f32 0.6931472, %v2170_v9  ;;  %2179 = vlog2.f32 %v1083_v46 }
 0x263   : > { %v1491_v20 = vsub.f32 %v3369_v48, %v1327_v24  ;;  %2181 = vlog2.f32 %v1081_v52 }
 0x264   : > { %v2172_v50 = vpop.eup %2171  ;;  %v1490_v31 = vsub.f32 %v3376_v12, %v1325_v27 }
 0x265   : > { %v2174_v36 = vpop.eup %2173  ;;  %1619 = vst [vmem:[%s3350_s15 + $0x2d8] sm:$0xff] %v1491_v20  ;;  %v1331_v44 = vmul.f32 0.6931472, %v2172_v50  ;;  %v1087_v16 = vpop.xlane.xlu1 %1086 }
 0x266   : > { %v1085_v0 = vpop.xlane.xlu0 %1084  ;;  %1618 = vst [vmem:[%s3350_s15 + $0x2d0] sm:$0xff] %v1490_v31  ;;  %v1329_v59 = vmul.f32 0.6931472, %v2174_v36  ;;  %2183 = vlog2.f32 %v1087_v16 }
 0x267   : > { %v1493_v19 = vsub.f32 %v3384_v42, %v1331_v44  ;;  %2185 = vlog2.f32 %v1085_v0 }
 0x268   : > { %v2176_v18 = vpop.eup %2175  ;;  %v1492_v48 = vsub.f32 %v3390_v38, %v1329_v59 }
 0x269   : > { %v2178_v37 = vpop.eup %2177  ;;  %1621 = vst [vmem:[%s3350_s15 + $0x2e8] sm:$0xff] %v1493_v19  ;;  %v1335_v12 = vmul.f32 0.6931472, %v2176_v18  ;;  %v1091_v5 = vpop.xlane.xlu1 %1090 }
 0x26a   : > { %v1089_v29 = vpop.xlane.xlu0 %1088  ;;  %1620 = vst [vmem:[%s3350_s15 + $0x2e0] sm:$0xff] %v1492_v48  ;;  %v1333_v3 = vmul.f32 0.6931472, %v2178_v37  ;;  %2187 = vlog2.f32 %v1091_v5 }
 0x26b   : > { %v1495_v39 = vsub.f32 %v3398_v41, %v1335_v12  ;;  %2189 = vlog2.f32 %v1089_v29 }
 0x26c   : > { %v2180_v23 = vpop.eup %2179  ;;  %v1494_v42 = vsub.f32 %v3404_v34, %v1333_v3 }
 0x26d   : > { %v2182_v56 = vpop.eup %2181  ;;  %1623 = vst [vmem:[%s3350_s15 + $0x2f8] sm:$0xff] %v1495_v39  ;;  %v1339_v38 = vmul.f32 0.6931472, %v2180_v23  ;;  %v1095_v45 = vpop.xlane.xlu1 %1094 }
 0x26e   : > { %v1093_v28 = vpop.xlane.xlu0 %1092  ;;  %1622 = vst [vmem:[%s3350_s15 + $0x2f0] sm:$0xff] %v1494_v42  ;;  %v1337_v62 = vmul.f32 0.6931472, %v2182_v56  ;;  %2191 = vlog2.f32 %v1095_v45 }
 0x26f   : > { %v1497_v43 = vsub.f32 %v3412_v21, %v1339_v38  ;;  %2193 = vlog2.f32 %v1093_v28 }
 0x270   : > { %v2184_v9 = vpop.eup %2183  ;;  %v1496_v41 = vsub.f32 %v3418_v10, %v1337_v62 }
 0x271   : > { %v2186_v24 = vpop.eup %2185  ;;  %1625 = vst [vmem:[%s3350_s15 + $0x308] sm:$0xff] %v1497_v43  ;;  %v1343_v34 = vmul.f32 0.6931472, %v2184_v9  ;;  %v1099_v46 = vpop.xlane.xlu1 %1098 }
 0x272   : > { %v1097_v52 = vpop.xlane.xlu0 %1096  ;;  %1624 = vst [vmem:[%s3350_s15 + $0x300] sm:$0xff] %v1496_v41  ;;  %v1341_v27 = vmul.f32 0.6931472, %v2186_v24  ;;  %2195 = vlog2.f32 %v1099_v46 }
 0x273   : > { %v1499_v20 = vsub.f32 %v3426_v1, %v1343_v34  ;;  %2197 = vlog2.f32 %v1097_v52 }
 0x274   : > { %v2188_v50 = vpop.eup %2187  ;;  %v1498_v21 = vsub.f32 %v3432_v2, %v1341_v27 }
 0x275   : > { %v2190_v31 = vpop.eup %2189  ;;  %1627 = vst [vmem:[%s3350_s15 + $0x318] sm:$0xff] %v1499_v20  ;;  %v1347_v10 = vmul.f32 0.6931472, %v2188_v50  ;;  %v1103_v36 = vpop.xlane.xlu1 %1102 }
 0x276   : > { %v1101_v44 = vpop.xlane.xlu0 %1100  ;;  %1626 = vst [vmem:[%s3350_s15 + $0x310] sm:$0xff] %v1498_v21  ;;  %v1345_v16 = vmul.f32 0.6931472, %v2190_v31  ;;  %2199 = vlog2.f32 %v1103_v36 }
 0x277   : > { %v1501_v0 = vsub.f32 %v3440_v35, %v1347_v10  ;;  %2201 = vlog2.f32 %v1101_v44 }
 0x278   : > { %v2192_v59 = vpop.eup %2191  ;;  %v1500_v1 = vsub.f32 %v3446_v6, %v1345_v16 }
 0x279   : > { %v2194_v19 = vpop.eup %2193  ;;  %1629 = vst [vmem:[%s3350_s15 + $0x328] sm:$0xff] %v1501_v0  ;;  %v1351_v2 = vmul.f32 0.6931472, %v2192_v59  ;;  %v1107_v18 = vpop.xlane.xlu1 %1106 }
 0x27a   : > { %v1105_v48 = vpop.xlane.xlu0 %1104  ;;  %1628 = vst [vmem:[%s3350_s15 + $0x320] sm:$0xff] %v1500_v1  ;;  %v1349_v37 = vmul.f32 0.6931472, %v2194_v19  ;;  %2203 = vlog2.f32 %v1107_v18 }
 0x27b   : > { %v1503_v12 = vsub.f32 %v3454_v4, %v1351_v2  ;;  %2205 = vlog2.f32 %v1105_v48 }
 0x27c   : > { %v2196_v5 = vpop.eup %2195  ;;  %v1502_v35 = vsub.f32 %v3460_v14, %v1349_v37 }
 0x27d   : > { %v2198_v29 = vpop.eup %2197  ;;  %1631 = vst [vmem:[%s3350_s15 + $0x338] sm:$0xff] %v1503_v12  ;;  %v1355_v6 = vmul.f32 0.6931472, %v2196_v5  ;;  %v1111_v3 = vpop.xlane.xlu1 %1110 }
 0x27e   : > { %v1109_v39 = vpop.xlane.xlu0 %1108  ;;  %1630 = vst [vmem:[%s3350_s15 + $0x330] sm:$0xff] %v1502_v35  ;;  %v1353_v23 = vmul.f32 0.6931472, %v2198_v29  ;;  %2207 = vlog2.f32 %v1111_v3 }
 0x27f   : > { %v1505_v42 = vsub.f32 %v3468_v8, %v1355_v6  ;;  %2209 = vlog2.f32 %v1109_v39 }
 0x280   : > { %v2200_v56 = vpop.eup %2199  ;;  %v1504_v4 = vsub.f32 %v3474_v13, %v1353_v23 }
 0x281   : > { %v2202_v38 = vpop.eup %2201  ;;  %1633 = vst [vmem:[%s3350_s15 + $0x348] sm:$0xff] %v1505_v42  ;;  %v1359_v14 = vmul.f32 0.6931472, %v2200_v56  ;;  %v1115_v45 = vpop.xlane.xlu1 %1114 }
 0x282   : > { %v1113_v28 = vpop.xlane.xlu0 %1112  ;;  %1632 = vst [vmem:[%s3350_s15 + $0x340] sm:$0xff] %v1504_v4  ;;  %v1357_v62 = vmul.f32 0.6931472, %v2202_v38  ;;  %2211 = vlog2.f32 %v1115_v45 }
 0x283   : > { %v1507_v43 = vsub.f32 %v3482_v22, %v1359_v14  ;;  %2213 = vlog2.f32 %v1113_v28 }
 0x284   : > { %v2204_v9 = vpop.eup %2203  ;;  %v1506_v8 = vsub.f32 %v3488_v26, %v1357_v62 }
 0x285   : > { %v2206_v41 = vpop.eup %2205  ;;  %1635 = vst [vmem:[%s3350_s15 + $0x358] sm:$0xff] %v1507_v43  ;;  %v1363_v13 = vmul.f32 0.6931472, %v2204_v9  ;;  %v1119_v24 = vpop.xlane.xlu1 %1118 }
 0x286   : > { %v1117_v34 = vpop.xlane.xlu0 %1116  ;;  %1634 = vst [vmem:[%s3350_s15 + $0x350] sm:$0xff] %v1506_v8  ;;  %v1361_v46 = vmul.f32 0.6931472, %v2206_v41  ;;  %2215 = vlog2.f32 %v1119_v24 }
 0x287   : > { %v1509_v52 = vsub.f32 %v3496_v57, %v1363_v13  ;;  %2217 = vlog2.f32 %v1117_v34 }
 0x288   : > { %v2208_v27 = vpop.eup %2207  ;;  %v1508_v22 = vsub.f32 %v3502_v61, %v1361_v46 }
 0x289   : > { %v2210_v20 = vpop.eup %2209  ;;  %1637 = vst [vmem:[%s3350_s15 + $0x368] sm:$0xff] %v1509_v52  ;;  %v1367_v26 = vmul.f32 0.6931472, %v2208_v27  ;;  %v1123_v50 = vpop.xlane.xlu1 %1122 }
 0x28a   : > { %v1121_v21 = vpop.xlane.xlu0 %1120  ;;  %1636 = vst [vmem:[%s3350_s15 + $0x360] sm:$0xff] %v1508_v22  ;;  %v1365_v31 = vmul.f32 0.6931472, %v2210_v20  ;;  %2219 = vlog2.f32 %v1123_v50 }
 0x28b   : > { %v1511_v10 = vsub.f32 %v3510_v15, %v1367_v26  ;;  %2221 = vlog2.f32 %v1121_v21 }
 0x28c   : > { %v2212_v36 = vpop.eup %2211  ;;  %v1510_v57 = vsub.f32 %v3516_v30, %v1365_v31 }
 0x28d   : > { %v2214_v44 = vpop.eup %2213  ;;  %1639 = vst [vmem:[%s3350_s15 + $0x378] sm:$0xff] %v1511_v10  ;;  %v1371_v61 = vmul.f32 0.6931472, %v2212_v36  ;;  %v1127_v16 = vpop.xlane.xlu1 %1126 }
 0x28e   : > { %v1125_v0 = vpop.xlane.xlu0 %1124  ;;  %1638 = vst [vmem:[%s3350_s15 + $0x370] sm:$0xff] %v1510_v57  ;;  %v1369_v59 = vmul.f32 0.6931472, %v2214_v44  ;;  %2223 = vlog2.f32 %v1127_v16 }
 0x28f   : > { %v1513_v1 = vsub.f32 %v3524_v58, %v1371_v61  ;;  %2225 = vlog2.f32 %v1125_v0 }
 0x290   : > { %v2216_v19 = vpop.eup %2215  ;;  %v1512_v15 = vsub.f32 %v3530_v54, %v1369_v59 }
 0x291   : > { %v2218_v2 = vpop.eup %2217  ;;  %1641 = vst [vmem:[%s3350_s15 + $0x388] sm:$0xff] %v1513_v1  ;;  %v1375_v30 = vmul.f32 0.6931472, %v2216_v19  ;;  %v1131_v18 = vpop.xlane.xlu1 %1130 }
 0x292   : > { %v1129_v48 = vpop.xlane.xlu0 %1128  ;;  %1640 = vst [vmem:[%s3350_s15 + $0x380] sm:$0xff] %v1512_v15  ;;  %v1373_v37 = vmul.f32 0.6931472, %v2218_v2  ;;  %2227 = vlog2.f32 %v1131_v18 }
 0x293   : > { %v1515_v12 = vsub.f32 %v3538_v25, %v1375_v30  ;;  %2229 = vlog2.f32 %v1129_v48 }
 0x294   : > { %v2220_v5 = vpop.eup %2219  ;;  %v1514_v58 = vsub.f32 %v3544_v32, %v1373_v37 }
 0x295   : > { %v2222_v35 = vpop.eup %2221  ;;  %1643 = vst [vmem:[%s3350_s15 + $0x398] sm:$0xff] %v1515_v12  ;;  %v1379_v54 = vmul.f32 0.6931472, %v2220_v5  ;;  %v1135_v29 = vpop.xlane.xlu1 %1134 }
 0x296   : > { %v1133_v6 = vpop.xlane.xlu0 %1132  ;;  %1642 = vst [vmem:[%s3350_s15 + $0x390] sm:$0xff] %v1514_v58  ;;  %v1377_v3 = vmul.f32 0.6931472, %v2222_v35  ;;  %2231 = vlog2.f32 %v1135_v29 }
 0x297   : > { %v1517_v39 = vsub.f32 %v3552_v40, %v1379_v54  ;;  %2233 = vlog2.f32 %v1133_v6 }
 0x298   : > { %v2224_v23 = vpop.eup %2223  ;;  %v1516_v25 = vsub.f32 %v3558_v63, %v1377_v3 }
 0x299   : > { %v2226_v42 = vpop.eup %2225  ;;  %1645 = vst [vmem:[%s3350_s15 + $0x3a8] sm:$0xff] %v1517_v39  ;;  %v1383_v32 = vmul.f32 0.6931472, %v2224_v23  ;;  %v1139_v56 = vpop.xlane.xlu1 %1138 }
 0x29a   : > { %v1137_v4 = vpop.xlane.xlu0 %1136  ;;  %1644 = vst [vmem:[%s3350_s15 + $0x3a0] sm:$0xff] %v1516_v25  ;;  %v1381_v38 = vmul.f32 0.6931472, %v2226_v42  ;;  %2235 = vlog2.f32 %v1139_v56 }
 0x29b   : > { %v1519_v14 = vsub.f32 %v3566_v17, %v1383_v32  ;;  %2237 = vlog2.f32 %v1137_v4 }
 0x29c   : > { %v2228_v45 = vpop.eup %2227  ;;  %v1518_v40 = vsub.f32 %v3572_v60, %v1381_v38 }
 0x29d   : > { %v2230_v28 = vpop.eup %2229  ;;  %1647 = vst [vmem:[%s3350_s15 + $0x3b8] sm:$0xff] %v1519_v14  ;;  %v1387_v63 = vmul.f32 0.6931472, %v2228_v45  ;;  %v1143_v62 = vpop.xlane.xlu1 %1142 }
 0x29e   : > { %v1141_v43 = vpop.xlane.xlu0 %1140  ;;  %1646 = vst [vmem:[%s3350_s15 + $0x3b0] sm:$0xff] %v1518_v40  ;;  %v1385_v9 = vmul.f32 0.6931472, %v2230_v28  ;;  %2239 = vlog2.f32 %v1143_v62 }
 0x29f   : > { %v1521_v8 = vsub.f32 %v3580_v11, %v1387_v63  ;;  %2241 = vlog2.f32 %v1141_v43 }
 0x2a0   : > { %v2232_v17 = vpop.eup %2231  ;;  %v1520_v41 = vsub.f32 %v3586_v53, %v1385_v9 }
 0x2a1   : > { %v2234_v13 = vpop.eup %2233  ;;  %1649 = vst [vmem:[%s3350_s15 + $0x3c8] sm:$0xff] %v1521_v8  ;;  %v1391_v60 = vmul.f32 0.6931472, %v2232_v17 }
 0x2a2   : > { %1648 = vst [vmem:[%s3350_s15 + $0x3c0] sm:$0xff] %v1520_v41  ;;  %v1389_v24 = vmul.f32 0.6931472, %v2234_v13 }
 0x2a3   : > { %v1523_v34 = vsub.f32 %v3594_v7, %v1391_v60 }
 0x2a4   : > { %v2236_v46 = vpop.eup %2235  ;;  %v1522_v52 = vsub.f32 %v3600_v51, %v1389_v24 }
 0x2a5   : > { %v2238_v27 = vpop.eup %2237  ;;  %1651 = vst [vmem:[%s3350_s15 + $0x3d8] sm:$0xff] %v1523_v34  ;;  %v1395_v11 = vmul.f32 0.6931472, %v2236_v46 }
 0x2a6   : > { %1650 = vst [vmem:[%s3350_s15 + $0x3d0] sm:$0xff] %v1522_v52  ;;  %v1393_v22 = vmul.f32 0.6931472, %v2238_v27 }
 0x2a7   : > { %v1525_v53 = vsub.f32 %v3608_v33, %v1395_v11 }
 0x2a8   : > { %v2240_v20 = vpop.eup %2239  ;;  %v1524_v26 = vsub.f32 %v3614_v49, %v1393_v22 }
 0x2a9   : > { %v2242_v50 = vpop.eup %2241  ;;  %1653 = vst [vmem:[%s3350_s15 + $0x3e8] sm:$0xff] %v1525_v53  ;;  %v1399_v21 = vmul.f32 0.6931472, %v2240_v20 }
 0x2aa   : > { %1652 = vst [vmem:[%s3350_s15 + $0x3e0] sm:$0xff] %v1524_v26  ;;  %v1397_v7 = vmul.f32 0.6931472, %v2242_v50 }
 0x2ab   : > { %v1527_v31 = vsub.f32 %v3622_v55, %v1399_v21 }
 0x2ac   : > { %v1526_v51 = vsub.f32 %v3628_v47, %v1397_v7 }
 0x2ad   : > { %1655 = vst [vmem:[%s3350_s15 + $0x3f8] sm:$0xff] %v1527_v31 }
 0x2ae   : > { %1654 = vst [vmem:[%s3350_s15 + $0x3f0] sm:$0xff] %v1526_v51 }
 0x2af PF: > { %s11_s6 = sadd.s32 1, %s2319_s6  }
 0x2b0   : > { %p8_p4 = scmp.ge.s32.totalorder %s11_s6, 4  }
 0x2b2   :  { %10 = sbr.rel (!%p8_p4) target bundleno = 1 (0x1), region = 54 }

// kernel: psp_bilinear_forward.4
= control target key start
LH: loop header
LB: loop body
LE: loop exit
PB: predicated region body
PF: predicated region fallthrough
CT: control target
= control target key end

     0   :  { %s12646_s18 = smov 0   ;;  %s12648_s19 = smov 0   ;;  %s14771_s0 = inlined_call_operand.vmem [shape: bf16[2,288,6656], index: 0, kind: input, shape index: {}]   ;;  %s14772_s1 = inlined_call_operand.vmem [shape: bf16[3,6656,512], index: 1, kind: input, shape index: {}]   ;;  %s14773_s2 = inlined_call_operand.vmem [shape: f32[1,512], index: 2, kind: input, shape index: {}]   ;;  %s14774_s3 = inlined_call_operand.vmem [shape: bf16[512,128], index: 3, kind: input, shape index: {}]   ;;  %s14775_s4 = inlined_call_operand.vmem [shape: f32[1,128], index: 4, kind: input, shape index: {}]   ;;  %s14776_s5 = inlined_call_operand.vmem [shape: f32[2,256,128], index: 5, kind: output, shape index: {}]  }
   0x1   :  { %s12650_s20 = smov 0   ;;  %s12652_s21 = smov 0  }
   0x2   :  { %s12654_s22 = smov 0   ;;  %s12656_s23 = smov 0  }
   0x3   :  { %s12658_s24 = smov 0   ;;  %s12660_s25 = smov 0  }
   0x4   :  { %s12662_s26 = smov 0  }
   0x5 LB: > { %s24_s27 = sadd.s32 1, %s12605_s24  ;;  %s27_s28 = sadd.s32 1, %s12609_s25  ;;  %s12613_s26 = sphi %s12662_s26, %s15_s26   ;;  %s12609_s25 = sphi %s12660_s25, %s14786_s25   ;;  %s12605_s24 = sphi %s12658_s24, %s14785_s24   ;;  %s12601_s23 = sphi %s12656_s23, %s14784_s23   ;;  %s12597_s22 = sphi %s12654_s22, %s14783_s22   ;;  %s12593_s21 = sphi %s12652_s21, %s14782_s21   ;;  %s12589_s20 = sphi %s12650_s20, %s14781_s20   ;;  %s12585_s19 = sphi %s12648_s19, %s14780_s19   ;;  %s12581_s18 = sphi %s12646_s18, %s14779_s18  }
   0x6   : > { %p25_p0 = scmp.ge.s32.totalorder %s24_s27, 13  ;;  %p43_p1 = scmp.ne.s32.totalorder %s12593_s21, %s12589_s20 }
   0x7   : > { %p44_p2 = scmp.eq.s32.totalorder %s12613_s26, 0  ;;  %s62_s6 = sadd.s32 1, %s12585_s19 }
   0x8   : > { %s14788_s27 = smov (%p25_p0, %s24_s27), 0  ;;  %s14790_s28 = smov (!%p25_p0, %s27_s28), %s12609_s25 }
   0x9   : > { %s32_s29 = ssub.s32 %s12605_s24, %s14788_s27  ;;  %p12701_p3 = por %p44_p2, %p43_p1 }
   0xa   : > { %p29_p4 = scmp.ge.s32.totalorder %s14790_s28, 2  ;;  %p60_p5 = scmp.eq.s32.totalorder %s32_s29, 0 }
   0xb   : > { %p69_p6 = scmp.ne.s32.totalorder %s12585_s19, %s12581_s18  ;;  %s36_s11 = sadd.s32 1, %s12593_s21 }
   0xc   : > { %s14792_s28 = smov (%p29_p4, %s14790_s28), 0  ;;  %p9458_p9 = scmp.ge.s32.totalorder %s12613_s26, 26 }
   0xd   : > { %s12711_s7 = scalar_select %p60_p5, %s12585_s19, %s62_s6  }
   0xe   : > { %s31_s8 = ssub.s32 %s12609_s25, %s14792_s28  ;;  %p12715_p7 = por %p69_p6, %p44_p2 }
   0xf   : > { %s33_s10 = sor.u32 %s32_s29, %s31_s8  ;;  %193 = sbr.rel (%p9458_p9) target bundleno = 263 (0x107), region = 28 }
  0x10   : > { %p34_p8 = scmp.eq.s32.totalorder %s33_s10, 0 }
  0x12   : > { %s12721_s12 = scalar_select %p34_p8, %s12593_s21, %s36_s11  }
  0x16   : > { %196 = sbr.rel (!%p12701_p3) target bundleno = 66 (0x42), region = 32  ;;  %s198_s13 = sand.u32 (%p12701_p3), 1, %s12593_s21  }
  0x17   : > { %s11587_s14 = smul.u32 (%p12701_p3), 576, %s198_s13  ;;  %s9459_s15 = sshll.u32 (%p12701_p3), %s12605_s24, 2 }
  0x18   : > { %s11588_s16 = smul.u32 (%p12701_p3), 1872, %s12609_s25 }
  0x19   : > { %s12737_s30 = scalar_lea.vmem (%p12701_p3), [#allocation3], %s11587_s14 }
  0x1a   : > { %s203_s17 = sadd.s32 (%p12701_p3), %s11588_s16, %s9459_s15 }
  0x1b   : > { %s9460_s6 = sshll.u32 (%p12701_p3), %s203_s17, 2 }
  0x1c   : > { %s12732_s10 = scalar_lea.vmem (%p12701_p3), %s14771_s0, %s9460_s6 }
  0x1d   : > { %v218_v0 = vld [vmem:[%s12732_s10] sm:$0xff]  ;;  %v220_v1 = vld [vmem:[%s12732_s10 + $0x8] sm:$0xff]  ;;  %v222_v2 = vld [vmem:[%s12732_s10 + $0xd0] sm:$0xff] }
  0x1e   : > { %219 = vst [vmem:[%s12737_s30] sm:$0xff] %v218_v0  ;;  %221 = vst [vmem:[%s12737_s30 + $0x8] sm:$0xff] %v220_v1  ;;  %v224_v3 = vld [vmem:[%s12732_s10 + $0xd8] sm:$0xff]  ;;  %v226_v4 = vld [vmem:[%s12732_s10 + $0x1a0] sm:$0xff] }
  0x1f   : > { %223 = vst [vmem:[%s12737_s30 + $0x10] sm:$0xff] %v222_v2  ;;  %v228_v5 = vld [vmem:[%s12732_s10 + $0x1a8] sm:$0xff]  ;;  %225 = vst [vmem:[%s12737_s30 + $0x18] sm:$0xff] %v224_v3  ;;  %v230_v6 = vld [vmem:[%s12732_s10 + $0x270] sm:$0xff] }
  0x20   : > { %227 = vst [vmem:[%s12737_s30 + $0x20] sm:$0xff] %v226_v4  ;;  %229 = vst [vmem:[%s12737_s30 + $0x28] sm:$0xff] %v228_v5  ;;  %v232_v7 = vld [vmem:[%s12732_s10 + $0x278] sm:$0xff]  ;;  %v234_v8 = vld [vmem:[%s12732_s10 + $0x340] sm:$0xff] }
  0x21   : > { %231 = vst [vmem:[%s12737_s30 + $0x30] sm:$0xff] %v230_v6  ;;  %233 = vst [vmem:[%s12737_s30 + $0x38] sm:$0xff] %v232_v7  ;;  %v236_v9 = vld [vmem:[%s12732_s10 + $0x348] sm:$0xff]  ;;  %v238_v10 = vld [vmem:[%s12732_s10 + $0x410] sm:$0xff] }
  0x22   : > { %235 = vst [vmem:[%s12737_s30 + $0x40] sm:$0xff] %v234_v8  ;;  %v240_v11 = vld [vmem:[%s12732_s10 + $0x418] sm:$0xff]  ;;  %237 = vst [vmem:[%s12737_s30 + $0x48] sm:$0xff] %v236_v9  ;;  %v242_v12 = vld [vmem:[%s12732_s10 + $0x4e0] sm:$0xff] }
  0x23   : > { %239 = vst [vmem:[%s12737_s30 + $0x50] sm:$0xff] %v238_v10  ;;  %241 = vst [vmem:[%s12737_s30 + $0x58] sm:$0xff] %v240_v11  ;;  %v244_v13 = vld [vmem:[%s12732_s10 + $0x4e8] sm:$0xff]  ;;  %v246_v14 = vld [vmem:[%s12732_s10 + $0x5b0] sm:$0xff] }
  0x24   : > { %243 = vst [vmem:[%s12737_s30 + $0x60] sm:$0xff] %v242_v12  ;;  %245 = vst [vmem:[%s12737_s30 + $0x68] sm:$0xff] %v244_v13  ;;  %v248_v15 = vld [vmem:[%s12732_s10 + $0x5b8] sm:$0xff]  ;;  %v250_v16 = vld [vmem:[%s12732_s10 + $0x680] sm:$0xff] }
  0x25   : > { %247 = vst [vmem:[%s12737_s30 + $0x70] sm:$0xff] %v246_v14  ;;  %v252_v17 = vld [vmem:[%s12732_s10 + $0x688] sm:$0xff]  ;;  %249 = vst [vmem:[%s12737_s30 + $0x78] sm:$0xff] %v248_v15  ;;  %v254_v18 = vld [vmem:[%s12732_s10 + $0x750] sm:$0xff] }
  0x26   : > { %251 = vst [vmem:[%s12737_s30 + $0x80] sm:$0xff] %v250_v16  ;;  %253 = vst [vmem:[%s12737_s30 + $0x88] sm:$0xff] %v252_v17  ;;  %v256_v19 = vld [vmem:[%s12732_s10 + $0x758] sm:$0xff]  ;;  %v258_v20 = vld [vmem:[%s12732_s10 + $0x820] sm:$0xff] }
  0x27   : > { %255 = vst [vmem:[%s12737_s30 + $0x90] sm:$0xff] %v254_v18  ;;  %257 = vst [vmem:[%s12737_s30 + $0x98] sm:$0xff] %v256_v19  ;;  %v260_v21 = vld [vmem:[%s12732_s10 + $0x828] sm:$0xff]  ;;  %v262_v22 = vld [vmem:[%s12732_s10 + $0x8f0] sm:$0xff] }
  0x28   : > { %259 = vst [vmem:[%s12737_s30 + $0xa0] sm:$0xff] %v258_v20  ;;  %v264_v23 = vld [vmem:[%s12732_s10 + $0x8f8] sm:$0xff]  ;;  %261 = vst [vmem:[%s12737_s30 + $0xa8] sm:$0xff] %v260_v21  ;;  %v266_v24 = vld [vmem:[%s12732_s10 + $0x9c0] sm:$0xff] }
  0x29   : > { %263 = vst [vmem:[%s12737_s30 + $0xb0] sm:$0xff] %v262_v22  ;;  %265 = vst [vmem:[%s12737_s30 + $0xb8] sm:$0xff] %v264_v23  ;;  %v268_v25 = vld [vmem:[%s12732_s10 + $0x9c8] sm:$0xff]  ;;  %v270_v26 = vld [vmem:[%s12732_s10 + $0xa90] sm:$0xff] }
  0x2a   : > { %267 = vst [vmem:[%s12737_s30 + $0xc0] sm:$0xff] %v266_v24  ;;  %269 = vst [vmem:[%s12737_s30 + $0xc8] sm:$0xff] %v268_v25  ;;  %v272_v27 = vld [vmem:[%s12732_s10 + $0xa98] sm:$0xff]  ;;  %v274_v28 = vld [vmem:[%s12732_s10 + $0xb60] sm:$0xff] }
  0x2b   : > { %271 = vst [vmem:[%s12737_s30 + $0xd0] sm:$0xff] %v270_v26  ;;  %v276_v29 = vld [vmem:[%s12732_s10 + $0xb68] sm:$0xff]  ;;  %273 = vst [vmem:[%s12737_s30 + $0xd8] sm:$0xff] %v272_v27  ;;  %v278_v30 = vld [vmem:[%s12732_s10 + $0xc30] sm:$0xff] }
  0x2c   : > { %275 = vst [vmem:[%s12737_s30 + $0xe0] sm:$0xff] %v274_v28  ;;  %277 = vst [vmem:[%s12737_s30 + $0xe8] sm:$0xff] %v276_v29  ;;  %v280_v31 = vld [vmem:[%s12732_s10 + $0xc38] sm:$0xff]  ;;  %v282_v32 = vld [vmem:[%s12732_s10 + $0xd00] sm:$0xff] }
  0x2d   : > { %279 = vst [vmem:[%s12737_s30 + $0xf0] sm:$0xff] %v278_v30  ;;  %281 = vst [vmem:[%s12737_s30 + $0xf8] sm:$0xff] %v280_v31  ;;  %v284_v33 = vld [vmem:[%s12732_s10 + $0xd08] sm:$0xff]  ;;  %v286_v34 = vld [vmem:[%s12732_s10 + $0xdd0] sm:$0xff] }
  0x2e   : > { %283 = vst [vmem:[%s12737_s30 + $0x100] sm:$0xff] %v282_v32  ;;  %v288_v35 = vld [vmem:[%s12732_s10 + $0xdd8] sm:$0xff]  ;;  %285 = vst [vmem:[%s12737_s30 + $0x108] sm:$0xff] %v284_v33  ;;  %v290_v36 = vld [vmem:[%s12732_s10 + $0xea0] sm:$0xff] }
  0x2f   : > { %287 = vst [vmem:[%s12737_s30 + $0x110] sm:$0xff] %v286_v34  ;;  %289 = vst [vmem:[%s12737_s30 + $0x118] sm:$0xff] %v288_v35  ;;  %v292_v37 = vld [vmem:[%s12732_s10 + $0xea8] sm:$0xff]  ;;  %v294_v38 = vld [vmem:[%s12732_s10 + $0xf70] sm:$0xff] }
  0x30   : > { %291 = vst [vmem:[%s12737_s30 + $0x120] sm:$0xff] %v290_v36  ;;  %293 = vst [vmem:[%s12737_s30 + $0x128] sm:$0xff] %v292_v37  ;;  %v296_v39 = vld [vmem:[%s12732_s10 + $0xf78] sm:$0xff]  ;;  %v298_v40 = vld [vmem:[%s12732_s10 + $0x1040] sm:$0xff] }
  0x31   : > { %295 = vst [vmem:[%s12737_s30 + $0x130] sm:$0xff] %v294_v38  ;;  %v300_v41 = vld [vmem:[%s12732_s10 + $0x1048] sm:$0xff]  ;;  %297 = vst [vmem:[%s12737_s30 + $0x138] sm:$0xff] %v296_v39  ;;  %v302_v42 = vld [vmem:[%s12732_s10 + $0x1110] sm:$0xff] }
  0x32   : > { %299 = vst [vmem:[%s12737_s30 + $0x140] sm:$0xff] %v298_v40  ;;  %301 = vst [vmem:[%s12737_s30 + $0x148] sm:$0xff] %v300_v41  ;;  %v304_v43 = vld [vmem:[%s12732_s10 + $0x1118] sm:$0xff]  ;;  %v306_v44 = vld [vmem:[%s12732_s10 + $0x11e0] sm:$0xff] }
  0x33   : > { %303 = vst [vmem:[%s12737_s30 + $0x150] sm:$0xff] %v302_v42  ;;  %305 = vst [vmem:[%s12737_s30 + $0x158] sm:$0xff] %v304_v43  ;;  %v308_v45 = vld [vmem:[%s12732_s10 + $0x11e8] sm:$0xff]  ;;  %v310_v46 = vld [vmem:[%s12732_s10 + $0x12b0] sm:$0xff] }
  0x34   : > { %307 = vst [vmem:[%s12737_s30 + $0x160] sm:$0xff] %v306_v44  ;;  %v312_v47 = vld [vmem:[%s12732_s10 + $0x12b8] sm:$0xff]  ;;  %309 = vst [vmem:[%s12737_s30 + $0x168] sm:$0xff] %v308_v45  ;;  %v314_v48 = vld [vmem:[%s12732_s10 + $0x1380] sm:$0xff] }
  0x35   : > { %311 = vst [vmem:[%s12737_s30 + $0x170] sm:$0xff] %v310_v46  ;;  %313 = vst [vmem:[%s12737_s30 + $0x178] sm:$0xff] %v312_v47  ;;  %v316_v49 = vld [vmem:[%s12732_s10 + $0x1388] sm:$0xff]  ;;  %v318_v50 = vld [vmem:[%s12732_s10 + $0x1450] sm:$0xff] }
  0x36   : > { %315 = vst [vmem:[%s12737_s30 + $0x180] sm:$0xff] %v314_v48  ;;  %317 = vst [vmem:[%s12737_s30 + $0x188] sm:$0xff] %v316_v49  ;;  %v320_v51 = vld [vmem:[%s12732_s10 + $0x1458] sm:$0xff]  ;;  %v322_v52 = vld [vmem:[%s12732_s10 + $0x1520] sm:$0xff] }
  0x37   : > { %319 = vst [vmem:[%s12737_s30 + $0x190] sm:$0xff] %v318_v50  ;;  %v324_v53 = vld [vmem:[%s12732_s10 + $0x1528] sm:$0xff]  ;;  %321 = vst [vmem:[%s12737_s30 + $0x198] sm:$0xff] %v320_v51  ;;  %v326_v54 = vld [vmem:[%s12732_s10 + $0x15f0] sm:$0xff] }
  0x38   : > { %323 = vst [vmem:[%s12737_s30 + $0x1a0] sm:$0xff] %v322_v52  ;;  %325 = vst [vmem:[%s12737_s30 + $0x1a8] sm:$0xff] %v324_v53  ;;  %v328_v55 = vld [vmem:[%s12732_s10 + $0x15f8] sm:$0xff]  ;;  %v330_v56 = vld [vmem:[%s12732_s10 + $0x16c0] sm:$0xff] }
  0x39   : > { %327 = vst [vmem:[%s12737_s30 + $0x1b0] sm:$0xff] %v326_v54  ;;  %329 = vst [vmem:[%s12737_s30 + $0x1b8] sm:$0xff] %v328_v55  ;;  %v332_v57 = vld [vmem:[%s12732_s10 + $0x16c8] sm:$0xff]  ;;  %v334_v58 = vld [vmem:[%s12732_s10 + $0x1790] sm:$0xff] }
  0x3a   : > { %331 = vst [vmem:[%s12737_s30 + $0x1c0] sm:$0xff] %v330_v56  ;;  %v336_v59 = vld [vmem:[%s12732_s10 + $0x1798] sm:$0xff]  ;;  %333 = vst [vmem:[%s12737_s30 + $0x1c8] sm:$0xff] %v332_v57  ;;  %v338_v60 = vld [vmem:[%s12732_s10 + $0x1860] sm:$0xff] }
  0x3b   : > { %335 = vst [vmem:[%s12737_s30 + $0x1d0] sm:$0xff] %v334_v58  ;;  %337 = vst [vmem:[%s12737_s30 + $0x1d8] sm:$0xff] %v336_v59  ;;  %v340_v61 = vld [vmem:[%s12732_s10 + $0x1868] sm:$0xff]  ;;  %v342_v62 = vld [vmem:[%s12732_s10 + $0x1930] sm:$0xff] }
  0x3c   : > { %339 = vst [vmem:[%s12737_s30 + $0x1e0] sm:$0xff] %v338_v60  ;;  %341 = vst [vmem:[%s12737_s30 + $0x1e8] sm:$0xff] %v340_v61  ;;  %v344_v63 = vld [vmem:[%s12732_s10 + $0x1938] sm:$0xff]  ;;  %v346_v0 = vld [vmem:[%s12732_s10 + $0x1a00] sm:$0xff] }
  0x3d   : > { %343 = vst [vmem:[%s12737_s30 + $0x1f0] sm:$0xff] %v342_v62  ;;  %v348_v1 = vld [vmem:[%s12732_s10 + $0x1a08] sm:$0xff]  ;;  %345 = vst [vmem:[%s12737_s30 + $0x1f8] sm:$0xff] %v344_v63  ;;  %v350_v2 = vld [vmem:[%s12732_s10 + $0x1ad0] sm:$0xff] }
  0x3e   : > { %347 = vst [vmem:[%s12737_s30 + $0x200] sm:$0xff] %v346_v0  ;;  %349 = vst [vmem:[%s12737_s30 + $0x208] sm:$0xff] %v348_v1  ;;  %v352_v3 = vld [vmem:[%s12732_s10 + $0x1ad8] sm:$0xff]  ;;  %v354_v4 = vld [vmem:[%s12732_s10 + $0x1ba0] sm:$0xff] }
  0x3f   : > { %351 = vst [vmem:[%s12737_s30 + $0x210] sm:$0xff] %v350_v2  ;;  %353 = vst [vmem:[%s12737_s30 + $0x218] sm:$0xff] %v352_v3  ;;  %v356_v5 = vld [vmem:[%s12732_s10 + $0x1ba8] sm:$0xff]  ;;  %v358_v6 = vld [vmem:[%s12732_s10 + $0x1c70] sm:$0xff] }
  0x40   : > { %355 = vst [vmem:[%s12737_s30 + $0x220] sm:$0xff] %v354_v4  ;;  %v360_v7 = vld [vmem:[%s12732_s10 + $0x1c78] sm:$0xff]  ;;  %357 = vst [vmem:[%s12737_s30 + $0x228] sm:$0xff] %v356_v5 }
  0x41   : > { %359 = vst [vmem:[%s12737_s30 + $0x230] sm:$0xff] %v358_v6  ;;  %361 = vst [vmem:[%s12737_s30 + $0x238] sm:$0xff] %v360_v7 }
  0x42 PF: > { %367 = sbr.rel (!%p12715_p7) target bundleno = 263 (0x107), region = 55  ;;  %s369_s11 = sand.u32 (%p12715_p7), 1, %s12585_s19  }
  0x43   : > { %s10337_s13 = sshll.u32 (%p12715_p7), %s12605_s24, 10  ;;  %s11589_s14 = smul.u32 (%p12715_p7), 3072, %s369_s11 }
  0x44   : > { %s12887_s17 = scalar_lea.vmem (%p12715_p7), %s14772_s1, %s10337_s13 }
  0x45   : > { %v388_v8 = vld [vmem:[%s12887_s17] sm:$0xff] (%p12715_p7)  ;;  %v390_v9 = vld [vmem:[%s12887_s17 + $0x8] sm:$0xff] (%p12715_p7)  ;;  %v392_v10 = vld [vmem:[%s12887_s17 + $0x10] sm:$0xff] (%p12715_p7)  ;;  %s12895_s9 = scalar_lea.vmem (%p12715_p7), [#allocation4], %s11589_s14 }
  0x46   : > { %v394_v11 = vld [vmem:[%s12887_s17 + $0x18] sm:$0xff] (%p12715_p7)  ;;  %v396_v12 = vld [vmem:[%s12887_s17 + $0x20] sm:$0xff] (%p12715_p7)  ;;  %v398_v13 = vld [vmem:[%s12887_s17 + $0x28] sm:$0xff] (%p12715_p7)  ;;  %389 = vst [vmem:[%s12895_s9] sm:$0xff] (%p12715_p7), %v388_v8 }
  0x47   : > { %391 = vst [vmem:[%s12895_s9 + $0x8] sm:$0xff] (%p12715_p7), %v390_v9  ;;  %393 = vst [vmem:[%s12895_s9 + $0x10] sm:$0xff] (%p12715_p7), %v392_v10  ;;  %v400_v14 = vld [vmem:[%s12887_s17 + $0x30] sm:$0xff] (%p12715_p7)  ;;  %v402_v15 = vld [vmem:[%s12887_s17 + $0x38] sm:$0xff] (%p12715_p7) }
  0x48   : > { %395 = vst [vmem:[%s12895_s9 + $0x18] sm:$0xff] (%p12715_p7), %v394_v11  ;;  %397 = vst [vmem:[%s12895_s9 + $0x20] sm:$0xff] (%p12715_p7), %v396_v12  ;;  %v404_v16 = vld [vmem:[%s12887_s17 + $0x40] sm:$0xff] (%p12715_p7)  ;;  %v406_v17 = vld [vmem:[%s12887_s17 + $0x48] sm:$0xff] (%p12715_p7) }
  0x49   : > { %399 = vst [vmem:[%s12895_s9 + $0x28] sm:$0xff] %v398_v13  ;;  %401 = vst [vmem:[%s12895_s9 + $0x30] sm:$0xff] %v400_v14  ;;  %v408_v18 = vld [vmem:[%s12887_s17 + $0x50] sm:$0xff]  ;;  %v410_v19 = vld [vmem:[%s12887_s17 + $0x58] sm:$0xff] }
  0x4a   : > { %403 = vst [vmem:[%s12895_s9 + $0x38] sm:$0xff] %v402_v15  ;;  %405 = vst [vmem:[%s12895_s9 + $0x40] sm:$0xff] %v404_v16  ;;  %v412_v20 = vld [vmem:[%s12887_s17 + $0x60] sm:$0xff]  ;;  %v414_v21 = vld [vmem:[%s12887_s17 + $0x68] sm:$0xff] }
  0x4b   : > { %407 = vst [vmem:[%s12895_s9 + $0x48] sm:$0xff] %v406_v17  ;;  %409 = vst [vmem:[%s12895_s9 + $0x50] sm:$0xff] %v408_v18  ;;  %v416_v22 = vld [vmem:[%s12887_s17 + $0x70] sm:$0xff]  ;;  %v418_v23 = vld [vmem:[%s12887_s17 + $0x78] sm:$0xff] }
  0x4c   : > { %411 = vst [vmem:[%s12895_s9 + $0x58] sm:$0xff] %v410_v19  ;;  %413 = vst [vmem:[%s12895_s9 + $0x60] sm:$0xff] %v412_v20  ;;  %v420_v24 = vld [vmem:[%s12887_s17 + $0x80] sm:$0xff]  ;;  %v422_v25 = vld [vmem:[%s12887_s17 + $0x88] sm:$0xff] }
  0x4d   : > { %415 = vst [vmem:[%s12895_s9 + $0x68] sm:$0xff] %v414_v21  ;;  %417 = vst [vmem:[%s12895_s9 + $0x70] sm:$0xff] %v416_v22  ;;  %v424_v26 = vld [vmem:[%s12887_s17 + $0x90] sm:$0xff]  ;;  %v426_v27 = vld [vmem:[%s12887_s17 + $0x98] sm:$0xff] }
  0x4e   : > { %419 = vst [vmem:[%s12895_s9 + $0x78] sm:$0xff] %v418_v23  ;;  %421 = vst [vmem:[%s12895_s9 + $0x80] sm:$0xff] %v420_v24  ;;  %v428_v28 = vld [vmem:[%s12887_s17 + $0xa0] sm:$0xff]  ;;  %v430_v29 = vld [vmem:[%s12887_s17 + $0xa8] sm:$0xff] }
  0x4f   : > { %423 = vst [vmem:[%s12895_s9 + $0x88] sm:$0xff] %v422_v25  ;;  %425 = vst [vmem:[%s12895_s9 + $0x90] sm:$0xff] %v424_v26  ;;  %v432_v30 = vld [vmem:[%s12887_s17 + $0xb0] sm:$0xff]  ;;  %v434_v31 = vld [vmem:[%s12887_s17 + $0xb8] sm:$0xff] }
  0x50   : > { %427 = vst [vmem:[%s12895_s9 + $0x98] sm:$0xff] %v426_v27  ;;  %429 = vst [vmem:[%s12895_s9 + $0xa0] sm:$0xff] %v428_v28  ;;  %v436_v32 = vld [vmem:[%s12887_s17 + $0xc0] sm:$0xff]  ;;  %v438_v33 = vld [vmem:[%s12887_s17 + $0xc8] sm:$0xff] }
  0x51   : > { %431 = vst [vmem:[%s12895_s9 + $0xa8] sm:$0xff] %v430_v29  ;;  %433 = vst [vmem:[%s12895_s9 + $0xb0] sm:$0xff] %v432_v30  ;;  %v440_v34 = vld [vmem:[%s12887_s17 + $0xd0] sm:$0xff]  ;;  %v442_v35 = vld [vmem:[%s12887_s17 + $0xd8] sm:$0xff] }
  0x52   : > { %435 = vst [vmem:[%s12895_s9 + $0xb8] sm:$0xff] %v434_v31  ;;  %437 = vst [vmem:[%s12895_s9 + $0xc0] sm:$0xff] %v436_v32  ;;  %v444_v36 = vld [vmem:[%s12887_s17 + $0xe0] sm:$0xff]  ;;  %v446_v37 = vld [vmem:[%s12887_s17 + $0xe8] sm:$0xff] }
  0x53   : > { %439 = vst [vmem:[%s12895_s9 + $0xc8] sm:$0xff] %v438_v33  ;;  %441 = vst [vmem:[%s12895_s9 + $0xd0] sm:$0xff] %v440_v34  ;;  %v448_v38 = vld [vmem:[%s12887_s17 + $0xf0] sm:$0xff]  ;;  %v450_v39 = vld [vmem:[%s12887_s17 + $0xf8] sm:$0xff] }
  0x54   : > { %443 = vst [vmem:[%s12895_s9 + $0xd8] sm:$0xff] %v442_v35  ;;  %445 = vst [vmem:[%s12895_s9 + $0xe0] sm:$0xff] %v444_v36  ;;  %v452_v40 = vld [vmem:[%s12887_s17 + $0x100] sm:$0xff]  ;;  %v454_v41 = vld [vmem:[%s12887_s17 + $0x108] sm:$0xff] }
  0x55   : > { %447 = vst [vmem:[%s12895_s9 + $0xe8] sm:$0xff] %v446_v37  ;;  %449 = vst [vmem:[%s12895_s9 + $0xf0] sm:$0xff] %v448_v38  ;;  %v456_v42 = vld [vmem:[%s12887_s17 + $0x110] sm:$0xff]  ;;  %v458_v43 = vld [vmem:[%s12887_s17 + $0x118] sm:$0xff] }
  0x56   : > { %451 = vst [vmem:[%s12895_s9 + $0xf8] sm:$0xff] %v450_v39  ;;  %453 = vst [vmem:[%s12895_s9 + $0x100] sm:$0xff] %v452_v40  ;;  %v460_v44 = vld [vmem:[%s12887_s17 + $0x120] sm:$0xff]  ;;  %v462_v45 = vld [vmem:[%s12887_s17 + $0x128] sm:$0xff] }
  0x57   : > { %455 = vst [vmem:[%s12895_s9 + $0x108] sm:$0xff] %v454_v41  ;;  %457 = vst [vmem:[%s12895_s9 + $0x110] sm:$0xff] %v456_v42  ;;  %v464_v46 = vld [vmem:[%s12887_s17 + $0x130] sm:$0xff]  ;;  %v466_v47 = vld [vmem:[%s12887_s17 + $0x138] sm:$0xff] }
  0x58   : > { %459 = vst [vmem:[%s12895_s9 + $0x118] sm:$0xff] %v458_v43  ;;  %461 = vst [vmem:[%s12895_s9 + $0x120] sm:$0xff] %v460_v44  ;;  %v468_v48 = vld [vmem:[%s12887_s17 + $0x140] sm:$0xff]  ;;  %v470_v49 = vld [vmem:[%s12887_s17 + $0x148] sm:$0xff] }
  0x59   : > { %463 = vst [vmem:[%s12895_s9 + $0x128] sm:$0xff] %v462_v45  ;;  %465 = vst [vmem:[%s12895_s9 + $0x130] sm:$0xff] %v464_v46  ;;  %v472_v50 = vld [vmem:[%s12887_s17 + $0x150] sm:$0xff]  ;;  %v474_v51 = vld [vmem:[%s12887_s17 + $0x158] sm:$0xff] }
  0x5a   : > { %467 = vst [vmem:[%s12895_s9 + $0x138] sm:$0xff] %v466_v47  ;;  %469 = vst [vmem:[%s12895_s9 + $0x140] sm:$0xff] %v468_v48  ;;  %v476_v52 = vld [vmem:[%s12887_s17 + $0x160] sm:$0xff]  ;;  %v478_v53 = vld [vmem:[%s12887_s17 + $0x168] sm:$0xff] }
  0x5b   : > { %471 = vst [vmem:[%s12895_s9 + $0x148] sm:$0xff] %v470_v49  ;;  %473 = vst [vmem:[%s12895_s9 + $0x150] sm:$0xff] %v472_v50  ;;  %v480_v54 = vld [vmem:[%s12887_s17 + $0x170] sm:$0xff]  ;;  %v482_v55 = vld [vmem:[%s12887_s17 + $0x178] sm:$0xff] }
  0x5c   : > { %475 = vst [vmem:[%s12895_s9 + $0x158] sm:$0xff] %v474_v51  ;;  %477 = vst [vmem:[%s12895_s9 + $0x160] sm:$0xff] %v476_v52  ;;  %v484_v56 = vld [vmem:[%s12887_s17 + $0x180] sm:$0xff]  ;;  %v486_v57 = vld [vmem:[%s12887_s17 + $0x188] sm:$0xff] }
  0x5d   : > { %479 = vst [vmem:[%s12895_s9 + $0x168] sm:$0xff] %v478_v53  ;;  %481 = vst [vmem:[%s12895_s9 + $0x170] sm:$0xff] %v480_v54  ;;  %v488_v58 = vld [vmem:[%s12887_s17 + $0x190] sm:$0xff]  ;;  %v490_v59 = vld [vmem:[%s12887_s17 + $0x198] sm:$0xff] }
  0x5e   : > { %483 = vst [vmem:[%s12895_s9 + $0x178] sm:$0xff] %v482_v55  ;;  %485 = vst [vmem:[%s12895_s9 + $0x180] sm:$0xff] %v484_v56  ;;  %v492_v60 = vld [vmem:[%s12887_s17 + $0x1a0] sm:$0xff]  ;;  %v494_v61 = vld [vmem:[%s12887_s17 + $0x1a8] sm:$0xff] }
  0x5f   : > { %487 = vst [vmem:[%s12895_s9 + $0x188] sm:$0xff] %v486_v57  ;;  %489 = vst [vmem:[%s12895_s9 + $0x190] sm:$0xff] %v488_v58  ;;  %v496_v62 = vld [vmem:[%s12887_s17 + $0x1b0] sm:$0xff]  ;;  %v498_v63 = vld [vmem:[%s12887_s17 + $0x1b8] sm:$0xff] }
  0x60   : > { %491 = vst [vmem:[%s12895_s9 + $0x198] sm:$0xff] %v490_v59  ;;  %493 = vst [vmem:[%s12895_s9 + $0x1a0] sm:$0xff] %v492_v60  ;;  %v500_v0 = vld [vmem:[%s12887_s17 + $0x1c0] sm:$0xff]  ;;  %v502_v1 = vld [vmem:[%s12887_s17 + $0x1c8] sm:$0xff] }
  0x61   : > { %495 = vst [vmem:[%s12895_s9 + $0x1a8] sm:$0xff] %v494_v61  ;;  %497 = vst [vmem:[%s12895_s9 + $0x1b0] sm:$0xff] %v496_v62  ;;  %v504_v2 = vld [vmem:[%s12887_s17 + $0x1d0] sm:$0xff]  ;;  %v506_v3 = vld [vmem:[%s12887_s17 + $0x1d8] sm:$0xff] }
  0x62   : > { %499 = vst [vmem:[%s12895_s9 + $0x1b8] sm:$0xff] %v498_v63  ;;  %501 = vst [vmem:[%s12895_s9 + $0x1c0] sm:$0xff] %v500_v0  ;;  %v508_v4 = vld [vmem:[%s12887_s17 + $0x1e0] sm:$0xff]  ;;  %v510_v5 = vld [vmem:[%s12887_s17 + $0x1e8] sm:$0xff] }
  0x63   : > { %503 = vst [vmem:[%s12895_s9 + $0x1c8] sm:$0xff] %v502_v1  ;;  %505 = vst [vmem:[%s12895_s9 + $0x1d0] sm:$0xff] %v504_v2  ;;  %v512_v6 = vld [vmem:[%s12887_s17 + $0x1f0] sm:$0xff]  ;;  %v514_v7 = vld [vmem:[%s12887_s17 + $0x1f8] sm:$0xff] }
  0x64   : > { %507 = vst [vmem:[%s12895_s9 + $0x1d8] sm:$0xff] %v506_v3  ;;  %509 = vst [vmem:[%s12895_s9 + $0x1e0] sm:$0xff] %v508_v4  ;;  %v516_v8 = vld [vmem:[%s12887_s17 + $0x200] sm:$0xff]  ;;  %v518_v9 = vld [vmem:[%s12887_s17 + $0x208] sm:$0xff] }
  0x65   : > { %511 = vst [vmem:[%s12895_s9 + $0x1e8] sm:$0xff] %v510_v5  ;;  %513 = vst [vmem:[%s12895_s9 + $0x1f0] sm:$0xff] %v512_v6  ;;  %v520_v10 = vld [vmem:[%s12887_s17 + $0x210] sm:$0xff]  ;;  %v522_v11 = vld [vmem:[%s12887_s17 + $0x218] sm:$0xff] }
  0x66   : > { %515 = vst [vmem:[%s12895_s9 + $0x1f8] sm:$0xff] %v514_v7  ;;  %517 = vst [vmem:[%s12895_s9 + $0x200] sm:$0xff] %v516_v8  ;;  %v524_v12 = vld [vmem:[%s12887_s17 + $0x220] sm:$0xff]  ;;  %v526_v13 = vld [vmem:[%s12887_s17 + $0x228] sm:$0xff] }
  0x67   : > { %519 = vst [vmem:[%s12895_s9 + $0x208] sm:$0xff] %v518_v9  ;;  %521 = vst [vmem:[%s12895_s9 + $0x210] sm:$0xff] %v520_v10  ;;  %v528_v14 = vld [vmem:[%s12887_s17 + $0x230] sm:$0xff]  ;;  %v530_v15 = vld [vmem:[%s12887_s17 + $0x238] sm:$0xff] }
  0x68   : > { %523 = vst [vmem:[%s12895_s9 + $0x218] sm:$0xff] %v522_v11  ;;  %525 = vst [vmem:[%s12895_s9 + $0x220] sm:$0xff] %v524_v12  ;;  %v532_v16 = vld [vmem:[%s12887_s17 + $0x240] sm:$0xff]  ;;  %v534_v17 = vld [vmem:[%s12887_s17 + $0x248] sm:$0xff] }
  0x69   : > { %527 = vst [vmem:[%s12895_s9 + $0x228] sm:$0xff] %v526_v13  ;;  %529 = vst [vmem:[%s12895_s9 + $0x230] sm:$0xff] %v528_v14  ;;  %v536_v18 = vld [vmem:[%s12887_s17 + $0x250] sm:$0xff]  ;;  %v538_v19 = vld [vmem:[%s12887_s17 + $0x258] sm:$0xff] }
  0x6a   : > { %531 = vst [vmem:[%s12895_s9 + $0x238] sm:$0xff] %v530_v15  ;;  %533 = vst [vmem:[%s12895_s9 + $0x240] sm:$0xff] %v532_v16  ;;  %v540_v20 = vld [vmem:[%s12887_s17 + $0x260] sm:$0xff]  ;;  %v542_v21 = vld [vmem:[%s12887_s17 + $0x268] sm:$0xff] }
  0x6b   : > { %535 = vst [vmem:[%s12895_s9 + $0x248] sm:$0xff] %v534_v17  ;;  %537 = vst [vmem:[%s12895_s9 + $0x250] sm:$0xff] %v536_v18  ;;  %v544_v22 = vld [vmem:[%s12887_s17 + $0x270] sm:$0xff]  ;;  %v546_v23 = vld [vmem:[%s12887_s17 + $0x278] sm:$0xff] }
  0x6c   : > { %539 = vst [vmem:[%s12895_s9 + $0x258] sm:$0xff] %v538_v19  ;;  %541 = vst [vmem:[%s12895_s9 + $0x260] sm:$0xff] %v540_v20  ;;  %v548_v24 = vld [vmem:[%s12887_s17 + $0x280] sm:$0xff]  ;;  %v550_v25 = vld [vmem:[%s12887_s17 + $0x288] sm:$0xff] }
  0x6d   : > { %543 = vst [vmem:[%s12895_s9 + $0x268] sm:$0xff] %v542_v21  ;;  %545 = vst [vmem:[%s12895_s9 + $0x270] sm:$0xff] %v544_v22  ;;  %v552_v26 = vld [vmem:[%s12887_s17 + $0x290] sm:$0xff]  ;;  %v554_v27 = vld [vmem:[%s12887_s17 + $0x298] sm:$0xff] }
  0x6e   : > { %547 = vst [vmem:[%s12895_s9 + $0x278] sm:$0xff] %v546_v23  ;;  %549 = vst [vmem:[%s12895_s9 + $0x280] sm:$0xff] %v548_v24  ;;  %v556_v28 = vld [vmem:[%s12887_s17 + $0x2a0] sm:$0xff]  ;;  %v558_v29 = vld [vmem:[%s12887_s17 + $0x2a8] sm:$0xff] }
  0x6f   : > { %551 = vst [vmem:[%s12895_s9 + $0x288] sm:$0xff] %v550_v25  ;;  %553 = vst [vmem:[%s12895_s9 + $0x290] sm:$0xff] %v552_v26  ;;  %v560_v30 = vld [vmem:[%s12887_s17 + $0x2b0] sm:$0xff]  ;;  %v562_v31 = vld [vmem:[%s12887_s17 + $0x2b8] sm:$0xff] }
  0x70   : > { %555 = vst [vmem:[%s12895_s9 + $0x298] sm:$0xff] %v554_v27  ;;  %557 = vst [vmem:[%s12895_s9 + $0x2a0] sm:$0xff] %v556_v28  ;;  %v564_v32 = vld [vmem:[%s12887_s17 + $0x2c0] sm:$0xff]  ;;  %v566_v33 = vld [vmem:[%s12887_s17 + $0x2c8] sm:$0xff] }
  0x71   : > { %559 = vst [vmem:[%s12895_s9 + $0x2a8] sm:$0xff] %v558_v29  ;;  %561 = vst [vmem:[%s12895_s9 + $0x2b0] sm:$0xff] %v560_v30  ;;  %v568_v34 = vld [vmem:[%s12887_s17 + $0x2d0] sm:$0xff]  ;;  %v570_v35 = vld [vmem:[%s12887_s17 + $0x2d8] sm:$0xff] }
  0x72   : > { %563 = vst [vmem:[%s12895_s9 + $0x2b8] sm:$0xff] %v562_v31  ;;  %565 = vst [vmem:[%s12895_s9 + $0x2c0] sm:$0xff] %v564_v32  ;;  %v572_v36 = vld [vmem:[%s12887_s17 + $0x2e0] sm:$0xff]  ;;  %v574_v37 = vld [vmem:[%s12887_s17 + $0x2e8] sm:$0xff] }
  0x73   : > { %567 = vst [vmem:[%s12895_s9 + $0x2c8] sm:$0xff] %v566_v33  ;;  %569 = vst [vmem:[%s12895_s9 + $0x2d0] sm:$0xff] %v568_v34  ;;  %v576_v38 = vld [vmem:[%s12887_s17 + $0x2f0] sm:$0xff]  ;;  %v578_v39 = vld [vmem:[%s12887_s17 + $0x2f8] sm:$0xff] }
  0x74   : > { %571 = vst [vmem:[%s12895_s9 + $0x2d8] sm:$0xff] %v570_v35  ;;  %573 = vst [vmem:[%s12895_s9 + $0x2e0] sm:$0xff] %v572_v36  ;;  %v580_v40 = vld [vmem:[%s12887_s17 + $0x300] sm:$0xff]  ;;  %v582_v41 = vld [vmem:[%s12887_s17 + $0x308] sm:$0xff] }
  0x75   : > { %575 = vst [vmem:[%s12895_s9 + $0x2e8] sm:$0xff] %v574_v37  ;;  %577 = vst [vmem:[%s12895_s9 + $0x2f0] sm:$0xff] %v576_v38  ;;  %v584_v42 = vld [vmem:[%s12887_s17 + $0x310] sm:$0xff]  ;;  %v586_v43 = vld [vmem:[%s12887_s17 + $0x318] sm:$0xff] }
  0x76   : > { %579 = vst [vmem:[%s12895_s9 + $0x2f8] sm:$0xff] %v578_v39  ;;  %581 = vst [vmem:[%s12895_s9 + $0x300] sm:$0xff] %v580_v40  ;;  %v588_v44 = vld [vmem:[%s12887_s17 + $0x320] sm:$0xff]  ;;  %v590_v45 = vld [vmem:[%s12887_s17 + $0x328] sm:$0xff] }
  0x77   : > { %583 = vst [vmem:[%s12895_s9 + $0x308] sm:$0xff] %v582_v41  ;;  %585 = vst [vmem:[%s12895_s9 + $0x310] sm:$0xff] %v584_v42  ;;  %v592_v46 = vld [vmem:[%s12887_s17 + $0x330] sm:$0xff]  ;;  %v594_v47 = vld [vmem:[%s12887_s17 + $0x338] sm:$0xff] }
  0x78   : > { %587 = vst [vmem:[%s12895_s9 + $0x318] sm:$0xff] %v586_v43  ;;  %589 = vst [vmem:[%s12895_s9 + $0x320] sm:$0xff] %v588_v44  ;;  %v596_v48 = vld [vmem:[%s12887_s17 + $0x340] sm:$0xff]  ;;  %v598_v49 = vld [vmem:[%s12887_s17 + $0x348] sm:$0xff] }
  0x79   : > { %591 = vst [vmem:[%s12895_s9 + $0x328] sm:$0xff] %v590_v45  ;;  %593 = vst [vmem:[%s12895_s9 + $0x330] sm:$0xff] %v592_v46  ;;  %v600_v50 = vld [vmem:[%s12887_s17 + $0x350] sm:$0xff]  ;;  %v602_v51 = vld [vmem:[%s12887_s17 + $0x358] sm:$0xff] }
  0x7a   : > { %595 = vst [vmem:[%s12895_s9 + $0x338] sm:$0xff] %v594_v47  ;;  %597 = vst [vmem:[%s12895_s9 + $0x340] sm:$0xff] %v596_v48  ;;  %v604_v52 = vld [vmem:[%s12887_s17 + $0x360] sm:$0xff]  ;;  %v606_v53 = vld [vmem:[%s12887_s17 + $0x368] sm:$0xff] }
  0x7b   : > { %599 = vst [vmem:[%s12895_s9 + $0x348] sm:$0xff] %v598_v49  ;;  %601 = vst [vmem:[%s12895_s9 + $0x350] sm:$0xff] %v600_v50  ;;  %v608_v54 = vld [vmem:[%s12887_s17 + $0x370] sm:$0xff]  ;;  %v610_v55 = vld [vmem:[%s12887_s17 + $0x378] sm:$0xff] }
  0x7c   : > { %603 = vst [vmem:[%s12895_s9 + $0x358] sm:$0xff] %v602_v51  ;;  %605 = vst [vmem:[%s12895_s9 + $0x360] sm:$0xff] %v604_v52  ;;  %v612_v56 = vld [vmem:[%s12887_s17 + $0x380] sm:$0xff]  ;;  %v614_v57 = vld [vmem:[%s12887_s17 + $0x388] sm:$0xff] }
  0x7d   : > { %607 = vst [vmem:[%s12895_s9 + $0x368] sm:$0xff] %v606_v53  ;;  %609 = vst [vmem:[%s12895_s9 + $0x370] sm:$0xff] %v608_v54  ;;  %v616_v58 = vld [vmem:[%s12887_s17 + $0x390] sm:$0xff]  ;;  %v618_v59 = vld [vmem:[%s12887_s17 + $0x398] sm:$0xff] }
  0x7e   : > { %611 = vst [vmem:[%s12895_s9 + $0x378] sm:$0xff] %v610_v55  ;;  %613 = vst [vmem:[%s12895_s9 + $0x380] sm:$0xff] %v612_v56  ;;  %v620_v60 = vld [vmem:[%s12887_s17 + $0x3a0] sm:$0xff]  ;;  %v622_v61 = vld [vmem:[%s12887_s17 + $0x3a8] sm:$0xff] }
  0x7f   : > { %615 = vst [vmem:[%s12895_s9 + $0x388] sm:$0xff] %v614_v57  ;;  %617 = vst [vmem:[%s12895_s9 + $0x390] sm:$0xff] %v616_v58  ;;  %v624_v62 = vld [vmem:[%s12887_s17 + $0x3b0] sm:$0xff]  ;;  %v626_v63 = vld [vmem:[%s12887_s17 + $0x3b8] sm:$0xff] }
  0x80   : > { %619 = vst [vmem:[%s12895_s9 + $0x398] sm:$0xff] %v618_v59  ;;  %621 = vst [vmem:[%s12895_s9 + $0x3a0] sm:$0xff] %v620_v60  ;;  %v628_v0 = vld [vmem:[%s12887_s17 + $0x3c0] sm:$0xff]  ;;  %v630_v1 = vld [vmem:[%s12887_s17 + $0x3c8] sm:$0xff] }
  0x81   : > { %623 = vst [vmem:[%s12895_s9 + $0x3a8] sm:$0xff] %v622_v61  ;;  %625 = vst [vmem:[%s12895_s9 + $0x3b0] sm:$0xff] %v624_v62  ;;  %v632_v2 = vld [vmem:[%s12887_s17 + $0x3d0] sm:$0xff]  ;;  %v634_v3 = vld [vmem:[%s12887_s17 + $0x3d8] sm:$0xff] }
  0x82   : > { %627 = vst [vmem:[%s12895_s9 + $0x3b8] sm:$0xff] %v626_v63  ;;  %629 = vst [vmem:[%s12895_s9 + $0x3c0] sm:$0xff] %v628_v0  ;;  %v636_v4 = vld [vmem:[%s12887_s17 + $0x3e0] sm:$0xff]  ;;  %v638_v5 = vld [vmem:[%s12887_s17 + $0x3e8] sm:$0xff] }
  0x83   : > { %631 = vst [vmem:[%s12895_s9 + $0x3c8] sm:$0xff] %v630_v1  ;;  %633 = vst [vmem:[%s12895_s9 + $0x3d0] sm:$0xff] %v632_v2  ;;  %v640_v6 = vld [vmem:[%s12887_s17 + $0x3f0] sm:$0xff]  ;;  %v642_v7 = vld [vmem:[%s12887_s17 + $0x3f8] sm:$0xff] }
  0x84   : > { %635 = vst [vmem:[%s12895_s9 + $0x3d8] sm:$0xff] %v634_v3  ;;  %637 = vst [vmem:[%s12895_s9 + $0x3e0] sm:$0xff] %v636_v4  ;;  %v644_v8 = vld [vmem:[%s12887_s17 + $0x3400] sm:$0xff]  ;;  %v646_v9 = vld [vmem:[%s12887_s17 + $0x3408] sm:$0xff] }
  0x85   : > { %639 = vst [vmem:[%s12895_s9 + $0x3e8] sm:$0xff] %v638_v5  ;;  %641 = vst [vmem:[%s12895_s9 + $0x3f0] sm:$0xff] %v640_v6  ;;  %v648_v10 = vld [vmem:[%s12887_s17 + $0x3410] sm:$0xff]  ;;  %v650_v11 = vld [vmem:[%s12887_s17 + $0x3418] sm:$0xff] }
  0x86   : > { %643 = vst [vmem:[%s12895_s9 + $0x3f8] sm:$0xff] %v642_v7  ;;  %645 = vst [vmem:[%s12895_s9 + $0x400] sm:$0xff] %v644_v8  ;;  %v652_v12 = vld [vmem:[%s12887_s17 + $0x3420] sm:$0xff]  ;;  %v654_v13 = vld [vmem:[%s12887_s17 + $0x3428] sm:$0xff] }
  0x87   : > { %647 = vst [vmem:[%s12895_s9 + $0x408] sm:$0xff] %v646_v9  ;;  %649 = vst [vmem:[%s12895_s9 + $0x410] sm:$0xff] %v648_v10  ;;  %v656_v14 = vld [vmem:[%s12887_s17 + $0x3430] sm:$0xff]  ;;  %v658_v15 = vld [vmem:[%s12887_s17 + $0x3438] sm:$0xff] }
  0x88   : > { %651 = vst [vmem:[%s12895_s9 + $0x418] sm:$0xff] %v650_v11  ;;  %653 = vst [vmem:[%s12895_s9 + $0x420] sm:$0xff] %v652_v12  ;;  %v660_v16 = vld [vmem:[%s12887_s17 + $0x3440] sm:$0xff]  ;;  %v662_v17 = vld [vmem:[%s12887_s17 + $0x3448] sm:$0xff] }
  0x89   : > { %655 = vst [vmem:[%s12895_s9 + $0x428] sm:$0xff] %v654_v13  ;;  %657 = vst [vmem:[%s12895_s9 + $0x430] sm:$0xff] %v656_v14  ;;  %v664_v18 = vld [vmem:[%s12887_s17 + $0x3450] sm:$0xff]  ;;  %v666_v19 = vld [vmem:[%s12887_s17 + $0x3458] sm:$0xff] }
  0x8a   : > { %659 = vst [vmem:[%s12895_s9 + $0x438] sm:$0xff] %v658_v15  ;;  %661 = vst [vmem:[%s12895_s9 + $0x440] sm:$0xff] %v660_v16  ;;  %v668_v20 = vld [vmem:[%s12887_s17 + $0x3460] sm:$0xff]  ;;  %v670_v21 = vld [vmem:[%s12887_s17 + $0x3468] sm:$0xff] }
  0x8b   : > { %663 = vst [vmem:[%s12895_s9 + $0x448] sm:$0xff] %v662_v17  ;;  %665 = vst [vmem:[%s12895_s9 + $0x450] sm:$0xff] %v664_v18  ;;  %v672_v22 = vld [vmem:[%s12887_s17 + $0x3470] sm:$0xff]  ;;  %v674_v23 = vld [vmem:[%s12887_s17 + $0x3478] sm:$0xff] }
  0x8c   : > { %667 = vst [vmem:[%s12895_s9 + $0x458] sm:$0xff] %v666_v19  ;;  %669 = vst [vmem:[%s12895_s9 + $0x460] sm:$0xff] %v668_v20  ;;  %v676_v24 = vld [vmem:[%s12887_s17 + $0x3480] sm:$0xff]  ;;  %v678_v25 = vld [vmem:[%s12887_s17 + $0x3488] sm:$0xff] }
  0x8d   : > { %671 = vst [vmem:[%s12895_s9 + $0x468] sm:$0xff] %v670_v21  ;;  %673 = vst [vmem:[%s12895_s9 + $0x470] sm:$0xff] %v672_v22  ;;  %v680_v26 = vld [vmem:[%s12887_s17 + $0x3490] sm:$0xff]  ;;  %v682_v27 = vld [vmem:[%s12887_s17 + $0x3498] sm:$0xff] }
  0x8e   : > { %675 = vst [vmem:[%s12895_s9 + $0x478] sm:$0xff] %v674_v23  ;;  %677 = vst [vmem:[%s12895_s9 + $0x480] sm:$0xff] %v676_v24  ;;  %v684_v28 = vld [vmem:[%s12887_s17 + $0x34a0] sm:$0xff]  ;;  %v686_v29 = vld [vmem:[%s12887_s17 + $0x34a8] sm:$0xff] }
  0x8f   : > { %679 = vst [vmem:[%s12895_s9 + $0x488] sm:$0xff] %v678_v25  ;;  %681 = vst [vmem:[%s12895_s9 + $0x490] sm:$0xff] %v680_v26  ;;  %v688_v30 = vld [vmem:[%s12887_s17 + $0x34b0] sm:$0xff]  ;;  %v690_v31 = vld [vmem:[%s12887_s17 + $0x34b8] sm:$0xff] }
  0x90   : > { %683 = vst [vmem:[%s12895_s9 + $0x498] sm:$0xff] %v682_v27  ;;  %685 = vst [vmem:[%s12895_s9 + $0x4a0] sm:$0xff] %v684_v28  ;;  %v692_v32 = vld [vmem:[%s12887_s17 + $0x34c0] sm:$0xff]  ;;  %v694_v33 = vld [vmem:[%s12887_s17 + $0x34c8] sm:$0xff] }
  0x91   : > { %687 = vst [vmem:[%s12895_s9 + $0x4a8] sm:$0xff] %v686_v29  ;;  %689 = vst [vmem:[%s12895_s9 + $0x4b0] sm:$0xff] %v688_v30  ;;  %v696_v34 = vld [vmem:[%s12887_s17 + $0x34d0] sm:$0xff]  ;;  %v698_v35 = vld [vmem:[%s12887_s17 + $0x34d8] sm:$0xff] }
  0x92   : > { %691 = vst [vmem:[%s12895_s9 + $0x4b8] sm:$0xff] %v690_v31  ;;  %693 = vst [vmem:[%s12895_s9 + $0x4c0] sm:$0xff] %v692_v32  ;;  %v700_v36 = vld [vmem:[%s12887_s17 + $0x34e0] sm:$0xff]  ;;  %v702_v37 = vld [vmem:[%s12887_s17 + $0x34e8] sm:$0xff] }
  0x93   : > { %695 = vst [vmem:[%s12895_s9 + $0x4c8] sm:$0xff] %v694_v33  ;;  %697 = vst [vmem:[%s12895_s9 + $0x4d0] sm:$0xff] %v696_v34  ;;  %v704_v38 = vld [vmem:[%s12887_s17 + $0x34f0] sm:$0xff]  ;;  %v706_v39 = vld [vmem:[%s12887_s17 + $0x34f8] sm:$0xff] }
  0x94   : > { %699 = vst [vmem:[%s12895_s9 + $0x4d8] sm:$0xff] %v698_v35  ;;  %701 = vst [vmem:[%s12895_s9 + $0x4e0] sm:$0xff] %v700_v36  ;;  %v708_v40 = vld [vmem:[%s12887_s17 + $0x3500] sm:$0xff]  ;;  %v710_v41 = vld [vmem:[%s12887_s17 + $0x3508] sm:$0xff] }
  0x95   : > { %703 = vst [vmem:[%s12895_s9 + $0x4e8] sm:$0xff] %v702_v37  ;;  %705 = vst [vmem:[%s12895_s9 + $0x4f0] sm:$0xff] %v704_v38  ;;  %v712_v42 = vld [vmem:[%s12887_s17 + $0x3510] sm:$0xff]  ;;  %v714_v43 = vld [vmem:[%s12887_s17 + $0x3518] sm:$0xff] }
  0x96   : > { %707 = vst [vmem:[%s12895_s9 + $0x4f8] sm:$0xff] %v706_v39  ;;  %709 = vst [vmem:[%s12895_s9 + $0x500] sm:$0xff] %v708_v40  ;;  %v716_v44 = vld [vmem:[%s12887_s17 + $0x3520] sm:$0xff]  ;;  %v718_v45 = vld [vmem:[%s12887_s17 + $0x3528] sm:$0xff] }
  0x97   : > { %711 = vst [vmem:[%s12895_s9 + $0x508] sm:$0xff] %v710_v41  ;;  %713 = vst [vmem:[%s12895_s9 + $0x510] sm:$0xff] %v712_v42  ;;  %v720_v46 = vld [vmem:[%s12887_s17 + $0x3530] sm:$0xff]  ;;  %v722_v47 = vld [vmem:[%s12887_s17 + $0x3538] sm:$0xff] }
  0x98   : > { %715 = vst [vmem:[%s12895_s9 + $0x518] sm:$0xff] %v714_v43  ;;  %717 = vst [vmem:[%s12895_s9 + $0x520] sm:$0xff] %v716_v44  ;;  %v724_v48 = vld [vmem:[%s12887_s17 + $0x3540] sm:$0xff]  ;;  %v726_v49 = vld [vmem:[%s12887_s17 + $0x3548] sm:$0xff] }
  0x99   : > { %719 = vst [vmem:[%s12895_s9 + $0x528] sm:$0xff] %v718_v45  ;;  %721 = vst [vmem:[%s12895_s9 + $0x530] sm:$0xff] %v720_v46  ;;  %v728_v50 = vld [vmem:[%s12887_s17 + $0x3550] sm:$0xff]  ;;  %v730_v51 = vld [vmem:[%s12887_s17 + $0x3558] sm:$0xff] }
  0x9a   : > { %723 = vst [vmem:[%s12895_s9 + $0x538] sm:$0xff] %v722_v47  ;;  %725 = vst [vmem:[%s12895_s9 + $0x540] sm:$0xff] %v724_v48  ;;  %v732_v52 = vld [vmem:[%s12887_s17 + $0x3560] sm:$0xff]  ;;  %v734_v53 = vld [vmem:[%s12887_s17 + $0x3568] sm:$0xff] }
  0x9b   : > { %727 = vst [vmem:[%s12895_s9 + $0x548] sm:$0xff] %v726_v49  ;;  %729 = vst [vmem:[%s12895_s9 + $0x550] sm:$0xff] %v728_v50  ;;  %v736_v54 = vld [vmem:[%s12887_s17 + $0x3570] sm:$0xff]  ;;  %v738_v55 = vld [vmem:[%s12887_s17 + $0x3578] sm:$0xff] }
  0x9c   : > { %731 = vst [vmem:[%s12895_s9 + $0x558] sm:$0xff] %v730_v51  ;;  %733 = vst [vmem:[%s12895_s9 + $0x560] sm:$0xff] %v732_v52  ;;  %v740_v56 = vld [vmem:[%s12887_s17 + $0x3580] sm:$0xff]  ;;  %v742_v57 = vld [vmem:[%s12887_s17 + $0x3588] sm:$0xff] }
  0x9d   : > { %735 = vst [vmem:[%s12895_s9 + $0x568] sm:$0xff] %v734_v53  ;;  %737 = vst [vmem:[%s12895_s9 + $0x570] sm:$0xff] %v736_v54  ;;  %v744_v58 = vld [vmem:[%s12887_s17 + $0x3590] sm:$0xff]  ;;  %v746_v59 = vld [vmem:[%s12887_s17 + $0x3598] sm:$0xff] }
  0x9e   : > { %739 = vst [vmem:[%s12895_s9 + $0x578] sm:$0xff] %v738_v55  ;;  %741 = vst [vmem:[%s12895_s9 + $0x580] sm:$0xff] %v740_v56  ;;  %v748_v60 = vld [vmem:[%s12887_s17 + $0x35a0] sm:$0xff]  ;;  %v750_v61 = vld [vmem:[%s12887_s17 + $0x35a8] sm:$0xff] }
  0x9f   : > { %743 = vst [vmem:[%s12895_s9 + $0x588] sm:$0xff] %v742_v57  ;;  %745 = vst [vmem:[%s12895_s9 + $0x590] sm:$0xff] %v744_v58  ;;  %v752_v62 = vld [vmem:[%s12887_s17 + $0x35b0] sm:$0xff]  ;;  %v754_v63 = vld [vmem:[%s12887_s17 + $0x35b8] sm:$0xff] }
  0xa0   : > { %747 = vst [vmem:[%s12895_s9 + $0x598] sm:$0xff] %v746_v59  ;;  %749 = vst [vmem:[%s12895_s9 + $0x5a0] sm:$0xff] %v748_v60  ;;  %v756_v0 = vld [vmem:[%s12887_s17 + $0x35c0] sm:$0xff]  ;;  %v758_v1 = vld [vmem:[%s12887_s17 + $0x35c8] sm:$0xff] }
  0xa1   : > { %751 = vst [vmem:[%s12895_s9 + $0x5a8] sm:$0xff] %v750_v61  ;;  %753 = vst [vmem:[%s12895_s9 + $0x5b0] sm:$0xff] %v752_v62  ;;  %v760_v2 = vld [vmem:[%s12887_s17 + $0x35d0] sm:$0xff]  ;;  %v762_v3 = vld [vmem:[%s12887_s17 + $0x35d8] sm:$0xff] }
  0xa2   : > { %755 = vst [vmem:[%s12895_s9 + $0x5b8] sm:$0xff] %v754_v63  ;;  %757 = vst [vmem:[%s12895_s9 + $0x5c0] sm:$0xff] %v756_v0  ;;  %v764_v4 = vld [vmem:[%s12887_s17 + $0x35e0] sm:$0xff]  ;;  %v766_v5 = vld [vmem:[%s12887_s17 + $0x35e8] sm:$0xff] }
  0xa3   : > { %759 = vst [vmem:[%s12895_s9 + $0x5c8] sm:$0xff] %v758_v1  ;;  %761 = vst [vmem:[%s12895_s9 + $0x5d0] sm:$0xff] %v760_v2  ;;  %v768_v6 = vld [vmem:[%s12887_s17 + $0x35f0] sm:$0xff]  ;;  %v770_v7 = vld [vmem:[%s12887_s17 + $0x35f8] sm:$0xff] }
  0xa4   : > { %763 = vst [vmem:[%s12895_s9 + $0x5d8] sm:$0xff] %v762_v3  ;;  %765 = vst [vmem:[%s12895_s9 + $0x5e0] sm:$0xff] %v764_v4  ;;  %v772_v8 = vld [vmem:[%s12887_s17 + $0x3600] sm:$0xff]  ;;  %v774_v9 = vld [vmem:[%s12887_s17 + $0x3608] sm:$0xff] }
  0xa5   : > { %767 = vst [vmem:[%s12895_s9 + $0x5e8] sm:$0xff] %v766_v5  ;;  %769 = vst [vmem:[%s12895_s9 + $0x5f0] sm:$0xff] %v768_v6  ;;  %v776_v10 = vld [vmem:[%s12887_s17 + $0x3610] sm:$0xff]  ;;  %v778_v11 = vld [vmem:[%s12887_s17 + $0x3618] sm:$0xff] }
  0xa6   : > { %771 = vst [vmem:[%s12895_s9 + $0x5f8] sm:$0xff] %v770_v7  ;;  %773 = vst [vmem:[%s12895_s9 + $0x600] sm:$0xff] %v772_v8  ;;  %v780_v12 = vld [vmem:[%s12887_s17 + $0x3620] sm:$0xff]  ;;  %v782_v13 = vld [vmem:[%s12887_s17 + $0x3628] sm:$0xff] }
  0xa7   : > { %775 = vst [vmem:[%s12895_s9 + $0x608] sm:$0xff] %v774_v9  ;;  %777 = vst [vmem:[%s12895_s9 + $0x610] sm:$0xff] %v776_v10  ;;  %v784_v14 = vld [vmem:[%s12887_s17 + $0x3630] sm:$0xff]  ;;  %v786_v15 = vld [vmem:[%s12887_s17 + $0x3638] sm:$0xff] }
  0xa8   : > { %779 = vst [vmem:[%s12895_s9 + $0x618] sm:$0xff] %v778_v11  ;;  %781 = vst [vmem:[%s12895_s9 + $0x620] sm:$0xff] %v780_v12  ;;  %v788_v16 = vld [vmem:[%s12887_s17 + $0x3640] sm:$0xff]  ;;  %v790_v17 = vld [vmem:[%s12887_s17 + $0x3648] sm:$0xff] }
  0xa9   : > { %783 = vst [vmem:[%s12895_s9 + $0x628] sm:$0xff] %v782_v13  ;;  %785 = vst [vmem:[%s12895_s9 + $0x630] sm:$0xff] %v784_v14  ;;  %v792_v18 = vld [vmem:[%s12887_s17 + $0x3650] sm:$0xff]  ;;  %v794_v19 = vld [vmem:[%s12887_s17 + $0x3658] sm:$0xff] }
  0xaa   : > { %787 = vst [vmem:[%s12895_s9 + $0x638] sm:$0xff] %v786_v15  ;;  %789 = vst [vmem:[%s12895_s9 + $0x640] sm:$0xff] %v788_v16  ;;  %v796_v20 = vld [vmem:[%s12887_s17 + $0x3660] sm:$0xff]  ;;  %v798_v21 = vld [vmem:[%s12887_s17 + $0x3668] sm:$0xff] }
  0xab   : > { %791 = vst [vmem:[%s12895_s9 + $0x648] sm:$0xff] %v790_v17  ;;  %793 = vst [vmem:[%s12895_s9 + $0x650] sm:$0xff] %v792_v18  ;;  %v800_v22 = vld [vmem:[%s12887_s17 + $0x3670] sm:$0xff]  ;;  %v802_v23 = vld [vmem:[%s12887_s17 + $0x3678] sm:$0xff] }
  0xac   : > { %795 = vst [vmem:[%s12895_s9 + $0x658] sm:$0xff] %v794_v19  ;;  %797 = vst [vmem:[%s12895_s9 + $0x660] sm:$0xff] %v796_v20  ;;  %v804_v24 = vld [vmem:[%s12887_s17 + $0x3680] sm:$0xff]  ;;  %v806_v25 = vld [vmem:[%s12887_s17 + $0x3688] sm:$0xff] }
  0xad   : > { %799 = vst [vmem:[%s12895_s9 + $0x668] sm:$0xff] %v798_v21  ;;  %801 = vst [vmem:[%s12895_s9 + $0x670] sm:$0xff] %v800_v22  ;;  %v808_v26 = vld [vmem:[%s12887_s17 + $0x3690] sm:$0xff]  ;;  %v810_v27 = vld [vmem:[%s12887_s17 + $0x3698] sm:$0xff] }
  0xae   : > { %803 = vst [vmem:[%s12895_s9 + $0x678] sm:$0xff] %v802_v23  ;;  %805 = vst [vmem:[%s12895_s9 + $0x680] sm:$0xff] %v804_v24  ;;  %v812_v28 = vld [vmem:[%s12887_s17 + $0x36a0] sm:$0xff]  ;;  %v814_v29 = vld [vmem:[%s12887_s17 + $0x36a8] sm:$0xff] }
  0xaf   : > { %807 = vst [vmem:[%s12895_s9 + $0x688] sm:$0xff] %v806_v25  ;;  %809 = vst [vmem:[%s12895_s9 + $0x690] sm:$0xff] %v808_v26  ;;  %v816_v30 = vld [vmem:[%s12887_s17 + $0x36b0] sm:$0xff]  ;;  %v818_v31 = vld [vmem:[%s12887_s17 + $0x36b8] sm:$0xff] }
  0xb0   : > { %811 = vst [vmem:[%s12895_s9 + $0x698] sm:$0xff] %v810_v27  ;;  %813 = vst [vmem:[%s12895_s9 + $0x6a0] sm:$0xff] %v812_v28  ;;  %v820_v32 = vld [vmem:[%s12887_s17 + $0x36c0] sm:$0xff]  ;;  %v822_v33 = vld [vmem:[%s12887_s17 + $0x36c8] sm:$0xff] }
  0xb1   : > { %815 = vst [vmem:[%s12895_s9 + $0x6a8] sm:$0xff] %v814_v29  ;;  %817 = vst [vmem:[%s12895_s9 + $0x6b0] sm:$0xff] %v816_v30  ;;  %v824_v34 = vld [vmem:[%s12887_s17 + $0x36d0] sm:$0xff]  ;;  %v826_v35 = vld [vmem:[%s12887_s17 + $0x36d8] sm:$0xff] }
  0xb2   : > { %819 = vst [vmem:[%s12895_s9 + $0x6b8] sm:$0xff] %v818_v31  ;;  %821 = vst [vmem:[%s12895_s9 + $0x6c0] sm:$0xff] %v820_v32  ;;  %v828_v36 = vld [vmem:[%s12887_s17 + $0x36e0] sm:$0xff]  ;;  %v830_v37 = vld [vmem:[%s12887_s17 + $0x36e8] sm:$0xff] }
  0xb3   : > { %823 = vst [vmem:[%s12895_s9 + $0x6c8] sm:$0xff] %v822_v33  ;;  %825 = vst [vmem:[%s12895_s9 + $0x6d0] sm:$0xff] %v824_v34  ;;  %v832_v38 = vld [vmem:[%s12887_s17 + $0x36f0] sm:$0xff]  ;;  %v834_v39 = vld [vmem:[%s12887_s17 + $0x36f8] sm:$0xff] }
  0xb4   : > { %827 = vst [vmem:[%s12895_s9 + $0x6d8] sm:$0xff] %v826_v35  ;;  %829 = vst [vmem:[%s12895_s9 + $0x6e0] sm:$0xff] %v828_v36  ;;  %v836_v40 = vld [vmem:[%s12887_s17 + $0x3700] sm:$0xff]  ;;  %v838_v41 = vld [vmem:[%s12887_s17 + $0x3708] sm:$0xff] }
  0xb5   : > { %831 = vst [vmem:[%s12895_s9 + $0x6e8] sm:$0xff] %v830_v37  ;;  %833 = vst [vmem:[%s12895_s9 + $0x6f0] sm:$0xff] %v832_v38  ;;  %v840_v42 = vld [vmem:[%s12887_s17 + $0x3710] sm:$0xff]  ;;  %v842_v43 = vld [vmem:[%s12887_s17 + $0x3718] sm:$0xff] }
  0xb6   : > { %835 = vst [vmem:[%s12895_s9 + $0x6f8] sm:$0xff] %v834_v39  ;;  %837 = vst [vmem:[%s12895_s9 + $0x700] sm:$0xff] %v836_v40  ;;  %v844_v44 = vld [vmem:[%s12887_s17 + $0x3720] sm:$0xff]  ;;  %v846_v45 = vld [vmem:[%s12887_s17 + $0x3728] sm:$0xff] }
  0xb7   : > { %839 = vst [vmem:[%s12895_s9 + $0x708] sm:$0xff] %v838_v41  ;;  %841 = vst [vmem:[%s12895_s9 + $0x710] sm:$0xff] %v840_v42  ;;  %v848_v46 = vld [vmem:[%s12887_s17 + $0x3730] sm:$0xff]  ;;  %v850_v47 = vld [vmem:[%s12887_s17 + $0x3738] sm:$0xff] }
  0xb8   : > { %843 = vst [vmem:[%s12895_s9 + $0x718] sm:$0xff] %v842_v43  ;;  %845 = vst [vmem:[%s12895_s9 + $0x720] sm:$0xff] %v844_v44  ;;  %v852_v48 = vld [vmem:[%s12887_s17 + $0x3740] sm:$0xff]  ;;  %v854_v49 = vld [vmem:[%s12887_s17 + $0x3748] sm:$0xff] }
  0xb9   : > { %847 = vst [vmem:[%s12895_s9 + $0x728] sm:$0xff] %v846_v45  ;;  %849 = vst [vmem:[%s12895_s9 + $0x730] sm:$0xff] %v848_v46  ;;  %v856_v50 = vld [vmem:[%s12887_s17 + $0x3750] sm:$0xff]  ;;  %v858_v51 = vld [vmem:[%s12887_s17 + $0x3758] sm:$0xff] }
  0xba   : > { %851 = vst [vmem:[%s12895_s9 + $0x738] sm:$0xff] %v850_v47  ;;  %853 = vst [vmem:[%s12895_s9 + $0x740] sm:$0xff] %v852_v48  ;;  %v860_v52 = vld [vmem:[%s12887_s17 + $0x3760] sm:$0xff]  ;;  %v862_v53 = vld [vmem:[%s12887_s17 + $0x3768] sm:$0xff] }
  0xbb   : > { %855 = vst [vmem:[%s12895_s9 + $0x748] sm:$0xff] %v854_v49  ;;  %857 = vst [vmem:[%s12895_s9 + $0x750] sm:$0xff] %v856_v50  ;;  %v864_v54 = vld [vmem:[%s12887_s17 + $0x3770] sm:$0xff]  ;;  %v866_v55 = vld [vmem:[%s12887_s17 + $0x3778] sm:$0xff] }
  0xbc   : > { %859 = vst [vmem:[%s12895_s9 + $0x758] sm:$0xff] %v858_v51  ;;  %861 = vst [vmem:[%s12895_s9 + $0x760] sm:$0xff] %v860_v52  ;;  %v868_v56 = vld [vmem:[%s12887_s17 + $0x3780] sm:$0xff]  ;;  %v870_v57 = vld [vmem:[%s12887_s17 + $0x3788] sm:$0xff] }
  0xbd   : > { %863 = vst [vmem:[%s12895_s9 + $0x768] sm:$0xff] %v862_v53  ;;  %865 = vst [vmem:[%s12895_s9 + $0x770] sm:$0xff] %v864_v54  ;;  %v872_v58 = vld [vmem:[%s12887_s17 + $0x3790] sm:$0xff]  ;;  %v874_v59 = vld [vmem:[%s12887_s17 + $0x3798] sm:$0xff] }
  0xbe   : > { %867 = vst [vmem:[%s12895_s9 + $0x778] sm:$0xff] %v866_v55  ;;  %869 = vst [vmem:[%s12895_s9 + $0x780] sm:$0xff] %v868_v56  ;;  %v876_v60 = vld [vmem:[%s12887_s17 + $0x37a0] sm:$0xff]  ;;  %v878_v61 = vld [vmem:[%s12887_s17 + $0x37a8] sm:$0xff] }
  0xbf   : > { %871 = vst [vmem:[%s12895_s9 + $0x788] sm:$0xff] %v870_v57  ;;  %873 = vst [vmem:[%s12895_s9 + $0x790] sm:$0xff] %v872_v58  ;;  %v880_v62 = vld [vmem:[%s12887_s17 + $0x37b0] sm:$0xff]  ;;  %v882_v63 = vld [vmem:[%s12887_s17 + $0x37b8] sm:$0xff] }
  0xc0   : > { %875 = vst [vmem:[%s12895_s9 + $0x798] sm:$0xff] %v874_v59  ;;  %877 = vst [vmem:[%s12895_s9 + $0x7a0] sm:$0xff] %v876_v60  ;;  %v884_v0 = vld [vmem:[%s12887_s17 + $0x37c0] sm:$0xff]  ;;  %v886_v1 = vld [vmem:[%s12887_s17 + $0x37c8] sm:$0xff] }
  0xc1   : > { %879 = vst [vmem:[%s12895_s9 + $0x7a8] sm:$0xff] %v878_v61  ;;  %881 = vst [vmem:[%s12895_s9 + $0x7b0] sm:$0xff] %v880_v62  ;;  %v888_v2 = vld [vmem:[%s12887_s17 + $0x37d0] sm:$0xff]  ;;  %v890_v3 = vld [vmem:[%s12887_s17 + $0x37d8] sm:$0xff] }
  0xc2   : > { %883 = vst [vmem:[%s12895_s9 + $0x7b8] sm:$0xff] %v882_v63  ;;  %885 = vst [vmem:[%s12895_s9 + $0x7c0] sm:$0xff] %v884_v0  ;;  %v892_v4 = vld [vmem:[%s12887_s17 + $0x37e0] sm:$0xff]  ;;  %v894_v5 = vld [vmem:[%s12887_s17 + $0x37e8] sm:$0xff] }
  0xc3   : > { %887 = vst [vmem:[%s12895_s9 + $0x7c8] sm:$0xff] %v886_v1  ;;  %889 = vst [vmem:[%s12895_s9 + $0x7d0] sm:$0xff] %v888_v2  ;;  %v896_v6 = vld [vmem:[%s12887_s17 + $0x37f0] sm:$0xff]  ;;  %v898_v7 = vld [vmem:[%s12887_s17 + $0x37f8] sm:$0xff] }
  0xc4   : > { %891 = vst [vmem:[%s12895_s9 + $0x7d8] sm:$0xff] %v890_v3  ;;  %893 = vst [vmem:[%s12895_s9 + $0x7e0] sm:$0xff] %v892_v4  ;;  %v900_v8 = vld [vmem:[%s12887_s17 + $0x6800] sm:$0xff]  ;;  %v902_v9 = vld [vmem:[%s12887_s17 + $0x6808] sm:$0xff] }
  0xc5   : > { %895 = vst [vmem:[%s12895_s9 + $0x7e8] sm:$0xff] %v894_v5  ;;  %897 = vst [vmem:[%s12895_s9 + $0x7f0] sm:$0xff] %v896_v6  ;;  %v904_v10 = vld [vmem:[%s12887_s17 + $0x6810] sm:$0xff]  ;;  %v906_v11 = vld [vmem:[%s12887_s17 + $0x6818] sm:$0xff] }
  0xc6   : > { %899 = vst [vmem:[%s12895_s9 + $0x7f8] sm:$0xff] %v898_v7  ;;  %901 = vst [vmem:[%s12895_s9 + $0x800] sm:$0xff] %v900_v8  ;;  %v908_v12 = vld [vmem:[%s12887_s17 + $0x6820] sm:$0xff]  ;;  %v910_v13 = vld [vmem:[%s12887_s17 + $0x6828] sm:$0xff] }
  0xc7   : > { %903 = vst [vmem:[%s12895_s9 + $0x808] sm:$0xff] %v902_v9  ;;  %905 = vst [vmem:[%s12895_s9 + $0x810] sm:$0xff] %v904_v10  ;;  %v912_v14 = vld [vmem:[%s12887_s17 + $0x6830] sm:$0xff]  ;;  %v914_v15 = vld [vmem:[%s12887_s17 + $0x6838] sm:$0xff] }
  0xc8   : > { %907 = vst [vmem:[%s12895_s9 + $0x818] sm:$0xff] %v906_v11  ;;  %909 = vst [vmem:[%s12895_s9 + $0x820] sm:$0xff] %v908_v12  ;;  %v916_v16 = vld [vmem:[%s12887_s17 + $0x6840] sm:$0xff]  ;;  %v918_v17 = vld [vmem:[%s12887_s17 + $0x6848] sm:$0xff] }
  0xc9   : > { %911 = vst [vmem:[%s12895_s9 + $0x828] sm:$0xff] %v910_v13  ;;  %913 = vst [vmem:[%s12895_s9 + $0x830] sm:$0xff] %v912_v14  ;;  %v920_v18 = vld [vmem:[%s12887_s17 + $0x6850] sm:$0xff]  ;;  %v922_v19 = vld [vmem:[%s12887_s17 + $0x6858] sm:$0xff] }
  0xca   : > { %915 = vst [vmem:[%s12895_s9 + $0x838] sm:$0xff] %v914_v15  ;;  %917 = vst [vmem:[%s12895_s9 + $0x840] sm:$0xff] %v916_v16  ;;  %v924_v20 = vld [vmem:[%s12887_s17 + $0x6860] sm:$0xff]  ;;  %v926_v21 = vld [vmem:[%s12887_s17 + $0x6868] sm:$0xff] }
  0xcb   : > { %919 = vst [vmem:[%s12895_s9 + $0x848] sm:$0xff] %v918_v17  ;;  %921 = vst [vmem:[%s12895_s9 + $0x850] sm:$0xff] %v920_v18  ;;  %v928_v22 = vld [vmem:[%s12887_s17 + $0x6870] sm:$0xff]  ;;  %v930_v23 = vld [vmem:[%s12887_s17 + $0x6878] sm:$0xff] }
  0xcc   : > { %923 = vst [vmem:[%s12895_s9 + $0x858] sm:$0xff] %v922_v19  ;;  %925 = vst [vmem:[%s12895_s9 + $0x860] sm:$0xff] %v924_v20  ;;  %v932_v24 = vld [vmem:[%s12887_s17 + $0x6880] sm:$0xff]  ;;  %v934_v25 = vld [vmem:[%s12887_s17 + $0x6888] sm:$0xff] }
  0xcd   : > { %927 = vst [vmem:[%s12895_s9 + $0x868] sm:$0xff] %v926_v21  ;;  %929 = vst [vmem:[%s12895_s9 + $0x870] sm:$0xff] %v928_v22  ;;  %v936_v26 = vld [vmem:[%s12887_s17 + $0x6890] sm:$0xff]  ;;  %v938_v27 = vld [vmem:[%s12887_s17 + $0x6898] sm:$0xff] }
  0xce   : > { %931 = vst [vmem:[%s12895_s9 + $0x878] sm:$0xff] %v930_v23  ;;  %933 = vst [vmem:[%s12895_s9 + $0x880] sm:$0xff] %v932_v24  ;;  %v940_v28 = vld [vmem:[%s12887_s17 + $0x68a0] sm:$0xff]  ;;  %v942_v29 = vld [vmem:[%s12887_s17 + $0x68a8] sm:$0xff] }
  0xcf   : > { %935 = vst [vmem:[%s12895_s9 + $0x888] sm:$0xff] %v934_v25  ;;  %937 = vst [vmem:[%s12895_s9 + $0x890] sm:$0xff] %v936_v26  ;;  %v944_v30 = vld [vmem:[%s12887_s17 + $0x68b0] sm:$0xff]  ;;  %v946_v31 = vld [vmem:[%s12887_s17 + $0x68b8] sm:$0xff] }
  0xd0   : > { %939 = vst [vmem:[%s12895_s9 + $0x898] sm:$0xff] %v938_v27  ;;  %941 = vst [vmem:[%s12895_s9 + $0x8a0] sm:$0xff] %v940_v28  ;;  %v948_v32 = vld [vmem:[%s12887_s17 + $0x68c0] sm:$0xff]  ;;  %v950_v33 = vld [vmem:[%s12887_s17 + $0x68c8] sm:$0xff] }
  0xd1   : > { %943 = vst [vmem:[%s12895_s9 + $0x8a8] sm:$0xff] %v942_v29  ;;  %945 = vst [vmem:[%s12895_s9 + $0x8b0] sm:$0xff] %v944_v30  ;;  %v952_v34 = vld [vmem:[%s12887_s17 + $0x68d0] sm:$0xff]  ;;  %v954_v35 = vld [vmem:[%s12887_s17 + $0x68d8] sm:$0xff] }
  0xd2   : > { %947 = vst [vmem:[%s12895_s9 + $0x8b8] sm:$0xff] %v946_v31  ;;  %949 = vst [vmem:[%s12895_s9 + $0x8c0] sm:$0xff] %v948_v32  ;;  %v956_v36 = vld [vmem:[%s12887_s17 + $0x68e0] sm:$0xff]  ;;  %v958_v37 = vld [vmem:[%s12887_s17 + $0x68e8] sm:$0xff] }
  0xd3   : > { %951 = vst [vmem:[%s12895_s9 + $0x8c8] sm:$0xff] %v950_v33  ;;  %953 = vst [vmem:[%s12895_s9 + $0x8d0] sm:$0xff] %v952_v34  ;;  %v960_v38 = vld [vmem:[%s12887_s17 + $0x68f0] sm:$0xff]  ;;  %v962_v39 = vld [vmem:[%s12887_s17 + $0x68f8] sm:$0xff] }
  0xd4   : > { %955 = vst [vmem:[%s12895_s9 + $0x8d8] sm:$0xff] %v954_v35  ;;  %957 = vst [vmem:[%s12895_s9 + $0x8e0] sm:$0xff] %v956_v36  ;;  %v964_v40 = vld [vmem:[%s12887_s17 + $0x6900] sm:$0xff]  ;;  %v966_v41 = vld [vmem:[%s12887_s17 + $0x6908] sm:$0xff] }
  0xd5   : > { %959 = vst [vmem:[%s12895_s9 + $0x8e8] sm:$0xff] %v958_v37  ;;  %961 = vst [vmem:[%s12895_s9 + $0x8f0] sm:$0xff] %v960_v38  ;;  %v968_v42 = vld [vmem:[%s12887_s17 + $0x6910] sm:$0xff]  ;;  %v970_v43 = vld [vmem:[%s12887_s17 + $0x6918] sm:$0xff] }
  0xd6   : > { %963 = vst [vmem:[%s12895_s9 + $0x8f8] sm:$0xff] %v962_v39  ;;  %965 = vst [vmem:[%s12895_s9 + $0x900] sm:$0xff] %v964_v40  ;;  %v972_v44 = vld [vmem:[%s12887_s17 + $0x6920] sm:$0xff]  ;;  %v974_v45 = vld [vmem:[%s12887_s17 + $0x6928] sm:$0xff] }
  0xd7   : > { %967 = vst [vmem:[%s12895_s9 + $0x908] sm:$0xff] %v966_v41  ;;  %969 = vst [vmem:[%s12895_s9 + $0x910] sm:$0xff] %v968_v42  ;;  %v976_v46 = vld [vmem:[%s12887_s17 + $0x6930] sm:$0xff]  ;;  %v978_v47 = vld [vmem:[%s12887_s17 + $0x6938] sm:$0xff] }
  0xd8   : > { %971 = vst [vmem:[%s12895_s9 + $0x918] sm:$0xff] %v970_v43  ;;  %973 = vst [vmem:[%s12895_s9 + $0x920] sm:$0xff] %v972_v44  ;;  %v980_v48 = vld [vmem:[%s12887_s17 + $0x6940] sm:$0xff]  ;;  %v982_v49 = vld [vmem:[%s12887_s17 + $0x6948] sm:$0xff] }
  0xd9   : > { %975 = vst [vmem:[%s12895_s9 + $0x928] sm:$0xff] %v974_v45  ;;  %977 = vst [vmem:[%s12895_s9 + $0x930] sm:$0xff] %v976_v46  ;;  %v984_v50 = vld [vmem:[%s12887_s17 + $0x6950] sm:$0xff]  ;;  %v986_v51 = vld [vmem:[%s12887_s17 + $0x6958] sm:$0xff] }
  0xda   : > { %979 = vst [vmem:[%s12895_s9 + $0x938] sm:$0xff] %v978_v47  ;;  %981 = vst [vmem:[%s12895_s9 + $0x940] sm:$0xff] %v980_v48  ;;  %v988_v52 = vld [vmem:[%s12887_s17 + $0x6960] sm:$0xff]  ;;  %v990_v53 = vld [vmem:[%s12887_s17 + $0x6968] sm:$0xff] }
  0xdb   : > { %983 = vst [vmem:[%s12895_s9 + $0x948] sm:$0xff] %v982_v49  ;;  %985 = vst [vmem:[%s12895_s9 + $0x950] sm:$0xff] %v984_v50  ;;  %v992_v54 = vld [vmem:[%s12887_s17 + $0x6970] sm:$0xff]  ;;  %v994_v55 = vld [vmem:[%s12887_s17 + $0x6978] sm:$0xff] }
  0xdc   : > { %987 = vst [vmem:[%s12895_s9 + $0x958] sm:$0xff] %v986_v51  ;;  %989 = vst [vmem:[%s12895_s9 + $0x960] sm:$0xff] %v988_v52  ;;  %v996_v56 = vld [vmem:[%s12887_s17 + $0x6980] sm:$0xff]  ;;  %v998_v57 = vld [vmem:[%s12887_s17 + $0x6988] sm:$0xff] }
  0xdd   : > { %991 = vst [vmem:[%s12895_s9 + $0x968] sm:$0xff] %v990_v53  ;;  %993 = vst [vmem:[%s12895_s9 + $0x970] sm:$0xff] %v992_v54  ;;  %v1000_v58 = vld [vmem:[%s12887_s17 + $0x6990] sm:$0xff]  ;;  %v1002_v59 = vld [vmem:[%s12887_s17 + $0x6998] sm:$0xff] }
  0xde   : > { %995 = vst [vmem:[%s12895_s9 + $0x978] sm:$0xff] %v994_v55  ;;  %997 = vst [vmem:[%s12895_s9 + $0x980] sm:$0xff] %v996_v56  ;;  %v1004_v60 = vld [vmem:[%s12887_s17 + $0x69a0] sm:$0xff]  ;;  %v1006_v61 = vld [vmem:[%s12887_s17 + $0x69a8] sm:$0xff] }
  0xdf   : > { %999 = vst [vmem:[%s12895_s9 + $0x988] sm:$0xff] %v998_v57  ;;  %1001 = vst [vmem:[%s12895_s9 + $0x990] sm:$0xff] %v1000_v58  ;;  %v1008_v62 = vld [vmem:[%s12887_s17 + $0x69b0] sm:$0xff]  ;;  %v1010_v63 = vld [vmem:[%s12887_s17 + $0x69b8] sm:$0xff] }
  0xe0   : > { %1003 = vst [vmem:[%s12895_s9 + $0x998] sm:$0xff] %v1002_v59  ;;  %1005 = vst [vmem:[%s12895_s9 + $0x9a0] sm:$0xff] %v1004_v60  ;;  %v1012_v0 = vld [vmem:[%s12887_s17 + $0x69c0] sm:$0xff]  ;;  %v1014_v1 = vld [vmem:[%s12887_s17 + $0x69c8] sm:$0xff] }
  0xe1   : > { %1007 = vst [vmem:[%s12895_s9 + $0x9a8] sm:$0xff] %v1006_v61  ;;  %1009 = vst [vmem:[%s12895_s9 + $0x9b0] sm:$0xff] %v1008_v62  ;;  %v1016_v2 = vld [vmem:[%s12887_s17 + $0x69d0] sm:$0xff]  ;;  %v1018_v3 = vld [vmem:[%s12887_s17 + $0x69d8] sm:$0xff] }
  0xe2   : > { %1011 = vst [vmem:[%s12895_s9 + $0x9b8] sm:$0xff] %v1010_v63  ;;  %1013 = vst [vmem:[%s12895_s9 + $0x9c0] sm:$0xff] %v1012_v0  ;;  %v1020_v4 = vld [vmem:[%s12887_s17 + $0x69e0] sm:$0xff]  ;;  %v1022_v5 = vld [vmem:[%s12887_s17 + $0x69e8] sm:$0xff] }
  0xe3   : > { %1015 = vst [vmem:[%s12895_s9 + $0x9c8] sm:$0xff] %v1014_v1  ;;  %1017 = vst [vmem:[%s12895_s9 + $0x9d0] sm:$0xff] %v1016_v2  ;;  %v1024_v6 = vld [vmem:[%s12887_s17 + $0x69f0] sm:$0xff]  ;;  %v1026_v7 = vld [vmem:[%s12887_s17 + $0x69f8] sm:$0xff] }
  0xe4   : > { %1019 = vst [vmem:[%s12895_s9 + $0x9d8] sm:$0xff] %v1018_v3  ;;  %1021 = vst [vmem:[%s12895_s9 + $0x9e0] sm:$0xff] %v1020_v4  ;;  %v1028_v8 = vld [vmem:[%s12887_s17 + $0x6a00] sm:$0xff]  ;;  %v1030_v9 = vld [vmem:[%s12887_s17 + $0x6a08] sm:$0xff] }
  0xe5   : > { %1023 = vst [vmem:[%s12895_s9 + $0x9e8] sm:$0xff] %v1022_v5  ;;  %1025 = vst [vmem:[%s12895_s9 + $0x9f0] sm:$0xff] %v1024_v6  ;;  %v1032_v10 = vld [vmem:[%s12887_s17 + $0x6a10] sm:$0xff]  ;;  %v1034_v11 = vld [vmem:[%s12887_s17 + $0x6a18] sm:$0xff] }
  0xe6   : > { %1027 = vst [vmem:[%s12895_s9 + $0x9f8] sm:$0xff] %v1026_v7  ;;  %1029 = vst [vmem:[%s12895_s9 + $0xa00] sm:$0xff] %v1028_v8  ;;  %v1036_v12 = vld [vmem:[%s12887_s17 + $0x6a20] sm:$0xff]  ;;  %v1038_v13 = vld [vmem:[%s12887_s17 + $0x6a28] sm:$0xff] }
  0xe7   : > { %1031 = vst [vmem:[%s12895_s9 + $0xa08] sm:$0xff] %v1030_v9  ;;  %1033 = vst [vmem:[%s12895_s9 + $0xa10] sm:$0xff] %v1032_v10  ;;  %v1040_v14 = vld [vmem:[%s12887_s17 + $0x6a30] sm:$0xff]  ;;  %v1042_v15 = vld [vmem:[%s12887_s17 + $0x6a38] sm:$0xff] }
  0xe8   : > { %1035 = vst [vmem:[%s12895_s9 + $0xa18] sm:$0xff] %v1034_v11  ;;  %1037 = vst [vmem:[%s12895_s9 + $0xa20] sm:$0xff] %v1036_v12  ;;  %v1044_v16 = vld [vmem:[%s12887_s17 + $0x6a40] sm:$0xff]  ;;  %v1046_v17 = vld [vmem:[%s12887_s17 + $0x6a48] sm:$0xff] }
  0xe9   : > { %1039 = vst [vmem:[%s12895_s9 + $0xa28] sm:$0xff] %v1038_v13  ;;  %1041 = vst [vmem:[%s12895_s9 + $0xa30] sm:$0xff] %v1040_v14  ;;  %v1048_v18 = vld [vmem:[%s12887_s17 + $0x6a50] sm:$0xff]  ;;  %v1050_v19 = vld [vmem:[%s12887_s17 + $0x6a58] sm:$0xff] }
  0xea   : > { %1043 = vst [vmem:[%s12895_s9 + $0xa38] sm:$0xff] %v1042_v15  ;;  %1045 = vst [vmem:[%s12895_s9 + $0xa40] sm:$0xff] %v1044_v16  ;;  %v1052_v20 = vld [vmem:[%s12887_s17 + $0x6a60] sm:$0xff]  ;;  %v1054_v21 = vld [vmem:[%s12887_s17 + $0x6a68] sm:$0xff] }
  0xeb   : > { %1047 = vst [vmem:[%s12895_s9 + $0xa48] sm:$0xff] %v1046_v17  ;;  %1049 = vst [vmem:[%s12895_s9 + $0xa50] sm:$0xff] %v1048_v18  ;;  %v1056_v22 = vld [vmem:[%s12887_s17 + $0x6a70] sm:$0xff]  ;;  %v1058_v23 = vld [vmem:[%s12887_s17 + $0x6a78] sm:$0xff] }
  0xec   : > { %1051 = vst [vmem:[%s12895_s9 + $0xa58] sm:$0xff] %v1050_v19  ;;  %1053 = vst [vmem:[%s12895_s9 + $0xa60] sm:$0xff] %v1052_v20  ;;  %v1060_v24 = vld [vmem:[%s12887_s17 + $0x6a80] sm:$0xff]  ;;  %v1062_v25 = vld [vmem:[%s12887_s17 + $0x6a88] sm:$0xff] }
  0xed   : > { %1055 = vst [vmem:[%s12895_s9 + $0xa68] sm:$0xff] %v1054_v21  ;;  %1057 = vst [vmem:[%s12895_s9 + $0xa70] sm:$0xff] %v1056_v22  ;;  %v1064_v26 = vld [vmem:[%s12887_s17 + $0x6a90] sm:$0xff]  ;;  %v1066_v27 = vld [vmem:[%s12887_s17 + $0x6a98] sm:$0xff] }
  0xee   : > { %1059 = vst [vmem:[%s12895_s9 + $0xa78] sm:$0xff] %v1058_v23  ;;  %1061 = vst [vmem:[%s12895_s9 + $0xa80] sm:$0xff] %v1060_v24  ;;  %v1068_v28 = vld [vmem:[%s12887_s17 + $0x6aa0] sm:$0xff]  ;;  %v1070_v29 = vld [vmem:[%s12887_s17 + $0x6aa8] sm:$0xff] }
  0xef   : > { %1063 = vst [vmem:[%s12895_s9 + $0xa88] sm:$0xff] %v1062_v25  ;;  %1065 = vst [vmem:[%s12895_s9 + $0xa90] sm:$0xff] %v1064_v26  ;;  %v1072_v30 = vld [vmem:[%s12887_s17 + $0x6ab0] sm:$0xff]  ;;  %v1074_v31 = vld [vmem:[%s12887_s17 + $0x6ab8] sm:$0xff] }
  0xf0   : > { %1067 = vst [vmem:[%s12895_s9 + $0xa98] sm:$0xff] %v1066_v27  ;;  %1069 = vst [vmem:[%s12895_s9 + $0xaa0] sm:$0xff] %v1068_v28  ;;  %v1076_v32 = vld [vmem:[%s12887_s17 + $0x6ac0] sm:$0xff]  ;;  %v1078_v33 = vld [vmem:[%s12887_s17 + $0x6ac8] sm:$0xff] }
  0xf1   : > { %1071 = vst [vmem:[%s12895_s9 + $0xaa8] sm:$0xff] %v1070_v29  ;;  %1073 = vst [vmem:[%s12895_s9 + $0xab0] sm:$0xff] %v1072_v30  ;;  %v1080_v34 = vld [vmem:[%s12887_s17 + $0x6ad0] sm:$0xff]  ;;  %v1082_v35 = vld [vmem:[%s12887_s17 + $0x6ad8] sm:$0xff] }
  0xf2   : > { %1075 = vst [vmem:[%s12895_s9 + $0xab8] sm:$0xff] %v1074_v31  ;;  %1077 = vst [vmem:[%s12895_s9 + $0xac0] sm:$0xff] %v1076_v32  ;;  %v1084_v36 = vld [vmem:[%s12887_s17 + $0x6ae0] sm:$0xff]  ;;  %v1086_v37 = vld [vmem:[%s12887_s17 + $0x6ae8] sm:$0xff] }
  0xf3   : > { %1079 = vst [vmem:[%s12895_s9 + $0xac8] sm:$0xff] %v1078_v33  ;;  %1081 = vst [vmem:[%s12895_s9 + $0xad0] sm:$0xff] %v1080_v34  ;;  %v1088_v38 = vld [vmem:[%s12887_s17 + $0x6af0] sm:$0xff]  ;;  %v1090_v39 = vld [vmem:[%s12887_s17 + $0x6af8] sm:$0xff] }
  0xf4   : > { %1083 = vst [vmem:[%s12895_s9 + $0xad8] sm:$0xff] %v1082_v35  ;;  %1085 = vst [vmem:[%s12895_s9 + $0xae0] sm:$0xff] %v1084_v36  ;;  %v1092_v40 = vld [vmem:[%s12887_s17 + $0x6b00] sm:$0xff]  ;;  %v1094_v41 = vld [vmem:[%s12887_s17 + $0x6b08] sm:$0xff] }
  0xf5   : > { %1087 = vst [vmem:[%s12895_s9 + $0xae8] sm:$0xff] %v1086_v37  ;;  %1089 = vst [vmem:[%s12895_s9 + $0xaf0] sm:$0xff] %v1088_v38  ;;  %v1096_v42 = vld [vmem:[%s12887_s17 + $0x6b10] sm:$0xff]  ;;  %v1098_v43 = vld [vmem:[%s12887_s17 + $0x6b18] sm:$0xff] }
  0xf6   : > { %1091 = vst [vmem:[%s12895_s9 + $0xaf8] sm:$0xff] %v1090_v39  ;;  %1093 = vst [vmem:[%s12895_s9 + $0xb00] sm:$0xff] %v1092_v40  ;;  %v1100_v44 = vld [vmem:[%s12887_s17 + $0x6b20] sm:$0xff]  ;;  %v1102_v45 = vld [vmem:[%s12887_s17 + $0x6b28] sm:$0xff] }
  0xf7   : > { %1095 = vst [vmem:[%s12895_s9 + $0xb08] sm:$0xff] %v1094_v41  ;;  %1097 = vst [vmem:[%s12895_s9 + $0xb10] sm:$0xff] %v1096_v42  ;;  %v1104_v46 = vld [vmem:[%s12887_s17 + $0x6b30] sm:$0xff]  ;;  %v1106_v47 = vld [vmem:[%s12887_s17 + $0x6b38] sm:$0xff] }
  0xf8   : > { %1099 = vst [vmem:[%s12895_s9 + $0xb18] sm:$0xff] %v1098_v43  ;;  %1101 = vst [vmem:[%s12895_s9 + $0xb20] sm:$0xff] %v1100_v44  ;;  %v1108_v48 = vld [vmem:[%s12887_s17 + $0x6b40] sm:$0xff]  ;;  %v1110_v49 = vld [vmem:[%s12887_s17 + $0x6b48] sm:$0xff] }
  0xf9   : > { %1103 = vst [vmem:[%s12895_s9 + $0xb28] sm:$0xff] %v1102_v45  ;;  %1105 = vst [vmem:[%s12895_s9 + $0xb30] sm:$0xff] %v1104_v46  ;;  %v1112_v50 = vld [vmem:[%s12887_s17 + $0x6b50] sm:$0xff]  ;;  %v1114_v51 = vld [vmem:[%s12887_s17 + $0x6b58] sm:$0xff] }
  0xfa   : > { %1107 = vst [vmem:[%s12895_s9 + $0xb38] sm:$0xff] %v1106_v47  ;;  %1109 = vst [vmem:[%s12895_s9 + $0xb40] sm:$0xff] %v1108_v48  ;;  %v1116_v52 = vld [vmem:[%s12887_s17 + $0x6b60] sm:$0xff]  ;;  %v1118_v53 = vld [vmem:[%s12887_s17 + $0x6b68] sm:$0xff] }
  0xfb   : > { %1111 = vst [vmem:[%s12895_s9 + $0xb48] sm:$0xff] %v1110_v49  ;;  %1113 = vst [vmem:[%s12895_s9 + $0xb50] sm:$0xff] %v1112_v50  ;;  %v1120_v54 = vld [vmem:[%s12887_s17 + $0x6b70] sm:$0xff]  ;;  %v1122_v55 = vld [vmem:[%s12887_s17 + $0x6b78] sm:$0xff] }
  0xfc   : > { %1115 = vst [vmem:[%s12895_s9 + $0xb58] sm:$0xff] %v1114_v51  ;;  %1117 = vst [vmem:[%s12895_s9 + $0xb60] sm:$0xff] %v1116_v52  ;;  %v1124_v56 = vld [vmem:[%s12887_s17 + $0x6b80] sm:$0xff]  ;;  %v1126_v57 = vld [vmem:[%s12887_s17 + $0x6b88] sm:$0xff] }
  0xfd   : > { %1119 = vst [vmem:[%s12895_s9 + $0xb68] sm:$0xff] %v1118_v53  ;;  %1121 = vst [vmem:[%s12895_s9 + $0xb70] sm:$0xff] %v1120_v54  ;;  %v1128_v58 = vld [vmem:[%s12887_s17 + $0x6b90] sm:$0xff]  ;;  %v1130_v59 = vld [vmem:[%s12887_s17 + $0x6b98] sm:$0xff] }
  0xfe   : > { %1123 = vst [vmem:[%s12895_s9 + $0xb78] sm:$0xff] %v1122_v55  ;;  %1125 = vst [vmem:[%s12895_s9 + $0xb80] sm:$0xff] %v1124_v56  ;;  %v1132_v60 = vld [vmem:[%s12887_s17 + $0x6ba0] sm:$0xff]  ;;  %v1134_v61 = vld [vmem:[%s12887_s17 + $0x6ba8] sm:$0xff] }
  0xff   : > { %1127 = vst [vmem:[%s12895_s9 + $0xb88] sm:$0xff] %v1126_v57  ;;  %1129 = vst [vmem:[%s12895_s9 + $0xb90] sm:$0xff] %v1128_v58  ;;  %v1136_v62 = vld [vmem:[%s12887_s17 + $0x6bb0] sm:$0xff]  ;;  %v1138_v63 = vld [vmem:[%s12887_s17 + $0x6bb8] sm:$0xff] }
 0x100   : > { %1131 = vst [vmem:[%s12895_s9 + $0xb98] sm:$0xff] %v1130_v59  ;;  %1133 = vst [vmem:[%s12895_s9 + $0xba0] sm:$0xff] %v1132_v60  ;;  %v1140_v0 = vld [vmem:[%s12887_s17 + $0x6bc0] sm:$0xff]  ;;  %v1142_v1 = vld [vmem:[%s12887_s17 + $0x6bc8] sm:$0xff] }
 0x101   : > { %1135 = vst [vmem:[%s12895_s9 + $0xba8] sm:$0xff] %v1134_v61  ;;  %1137 = vst [vmem:[%s12895_s9 + $0xbb0] sm:$0xff] %v1136_v62  ;;  %v1144_v2 = vld [vmem:[%s12887_s17 + $0x6bd0] sm:$0xff]  ;;  %v1146_v3 = vld [vmem:[%s12887_s17 + $0x6bd8] sm:$0xff] }
 0x102   : > { %1139 = vst [vmem:[%s12895_s9 + $0xbb8] sm:$0xff] %v1138_v63  ;;  %1141 = vst [vmem:[%s12895_s9 + $0xbc0] sm:$0xff] %v1140_v0  ;;  %v1148_v4 = vld [vmem:[%s12887_s17 + $0x6be0] sm:$0xff]  ;;  %v1150_v5 = vld [vmem:[%s12887_s17 + $0x6be8] sm:$0xff] }
 0x103   : > { %1143 = vst [vmem:[%s12895_s9 + $0xbc8] sm:$0xff] %v1142_v1  ;;  %1145 = vst [vmem:[%s12895_s9 + $0xbd0] sm:$0xff] %v1144_v2  ;;  %v1152_v6 = vld [vmem:[%s12887_s17 + $0x6bf0] sm:$0xff]  ;;  %v1154_v7 = vld [vmem:[%s12887_s17 + $0x6bf8] sm:$0xff] }
 0x104   : > { %1147 = vst [vmem:[%s12895_s9 + $0xbd8] sm:$0xff] %v1146_v3  ;;  %1149 = vst [vmem:[%s12895_s9 + $0xbe0] sm:$0xff] %v1148_v4 }
 0x105   : > { %1151 = vst [vmem:[%s12895_s9 + $0xbe8] sm:$0xff] %v1150_v5  ;;  %1153 = vst [vmem:[%s12895_s9 + $0xbf0] sm:$0xff] %v1152_v6 }
 0x106   : > { %1155 = vst [vmem:[%s12895_s9 + $0xbf8] sm:$0xff] %v1154_v7 }
 0x107 PF: > { %p9464_p10 = scmp.ge.s32.totalorder %s12613_s26, 1  ;;  %p1160_p11 = scmp.lt.s32.totalorder %s12613_s26, 27 }
 0x109   : > { %p1161_p12 = pnand %p9464_p10, %p1160_p11 }
 0x10a   : > { %s1167_s6 = sand.u32 (!%p1161_p12), 1, %s12589_s20   ;;  %s1174_s29 = sand.u32 (!%p1161_p12), 1, %s12581_s18  }
 0x10b   : > { %1164 = sbr.rel (%p1161_p12) target bundleno = 1738 (0x6ca), region = 78  ;;  %p1207_p13 = scmp.lt.s32.totalorder (!%p1161_p12), %s12601_s23, 1 }
 0x10c   : > { %s11590_s8 = smul.u32 (!%p1161_p12), 576, %s1167_s6  ;;  %p9467_p0 = scmp.ne.s32.totalorder (!%p1161_p12), %s12597_s22, 0 }
 0x10d   : > { %s11591_s10 = smul.u32 (!%p1161_p12), 3072, %s1174_s29 }
 0x10e   : > { %s13670_s15 = scalar_lea.vmem (!%p1161_p12), [#allocation3], %s11590_s8 }
 0x10f   : > { %s13672_s16 = scalar_lea.vmem (!%p1161_p12), [#allocation4], %s11591_s10 }
 0x112   : > { %s14794_s23 = smov (!%p1207_p13, %s12601_s23), 1  ;;  %1216 = sbr.rel (%p9467_p0) target bundleno = 340 (0x154), region = 90 }
 0x113   : > { %s10338_s30 = sshll.u32 %s14794_s23, 8  ;;  %v12615_v8 = vmov (!%p9467_p0), 0.0  }
 0x114   : > { %s13668_s14 = scalar_lea.vmem %s14776_s5, %s10338_s30  ;;  %1217 = vst [vmem:[#allocation2] sm:$0xff] (!%p9467_p0), %v12615_v8  ;;  %1218 = vst [vmem:[#allocation2 + $0x8] sm:$0xff] (!%p9467_p0), %v12615_v8 }
 0x115   : > { %1219 = vst [vmem:[#allocation2 + $0x10] sm:$0xff] (!%p9467_p0), %v12615_v8  ;;  %1220 = vst [vmem:[#allocation2 + $0x18] sm:$0xff] (!%p9467_p0), %v12615_v8 }
 0x116   : > { %1221 = vst [vmem:[#allocation2 + $0x20] sm:$0xff] (!%p9467_p0), %v12615_v8  ;;  %1222 = vst [vmem:[#allocation2 + $0x28] sm:$0xff] (!%p9467_p0), %v12615_v8 }
 0x117   : > { %1223 = vst [vmem:[#allocation2 + $0x30] sm:$0xff] (!%p9467_p0), %v12615_v8  ;;  %1224 = vst [vmem:[#allocation2 + $0x38] sm:$0xff] (!%p9467_p0), %v12615_v8 }
 0x118   : > { %1225 = vst [vmem:[#allocation2 + $0x40] sm:$0xff] (!%p9467_p0), %v12615_v8  ;;  %1226 = vst [vmem:[#allocation2 + $0x48] sm:$0xff] (!%p9467_p0), %v12615_v8 }
 0x119   : > { %1227 = vst [vmem:[#allocation2 + $0x50] sm:$0xff] %v12615_v8  ;;  %1228 = vst [vmem:[#allocation2 + $0x58] sm:$0xff] %v12615_v8 }
 0x11a   : > { %1229 = vst [vmem:[#allocation2 + $0x60] sm:$0xff] %v12615_v8  ;;  %1230 = vst [vmem:[#allocation2 + $0x68] sm:$0xff] %v12615_v8 }
 0x11b   : > { %1231 = vst [vmem:[#allocation2 + $0x70] sm:$0xff] %v12615_v8  ;;  %1232 = vst [vmem:[#allocation2 + $0x78] sm:$0xff] %v12615_v8 }
 0x11c   : > { %1233 = vst [vmem:[#allocation2 + $0x80] sm:$0xff] %v12615_v8  ;;  %1234 = vst [vmem:[#allocation2 + $0x88] sm:$0xff] %v12615_v8 }
 0x11d   : > { %1235 = vst [vmem:[#allocation2 + $0x90] sm:$0xff] %v12615_v8  ;;  %1236 = vst [vmem:[#allocation2 + $0x98] sm:$0xff] %v12615_v8 }
 0x11e   : > { %1237 = vst [vmem:[#allocation2 + $0xa0] sm:$0xff] %v12615_v8  ;;  %1238 = vst [vmem:[#allocation2 + $0xa8] sm:$0xff] %v12615_v8 }
 0x11f   : > { %1239 = vst [vmem:[#allocation2 + $0xb0] sm:$0xff] %v12615_v8  ;;  %1240 = vst [vmem:[#allocation2 + $0xb8] sm:$0xff] %v12615_v8 }
 0x120   : > { %1241 = vst [vmem:[#allocation2 + $0xc0] sm:$0xff] %v12615_v8  ;;  %1242 = vst [vmem:[#allocation2 + $0xc8] sm:$0xff] %v12615_v8 }
 0x121   : > { %1243 = vst [vmem:[#allocation2 + $0xd0] sm:$0xff] %v12615_v8  ;;  %1244 = vst [vmem:[#allocation2 + $0xd8] sm:$0xff] %v12615_v8 }
 0x122   : > { %1245 = vst [vmem:[#allocation2 + $0xe0] sm:$0xff] %v12615_v8  ;;  %1246 = vst [vmem:[#allocation2 + $0xe8] sm:$0xff] %v12615_v8 }
 0x123   : > { %1247 = vst [vmem:[#allocation2 + $0xf0] sm:$0xff] %v12615_v8  ;;  %1248 = vst [vmem:[#allocation2 + $0xf8] sm:$0xff] %v12615_v8 }
 0x124   : > { %1249 = vst [vmem:[#allocation2 + $0x100] sm:$0xff] %v12615_v8  ;;  %1250 = vst [vmem:[#allocation2 + $0x108] sm:$0xff] %v12615_v8 }
 0x125   : > { %1251 = vst [vmem:[#allocation2 + $0x110] sm:$0xff] %v12615_v8  ;;  %1252 = vst [vmem:[#allocation2 + $0x118] sm:$0xff] %v12615_v8 }
 0x126   : > { %1253 = vst [vmem:[#allocation2 + $0x120] sm:$0xff] %v12615_v8  ;;  %1254 = vst [vmem:[#allocation2 + $0x128] sm:$0xff] %v12615_v8 }
 0x127   : > { %1255 = vst [vmem:[#allocation2 + $0x130] sm:$0xff] %v12615_v8  ;;  %1256 = vst [vmem:[#allocation2 + $0x138] sm:$0xff] %v12615_v8 }
 0x128   : > { %1257 = vst [vmem:[#allocation2 + $0x140] sm:$0xff] %v12615_v8  ;;  %1258 = vst [vmem:[#allocation2 + $0x148] sm:$0xff] %v12615_v8 }
 0x129   : > { %1259 = vst [vmem:[#allocation2 + $0x150] sm:$0xff] %v12615_v8  ;;  %1260 = vst [vmem:[#allocation2 + $0x158] sm:$0xff] %v12615_v8 }
 0x12a   : > { %1261 = vst [vmem:[#allocation2 + $0x160] sm:$0xff] %v12615_v8  ;;  %1262 = vst [vmem:[#allocation2 + $0x168] sm:$0xff] %v12615_v8 }
 0x12b   : > { %1263 = vst [vmem:[#allocation2 + $0x170] sm:$0xff] %v12615_v8  ;;  %1264 = vst [vmem:[#allocation2 + $0x178] sm:$0xff] %v12615_v8 }
 0x12c   : > { %1265 = vst [vmem:[#allocation2 + $0x180] sm:$0xff] %v12615_v8  ;;  %1266 = vst [vmem:[#allocation2 + $0x188] sm:$0xff] %v12615_v8 }
 0x12d   : > { %1267 = vst [vmem:[#allocation2 + $0x190] sm:$0xff] %v12615_v8  ;;  %1268 = vst [vmem:[#allocation2 + $0x198] sm:$0xff] %v12615_v8 }
 0x12e   : > { %1269 = vst [vmem:[#allocation2 + $0x1a0] sm:$0xff] %v12615_v8  ;;  %1270 = vst [vmem:[#allocation2 + $0x1a8] sm:$0xff] %v12615_v8 }
 0x12f   : > { %1271 = vst [vmem:[#allocation2 + $0x1b0] sm:$0xff] %v12615_v8  ;;  %1272 = vst [vmem:[#allocation2 + $0x1b8] sm:$0xff] %v12615_v8 }
 0x130   : > { %1273 = vst [vmem:[#allocation2 + $0x1c0] sm:$0xff] %v12615_v8  ;;  %1274 = vst [vmem:[#allocation2 + $0x1c8] sm:$0xff] %v12615_v8 }
 0x131   : > { %1275 = vst [vmem:[#allocation2 + $0x1d0] sm:$0xff] %v12615_v8  ;;  %1276 = vst [vmem:[#allocation2 + $0x1d8] sm:$0xff] %v12615_v8 }
 0x132   : > { %1277 = vst [vmem:[#allocation2 + $0x1e0] sm:$0xff] %v12615_v8  ;;  %1278 = vst [vmem:[#allocation2 + $0x1e8] sm:$0xff] %v12615_v8 }
 0x133   : > { %1279 = vst [vmem:[#allocation2 + $0x1f0] sm:$0xff] %v12615_v8  ;;  %1280 = vst [vmem:[#allocation2 + $0x1f8] sm:$0xff] %v12615_v8 }
 0x134   : > { %1281 = vst [vmem:[#allocation2 + $0x200] sm:$0xff] %v12615_v8  ;;  %1282 = vst [vmem:[#allocation2 + $0x208] sm:$0xff] %v12615_v8 }
 0x135   : > { %1283 = vst [vmem:[#allocation2 + $0x210] sm:$0xff] %v12615_v8  ;;  %1284 = vst [vmem:[#allocation2 + $0x218] sm:$0xff] %v12615_v8 }
 0x136   : > { %1285 = vst [vmem:[#allocation2 + $0x220] sm:$0xff] %v12615_v8  ;;  %1286 = vst [vmem:[#allocation2 + $0x228] sm:$0xff] %v12615_v8 }
 0x137   : > { %1287 = vst [vmem:[#allocation2 + $0x230] sm:$0xff] %v12615_v8  ;;  %1288 = vst [vmem:[#allocation2 + $0x238] sm:$0xff] %v12615_v8 }
 0x138   : > { %1289 = vst [vmem:[#allocation2 + $0x240] sm:$0xff] %v12615_v8  ;;  %1290 = vst [vmem:[#allocation2 + $0x248] sm:$0xff] %v12615_v8 }
 0x139   : > { %1291 = vst [vmem:[#allocation2 + $0x250] sm:$0xff] %v12615_v8  ;;  %1292 = vst [vmem:[#allocation2 + $0x258] sm:$0xff] %v12615_v8 }
 0x13a   : > { %1293 = vst [vmem:[#allocation2 + $0x260] sm:$0xff] %v12615_v8  ;;  %1294 = vst [vmem:[#allocation2 + $0x268] sm:$0xff] %v12615_v8 }
 0x13b   : > { %1295 = vst [vmem:[#allocation2 + $0x270] sm:$0xff] %v12615_v8  ;;  %1296 = vst [vmem:[#allocation2 + $0x278] sm:$0xff] %v12615_v8 }
 0x13c   : > { %1297 = vst [vmem:[#allocation2 + $0x280] sm:$0xff] %v12615_v8  ;;  %1298 = vst [vmem:[#allocation2 + $0x288] sm:$0xff] %v12615_v8 }
 0x13d   : > { %1299 = vst [vmem:[#allocation2 + $0x290] sm:$0xff] %v12615_v8  ;;  %1300 = vst [vmem:[#allocation2 + $0x298] sm:$0xff] %v12615_v8 }
 0x13e   : > { %1301 = vst [vmem:[#allocation2 + $0x2a0] sm:$0xff] %v12615_v8  ;;  %1302 = vst [vmem:[#allocation2 + $0x2a8] sm:$0xff] %v12615_v8 }
 0x13f   : > { %1303 = vst [vmem:[#allocation2 + $0x2b0] sm:$0xff] %v12615_v8  ;;  %1304 = vst [vmem:[#allocation2 + $0x2b8] sm:$0xff] %v12615_v8 }
 0x140   : > { %1305 = vst [vmem:[#allocation2 + $0x2c0] sm:$0xff] %v12615_v8  ;;  %1306 = vst [vmem:[#allocation2 + $0x2c8] sm:$0xff] %v12615_v8 }
 0x141   : > { %1307 = vst [vmem:[#allocation2 + $0x2d0] sm:$0xff] %v12615_v8  ;;  %1308 = vst [vmem:[#allocation2 + $0x2d8] sm:$0xff] %v12615_v8 }
 0x142   : > { %1309 = vst [vmem:[#allocation2 + $0x2e0] sm:$0xff] %v12615_v8  ;;  %1310 = vst [vmem:[#allocation2 + $0x2e8] sm:$0xff] %v12615_v8 }
 0x143   : > { %1311 = vst [vmem:[#allocation2 + $0x2f0] sm:$0xff] %v12615_v8  ;;  %1312 = vst [vmem:[#allocation2 + $0x2f8] sm:$0xff] %v12615_v8 }
 0x144   : > { %1313 = vst [vmem:[#allocation2 + $0x300] sm:$0xff] %v12615_v8  ;;  %1314 = vst [vmem:[#allocation2 + $0x308] sm:$0xff] %v12615_v8 }
 0x145   : > { %1315 = vst [vmem:[#allocation2 + $0x310] sm:$0xff] %v12615_v8  ;;  %1316 = vst [vmem:[#allocation2 + $0x318] sm:$0xff] %v12615_v8 }
 0x146   : > { %1317 = vst [vmem:[#allocation2 + $0x320] sm:$0xff] %v12615_v8  ;;  %1318 = vst [vmem:[#allocation2 + $0x328] sm:$0xff] %v12615_v8 }
 0x147   : > { %1319 = vst [vmem:[#allocation2 + $0x330] sm:$0xff] %v12615_v8  ;;  %1320 = vst [vmem:[#allocation2 + $0x338] sm:$0xff] %v12615_v8 }
 0x148   : > { %1321 = vst [vmem:[#allocation2 + $0x340] sm:$0xff] %v12615_v8  ;;  %1322 = vst [vmem:[#allocation2 + $0x348] sm:$0xff] %v12615_v8 }
 0x149   : > { %1323 = vst [vmem:[#allocation2 + $0x350] sm:$0xff] %v12615_v8  ;;  %1324 = vst [vmem:[#allocation2 + $0x358] sm:$0xff] %v12615_v8 }
 0x14a   : > { %1325 = vst [vmem:[#allocation2 + $0x360] sm:$0xff] %v12615_v8  ;;  %1326 = vst [vmem:[#allocation2 + $0x368] sm:$0xff] %v12615_v8 }
 0x14b   : > { %1327 = vst [vmem:[#allocation2 + $0x370] sm:$0xff] %v12615_v8  ;;  %1328 = vst [vmem:[#allocation2 + $0x378] sm:$0xff] %v12615_v8 }
 0x14c   : > { %1329 = vst [vmem:[#allocation2 + $0x380] sm:$0xff] %v12615_v8  ;;  %1330 = vst [vmem:[#allocation2 + $0x388] sm:$0xff] %v12615_v8 }
 0x14d   : > { %1331 = vst [vmem:[#allocation2 + $0x390] sm:$0xff] %v12615_v8  ;;  %1332 = vst [vmem:[#allocation2 + $0x398] sm:$0xff] %v12615_v8 }
 0x14e   : > { %1333 = vst [vmem:[#allocation2 + $0x3a0] sm:$0xff] %v12615_v8  ;;  %1334 = vst [vmem:[#allocation2 + $0x3a8] sm:$0xff] %v12615_v8 }
 0x14f   : > { %1335 = vst [vmem:[#allocation2 + $0x3b0] sm:$0xff] %v12615_v8  ;;  %1336 = vst [vmem:[#allocation2 + $0x3b8] sm:$0xff] %v12615_v8 }
 0x150   : > { %1337 = vst [vmem:[#allocation2 + $0x3c0] sm:$0xff] %v12615_v8  ;;  %1338 = vst [vmem:[#allocation2 + $0x3c8] sm:$0xff] %v12615_v8 }
 0x151   : > { %1339 = vst [vmem:[#allocation2 + $0x3d0] sm:$0xff] %v12615_v8  ;;  %1340 = vst [vmem:[#allocation2 + $0x3d8] sm:$0xff] %v12615_v8 }
 0x152   : > { %1341 = vst [vmem:[#allocation2 + $0x3e0] sm:$0xff] %v12615_v8  ;;  %1342 = vst [vmem:[#allocation2 + $0x3e8] sm:$0xff] %v12615_v8 }
 0x153   : > { %1343 = vst [vmem:[#allocation2 + $0x3f0] sm:$0xff] %v12615_v8  ;;  %1344 = vst [vmem:[#allocation2 + $0x3f8] sm:$0xff] %v12615_v8 }
 0x154 PF: > { %v11665_v9 = vld [vmem:[%s13672_s16 + $0x4] ss:$16 sps:$4 sm:$0xff]   ;;  %v11667_v10 = vld [vmem:[%s13672_s16 + $0xc] ss:$16 sps:$4 sm:$0xff]   ;;  %v11669_v11 = vld [vmem:[%s13672_s16] ss:$16 sps:$4 sm:$0xff]  }
 0x155   : > { %2625 = vmatprep.subr.bf16.mxu0 %v11665_v9  ;;  %v11670_v12 = vld [vmem:[%s13672_s16 + $0x8] ss:$16 sps:$4 sm:$0xff]   ;;  %3011 = vmatprep.subr.bf16.mxu1 %v11667_v10  ;;  %v11671_v13 = vld [vmem:[%s13672_s16 + $0x24] ss:$16 sps:$4 sm:$0xff]   ;;  %v11673_v14 = vld [vmem:[%s13672_s16 + $0x2c] ss:$16 sps:$4 sm:$0xff]  }
 0x156   : > { %2626 = vmatpush1.bf16.msra.mxu0 %v11669_v11  ;;  %3012 = vmatpush1.bf16.msra.mxu1 %v11670_v12  ;;  %v11675_v15 = vld [vmem:[%s13672_s16 + $0x20] ss:$16 sps:$4 sm:$0xff]   ;;  %v11676_v16 = vld [vmem:[%s13672_s16 + $0x28] ss:$16 sps:$4 sm:$0xff]   ;;  %v11677_v17 = vld [vmem:[%s13672_s16 + $0x44] ss:$16 sps:$4 sm:$0xff]  }
 0x157   : > { %2627 = vmatprep.subr.bf16.mxu0 %v11671_v13  ;;  %3013 = vmatprep.subr.bf16.mxu1 %v11673_v14  ;;  %v11679_v18 = vld [vmem:[%s13672_s16 + $0x4c] ss:$16 sps:$4 sm:$0xff]   ;;  %v11681_v19 = vld [vmem:[%s13672_s16 + $0x40] ss:$16 sps:$4 sm:$0xff]   ;;  %v11682_v20 = vld [vmem:[%s13672_s16 + $0x48] ss:$16 sps:$4 sm:$0xff]  }
 0x158   : > { %v11683_v21 = vld [vmem:[%s13672_s16 + $0x64] ss:$16 sps:$4 sm:$0xff]   ;;  %v11685_v22 = vld [vmem:[%s13672_s16 + $0x6c] ss:$16 sps:$4 sm:$0xff]   ;;  %v11687_v23 = vld [vmem:[%s13672_s16 + $0x60] ss:$16 sps:$4 sm:$0xff]  }
 0x159   : > { %v11688_v24 = vld [vmem:[%s13672_s16 + $0x68] ss:$16 sps:$4 sm:$0xff]   ;;  %v11689_v25 = vld [vmem:[%s13672_s16 + $0x84] ss:$16 sps:$4 sm:$0xff]   ;;  %v11691_v26 = vld [vmem:[%s13672_s16 + $0x8c] ss:$16 sps:$4 sm:$0xff]  }
 0x15a   : > { %2628 = vmatpush1.bf16.msra.mxu0 %v11675_v15  ;;  %3014 = vmatpush1.bf16.msra.mxu1 %v11676_v16  ;;  %v11693_v27 = vld [vmem:[%s13672_s16 + $0x80] ss:$16 sps:$4 sm:$0xff]   ;;  %v11694_v28 = vld [vmem:[%s13672_s16 + $0x88] ss:$16 sps:$4 sm:$0xff]   ;;  %v11695_v29 = vld [vmem:[%s13672_s16 + $0xa4] ss:$16 sps:$4 sm:$0xff]  }
 0x15b   : > { %2629 = vmatprep.subr.bf16.mxu0 %v11677_v17  ;;  %3015 = vmatprep.subr.bf16.mxu1 %v11679_v18  ;;  %v11697_v30 = vld [vmem:[%s13672_s16 + $0xac] ss:$16 sps:$4 sm:$0xff]   ;;  %v11699_v31 = vld [vmem:[%s13672_s16 + $0xa0] ss:$16 sps:$4 sm:$0xff]   ;;  %v11700_v32 = vld [vmem:[%s13672_s16 + $0xa8] ss:$16 sps:$4 sm:$0xff]  }
 0x15c   : > { %v11701_v33 = vld [vmem:[%s13672_s16 + $0xc4] ss:$16 sps:$4 sm:$0xff]   ;;  %v11703_v34 = vld [vmem:[%s13672_s16 + $0xcc] ss:$16 sps:$4 sm:$0xff]   ;;  %v11705_v35 = vld [vmem:[%s13672_s16 + $0xc0] ss:$16 sps:$4 sm:$0xff]  }
 0x15d   : > { %v11706_v36 = vld [vmem:[%s13672_s16 + $0xc8] ss:$16 sps:$4 sm:$0xff]   ;;  %v11707_v37 = vld [vmem:[%s13672_s16 + $0xe4] ss:$16 sps:$4 sm:$0xff]   ;;  %v11709_v38 = vld [vmem:[%s13672_s16 + $0xec] ss:$16 sps:$4 sm:$0xff]  }
 0x15e   : > { %2630 = vmatpush1.bf16.msra.mxu0 %v11681_v19  ;;  %3016 = vmatpush1.bf16.msra.mxu1 %v11682_v20  ;;  %v11711_v39 = vld [vmem:[%s13672_s16 + $0xe0] ss:$16 sps:$4 sm:$0xff]   ;;  %v11712_v40 = vld [vmem:[%s13672_s16 + $0xe8] ss:$16 sps:$4 sm:$0xff]   ;;  %v11713_v41 = vld [vmem:[%s13672_s16 + $0x104] ss:$16 sps:$4 sm:$0xff]  }
 0x15f   : > { %2631 = vmatprep.subr.bf16.mxu0 %v11683_v21  ;;  %3017 = vmatprep.subr.bf16.mxu1 %v11685_v22  ;;  %v11715_v42 = vld [vmem:[%s13672_s16 + $0x10c] ss:$16 sps:$4 sm:$0xff]   ;;  %v11717_v43 = vld [vmem:[%s13672_s16 + $0x100] ss:$16 sps:$4 sm:$0xff]   ;;  %v11718_v44 = vld [vmem:[%s13672_s16 + $0x108] ss:$16 sps:$4 sm:$0xff]  }
 0x160   : > { %v11719_v45 = vld [vmem:[%s13672_s16 + $0x124] ss:$16 sps:$4 sm:$0xff]   ;;  %v11721_v46 = vld [vmem:[%s13672_s16 + $0x12c] ss:$16 sps:$4 sm:$0xff]   ;;  %v11723_v47 = vld [vmem:[%s13672_s16 + $0x120] ss:$16 sps:$4 sm:$0xff]  }
 0x161   : > { %v11724_v48 = vld [vmem:[%s13672_s16 + $0x128] ss:$16 sps:$4 sm:$0xff]   ;;  %v11725_v49 = vld [vmem:[%s13672_s16 + $0x144] ss:$16 sps:$4 sm:$0xff]   ;;  %v11727_v50 = vld [vmem:[%s13672_s16 + $0x14c] ss:$16 sps:$4 sm:$0xff]  }
 0x162   : > { %2632 = vmatpush1.bf16.msra.mxu0 %v11687_v23  ;;  %3018 = vmatpush1.bf16.msra.mxu1 %v11688_v24  ;;  %v11729_v51 = vld [vmem:[%s13672_s16 + $0x140] ss:$16 sps:$4 sm:$0xff]   ;;  %v11730_v52 = vld [vmem:[%s13672_s16 + $0x148] ss:$16 sps:$4 sm:$0xff]   ;;  %v11731_v53 = vld [vmem:[%s13672_s16 + $0x164] ss:$16 sps:$4 sm:$0xff]  }
 0x163   : > { %2633 = vmatprep.subr.bf16.mxu0 %v11689_v25  ;;  %3019 = vmatprep.subr.bf16.mxu1 %v11691_v26  ;;  %v11733_v54 = vld [vmem:[%s13672_s16 + $0x16c] ss:$16 sps:$4 sm:$0xff]   ;;  %v11735_v55 = vld [vmem:[%s13672_s16 + $0x160] ss:$16 sps:$4 sm:$0xff]   ;;  %v11736_v56 = vld [vmem:[%s13672_s16 + $0x168] ss:$16 sps:$4 sm:$0xff]  }
 0x164   : > { %v11763_v57 = vld [vmem:[%s13670_s15 + $0x4] ss:$16 sps:$4 sm:$0xff]   ;;  %v11739_v59 = vld [vmem:[%s13672_s16 + $0x18c] ss:$16 sps:$4 sm:$0xff]   ;;  %v11741_v60 = vld [vmem:[%s13672_s16 + $0x180] ss:$16 sps:$4 sm:$0xff]  }
 0x165   : > { %v11737_v58 = vld [vmem:[%s13672_s16 + $0x184] ss:$16 sps:$4 sm:$0xff]   ;;  %2657 = vmatprep.mubr.bf16.mxu0 %v11763_v57  ;;  %3043 = vmatprep.mubr.bf16.mxu1 %v11763_v57  ;;  %v11742_v61 = vld [vmem:[%s13672_s16 + $0x188] ss:$16 sps:$4 sm:$0xff]   ;;  %v11745_v63 = vld [vmem:[%s13672_s16 + $0x1ac] ss:$16 sps:$4 sm:$0xff]  }
 0x166   : > { %2634 = vmatpush1.bf16.msra.mxu0 %v11693_v27  ;;  %3020 = vmatpush1.bf16.msra.mxu1 %v11694_v28  ;;  %v11743_v62 = vld [vmem:[%s13672_s16 + $0x1a4] ss:$16 sps:$4 sm:$0xff]   ;;  %v11747_v0 = vld [vmem:[%s13672_s16 + $0x1a0] ss:$16 sps:$4 sm:$0xff]   ;;  %v11748_v1 = vld [vmem:[%s13672_s16 + $0x1a8] ss:$16 sps:$4 sm:$0xff]  }
 0x167   : > { %2635 = vmatprep.subr.bf16.mxu0 %v11695_v29  ;;  %3021 = vmatprep.subr.bf16.mxu1 %v11697_v30  ;;  %v11749_v2 = vld [vmem:[%s13672_s16 + $0x1c4] ss:$16 sps:$4 sm:$0xff]   ;;  %v11751_v3 = vld [vmem:[%s13672_s16 + $0x1cc] ss:$16 sps:$4 sm:$0xff]   ;;  %v11753_v4 = vld [vmem:[%s13672_s16 + $0x1c0] ss:$16 sps:$4 sm:$0xff]  }
 0x168   : > { %v11754_v5 = vld [vmem:[%s13672_s16 + $0x1c8] ss:$16 sps:$4 sm:$0xff]   ;;  %v11755_v6 = vld [vmem:[%s13672_s16 + $0x1e4] ss:$16 sps:$4 sm:$0xff]   ;;  %v11757_v7 = vld [vmem:[%s13672_s16 + $0x1ec] ss:$16 sps:$4 sm:$0xff]  }
 0x169   : > { %v11759_v8 = vld [vmem:[%s13672_s16 + $0x1e0] ss:$16 sps:$4 sm:$0xff]   ;;  %v11760_v9 = vld [vmem:[%s13672_s16 + $0x1e8] ss:$16 sps:$4 sm:$0xff]   ;;  %v11766_v10 = vld [vmem:[%s13672_s16 + $0x204] ss:$16 sps:$4 sm:$0xff]  }
 0x16a   : > { %2636 = vmatpush1.bf16.msra.mxu0 %v11699_v31  ;;  %3022 = vmatpush1.bf16.msra.mxu1 %v11700_v32  ;;  %v11769_v11 = vld [vmem:[%s13672_s16 + $0x20c] ss:$16 sps:$4 sm:$0xff]   ;;  %v11761_v12 = vld [vmem:[%s13670_s15] ss:$16 sps:$4 sm:$0xff]   ;;  %v11767_v14 = vld [vmem:[%s13672_s16 + $0x208] ss:$16 sps:$4 sm:$0xff]  }
 0x16b   : > { %2637 = vmatprep.subr.bf16.mxu0 %v11701_v33  ;;  %3023 = vmatprep.subr.bf16.mxu1 %v11703_v34  ;;  %v11764_v13 = vld [vmem:[%s13672_s16 + $0x200] ss:$16 sps:$4 sm:$0xff]   ;;  %v11770_v15 = vld [vmem:[%s13670_s15 + $0x24] ss:$16 sps:$4 sm:$0xff]   ;;  %v11778_v17 = vld [vmem:[%s13672_s16 + $0x22c] ss:$16 sps:$4 sm:$0xff]  }
 0x16c   : > { %v11775_v16 = vld [vmem:[%s13672_s16 + $0x224] ss:$16 sps:$4 sm:$0xff]   ;;  %v11773_v18 = vld [vmem:[%s13672_s16 + $0x220] ss:$16 sps:$4 sm:$0xff]   ;;  %v11776_v19 = vld [vmem:[%s13672_s16 + $0x228] ss:$16 sps:$4 sm:$0xff]  }
 0x16d   : > { %v11784_v20 = vld [vmem:[%s13672_s16 + $0x244] ss:$16 sps:$4 sm:$0xff]   ;;  %v11787_v21 = vld [vmem:[%s13672_s16 + $0x24c] ss:$16 sps:$4 sm:$0xff]   ;;  %v11772_v22 = vld [vmem:[%s13670_s15 + $0x20] ss:$16 sps:$4 sm:$0xff]  }
 0x16e   : > { %2638 = vmatpush1.bf16.msra.mxu0 %v11705_v35  ;;  %3024 = vmatpush1.bf16.msra.mxu1 %v11706_v36  ;;  %v11779_v23 = vld [vmem:[%s13670_s15 + $0x44] ss:$16 sps:$4 sm:$0xff]   ;;  %v11782_v24 = vld [vmem:[%s13672_s16 + $0x240] ss:$16 sps:$4 sm:$0xff]   ;;  %v11785_v25 = vld [vmem:[%s13672_s16 + $0x248] ss:$16 sps:$4 sm:$0xff]  }
 0x16f   : > { %2639 = vmatprep.subr.bf16.mxu0 %v11707_v37  ;;  %3025 = vmatprep.subr.bf16.mxu1 %v11709_v38  ;;  %v11793_v26 = vld [vmem:[%s13672_s16 + $0x264] ss:$16 sps:$4 sm:$0xff]   ;;  %v11796_v27 = vld [vmem:[%s13672_s16 + $0x26c] ss:$16 sps:$4 sm:$0xff]   ;;  %v11791_v28 = vld [vmem:[%s13672_s16 + $0x260] ss:$16 sps:$4 sm:$0xff]  }
 0x170   : > { %v11794_v29 = vld [vmem:[%s13672_s16 + $0x268] ss:$16 sps:$4 sm:$0xff]   ;;  %v11802_v30 = vld [vmem:[%s13672_s16 + $0x284] ss:$16 sps:$4 sm:$0xff]   ;;  %v11805_v31 = vld [vmem:[%s13672_s16 + $0x28c] ss:$16 sps:$4 sm:$0xff]  }
 0x171   : > { %v11781_v32 = vld [vmem:[%s13670_s15 + $0x40] ss:$16 sps:$4 sm:$0xff]   ;;  %v11788_v33 = vld [vmem:[%s13670_s15 + $0x64] ss:$16 sps:$4 sm:$0xff]   ;;  %v11803_v35 = vld [vmem:[%s13672_s16 + $0x288] ss:$16 sps:$4 sm:$0xff]  }
 0x172   : > { %2640 = vmatpush1.bf16.msra.mxu0 %v11711_v39  ;;  %3026 = vmatpush1.bf16.msra.mxu1 %v11712_v40  ;;  %v11800_v34 = vld [vmem:[%s13672_s16 + $0x280] ss:$16 sps:$4 sm:$0xff]   ;;  %v11811_v36 = vld [vmem:[%s13672_s16 + $0x2a4] ss:$16 sps:$4 sm:$0xff]   ;;  %v11814_v37 = vld [vmem:[%s13672_s16 + $0x2ac] ss:$16 sps:$4 sm:$0xff]  }
 0x173   : > { %2641 = vmatprep.subr.bf16.mxu0 %v11713_v41  ;;  %3027 = vmatprep.subr.bf16.mxu1 %v11715_v42  ;;  %v11809_v38 = vld [vmem:[%s13672_s16 + $0x2a0] ss:$16 sps:$4 sm:$0xff]   ;;  %v11812_v39 = vld [vmem:[%s13672_s16 + $0x2a8] ss:$16 sps:$4 sm:$0xff]   ;;  %v11820_v40 = vld [vmem:[%s13672_s16 + $0x2c4] ss:$16 sps:$4 sm:$0xff]  }
 0x174   : > { %v11823_v41 = vld [vmem:[%s13672_s16 + $0x2cc] ss:$16 sps:$4 sm:$0xff]   ;;  %v11790_v42 = vld [vmem:[%s13670_s15 + $0x60] ss:$16 sps:$4 sm:$0xff]   ;;  %p10300_p1 = scmp.ne.s32.totalorder %s12597_s22, 12 }
 0x175   : > { %v11850_v57 = vld [vmem:[%s13672_s16 + $0x32c] ss:$16 sps:$4 sm:$0xff]  }
 0x176   : > { %2642 = vmatpush1.bf16.msra.mxu0 %v11717_v43  ;;  %3028 = vmatpush1.bf16.msra.mxu1 %v11718_v44  ;;  %v11797_v43 = vld [vmem:[%s13670_s15 + $0x84] ss:$16 sps:$4 sm:$0xff]   ;;  %v11818_v44 = vld [vmem:[%s13672_s16 + $0x2c0] ss:$16 sps:$4 sm:$0xff]  }
 0x177   : > { %2643 = vmatprep.subr.bf16.mxu0 %v11719_v45  ;;  %3029 = vmatprep.subr.bf16.mxu1 %v11721_v46  ;;  %v11821_v45 = vld [vmem:[%s13672_s16 + $0x2c8] ss:$16 sps:$4 sm:$0xff]   ;;  %v11829_v46 = vld [vmem:[%s13672_s16 + $0x2e4] ss:$16 sps:$4 sm:$0xff]  }
 0x17a   : > { %2644 = vmatpush1.bf16.msra.mxu0 %v11723_v47  ;;  %3030 = vmatpush1.bf16.msra.mxu1 %v11724_v48  ;;  %v11832_v47 = vld [vmem:[%s13672_s16 + $0x2ec] ss:$16 sps:$4 sm:$0xff]   ;;  %v11827_v48 = vld [vmem:[%s13672_s16 + $0x2e0] ss:$16 sps:$4 sm:$0xff]  }
 0x17b   : > { %2645 = vmatprep.subr.bf16.mxu0 %v11725_v49  ;;  %3031 = vmatprep.subr.bf16.mxu1 %v11727_v50  ;;  %v11830_v49 = vld [vmem:[%s13672_s16 + $0x2e8] ss:$16 sps:$4 sm:$0xff]   ;;  %v11838_v50 = vld [vmem:[%s13672_s16 + $0x304] ss:$16 sps:$4 sm:$0xff]  }
 0x17e   : > { %2646 = vmatpush1.bf16.msra.mxu0 %v11729_v51  ;;  %3032 = vmatpush1.bf16.msra.mxu1 %v11730_v52  ;;  %v11841_v51 = vld [vmem:[%s13672_s16 + $0x30c] ss:$16 sps:$4 sm:$0xff]   ;;  %v11799_v52 = vld [vmem:[%s13670_s15 + $0x80] ss:$16 sps:$4 sm:$0xff]  }
 0x17f   : > { %2647 = vmatprep.subr.bf16.mxu0 %v11731_v53  ;;  %3033 = vmatprep.subr.bf16.mxu1 %v11733_v54  ;;  %v11806_v53 = vld [vmem:[%s13670_s15 + $0xa4] ss:$16 sps:$4 sm:$0xff]   ;;  %v11836_v54 = vld [vmem:[%s13672_s16 + $0x300] ss:$16 sps:$4 sm:$0xff]  }
 0x182   : > { %2648 = vmatpush1.bf16.msra.mxu0 %v11735_v55  ;;  %3034 = vmatpush1.bf16.msra.mxu1 %v11736_v56  ;;  %v11839_v55 = vld [vmem:[%s13672_s16 + $0x308] ss:$16 sps:$4 sm:$0xff]   ;;  %v11847_v56 = vld [vmem:[%s13672_s16 + $0x324] ss:$16 sps:$4 sm:$0xff]  }
 0x183   : > { %2649 = vmatprep.subr.bf16.mxu0 %v11737_v58  ;;  %3035 = vmatprep.subr.bf16.mxu1 %v11739_v59  ;;  %v11845_v58 = vld [vmem:[%s13672_s16 + $0x320] ss:$16 sps:$4 sm:$0xff]   ;;  %v11848_v59 = vld [vmem:[%s13672_s16 + $0x328] ss:$16 sps:$4 sm:$0xff]  }
 0x186   : > { %2650 = vmatpush1.bf16.msra.mxu0 %v11741_v60  ;;  %3036 = vmatpush1.bf16.msra.mxu1 %v11742_v61  ;;  %v11856_v60 = vld [vmem:[%s13672_s16 + $0x344] ss:$16 sps:$4 sm:$0xff]   ;;  %v11859_v61 = vld [vmem:[%s13672_s16 + $0x34c] ss:$16 sps:$4 sm:$0xff]  }
 0x187   : > { %2651 = vmatprep.subr.bf16.mxu0 %v11743_v62  ;;  %3037 = vmatprep.subr.bf16.mxu1 %v11745_v63  ;;  %v11808_v62 = vld [vmem:[%s13670_s15 + $0xa0] ss:$16 sps:$4 sm:$0xff]   ;;  %v11815_v63 = vld [vmem:[%s13670_s15 + $0xc4] ss:$16 sps:$4 sm:$0xff]  }
 0x18a   : > { %2652 = vmatpush1.bf16.msra.mxu0 %v11747_v0  ;;  %3038 = vmatpush1.bf16.msra.mxu1 %v11748_v1  ;;  %v11854_v0 = vld [vmem:[%s13672_s16 + $0x340] ss:$16 sps:$4 sm:$0xff]   ;;  %v11857_v1 = vld [vmem:[%s13672_s16 + $0x348] ss:$16 sps:$4 sm:$0xff]  }
 0x18b   : > { %2653 = vmatprep.subr.bf16.mxu0 %v11749_v2  ;;  %3039 = vmatprep.subr.bf16.mxu1 %v11751_v3  ;;  %v11865_v2 = vld [vmem:[%s13672_s16 + $0x364] ss:$16 sps:$4 sm:$0xff]   ;;  %v11868_v3 = vld [vmem:[%s13672_s16 + $0x36c] ss:$16 sps:$4 sm:$0xff]  }
 0x18e   : > { %2654 = vmatpush1.bf16.msra.mxu0 %v11753_v4  ;;  %3040 = vmatpush1.bf16.msra.mxu1 %v11754_v5  ;;  %v11863_v4 = vld [vmem:[%s13672_s16 + $0x360] ss:$16 sps:$4 sm:$0xff]   ;;  %v11866_v5 = vld [vmem:[%s13672_s16 + $0x368] ss:$16 sps:$4 sm:$0xff]  }
 0x18f   : > { %2655 = vmatprep.subr.bf16.mxu0 %v11755_v6  ;;  %3041 = vmatprep.subr.bf16.mxu1 %v11757_v7  ;;  %v11874_v6 = vld [vmem:[%s13672_s16 + $0x384] ss:$16 sps:$4 sm:$0xff]   ;;  %v11877_v7 = vld [vmem:[%s13672_s16 + $0x38c] ss:$16 sps:$4 sm:$0xff]  }
 0x192   : > { %2656 = vmatpush1.bf16.msra.mxu0 %v11759_v8  ;;  %3042 = vmatpush1.bf16.msra.mxu1 %v11760_v9  ;;  %v11817_v8 = vld [vmem:[%s13670_s15 + $0xc0] ss:$16 sps:$4 sm:$0xff]   ;;  %v11824_v9 = vld [vmem:[%s13670_s15 + $0xe4] ss:$16 sps:$4 sm:$0xff]  }
 0x193   : > { %2818 = vmatprep.subr.bf16.mxu0 %v11766_v10  ;;  %3204 = vmatprep.subr.bf16.mxu1 %v11769_v11  ;;  %v11872_v10 = vld [vmem:[%s13672_s16 + $0x380] ss:$16 sps:$4 sm:$0xff]   ;;  %v11875_v11 = vld [vmem:[%s13672_s16 + $0x388] ss:$16 sps:$4 sm:$0xff]  }
 0x195   : > { %2658 = vmatmul.mubr.bf16.vlgmr.msra.gmra.mrb[0].mxu0 %v11761_v12  ;;  %3044 = vmatmul.mubr.bf16.vlgmr.msra.gmra.mrb[0].mxu1 %v11761_v12  ;;  %v11883_v12 = vld [vmem:[%s13672_s16 + $0x3a4] ss:$16 sps:$4 sm:$0xff]  }
 0x196   : > { %2819 = vmatpush1.bf16.msra.mxu0 %v11764_v13  ;;  %3205 = vmatpush1.bf16.msra.mxu1 %v11767_v14  ;;  %v11886_v13 = vld [vmem:[%s13672_s16 + $0x3ac] ss:$16 sps:$4 sm:$0xff]   ;;  %v11881_v14 = vld [vmem:[%s13672_s16 + $0x3a0] ss:$16 sps:$4 sm:$0xff]  }
 0x197   : > { %2667 = vmatprep.mubr.bf16.mxu0 %v11770_v15  ;;  %3053 = vmatprep.mubr.bf16.mxu1 %v11770_v15  ;;  %v11884_v15 = vld [vmem:[%s13672_s16 + $0x3a8] ss:$16 sps:$4 sm:$0xff]  }
 0x198   : > { %2820 = vmatprep.subr.bf16.mxu0 %v11775_v16  ;;  %3206 = vmatprep.subr.bf16.mxu1 %v11778_v17  ;;  %v11892_v16 = vld [vmem:[%s13672_s16 + $0x3c4] ss:$16 sps:$4 sm:$0xff]   ;;  %v11895_v17 = vld [vmem:[%s13672_s16 + $0x3cc] ss:$16 sps:$4 sm:$0xff]  }
 0x19a   : > { %2821 = vmatpush1.bf16.msra.mxu0 %v11773_v18  ;;  %3207 = vmatpush1.bf16.msra.mxu1 %v11776_v19  ;;  %v11826_v18 = vld [vmem:[%s13670_s15 + $0xe0] ss:$16 sps:$4 sm:$0xff]   ;;  %v11833_v19 = vld [vmem:[%s13670_s15 + $0x104] ss:$16 sps:$4 sm:$0xff]  }
 0x19b   : > { %2822 = vmatprep.subr.bf16.mxu0 %v11784_v20  ;;  %3208 = vmatprep.subr.bf16.mxu1 %v11787_v21  ;;  %v11890_v20 = vld [vmem:[%s13672_s16 + $0x3c0] ss:$16 sps:$4 sm:$0xff]   ;;  %v11893_v21 = vld [vmem:[%s13672_s16 + $0x3c8] ss:$16 sps:$4 sm:$0xff]  }
 0x19d   : > { %2668 = vmatmul.mubr.bf16.gmra.mrb[4].mxu0 %v11772_v22  ;;  %3054 = vmatmul.mubr.bf16.gmra.mrb[4].mxu1 %v11772_v22  ;;  %v11901_v22 = vld [vmem:[%s13672_s16 + $0x3e4] ss:$16 sps:$4 sm:$0xff]  }
 0x19e   : > { %2677 = vmatprep.mubr.bf16.mxu0 %v11779_v23  ;;  %3063 = vmatprep.mubr.bf16.mxu1 %v11779_v23  ;;  %v11904_v23 = vld [vmem:[%s13672_s16 + $0x3ec] ss:$16 sps:$4 sm:$0xff]  }
 0x19f   : > { %2823 = vmatpush1.bf16.msra.mxu0 %v11782_v24  ;;  %3209 = vmatpush1.bf16.msra.mxu1 %v11785_v25  ;;  %v11899_v24 = vld [vmem:[%s13672_s16 + $0x3e0] ss:$16 sps:$4 sm:$0xff]   ;;  %v11902_v25 = vld [vmem:[%s13672_s16 + $0x3e8] ss:$16 sps:$4 sm:$0xff]  }
 0x1a0   : > { %2824 = vmatprep.subr.bf16.mxu0 %v11793_v26  ;;  %3210 = vmatprep.subr.bf16.mxu1 %v11796_v27  ;;  %v11910_v26 = vld [vmem:[%s13672_s16 + $0x404] ss:$16 sps:$4 sm:$0xff]   ;;  %v11913_v27 = vld [vmem:[%s13672_s16 + $0x40c] ss:$16 sps:$4 sm:$0xff]  }
 0x1a3   : > { %2825 = vmatpush1.bf16.msra.mxu0 %v11791_v28  ;;  %3211 = vmatpush1.bf16.msra.mxu1 %v11794_v29  ;;  %v11835_v28 = vld [vmem:[%s13670_s15 + $0x100] ss:$16 sps:$4 sm:$0xff]   ;;  %v11842_v29 = vld [vmem:[%s13670_s15 + $0x124] ss:$16 sps:$4 sm:$0xff]  }
 0x1a4   : > { %2826 = vmatprep.subr.bf16.mxu0 %v11802_v30  ;;  %3212 = vmatprep.subr.bf16.mxu1 %v11805_v31  ;;  %v11844_v30 = vld [vmem:[%s13670_s15 + $0x120] ss:$16 sps:$4 sm:$0xff]   ;;  %v11851_v31 = vld [vmem:[%s13670_s15 + $0x144] ss:$16 sps:$4 sm:$0xff]  }
 0x1a5   : > { %2678 = vmatmul.mubr.bf16.gmra.mrb[8].mxu0 %v11781_v32  ;;  %3064 = vmatmul.mubr.bf16.gmra.mrb[8].mxu1 %v11781_v32  ;;  %v11853_v32 = vld [vmem:[%s13670_s15 + $0x140] ss:$16 sps:$4 sm:$0xff]  }
 0x1a6   : > { %2687 = vmatprep.mubr.bf16.mxu0 %v11788_v33  ;;  %3073 = vmatprep.mubr.bf16.mxu1 %v11788_v33  ;;  %v11860_v33 = vld [vmem:[%s13670_s15 + $0x164] ss:$16 sps:$4 sm:$0xff]  }
 0x1a7   : > { %2827 = vmatpush1.bf16.msra.mxu0 %v11800_v34  ;;  %3213 = vmatpush1.bf16.msra.mxu1 %v11803_v35  ;;  %v11862_v34 = vld [vmem:[%s13670_s15 + $0x160] ss:$16 sps:$4 sm:$0xff]   ;;  %v11869_v35 = vld [vmem:[%s13670_s15 + $0x184] ss:$16 sps:$4 sm:$0xff]  }
 0x1a8   : > { %2828 = vmatprep.subr.bf16.mxu0 %v11811_v36  ;;  %3214 = vmatprep.subr.bf16.mxu1 %v11814_v37  ;;  %v11871_v36 = vld [vmem:[%s13670_s15 + $0x180] ss:$16 sps:$4 sm:$0xff]   ;;  %v11878_v37 = vld [vmem:[%s13670_s15 + $0x1a4] ss:$16 sps:$4 sm:$0xff]  }
 0x1ab   : > { %2829 = vmatpush1.bf16.msra.mxu0 %v11809_v38  ;;  %3215 = vmatpush1.bf16.msra.mxu1 %v11812_v39  ;;  %v11880_v38 = vld [vmem:[%s13670_s15 + $0x1a0] ss:$16 sps:$4 sm:$0xff]   ;;  %v11887_v39 = vld [vmem:[%s13670_s15 + $0x1c4] ss:$16 sps:$4 sm:$0xff]  }
 0x1ac   : > { %2830 = vmatprep.subr.bf16.mxu0 %v11820_v40  ;;  %3216 = vmatprep.subr.bf16.mxu1 %v11823_v41  ;;  %v11889_v40 = vld [vmem:[%s13670_s15 + $0x1c0] ss:$16 sps:$4 sm:$0xff]   ;;  %v11896_v41 = vld [vmem:[%s13670_s15 + $0x1e4] ss:$16 sps:$4 sm:$0xff]  }
 0x1ad   : > { %2688 = vmatmul.mubr.bf16.gmra.mrb[12].mxu0 %v11790_v42  ;;  %3074 = vmatmul.mubr.bf16.gmra.mrb[12].mxu1 %v11790_v42  ;;  %v11898_v42 = vld [vmem:[%s13670_s15 + $0x1e0] ss:$16 sps:$4 sm:$0xff]  }
 0x1ae   : > { %2697 = vmatprep.mubr.bf16.mxu0 %v11797_v43  ;;  %3083 = vmatprep.mubr.bf16.mxu1 %v11797_v43  ;;  %v11907_v43 = vld [vmem:[%s13670_s15 + $0xc] ss:$16 sps:$4 sm:$0xff]  }
 0x1af   : > { %2831 = vmatpush1.bf16.msra.mxu0 %v11818_v44  ;;  %3217 = vmatpush1.bf16.msra.mxu1 %v11821_v45  ;;  %v11905_v44 = vld [vmem:[%s13670_s15 + $0x8] ss:$16 sps:$4 sm:$0xff]   ;;  %v11908_v45 = vld [vmem:[%s13672_s16 + $0x400] ss:$16 sps:$4 sm:$0xff]  }
 0x1b0   : > { %2832 = vmatprep.subr.bf16.mxu0 %v11829_v46  ;;  %3218 = vmatprep.subr.bf16.mxu1 %v11832_v47  ;;  %v11911_v46 = vld [vmem:[%s13672_s16 + $0x408] ss:$16 sps:$4 sm:$0xff]   ;;  %v11914_v47 = vld [vmem:[%s13670_s15 + $0x2c] ss:$16 sps:$4 sm:$0xff]  }
 0x1b3   : > { %2833 = vmatpush1.bf16.msra.mxu0 %v11827_v48  ;;  %3219 = vmatpush1.bf16.msra.mxu1 %v11830_v49  ;;  %v11919_v48 = vld [vmem:[%s13672_s16 + $0x424] ss:$16 sps:$4 sm:$0xff]   ;;  %v11922_v49 = vld [vmem:[%s13672_s16 + $0x42c] ss:$16 sps:$4 sm:$0xff]  }
 0x1b4   : > { %2834 = vmatprep.subr.bf16.mxu0 %v11838_v50  ;;  %3220 = vmatprep.subr.bf16.mxu1 %v11841_v51  ;;  %v11917_v50 = vld [vmem:[%s13672_s16 + $0x420] ss:$16 sps:$4 sm:$0xff]   ;;  %v11920_v51 = vld [vmem:[%s13672_s16 + $0x428] ss:$16 sps:$4 sm:$0xff]  }
 0x1b5   : > { %2698 = vmatmul.mubr.bf16.gmra.mrb[16].mxu0 %v11799_v52  ;;  %3084 = vmatmul.mubr.bf16.gmra.mrb[16].mxu1 %v11799_v52  ;;  %v11928_v52 = vld [vmem:[%s13672_s16 + $0x444] ss:$16 sps:$4 sm:$0xff]  }
 0x1b6   : > { %2707 = vmatprep.mubr.bf16.mxu0 %v11806_v53  ;;  %3093 = vmatprep.mubr.bf16.mxu1 %v11806_v53  ;;  %v11916_v53 = vld [vmem:[%s13670_s15 + $0x28] ss:$16 sps:$4 sm:$0xff]  }
 0x1b7   : > { %2835 = vmatpush1.bf16.msra.mxu0 %v11836_v54  ;;  %3221 = vmatpush1.bf16.msra.mxu1 %v11839_v55  ;;  %v11931_v54 = vld [vmem:[%s13672_s16 + $0x44c] ss:$16 sps:$4 sm:$0xff]  }
 0x1b8   : > { %2836 = vmatprep.subr.bf16.mxu0 %v11847_v56  ;;  %3222 = vmatprep.subr.bf16.mxu1 %v11850_v57  ;;  %v11923_v55 = vld [vmem:[%s13670_s15 + $0x4c] ss:$16 sps:$4 sm:$0xff]   ;;  %v11926_v56 = vld [vmem:[%s13672_s16 + $0x440] ss:$16 sps:$4 sm:$0xff]   ;;  %v11929_v57 = vld [vmem:[%s13672_s16 + $0x448] ss:$16 sps:$4 sm:$0xff]  }
 0x1bb   : > { %2837 = vmatpush1.bf16.msra.mxu0 %v11845_v58  ;;  %3223 = vmatpush1.bf16.msra.mxu1 %v11848_v59  ;;  %v11937_v58 = vld [vmem:[%s13672_s16 + $0x464] ss:$16 sps:$4 sm:$0xff]   ;;  %v11940_v59 = vld [vmem:[%s13672_s16 + $0x46c] ss:$16 sps:$4 sm:$0xff]  }
 0x1bc   : > { %2838 = vmatprep.subr.bf16.mxu0 %v11856_v60  ;;  %3224 = vmatprep.subr.bf16.mxu1 %v11859_v61  ;;  %v11935_v60 = vld [vmem:[%s13672_s16 + $0x460] ss:$16 sps:$4 sm:$0xff]   ;;  %v11938_v61 = vld [vmem:[%s13672_s16 + $0x468] ss:$16 sps:$4 sm:$0xff]  }
 0x1bd   : > { %2708 = vmatmul.mubr.bf16.gmra.mrb[20].mxu0 %v11808_v62  ;;  %3094 = vmatmul.mubr.bf16.gmra.mrb[20].mxu1 %v11808_v62  ;;  %v11946_v62 = vld [vmem:[%s13672_s16 + $0x484] ss:$16 sps:$4 sm:$0xff]  }
 0x1be   : > { %2717 = vmatprep.mubr.bf16.mxu0 %v11815_v63  ;;  %3103 = vmatprep.mubr.bf16.mxu1 %v11815_v63  ;;  %v11949_v63 = vld [vmem:[%s13672_s16 + $0x48c] ss:$16 sps:$4 sm:$0xff]  }
 0x1bf   : > { %2839 = vmatpush1.bf16.msra.mxu0 %v11854_v0  ;;  %3225 = vmatpush1.bf16.msra.mxu1 %v11857_v1  ;;  %v11925_v0 = vld [vmem:[%s13670_s15 + $0x48] ss:$16 sps:$4 sm:$0xff]   ;;  %v11932_v1 = vld [vmem:[%s13670_s15 + $0x6c] ss:$16 sps:$4 sm:$0xff]  }
 0x1c0   : > { %2840 = vmatprep.subr.bf16.mxu0 %v11865_v2  ;;  %3226 = vmatprep.subr.bf16.mxu1 %v11868_v3  ;;  %v11944_v2 = vld [vmem:[%s13672_s16 + $0x480] ss:$16 sps:$4 sm:$0xff]   ;;  %v11947_v3 = vld [vmem:[%s13672_s16 + $0x488] ss:$16 sps:$4 sm:$0xff]  }
 0x1c3   : > { %2841 = vmatpush1.bf16.msra.mxu0 %v11863_v4  ;;  %3227 = vmatpush1.bf16.msra.mxu1 %v11866_v5  ;;  %v11955_v4 = vld [vmem:[%s13672_s16 + $0x4a4] ss:$16 sps:$4 sm:$0xff]   ;;  %v11958_v5 = vld [vmem:[%s13672_s16 + $0x4ac] ss:$16 sps:$4 sm:$0xff]  }
 0x1c4   : > { %2842 = vmatprep.subr.bf16.mxu0 %v11874_v6  ;;  %3228 = vmatprep.subr.bf16.mxu1 %v11877_v7  ;;  %v11953_v6 = vld [vmem:[%s13672_s16 + $0x4a0] ss:$16 sps:$4 sm:$0xff]   ;;  %v11956_v7 = vld [vmem:[%s13672_s16 + $0x4a8] ss:$16 sps:$4 sm:$0xff]  }
 0x1c5   : > { %2718 = vmatmul.mubr.bf16.gmra.mrb[24].mxu0 %v11817_v8  ;;  %3104 = vmatmul.mubr.bf16.gmra.mrb[24].mxu1 %v11817_v8  ;;  %v11964_v8 = vld [vmem:[%s13672_s16 + $0x4c4] ss:$16 sps:$4 sm:$0xff]  }
 0x1c6   : > { %2727 = vmatprep.mubr.bf16.mxu0 %v11824_v9  ;;  %3113 = vmatprep.mubr.bf16.mxu1 %v11824_v9  ;;  %v11967_v9 = vld [vmem:[%s13672_s16 + $0x4cc] ss:$16 sps:$4 sm:$0xff]  }
 0x1c7   : > { %2843 = vmatpush1.bf16.msra.mxu0 %v11872_v10  ;;  %3229 = vmatpush1.bf16.msra.mxu1 %v11875_v11  ;;  %v11934_v10 = vld [vmem:[%s13670_s15 + $0x68] ss:$16 sps:$4 sm:$0xff]   ;;  %v11941_v11 = vld [vmem:[%s13670_s15 + $0x8c] ss:$16 sps:$4 sm:$0xff]  }
 0x1c8   : > { %2844 = vmatprep.subr.bf16.mxu0 %v11883_v12  ;;  %3230 = vmatprep.subr.bf16.mxu1 %v11886_v13  ;;  %v11962_v12 = vld [vmem:[%s13672_s16 + $0x4c0] ss:$16 sps:$4 sm:$0xff]   ;;  %v11965_v13 = vld [vmem:[%s13672_s16 + $0x4c8] ss:$16 sps:$4 sm:$0xff]  }
 0x1cb   : > { %2845 = vmatpush1.bf16.msra.mxu0 %v11881_v14  ;;  %3231 = vmatpush1.bf16.msra.mxu1 %v11884_v15  ;;  %v11973_v14 = vld [vmem:[%s13672_s16 + $0x4e4] ss:$16 sps:$4 sm:$0xff]   ;;  %v11976_v15 = vld [vmem:[%s13672_s16 + $0x4ec] ss:$16 sps:$4 sm:$0xff]  }
 0x1cc   : > { %2846 = vmatprep.subr.bf16.mxu0 %v11892_v16  ;;  %3232 = vmatprep.subr.bf16.mxu1 %v11895_v17  ;;  %v11971_v16 = vld [vmem:[%s13672_s16 + $0x4e0] ss:$16 sps:$4 sm:$0xff]   ;;  %v11974_v17 = vld [vmem:[%s13672_s16 + $0x4e8] ss:$16 sps:$4 sm:$0xff]  }
 0x1cd   : > { %2728 = vmatmul.mubr.bf16.gmra.mrb[28].mxu0 %v11826_v18  ;;  %3114 = vmatmul.mubr.bf16.gmra.mrb[28].mxu1 %v11826_v18  ;;  %v11982_v18 = vld [vmem:[%s13672_s16 + $0x504] ss:$16 sps:$4 sm:$0xff]  }
 0x1ce   : > { %2737 = vmatprep.mubr.bf16.mxu0 %v11833_v19  ;;  %3123 = vmatprep.mubr.bf16.mxu1 %v11833_v19  ;;  %v11985_v19 = vld [vmem:[%s13672_s16 + $0x50c] ss:$16 sps:$4 sm:$0xff]  }
 0x1cf   : > { %2847 = vmatpush1.bf16.msra.mxu0 %v11890_v20  ;;  %3233 = vmatpush1.bf16.msra.mxu1 %v11893_v21  ;;  %v11943_v20 = vld [vmem:[%s13670_s15 + $0x88] ss:$16 sps:$4 sm:$0xff]   ;;  %v11950_v21 = vld [vmem:[%s13670_s15 + $0xac] ss:$16 sps:$4 sm:$0xff]  }
 0x1d0   : > { %2848 = vmatprep.subr.bf16.mxu0 %v11901_v22  ;;  %3234 = vmatprep.subr.bf16.mxu1 %v11904_v23  ;;  %v11980_v22 = vld [vmem:[%s13672_s16 + $0x500] ss:$16 sps:$4 sm:$0xff]   ;;  %v11983_v23 = vld [vmem:[%s13672_s16 + $0x508] ss:$16 sps:$4 sm:$0xff]  }
 0x1d3   : > { %2849 = vmatpush1.bf16.msra.mxu0 %v11899_v24  ;;  %3235 = vmatpush1.bf16.msra.mxu1 %v11902_v25  ;;  %v11991_v24 = vld [vmem:[%s13672_s16 + $0x524] ss:$16 sps:$4 sm:$0xff]   ;;  %v11994_v25 = vld [vmem:[%s13672_s16 + $0x52c] ss:$16 sps:$4 sm:$0xff]  }
 0x1d4   : > { %4934 = vmatprep.subr.bf16.mxu0 %v11910_v26  ;;  %5320 = vmatprep.subr.bf16.mxu1 %v11913_v27  ;;  %v11989_v26 = vld [vmem:[%s13672_s16 + $0x520] ss:$16 sps:$4 sm:$0xff]   ;;  %v11992_v27 = vld [vmem:[%s13672_s16 + $0x528] ss:$16 sps:$4 sm:$0xff]  }
 0x1d5   : > { %2738 = vmatmul.mubr.bf16.gmra.mrb[32].mxu0 %v11835_v28  ;;  %3124 = vmatmul.mubr.bf16.gmra.mrb[32].mxu1 %v11835_v28  ;;  %v12000_v28 = vld [vmem:[%s13672_s16 + $0x544] ss:$16 sps:$4 sm:$0xff]  }
 0x1d6   : > { %2747 = vmatprep.mubr.bf16.mxu0 %v11842_v29  ;;  %3133 = vmatprep.mubr.bf16.mxu1 %v11842_v29  ;;  %v12003_v29 = vld [vmem:[%s13672_s16 + $0x54c] ss:$16 sps:$4 sm:$0xff]  }
 0x1dd   : > { %2748 = vmatmul.mubr.bf16.gmra.mrb[36].mxu0 %v11844_v30  ;;  %3134 = vmatmul.mubr.bf16.gmra.mrb[36].mxu1 %v11844_v30  ;;  %v11952_v30 = vld [vmem:[%s13670_s15 + $0xa8] ss:$16 sps:$4 sm:$0xff]  }
 0x1de   : > { %2757 = vmatprep.mubr.bf16.mxu0 %v11851_v31  ;;  %3143 = vmatprep.mubr.bf16.mxu1 %v11851_v31  ;;  %v11959_v31 = vld [vmem:[%s13670_s15 + $0xcc] ss:$16 sps:$4 sm:$0xff]  }
 0x1e5   : > { %2758 = vmatmul.mubr.bf16.gmra.mrb[40].mxu0 %v11853_v32  ;;  %3144 = vmatmul.mubr.bf16.gmra.mrb[40].mxu1 %v11853_v32  ;;  %v11998_v32 = vld [vmem:[%s13672_s16 + $0x540] ss:$16 sps:$4 sm:$0xff]  }
 0x1e6   : > { %2767 = vmatprep.mubr.bf16.mxu0 %v11860_v33  ;;  %3153 = vmatprep.mubr.bf16.mxu1 %v11860_v33  ;;  %v12001_v33 = vld [vmem:[%s13672_s16 + $0x548] ss:$16 sps:$4 sm:$0xff]  }
 0x1ed   : > { %2768 = vmatmul.mubr.bf16.gmra.mrb[44].mxu0 %v11862_v34  ;;  %3154 = vmatmul.mubr.bf16.gmra.mrb[44].mxu1 %v11862_v34  ;;  %v12009_v34 = vld [vmem:[%s13672_s16 + $0x564] ss:$16 sps:$4 sm:$0xff]  }
 0x1ee   : > { %2777 = vmatprep.mubr.bf16.mxu0 %v11869_v35  ;;  %3163 = vmatprep.mubr.bf16.mxu1 %v11869_v35  ;;  %v12012_v35 = vld [vmem:[%s13672_s16 + $0x56c] ss:$16 sps:$4 sm:$0xff]  }
 0x1f5   : > { %2778 = vmatmul.mubr.bf16.gmra.mrb[48].mxu0 %v11871_v36  ;;  %3164 = vmatmul.mubr.bf16.gmra.mrb[48].mxu1 %v11871_v36  ;;  %v12007_v36 = vld [vmem:[%s13672_s16 + $0x560] ss:$16 sps:$4 sm:$0xff]  }
 0x1f6   : > { %2787 = vmatprep.mubr.bf16.mxu0 %v11878_v37  ;;  %3173 = vmatprep.mubr.bf16.mxu1 %v11878_v37  ;;  %v12010_v37 = vld [vmem:[%s13672_s16 + $0x568] ss:$16 sps:$4 sm:$0xff]  }
 0x1fd   : > { %2788 = vmatmul.mubr.bf16.gmra.mrb[52].mxu0 %v11880_v38  ;;  %3174 = vmatmul.mubr.bf16.gmra.mrb[52].mxu1 %v11880_v38  ;;  %v12018_v38 = vld [vmem:[%s13672_s16 + $0x584] ss:$16 sps:$4 sm:$0xff]  }
 0x1fe   : > { %2797 = vmatprep.mubr.bf16.mxu0 %v11887_v39  ;;  %3183 = vmatprep.mubr.bf16.mxu1 %v11887_v39  ;;  %v12021_v39 = vld [vmem:[%s13672_s16 + $0x58c] ss:$16 sps:$4 sm:$0xff]  }
 0x205   : > { %2798 = vmatmul.mubr.bf16.gmra.mrb[56].mxu0 %v11889_v40  ;;  %3184 = vmatmul.mubr.bf16.gmra.mrb[56].mxu1 %v11889_v40  ;;  %v11961_v40 = vld [vmem:[%s13670_s15 + $0xc8] ss:$16 sps:$4 sm:$0xff]  }
 0x206   : > { %2807 = vmatprep.mubr.bf16.mxu0 %v11896_v41  ;;  %3193 = vmatprep.mubr.bf16.mxu1 %v11896_v41  ;;  %v11968_v41 = vld [vmem:[%s13670_s15 + $0xec] ss:$16 sps:$4 sm:$0xff]  }
 0x20d   : > { %2808 = vmatmul.mubr.bf16.gmra.mrb[60].mxu0 %v11898_v42  ;;  %3194 = vmatmul.mubr.bf16.gmra.mrb[60].mxu1 %v11898_v42  ;;  %v12016_v42 = vld [vmem:[%s13672_s16 + $0x580] ss:$16 sps:$4 sm:$0xff]  }
 0x20e   : > { %2850 = vmatprep.mubr.bf16.mxu0 %v11907_v43  ;;  %3236 = vmatprep.mubr.bf16.mxu1 %v11907_v43  ;;  %v12019_v43 = vld [vmem:[%s13672_s16 + $0x588] ss:$16 sps:$4 sm:$0xff]  }
 0x215   : > { %2851 = vmatmul.mubr.bf16.vlgmr.msra.gmra.mrb[0].mxu0 %v11905_v44  ;;  %3237 = vmatmul.mubr.bf16.vlgmr.msra.gmra.mrb[0].mxu1 %v11905_v44  ;;  %v12027_v44 = vld [vmem:[%s13672_s16 + $0x5a4] ss:$16 sps:$4 sm:$0xff]  }
 0x216   : > { %4935 = vmatpush1.bf16.msra.mxu0 %v11908_v45  ;;  %5321 = vmatpush1.bf16.msra.mxu1 %v11911_v46  ;;  %v12030_v45 = vld [vmem:[%s13672_s16 + $0x5ac] ss:$16 sps:$4 sm:$0xff]   ;;  %v12025_v46 = vld [vmem:[%s13672_s16 + $0x5a0] ss:$16 sps:$4 sm:$0xff]  }
 0x217   : > { %2860 = vmatprep.mubr.bf16.mxu0 %v11914_v47  ;;  %3246 = vmatprep.mubr.bf16.mxu1 %v11914_v47  ;;  %v12028_v47 = vld [vmem:[%s13672_s16 + $0x5a8] ss:$16 sps:$4 sm:$0xff]  }
 0x218   : > { %4936 = vmatprep.subr.bf16.mxu0 %v11919_v48  ;;  %5322 = vmatprep.subr.bf16.mxu1 %v11922_v49  ;;  %v12036_v48 = vld [vmem:[%s13672_s16 + $0x5c4] ss:$16 sps:$4 sm:$0xff]   ;;  %v12039_v49 = vld [vmem:[%s13672_s16 + $0x5cc] ss:$16 sps:$4 sm:$0xff]  }
 0x21a   : > { %4937 = vmatpush1.bf16.msra.mxu0 %v11917_v50  ;;  %5323 = vmatpush1.bf16.msra.mxu1 %v11920_v51  ;;  %v11970_v50 = vld [vmem:[%s13670_s15 + $0xe8] ss:$16 sps:$4 sm:$0xff]   ;;  %v11977_v51 = vld [vmem:[%s13670_s15 + $0x10c] ss:$16 sps:$4 sm:$0xff]  }
 0x21b   : > { %4938 = vmatprep.subr.bf16.mxu0 %v11928_v52  ;;  %5324 = vmatprep.subr.bf16.mxu1 %v11931_v54  ;;  %v12034_v52 = vld [vmem:[%s13672_s16 + $0x5c0] ss:$16 sps:$4 sm:$0xff]   ;;  %v12045_v54 = vld [vmem:[%s13672_s16 + $0x5e4] ss:$16 sps:$4 sm:$0xff]  }
 0x21d   : > { %2861 = vmatmul.mubr.bf16.gmra.mrb[4].mxu0 %v11916_v53  ;;  %3247 = vmatmul.mubr.bf16.gmra.mrb[4].mxu1 %v11916_v53  ;;  %v12037_v53 = vld [vmem:[%s13672_s16 + $0x5c8] ss:$16 sps:$4 sm:$0xff]  }
 0x21e   : > { %2870 = vmatprep.mubr.bf16.mxu0 %v11923_v55  ;;  %3256 = vmatprep.mubr.bf16.mxu1 %v11923_v55  ;;  %v12048_v55 = vld [vmem:[%s13672_s16 + $0x5ec] ss:$16 sps:$4 sm:$0xff]  }
 0x21f   : > { %4939 = vmatpush1.bf16.msra.mxu0 %v11926_v56  ;;  %5325 = vmatpush1.bf16.msra.mxu1 %v11929_v57  ;;  %v12043_v56 = vld [vmem:[%s13672_s16 + $0x5e0] ss:$16 sps:$4 sm:$0xff]   ;;  %v12046_v57 = vld [vmem:[%s13672_s16 + $0x5e8] ss:$16 sps:$4 sm:$0xff]  }
 0x220   : > { %4940 = vmatprep.subr.bf16.mxu0 %v11937_v58  ;;  %5326 = vmatprep.subr.bf16.mxu1 %v11940_v59  ;;  %v12054_v58 = vld [vmem:[%s13672_s16 + $0x604] ss:$16 sps:$4 sm:$0xff]   ;;  %v12057_v59 = vld [vmem:[%s13672_s16 + $0x60c] ss:$16 sps:$4 sm:$0xff]  }
 0x223   : > { %4941 = vmatpush1.bf16.msra.mxu0 %v11935_v60  ;;  %5327 = vmatpush1.bf16.msra.mxu1 %v11938_v61  ;;  %v11979_v60 = vld [vmem:[%s13670_s15 + $0x108] ss:$16 sps:$4 sm:$0xff]   ;;  %v11986_v61 = vld [vmem:[%s13670_s15 + $0x12c] ss:$16 sps:$4 sm:$0xff]  }
 0x224   : > { %4942 = vmatprep.subr.bf16.mxu0 %v11946_v62  ;;  %5328 = vmatprep.subr.bf16.mxu1 %v11949_v63  ;;  %v11988_v62 = vld [vmem:[%s13670_s15 + $0x128] ss:$16 sps:$4 sm:$0xff]   ;;  %v11995_v63 = vld [vmem:[%s13670_s15 + $0x14c] ss:$16 sps:$4 sm:$0xff]  }
 0x225   : > { %2871 = vmatmul.mubr.bf16.gmra.mrb[8].mxu0 %v11925_v0  ;;  %3257 = vmatmul.mubr.bf16.gmra.mrb[8].mxu1 %v11925_v0  ;;  %v11997_v0 = vld [vmem:[%s13670_s15 + $0x148] ss:$16 sps:$4 sm:$0xff]  }
 0x226   : > { %2880 = vmatprep.mubr.bf16.mxu0 %v11932_v1  ;;  %3266 = vmatprep.mubr.bf16.mxu1 %v11932_v1  ;;  %v12004_v1 = vld [vmem:[%s13670_s15 + $0x16c] ss:$16 sps:$4 sm:$0xff]  }
 0x227   : > { %4943 = vmatpush1.bf16.msra.mxu0 %v11944_v2  ;;  %5329 = vmatpush1.bf16.msra.mxu1 %v11947_v3  ;;  %v12006_v2 = vld [vmem:[%s13670_s15 + $0x168] ss:$16 sps:$4 sm:$0xff]   ;;  %v12013_v3 = vld [vmem:[%s13670_s15 + $0x18c] ss:$16 sps:$4 sm:$0xff]  }
 0x228   : > { %4944 = vmatprep.subr.bf16.mxu0 %v11955_v4  ;;  %5330 = vmatprep.subr.bf16.mxu1 %v11958_v5  ;;  %v12015_v4 = vld [vmem:[%s13670_s15 + $0x188] ss:$16 sps:$4 sm:$0xff]   ;;  %v12022_v5 = vld [vmem:[%s13670_s15 + $0x1ac] ss:$16 sps:$4 sm:$0xff]  }
 0x22b   : > { %4945 = vmatpush1.bf16.msra.mxu0 %v11953_v6  ;;  %5331 = vmatpush1.bf16.msra.mxu1 %v11956_v7  ;;  %v12024_v6 = vld [vmem:[%s13670_s15 + $0x1a8] ss:$16 sps:$4 sm:$0xff]   ;;  %v12031_v7 = vld [vmem:[%s13670_s15 + $0x1cc] ss:$16 sps:$4 sm:$0xff]  }
 0x22c   : > { %4946 = vmatprep.subr.bf16.mxu0 %v11964_v8  ;;  %5332 = vmatprep.subr.bf16.mxu1 %v11967_v9  ;;  %v12033_v8 = vld [vmem:[%s13670_s15 + $0x1c8] ss:$16 sps:$4 sm:$0xff]   ;;  %v12040_v9 = vld [vmem:[%s13670_s15 + $0x1ec] ss:$16 sps:$4 sm:$0xff]  }
 0x22d   : > { %2881 = vmatmul.mubr.bf16.gmra.mrb[12].mxu0 %v11934_v10  ;;  %3267 = vmatmul.mubr.bf16.gmra.mrb[12].mxu1 %v11934_v10  ;;  %v12042_v10 = vld [vmem:[%s13670_s15 + $0x1e8] ss:$16 sps:$4 sm:$0xff]  }
 0x22e   : > { %2890 = vmatprep.mubr.bf16.mxu0 %v11941_v11  ;;  %3276 = vmatprep.mubr.bf16.mxu1 %v11941_v11  ;;  %v12051_v11 = vld [vmem:[%s13670_s15 + $0x24] ss:$16 sps:$4 sm:$0xff]  }
 0x22f   : > { %4947 = vmatpush1.bf16.msra.mxu0 %v11962_v12  ;;  %5333 = vmatpush1.bf16.msra.mxu1 %v11965_v13  ;;  %v12049_v12 = vld [vmem:[%s13670_s15 + $0x20] ss:$16 sps:$4 sm:$0xff]  }
 0x230   : > { %4948 = vmatprep.subr.bf16.mxu0 %v11973_v14  ;;  %5334 = vmatprep.subr.bf16.mxu1 %v11976_v15  ;;  %v12052_v13 = vld [vmem:[%s13672_s16 + $0x600] ss:$16 sps:$4 sm:$0xff]   ;;  %v12055_v14 = vld [vmem:[%s13672_s16 + $0x608] ss:$16 sps:$4 sm:$0xff]   ;;  %v12058_v15 = vld [vmem:[%s13670_s15 + $0x44] ss:$16 sps:$4 sm:$0xff]  }
 0x233   : > { %4949 = vmatpush1.bf16.msra.mxu0 %v11971_v16  ;;  %5335 = vmatpush1.bf16.msra.mxu1 %v11974_v17  ;;  %v12063_v16 = vld [vmem:[%s13672_s16 + $0x624] ss:$16 sps:$4 sm:$0xff]   ;;  %v12066_v17 = vld [vmem:[%s13672_s16 + $0x62c] ss:$16 sps:$4 sm:$0xff]  }
 0x234   : > { %4950 = vmatprep.subr.bf16.mxu0 %v11982_v18  ;;  %5336 = vmatprep.subr.bf16.mxu1 %v11985_v19  ;;  %v12061_v18 = vld [vmem:[%s13672_s16 + $0x620] ss:$16 sps:$4 sm:$0xff]   ;;  %v12064_v19 = vld [vmem:[%s13672_s16 + $0x628] ss:$16 sps:$4 sm:$0xff]  }
 0x235   : > { %2891 = vmatmul.mubr.bf16.gmra.mrb[16].mxu0 %v11943_v20  ;;  %3277 = vmatmul.mubr.bf16.gmra.mrb[16].mxu1 %v11943_v20  ;;  %v12072_v20 = vld [vmem:[%s13672_s16 + $0x644] ss:$16 sps:$4 sm:$0xff]  }
 0x236   : > { %2900 = vmatprep.mubr.bf16.mxu0 %v11950_v21  ;;  %3286 = vmatprep.mubr.bf16.mxu1 %v11950_v21  ;;  %v12075_v21 = vld [vmem:[%s13672_s16 + $0x64c] ss:$16 sps:$4 sm:$0xff]  }
 0x237   : > { %4951 = vmatpush1.bf16.msra.mxu0 %v11980_v22  ;;  %5337 = vmatpush1.bf16.msra.mxu1 %v11983_v23  ;;  %v12060_v22 = vld [vmem:[%s13670_s15 + $0x40] ss:$16 sps:$4 sm:$0xff]   ;;  %v12067_v23 = vld [vmem:[%s13670_s15 + $0x64] ss:$16 sps:$4 sm:$0xff]  }
 0x238   : > { %4952 = vmatprep.subr.bf16.mxu0 %v11991_v24  ;;  %5338 = vmatprep.subr.bf16.mxu1 %v11994_v25  ;;  %v12070_v24 = vld [vmem:[%s13672_s16 + $0x640] ss:$16 sps:$4 sm:$0xff]   ;;  %v12073_v25 = vld [vmem:[%s13672_s16 + $0x648] ss:$16 sps:$4 sm:$0xff]  }
 0x23b   : > { %4953 = vmatpush1.bf16.msra.mxu0 %v11989_v26  ;;  %5339 = vmatpush1.bf16.msra.mxu1 %v11992_v27  ;;  %v12081_v26 = vld [vmem:[%s13672_s16 + $0x664] ss:$16 sps:$4 sm:$0xff]   ;;  %v12084_v27 = vld [vmem:[%s13672_s16 + $0x66c] ss:$16 sps:$4 sm:$0xff]  }
 0x23c   : > { %4954 = vmatprep.subr.bf16.mxu0 %v12000_v28  ;;  %5340 = vmatprep.subr.bf16.mxu1 %v12003_v29  ;;  %v12079_v28 = vld [vmem:[%s13672_s16 + $0x660] ss:$16 sps:$4 sm:$0xff]   ;;  %v12082_v29 = vld [vmem:[%s13672_s16 + $0x668] ss:$16 sps:$4 sm:$0xff]  }
 0x23d   : > { %2901 = vmatmul.mubr.bf16.gmra.mrb[20].mxu0 %v11952_v30  ;;  %3287 = vmatmul.mubr.bf16.gmra.mrb[20].mxu1 %v11952_v30  ;;  %v12090_v30 = vld [vmem:[%s13672_s16 + $0x684] ss:$16 sps:$4 sm:$0xff]  }
 0x23e   : > { %2910 = vmatprep.mubr.bf16.mxu0 %v11959_v31  ;;  %3296 = vmatprep.mubr.bf16.mxu1 %v11959_v31  ;;  %v12093_v31 = vld [vmem:[%s13672_s16 + $0x68c] ss:$16 sps:$4 sm:$0xff]  }
 0x23f   : > { %4955 = vmatpush1.bf16.msra.mxu0 %v11998_v32  ;;  %5341 = vmatpush1.bf16.msra.mxu1 %v12001_v33  ;;  %v12069_v32 = vld [vmem:[%s13670_s15 + $0x60] ss:$16 sps:$4 sm:$0xff]   ;;  %v12076_v33 = vld [vmem:[%s13670_s15 + $0x84] ss:$16 sps:$4 sm:$0xff]  }
 0x240   : > { %4956 = vmatprep.subr.bf16.mxu0 %v12009_v34  ;;  %5342 = vmatprep.subr.bf16.mxu1 %v12012_v35  ;;  %v12088_v34 = vld [vmem:[%s13672_s16 + $0x680] ss:$16 sps:$4 sm:$0xff]   ;;  %v12091_v35 = vld [vmem:[%s13672_s16 + $0x688] ss:$16 sps:$4 sm:$0xff]  }
 0x243   : > { %4957 = vmatpush1.bf16.msra.mxu0 %v12007_v36  ;;  %5343 = vmatpush1.bf16.msra.mxu1 %v12010_v37  ;;  %v12099_v36 = vld [vmem:[%s13672_s16 + $0x6a4] ss:$16 sps:$4 sm:$0xff]   ;;  %v12102_v37 = vld [vmem:[%s13672_s16 + $0x6ac] ss:$16 sps:$4 sm:$0xff]  }
 0x244   : > { %4958 = vmatprep.subr.bf16.mxu0 %v12018_v38  ;;  %5344 = vmatprep.subr.bf16.mxu1 %v12021_v39  ;;  %v12097_v38 = vld [vmem:[%s13672_s16 + $0x6a0] ss:$16 sps:$4 sm:$0xff]   ;;  %v12100_v39 = vld [vmem:[%s13672_s16 + $0x6a8] ss:$16 sps:$4 sm:$0xff]  }
 0x245   : > { %2911 = vmatmul.mubr.bf16.gmra.mrb[24].mxu0 %v11961_v40  ;;  %3297 = vmatmul.mubr.bf16.gmra.mrb[24].mxu1 %v11961_v40  ;;  %v12108_v40 = vld [vmem:[%s13672_s16 + $0x6c4] ss:$16 sps:$4 sm:$0xff]  }
 0x246   : > { %2920 = vmatprep.mubr.bf16.mxu0 %v11968_v41  ;;  %3306 = vmatprep.mubr.bf16.mxu1 %v11968_v41  ;;  %v12111_v41 = vld [vmem:[%s13672_s16 + $0x6cc] ss:$16 sps:$4 sm:$0xff]  }
 0x247   : > { %4959 = vmatpush1.bf16.msra.mxu0 %v12016_v42  ;;  %5345 = vmatpush1.bf16.msra.mxu1 %v12019_v43  ;;  %v12078_v42 = vld [vmem:[%s13670_s15 + $0x80] ss:$16 sps:$4 sm:$0xff]   ;;  %v12085_v43 = vld [vmem:[%s13670_s15 + $0xa4] ss:$16 sps:$4 sm:$0xff]  }
 0x248   : > { %4960 = vmatprep.subr.bf16.mxu0 %v12027_v44  ;;  %5346 = vmatprep.subr.bf16.mxu1 %v12030_v45  ;;  %v12106_v44 = vld [vmem:[%s13672_s16 + $0x6c0] ss:$16 sps:$4 sm:$0xff]   ;;  %v12109_v45 = vld [vmem:[%s13672_s16 + $0x6c8] ss:$16 sps:$4 sm:$0xff]  }
 0x24b   : > { %4961 = vmatpush1.bf16.msra.mxu0 %v12025_v46  ;;  %5347 = vmatpush1.bf16.msra.mxu1 %v12028_v47  ;;  %v12117_v46 = vld [vmem:[%s13672_s16 + $0x6e4] ss:$16 sps:$4 sm:$0xff]   ;;  %v12120_v47 = vld [vmem:[%s13672_s16 + $0x6ec] ss:$16 sps:$4 sm:$0xff]  }
 0x24c   : > { %4962 = vmatprep.subr.bf16.mxu0 %v12036_v48  ;;  %5348 = vmatprep.subr.bf16.mxu1 %v12039_v49  ;;  %v12115_v48 = vld [vmem:[%s13672_s16 + $0x6e0] ss:$16 sps:$4 sm:$0xff]   ;;  %v12118_v49 = vld [vmem:[%s13672_s16 + $0x6e8] ss:$16 sps:$4 sm:$0xff]  }
 0x24d   : > { %2921 = vmatmul.mubr.bf16.gmra.mrb[28].mxu0 %v11970_v50  ;;  %3307 = vmatmul.mubr.bf16.gmra.mrb[28].mxu1 %v11970_v50  ;;  %v12126_v50 = vld [vmem:[%s13672_s16 + $0x704] ss:$16 sps:$4 sm:$0xff]  }
 0x24e   : > { %2930 = vmatprep.mubr.bf16.mxu0 %v11977_v51  ;;  %3316 = vmatprep.mubr.bf16.mxu1 %v11977_v51  ;;  %v12129_v51 = vld [vmem:[%s13672_s16 + $0x70c] ss:$16 sps:$4 sm:$0xff]  }
 0x24f   : > { %4963 = vmatpush1.bf16.msra.mxu0 %v12034_v52  ;;  %5349 = vmatpush1.bf16.msra.mxu1 %v12037_v53  ;;  %v12087_v52 = vld [vmem:[%s13670_s15 + $0xa0] ss:$16 sps:$4 sm:$0xff]   ;;  %v12094_v53 = vld [vmem:[%s13670_s15 + $0xc4] ss:$16 sps:$4 sm:$0xff]  }
 0x250   : > { %4964 = vmatprep.subr.bf16.mxu0 %v12045_v54  ;;  %5350 = vmatprep.subr.bf16.mxu1 %v12048_v55  ;;  %v12124_v54 = vld [vmem:[%s13672_s16 + $0x700] ss:$16 sps:$4 sm:$0xff]   ;;  %v12127_v55 = vld [vmem:[%s13672_s16 + $0x708] ss:$16 sps:$4 sm:$0xff]  }
 0x253   : > { %4965 = vmatpush1.bf16.msra.mxu0 %v12043_v56  ;;  %5351 = vmatpush1.bf16.msra.mxu1 %v12046_v57  ;;  %v12135_v56 = vld [vmem:[%s13672_s16 + $0x724] ss:$16 sps:$4 sm:$0xff]   ;;  %v12138_v57 = vld [vmem:[%s13672_s16 + $0x72c] ss:$16 sps:$4 sm:$0xff]  }
 0x254   : > { %5127 = vmatprep.subr.bf16.mxu0 %v12054_v58  ;;  %5513 = vmatprep.subr.bf16.mxu1 %v12057_v59  ;;  %v12133_v58 = vld [vmem:[%s13672_s16 + $0x720] ss:$16 sps:$4 sm:$0xff]   ;;  %v12136_v59 = vld [vmem:[%s13672_s16 + $0x728] ss:$16 sps:$4 sm:$0xff]  }
 0x255   : > { %2931 = vmatmul.mubr.bf16.gmra.mrb[32].mxu0 %v11979_v60  ;;  %3317 = vmatmul.mubr.bf16.gmra.mrb[32].mxu1 %v11979_v60  ;;  %v12144_v60 = vld [vmem:[%s13672_s16 + $0x744] ss:$16 sps:$4 sm:$0xff]  }
 0x256   : > { %2940 = vmatprep.mubr.bf16.mxu0 %v11986_v61  ;;  %3326 = vmatprep.mubr.bf16.mxu1 %v11986_v61  ;;  %v12147_v61 = vld [vmem:[%s13672_s16 + $0x74c] ss:$16 sps:$4 sm:$0xff]  }
 0x25d   : > { %2941 = vmatmul.mubr.bf16.gmra.mrb[36].mxu0 %v11988_v62  ;;  %3327 = vmatmul.mubr.bf16.gmra.mrb[36].mxu1 %v11988_v62  ;;  %v12096_v62 = vld [vmem:[%s13670_s15 + $0xc0] ss:$16 sps:$4 sm:$0xff]  }
 0x25e   : > { %2950 = vmatprep.mubr.bf16.mxu0 %v11995_v63  ;;  %3336 = vmatprep.mubr.bf16.mxu1 %v11995_v63  ;;  %v12103_v63 = vld [vmem:[%s13670_s15 + $0xe4] ss:$16 sps:$4 sm:$0xff]  }
 0x265   : > { %2951 = vmatmul.mubr.bf16.gmra.mrb[40].mxu0 %v11997_v0  ;;  %3337 = vmatmul.mubr.bf16.gmra.mrb[40].mxu1 %v11997_v0  ;;  %v12142_v0 = vld [vmem:[%s13672_s16 + $0x740] ss:$16 sps:$4 sm:$0xff]  }
 0x266   : > { %2960 = vmatprep.mubr.bf16.mxu0 %v12004_v1  ;;  %3346 = vmatprep.mubr.bf16.mxu1 %v12004_v1  ;;  %v12145_v1 = vld [vmem:[%s13672_s16 + $0x748] ss:$16 sps:$4 sm:$0xff]  }
 0x26d   : > { %2961 = vmatmul.mubr.bf16.gmra.mrb[44].mxu0 %v12006_v2  ;;  %3347 = vmatmul.mubr.bf16.gmra.mrb[44].mxu1 %v12006_v2  ;;  %v12153_v2 = vld [vmem:[%s13672_s16 + $0x764] ss:$16 sps:$4 sm:$0xff]  }
 0x26e   : > { %2970 = vmatprep.mubr.bf16.mxu0 %v12013_v3  ;;  %3356 = vmatprep.mubr.bf16.mxu1 %v12013_v3  ;;  %v12156_v3 = vld [vmem:[%s13672_s16 + $0x76c] ss:$16 sps:$4 sm:$0xff]  }
 0x275   : > { %2971 = vmatmul.mubr.bf16.gmra.mrb[48].mxu0 %v12015_v4  ;;  %3357 = vmatmul.mubr.bf16.gmra.mrb[48].mxu1 %v12015_v4  ;;  %v12151_v4 = vld [vmem:[%s13672_s16 + $0x760] ss:$16 sps:$4 sm:$0xff]  }
 0x276   : > { %2980 = vmatprep.mubr.bf16.mxu0 %v12022_v5  ;;  %3366 = vmatprep.mubr.bf16.mxu1 %v12022_v5  ;;  %v12154_v5 = vld [vmem:[%s13672_s16 + $0x768] ss:$16 sps:$4 sm:$0xff]  }
 0x27d   : > { %2981 = vmatmul.mubr.bf16.gmra.mrb[52].mxu0 %v12024_v6  ;;  %3367 = vmatmul.mubr.bf16.gmra.mrb[52].mxu1 %v12024_v6  ;;  %v12162_v6 = vld [vmem:[%s13672_s16 + $0x784] ss:$16 sps:$4 sm:$0xff]  }
 0x27e   : > { %2990 = vmatprep.mubr.bf16.mxu0 %v12031_v7  ;;  %3376 = vmatprep.mubr.bf16.mxu1 %v12031_v7  ;;  %v12165_v7 = vld [vmem:[%s13672_s16 + $0x78c] ss:$16 sps:$4 sm:$0xff]  }
 0x285   : > { %2991 = vmatmul.mubr.bf16.gmra.mrb[56].mxu0 %v12033_v8  ;;  %3377 = vmatmul.mubr.bf16.gmra.mrb[56].mxu1 %v12033_v8  ;;  %v12105_v8 = vld [vmem:[%s13670_s15 + $0xe0] ss:$16 sps:$4 sm:$0xff]  }
 0x286   : > { %3000 = vmatprep.mubr.bf16.mxu0 %v12040_v9  ;;  %3386 = vmatprep.mubr.bf16.mxu1 %v12040_v9  ;;  %v12112_v9 = vld [vmem:[%s13670_s15 + $0x104] ss:$16 sps:$4 sm:$0xff]  }
 0x28d   : > { %3001 = vmatmul.mubr.bf16.gmra.mrb[60].mxu0 %v12042_v10  ;;  %3387 = vmatmul.mubr.bf16.gmra.mrb[60].mxu1 %v12042_v10  ;;  %v12160_v10 = vld [vmem:[%s13672_s16 + $0x780] ss:$16 sps:$4 sm:$0xff]  }
 0x28e   : > { %4966 = vmatprep.mubr.bf16.mxu0 %v12051_v11  ;;  %5352 = vmatprep.mubr.bf16.mxu1 %v12051_v11  ;;  %v12163_v11 = vld [vmem:[%s13672_s16 + $0x788] ss:$16 sps:$4 sm:$0xff]  }
 0x295   : > { %4967 = vmatmul.mubr.bf16.vlgmr.msra.gmra.mrb[0].mxu0 %v12049_v12  ;;  %5353 = vmatmul.mubr.bf16.vlgmr.msra.gmra.mrb[0].mxu1 %v12049_v12  ;;  %v12171_v12 = vld [vmem:[%s13672_s16 + $0x7a4] ss:$16 sps:$4 sm:$0xff]  }
 0x296   : > { %5128 = vmatpush1.bf16.msra.mxu0 %v12052_v13  ;;  %5514 = vmatpush1.bf16.msra.mxu1 %v12055_v14  ;;  %v12174_v13 = vld [vmem:[%s13672_s16 + $0x7ac] ss:$16 sps:$4 sm:$0xff]   ;;  %v12169_v14 = vld [vmem:[%s13672_s16 + $0x7a0] ss:$16 sps:$4 sm:$0xff]  }
 0x297   : > { %4976 = vmatprep.mubr.bf16.mxu0 %v12058_v15  ;;  %5362 = vmatprep.mubr.bf16.mxu1 %v12058_v15  ;;  %v12172_v15 = vld [vmem:[%s13672_s16 + $0x7a8] ss:$16 sps:$4 sm:$0xff]  }
 0x298   : > { %5129 = vmatprep.subr.bf16.mxu0 %v12063_v16  ;;  %5515 = vmatprep.subr.bf16.mxu1 %v12066_v17  ;;  %v12180_v16 = vld [vmem:[%s13672_s16 + $0x7c4] ss:$16 sps:$4 sm:$0xff]   ;;  %v12183_v17 = vld [vmem:[%s13672_s16 + $0x7cc] ss:$16 sps:$4 sm:$0xff]  }
 0x29a   : > { %5130 = vmatpush1.bf16.msra.mxu0 %v12061_v18  ;;  %5516 = vmatpush1.bf16.msra.mxu1 %v12064_v19  ;;  %v12114_v18 = vld [vmem:[%s13670_s15 + $0x100] ss:$16 sps:$4 sm:$0xff]   ;;  %v12121_v19 = vld [vmem:[%s13670_s15 + $0x124] ss:$16 sps:$4 sm:$0xff]  }
 0x29b   : > { %5131 = vmatprep.subr.bf16.mxu0 %v12072_v20  ;;  %5517 = vmatprep.subr.bf16.mxu1 %v12075_v21  ;;  %v12178_v20 = vld [vmem:[%s13672_s16 + $0x7c0] ss:$16 sps:$4 sm:$0xff]   ;;  %v12181_v21 = vld [vmem:[%s13672_s16 + $0x7c8] ss:$16 sps:$4 sm:$0xff]  }
 0x29d   : > { %4977 = vmatmul.mubr.bf16.gmra.mrb[4].mxu0 %v12060_v22  ;;  %5363 = vmatmul.mubr.bf16.gmra.mrb[4].mxu1 %v12060_v22  ;;  %v12189_v22 = vld [vmem:[%s13672_s16 + $0x7e4] ss:$16 sps:$4 sm:$0xff]  }
 0x29e   : > { %4986 = vmatprep.mubr.bf16.mxu0 %v12067_v23  ;;  %5372 = vmatprep.mubr.bf16.mxu1 %v12067_v23  ;;  %v12192_v23 = vld [vmem:[%s13672_s16 + $0x7ec] ss:$16 sps:$4 sm:$0xff]  }
 0x29f   : > { %5132 = vmatpush1.bf16.msra.mxu0 %v12070_v24  ;;  %5518 = vmatpush1.bf16.msra.mxu1 %v12073_v25  ;;  %v12187_v24 = vld [vmem:[%s13672_s16 + $0x7e0] ss:$16 sps:$4 sm:$0xff]   ;;  %v12190_v25 = vld [vmem:[%s13672_s16 + $0x7e8] ss:$16 sps:$4 sm:$0xff]  }
 0x2a0   : > { %5133 = vmatprep.subr.bf16.mxu0 %v12081_v26  ;;  %5519 = vmatprep.subr.bf16.mxu1 %v12084_v27  ;;  %v12198_v26 = vld [vmem:[%s13672_s16 + $0x804] ss:$16 sps:$4 sm:$0xff]   ;;  %v12201_v27 = vld [vmem:[%s13672_s16 + $0x80c] ss:$16 sps:$4 sm:$0xff]  }
 0x2a3   : > { %5134 = vmatpush1.bf16.msra.mxu0 %v12079_v28  ;;  %5520 = vmatpush1.bf16.msra.mxu1 %v12082_v29  ;;  %v12123_v28 = vld [vmem:[%s13670_s15 + $0x120] ss:$16 sps:$4 sm:$0xff]   ;;  %v12130_v29 = vld [vmem:[%s13670_s15 + $0x144] ss:$16 sps:$4 sm:$0xff]  }
 0x2a4   : > { %5135 = vmatprep.subr.bf16.mxu0 %v12090_v30  ;;  %5521 = vmatprep.subr.bf16.mxu1 %v12093_v31  ;;  %v12132_v30 = vld [vmem:[%s13670_s15 + $0x140] ss:$16 sps:$4 sm:$0xff]   ;;  %v12139_v31 = vld [vmem:[%s13670_s15 + $0x164] ss:$16 sps:$4 sm:$0xff]  }
 0x2a5   : > { %4987 = vmatmul.mubr.bf16.gmra.mrb[8].mxu0 %v12069_v32  ;;  %5373 = vmatmul.mubr.bf16.gmra.mrb[8].mxu1 %v12069_v32  ;;  %v12141_v32 = vld [vmem:[%s13670_s15 + $0x160] ss:$16 sps:$4 sm:$0xff]  }
 0x2a6   : > { %4996 = vmatprep.mubr.bf16.mxu0 %v12076_v33  ;;  %5382 = vmatprep.mubr.bf16.mxu1 %v12076_v33  ;;  %v12148_v33 = vld [vmem:[%s13670_s15 + $0x184] ss:$16 sps:$4 sm:$0xff]  }
 0x2a7   : > { %5136 = vmatpush1.bf16.msra.mxu0 %v12088_v34  ;;  %5522 = vmatpush1.bf16.msra.mxu1 %v12091_v35  ;;  %v12150_v34 = vld [vmem:[%s13670_s15 + $0x180] ss:$16 sps:$4 sm:$0xff]   ;;  %v12157_v35 = vld [vmem:[%s13670_s15 + $0x1a4] ss:$16 sps:$4 sm:$0xff]  }
 0x2a8   : > { %5137 = vmatprep.subr.bf16.mxu0 %v12099_v36  ;;  %5523 = vmatprep.subr.bf16.mxu1 %v12102_v37  ;;  %v12159_v36 = vld [vmem:[%s13670_s15 + $0x1a0] ss:$16 sps:$4 sm:$0xff]   ;;  %v12166_v37 = vld [vmem:[%s13670_s15 + $0x1c4] ss:$16 sps:$4 sm:$0xff]  }
 0x2ab   : > { %5138 = vmatpush1.bf16.msra.mxu0 %v12097_v38  ;;  %5524 = vmatpush1.bf16.msra.mxu1 %v12100_v39  ;;  %v12168_v38 = vld [vmem:[%s13670_s15 + $0x1c0] ss:$16 sps:$4 sm:$0xff]   ;;  %v12175_v39 = vld [vmem:[%s13670_s15 + $0x1e4] ss:$16 sps:$4 sm:$0xff]  }
 0x2ac   : > { %5139 = vmatprep.subr.bf16.mxu0 %v12108_v40  ;;  %5525 = vmatprep.subr.bf16.mxu1 %v12111_v41  ;;  %v12177_v40 = vld [vmem:[%s13670_s15 + $0x1e0] ss:$16 sps:$4 sm:$0xff]   ;;  %v12184_v41 = vld [vmem:[%s13670_s15 + $0x204] ss:$16 sps:$4 sm:$0xff]  }
 0x2ad   : > { %4997 = vmatmul.mubr.bf16.gmra.mrb[12].mxu0 %v12078_v42  ;;  %5383 = vmatmul.mubr.bf16.gmra.mrb[12].mxu1 %v12078_v42  ;;  %v12186_v42 = vld [vmem:[%s13670_s15 + $0x200] ss:$16 sps:$4 sm:$0xff]  }
 0x2ae   : > { %5006 = vmatprep.mubr.bf16.mxu0 %v12085_v43  ;;  %5392 = vmatprep.mubr.bf16.mxu1 %v12085_v43  ;;  %v12195_v43 = vld [vmem:[%s13670_s15 + $0x2c] ss:$16 sps:$4 sm:$0xff]  }
 0x2af   : > { %5140 = vmatpush1.bf16.msra.mxu0 %v12106_v44  ;;  %5526 = vmatpush1.bf16.msra.mxu1 %v12109_v45  ;;  %v12193_v44 = vld [vmem:[%s13670_s15 + $0x28] ss:$16 sps:$4 sm:$0xff]   ;;  %v12196_v45 = vld [vmem:[%s13672_s16 + $0x800] ss:$16 sps:$4 sm:$0xff]  }
 0x2b0   : > { %5141 = vmatprep.subr.bf16.mxu0 %v12117_v46  ;;  %5527 = vmatprep.subr.bf16.mxu1 %v12120_v47  ;;  %v12199_v46 = vld [vmem:[%s13672_s16 + $0x808] ss:$16 sps:$4 sm:$0xff]   ;;  %v12202_v47 = vld [vmem:[%s13670_s15 + $0x4c] ss:$16 sps:$4 sm:$0xff]  }
 0x2b3   : > { %5142 = vmatpush1.bf16.msra.mxu0 %v12115_v48  ;;  %5528 = vmatpush1.bf16.msra.mxu1 %v12118_v49  ;;  %v12207_v48 = vld [vmem:[%s13672_s16 + $0x824] ss:$16 sps:$4 sm:$0xff]   ;;  %v12210_v49 = vld [vmem:[%s13672_s16 + $0x82c] ss:$16 sps:$4 sm:$0xff]  }
 0x2b4   : > { %5143 = vmatprep.subr.bf16.mxu0 %v12126_v50  ;;  %5529 = vmatprep.subr.bf16.mxu1 %v12129_v51  ;;  %v12205_v50 = vld [vmem:[%s13672_s16 + $0x820] ss:$16 sps:$4 sm:$0xff]   ;;  %v12208_v51 = vld [vmem:[%s13672_s16 + $0x828] ss:$16 sps:$4 sm:$0xff]  }
 0x2b5   : > { %5007 = vmatmul.mubr.bf16.gmra.mrb[16].mxu0 %v12087_v52  ;;  %5393 = vmatmul.mubr.bf16.gmra.mrb[16].mxu1 %v12087_v52  ;;  %v12216_v52 = vld [vmem:[%s13672_s16 + $0x844] ss:$16 sps:$4 sm:$0xff]  }
 0x2b6   : > { %5016 = vmatprep.mubr.bf16.mxu0 %v12094_v53  ;;  %5402 = vmatprep.mubr.bf16.mxu1 %v12094_v53  ;;  %v12219_v53 = vld [vmem:[%s13672_s16 + $0x84c] ss:$16 sps:$4 sm:$0xff]  }
 0x2b7   : > { %5144 = vmatpush1.bf16.msra.mxu0 %v12124_v54  ;;  %5530 = vmatpush1.bf16.msra.mxu1 %v12127_v55  ;;  %v12204_v54 = vld [vmem:[%s13670_s15 + $0x48] ss:$16 sps:$4 sm:$0xff]   ;;  %v12211_v55 = vld [vmem:[%s13670_s15 + $0x6c] ss:$16 sps:$4 sm:$0xff]  }
 0x2b8   : > { %5145 = vmatprep.subr.bf16.mxu0 %v12135_v56  ;;  %5531 = vmatprep.subr.bf16.mxu1 %v12138_v57  ;;  %v12214_v56 = vld [vmem:[%s13672_s16 + $0x840] ss:$16 sps:$4 sm:$0xff]   ;;  %v12217_v57 = vld [vmem:[%s13672_s16 + $0x848] ss:$16 sps:$4 sm:$0xff]  }
 0x2bb   : > { %5146 = vmatpush1.bf16.msra.mxu0 %v12133_v58  ;;  %5532 = vmatpush1.bf16.msra.mxu1 %v12136_v59  ;;  %v12225_v58 = vld [vmem:[%s13672_s16 + $0x864] ss:$16 sps:$4 sm:$0xff]   ;;  %v12228_v59 = vld [vmem:[%s13672_s16 + $0x86c] ss:$16 sps:$4 sm:$0xff]  }
 0x2bc   : > { %5147 = vmatprep.subr.bf16.mxu0 %v12144_v60  ;;  %5533 = vmatprep.subr.bf16.mxu1 %v12147_v61  ;;  %v12223_v60 = vld [vmem:[%s13672_s16 + $0x860] ss:$16 sps:$4 sm:$0xff]   ;;  %v12226_v61 = vld [vmem:[%s13672_s16 + $0x868] ss:$16 sps:$4 sm:$0xff]  }
 0x2bd   : > { %5017 = vmatmul.mubr.bf16.gmra.mrb[20].mxu0 %v12096_v62  ;;  %5403 = vmatmul.mubr.bf16.gmra.mrb[20].mxu1 %v12096_v62  ;;  %v12234_v62 = vld [vmem:[%s13672_s16 + $0x884] ss:$16 sps:$4 sm:$0xff]  }
 0x2be   : > { %5026 = vmatprep.mubr.bf16.mxu0 %v12103_v63  ;;  %5412 = vmatprep.mubr.bf16.mxu1 %v12103_v63  ;;  %v12237_v63 = vld [vmem:[%s13672_s16 + $0x88c] ss:$16 sps:$4 sm:$0xff]  }
 0x2bf   : > { %5148 = vmatpush1.bf16.msra.mxu0 %v12142_v0  ;;  %5534 = vmatpush1.bf16.msra.mxu1 %v12145_v1  ;;  %v12213_v0 = vld [vmem:[%s13670_s15 + $0x68] ss:$16 sps:$4 sm:$0xff]   ;;  %v12220_v1 = vld [vmem:[%s13670_s15 + $0x8c] ss:$16 sps:$4 sm:$0xff]  }
 0x2c0   : > { %5149 = vmatprep.subr.bf16.mxu0 %v12153_v2  ;;  %5535 = vmatprep.subr.bf16.mxu1 %v12156_v3  ;;  %v12232_v2 = vld [vmem:[%s13672_s16 + $0x880] ss:$16 sps:$4 sm:$0xff]   ;;  %v12235_v3 = vld [vmem:[%s13672_s16 + $0x888] ss:$16 sps:$4 sm:$0xff]  }
 0x2c3   : > { %5150 = vmatpush1.bf16.msra.mxu0 %v12151_v4  ;;  %5536 = vmatpush1.bf16.msra.mxu1 %v12154_v5  ;;  %v12243_v4 = vld [vmem:[%s13672_s16 + $0x8a4] ss:$16 sps:$4 sm:$0xff]   ;;  %v12246_v5 = vld [vmem:[%s13672_s16 + $0x8ac] ss:$16 sps:$4 sm:$0xff]  }
 0x2c4   : > { %5151 = vmatprep.subr.bf16.mxu0 %v12162_v6  ;;  %5537 = vmatprep.subr.bf16.mxu1 %v12165_v7  ;;  %v12241_v6 = vld [vmem:[%s13672_s16 + $0x8a0] ss:$16 sps:$4 sm:$0xff]   ;;  %v12244_v7 = vld [vmem:[%s13672_s16 + $0x8a8] ss:$16 sps:$4 sm:$0xff]  }
 0x2c5   : > { %5027 = vmatmul.mubr.bf16.gmra.mrb[24].mxu0 %v12105_v8  ;;  %5413 = vmatmul.mubr.bf16.gmra.mrb[24].mxu1 %v12105_v8  ;;  %v12252_v8 = vld [vmem:[%s13672_s16 + $0x8c4] ss:$16 sps:$4 sm:$0xff]  }
 0x2c6   : > { %5036 = vmatprep.mubr.bf16.mxu0 %v12112_v9  ;;  %5422 = vmatprep.mubr.bf16.mxu1 %v12112_v9  ;;  %v12255_v9 = vld [vmem:[%s13672_s16 + $0x8cc] ss:$16 sps:$4 sm:$0xff]  }
 0x2c7   : > { %5152 = vmatpush1.bf16.msra.mxu0 %v12160_v10  ;;  %5538 = vmatpush1.bf16.msra.mxu1 %v12163_v11  ;;  %v12222_v10 = vld [vmem:[%s13670_s15 + $0x88] ss:$16 sps:$4 sm:$0xff]   ;;  %v12229_v11 = vld [vmem:[%s13670_s15 + $0xac] ss:$16 sps:$4 sm:$0xff]  }
 0x2c8   : > { %5153 = vmatprep.subr.bf16.mxu0 %v12171_v12  ;;  %5539 = vmatprep.subr.bf16.mxu1 %v12174_v13  ;;  %v12250_v12 = vld [vmem:[%s13672_s16 + $0x8c0] ss:$16 sps:$4 sm:$0xff]   ;;  %v12253_v13 = vld [vmem:[%s13672_s16 + $0x8c8] ss:$16 sps:$4 sm:$0xff]  }
 0x2cb   : > { %5154 = vmatpush1.bf16.msra.mxu0 %v12169_v14  ;;  %5540 = vmatpush1.bf16.msra.mxu1 %v12172_v15  ;;  %v12261_v14 = vld [vmem:[%s13672_s16 + $0x8e4] ss:$16 sps:$4 sm:$0xff]   ;;  %v12264_v15 = vld [vmem:[%s13672_s16 + $0x8ec] ss:$16 sps:$4 sm:$0xff]  }
 0x2cc   : > { %5155 = vmatprep.subr.bf16.mxu0 %v12180_v16  ;;  %5541 = vmatprep.subr.bf16.mxu1 %v12183_v17  ;;  %v12259_v16 = vld [vmem:[%s13672_s16 + $0x8e0] ss:$16 sps:$4 sm:$0xff]   ;;  %v12262_v17 = vld [vmem:[%s13672_s16 + $0x8e8] ss:$16 sps:$4 sm:$0xff]  }
 0x2cd   : > { %5037 = vmatmul.mubr.bf16.gmra.mrb[28].mxu0 %v12114_v18  ;;  %5423 = vmatmul.mubr.bf16.gmra.mrb[28].mxu1 %v12114_v18  ;;  %v12270_v18 = vld [vmem:[%s13672_s16 + $0x904] ss:$16 sps:$4 sm:$0xff]  }
 0x2ce   : > { %5046 = vmatprep.mubr.bf16.mxu0 %v12121_v19  ;;  %5432 = vmatprep.mubr.bf16.mxu1 %v12121_v19  ;;  %v12273_v19 = vld [vmem:[%s13672_s16 + $0x90c] ss:$16 sps:$4 sm:$0xff]  }
 0x2cf   : > { %5156 = vmatpush1.bf16.msra.mxu0 %v12178_v20  ;;  %5542 = vmatpush1.bf16.msra.mxu1 %v12181_v21  ;;  %v12231_v20 = vld [vmem:[%s13670_s15 + $0xa8] ss:$16 sps:$4 sm:$0xff]   ;;  %v12238_v21 = vld [vmem:[%s13670_s15 + $0xcc] ss:$16 sps:$4 sm:$0xff]  }
 0x2d0   : > { %5157 = vmatprep.subr.bf16.mxu0 %v12189_v22  ;;  %5543 = vmatprep.subr.bf16.mxu1 %v12192_v23  ;;  %v12268_v22 = vld [vmem:[%s13672_s16 + $0x900] ss:$16 sps:$4 sm:$0xff]   ;;  %v12271_v23 = vld [vmem:[%s13672_s16 + $0x908] ss:$16 sps:$4 sm:$0xff]  }
 0x2d3   : > { %5158 = vmatpush1.bf16.msra.mxu0 %v12187_v24  ;;  %5544 = vmatpush1.bf16.msra.mxu1 %v12190_v25  ;;  %v12279_v24 = vld [vmem:[%s13672_s16 + $0x924] ss:$16 sps:$4 sm:$0xff]   ;;  %v12282_v25 = vld [vmem:[%s13672_s16 + $0x92c] ss:$16 sps:$4 sm:$0xff]  }
 0x2d4   : > { %7243 = vmatprep.subr.bf16.mxu0 %v12198_v26  ;;  %7629 = vmatprep.subr.bf16.mxu1 %v12201_v27  ;;  %v12277_v26 = vld [vmem:[%s13672_s16 + $0x920] ss:$16 sps:$4 sm:$0xff]   ;;  %v12280_v27 = vld [vmem:[%s13672_s16 + $0x928] ss:$16 sps:$4 sm:$0xff]  }
 0x2d5   : > { %5047 = vmatmul.mubr.bf16.gmra.mrb[32].mxu0 %v12123_v28  ;;  %5433 = vmatmul.mubr.bf16.gmra.mrb[32].mxu1 %v12123_v28  ;;  %v12288_v28 = vld [vmem:[%s13672_s16 + $0x944] ss:$16 sps:$4 sm:$0xff]  }
 0x2d6   : > { %5056 = vmatprep.mubr.bf16.mxu0 %v12130_v29  ;;  %5442 = vmatprep.mubr.bf16.mxu1 %v12130_v29  ;;  %v12291_v29 = vld [vmem:[%s13672_s16 + $0x94c] ss:$16 sps:$4 sm:$0xff]  }
 0x2dd   : > { %5057 = vmatmul.mubr.bf16.gmra.mrb[36].mxu0 %v12132_v30  ;;  %5443 = vmatmul.mubr.bf16.gmra.mrb[36].mxu1 %v12132_v30  ;;  %v12240_v30 = vld [vmem:[%s13670_s15 + $0xc8] ss:$16 sps:$4 sm:$0xff]  }
 0x2de   : > { %5066 = vmatprep.mubr.bf16.mxu0 %v12139_v31  ;;  %5452 = vmatprep.mubr.bf16.mxu1 %v12139_v31  ;;  %v12247_v31 = vld [vmem:[%s13670_s15 + $0xec] ss:$16 sps:$4 sm:$0xff]  }
 0x2e5   : > { %5067 = vmatmul.mubr.bf16.gmra.mrb[40].mxu0 %v12141_v32  ;;  %5453 = vmatmul.mubr.bf16.gmra.mrb[40].mxu1 %v12141_v32  ;;  %v12286_v32 = vld [vmem:[%s13672_s16 + $0x940] ss:$16 sps:$4 sm:$0xff]  }
 0x2e6   : > { %5076 = vmatprep.mubr.bf16.mxu0 %v12148_v33  ;;  %5462 = vmatprep.mubr.bf16.mxu1 %v12148_v33  ;;  %v12289_v33 = vld [vmem:[%s13672_s16 + $0x948] ss:$16 sps:$4 sm:$0xff]  }
 0x2ed   : > { %5077 = vmatmul.mubr.bf16.gmra.mrb[44].mxu0 %v12150_v34  ;;  %5463 = vmatmul.mubr.bf16.gmra.mrb[44].mxu1 %v12150_v34  ;;  %v12297_v34 = vld [vmem:[%s13672_s16 + $0x964] ss:$16 sps:$4 sm:$0xff]  }
 0x2ee   : > { %5086 = vmatprep.mubr.bf16.mxu0 %v12157_v35  ;;  %5472 = vmatprep.mubr.bf16.mxu1 %v12157_v35  ;;  %v12300_v35 = vld [vmem:[%s13672_s16 + $0x96c] ss:$16 sps:$4 sm:$0xff]  }
 0x2f5   : > { %5087 = vmatmul.mubr.bf16.gmra.mrb[48].mxu0 %v12159_v36  ;;  %5473 = vmatmul.mubr.bf16.gmra.mrb[48].mxu1 %v12159_v36  ;;  %v12295_v36 = vld [vmem:[%s13672_s16 + $0x960] ss:$16 sps:$4 sm:$0xff]  }
 0x2f6   : > { %5096 = vmatprep.mubr.bf16.mxu0 %v12166_v37  ;;  %5482 = vmatprep.mubr.bf16.mxu1 %v12166_v37  ;;  %v12298_v37 = vld [vmem:[%s13672_s16 + $0x968] ss:$16 sps:$4 sm:$0xff]  }
 0x2fd   : > { %5097 = vmatmul.mubr.bf16.gmra.mrb[52].mxu0 %v12168_v38  ;;  %5483 = vmatmul.mubr.bf16.gmra.mrb[52].mxu1 %v12168_v38  ;;  %v12306_v38 = vld [vmem:[%s13672_s16 + $0x984] ss:$16 sps:$4 sm:$0xff]  }
 0x2fe   : > { %5106 = vmatprep.mubr.bf16.mxu0 %v12175_v39  ;;  %5492 = vmatprep.mubr.bf16.mxu1 %v12175_v39  ;;  %v12309_v39 = vld [vmem:[%s13672_s16 + $0x98c] ss:$16 sps:$4 sm:$0xff]  }
 0x305   : > { %5107 = vmatmul.mubr.bf16.gmra.mrb[56].mxu0 %v12177_v40  ;;  %5493 = vmatmul.mubr.bf16.gmra.mrb[56].mxu1 %v12177_v40  ;;  %v12249_v40 = vld [vmem:[%s13670_s15 + $0xe8] ss:$16 sps:$4 sm:$0xff]  }
 0x306   : > { %5116 = vmatprep.mubr.bf16.mxu0 %v12184_v41  ;;  %5502 = vmatprep.mubr.bf16.mxu1 %v12184_v41  ;;  %v12256_v41 = vld [vmem:[%s13670_s15 + $0x10c] ss:$16 sps:$4 sm:$0xff]  }
 0x30d   : > { %5117 = vmatmul.mubr.bf16.gmra.mrb[60].mxu0 %v12186_v42  ;;  %5503 = vmatmul.mubr.bf16.gmra.mrb[60].mxu1 %v12186_v42  ;;  %v12304_v42 = vld [vmem:[%s13672_s16 + $0x980] ss:$16 sps:$4 sm:$0xff]  }
 0x30e   : > { %5159 = vmatprep.mubr.bf16.mxu0 %v12195_v43  ;;  %5545 = vmatprep.mubr.bf16.mxu1 %v12195_v43  ;;  %v12307_v43 = vld [vmem:[%s13672_s16 + $0x988] ss:$16 sps:$4 sm:$0xff]  }
 0x315   : > { %5160 = vmatmul.mubr.bf16.vlgmr.msra.gmra.mrb[0].mxu0 %v12193_v44  ;;  %5546 = vmatmul.mubr.bf16.vlgmr.msra.gmra.mrb[0].mxu1 %v12193_v44  ;;  %v12315_v44 = vld [vmem:[%s13672_s16 + $0x9a4] ss:$16 sps:$4 sm:$0xff]  }
 0x316   : > { %7244 = vmatpush1.bf16.msra.mxu0 %v12196_v45  ;;  %7630 = vmatpush1.bf16.msra.mxu1 %v12199_v46  ;;  %v12318_v45 = vld [vmem:[%s13672_s16 + $0x9ac] ss:$16 sps:$4 sm:$0xff]   ;;  %v12313_v46 = vld [vmem:[%s13672_s16 + $0x9a0] ss:$16 sps:$4 sm:$0xff]  }
 0x317   : > { %5169 = vmatprep.mubr.bf16.mxu0 %v12202_v47  ;;  %5555 = vmatprep.mubr.bf16.mxu1 %v12202_v47  ;;  %v12316_v47 = vld [vmem:[%s13672_s16 + $0x9a8] ss:$16 sps:$4 sm:$0xff]  }
 0x318   : > { %7245 = vmatprep.subr.bf16.mxu0 %v12207_v48  ;;  %7631 = vmatprep.subr.bf16.mxu1 %v12210_v49  ;;  %v12324_v48 = vld [vmem:[%s13672_s16 + $0x9c4] ss:$16 sps:$4 sm:$0xff]   ;;  %v12327_v49 = vld [vmem:[%s13672_s16 + $0x9cc] ss:$16 sps:$4 sm:$0xff]  }
 0x31a   : > { %7246 = vmatpush1.bf16.msra.mxu0 %v12205_v50  ;;  %7632 = vmatpush1.bf16.msra.mxu1 %v12208_v51  ;;  %v12258_v50 = vld [vmem:[%s13670_s15 + $0x108] ss:$16 sps:$4 sm:$0xff]   ;;  %v12265_v51 = vld [vmem:[%s13670_s15 + $0x12c] ss:$16 sps:$4 sm:$0xff]  }
 0x31b   : > { %7247 = vmatprep.subr.bf16.mxu0 %v12216_v52  ;;  %7633 = vmatprep.subr.bf16.mxu1 %v12219_v53  ;;  %v12322_v52 = vld [vmem:[%s13672_s16 + $0x9c0] ss:$16 sps:$4 sm:$0xff]   ;;  %v12325_v53 = vld [vmem:[%s13672_s16 + $0x9c8] ss:$16 sps:$4 sm:$0xff]  }
 0x31d   : > { %5170 = vmatmul.mubr.bf16.gmra.mrb[4].mxu0 %v12204_v54  ;;  %5556 = vmatmul.mubr.bf16.gmra.mrb[4].mxu1 %v12204_v54  ;;  %v12333_v54 = vld [vmem:[%s13672_s16 + $0x9e4] ss:$16 sps:$4 sm:$0xff]  }
 0x31e   : > { %5179 = vmatprep.mubr.bf16.mxu0 %v12211_v55  ;;  %5565 = vmatprep.mubr.bf16.mxu1 %v12211_v55  ;;  %v12336_v55 = vld [vmem:[%s13672_s16 + $0x9ec] ss:$16 sps:$4 sm:$0xff]  }
 0x31f   : > { %7248 = vmatpush1.bf16.msra.mxu0 %v12214_v56  ;;  %7634 = vmatpush1.bf16.msra.mxu1 %v12217_v57  ;;  %v12331_v56 = vld [vmem:[%s13672_s16 + $0x9e0] ss:$16 sps:$4 sm:$0xff]   ;;  %v12334_v57 = vld [vmem:[%s13672_s16 + $0x9e8] ss:$16 sps:$4 sm:$0xff]  }
 0x320   : > { %7249 = vmatprep.subr.bf16.mxu0 %v12225_v58  ;;  %7635 = vmatprep.subr.bf16.mxu1 %v12228_v59  ;;  %v12342_v58 = vld [vmem:[%s13672_s16 + $0xa04] ss:$16 sps:$4 sm:$0xff]   ;;  %v12345_v59 = vld [vmem:[%s13672_s16 + $0xa0c] ss:$16 sps:$4 sm:$0xff]  }
 0x323   : > { %7250 = vmatpush1.bf16.msra.mxu0 %v12223_v60  ;;  %7636 = vmatpush1.bf16.msra.mxu1 %v12226_v61  ;;  %v12267_v60 = vld [vmem:[%s13670_s15 + $0x128] ss:$16 sps:$4 sm:$0xff]   ;;  %v12274_v61 = vld [vmem:[%s13670_s15 + $0x14c] ss:$16 sps:$4 sm:$0xff]  }
 0x324   : > { %7251 = vmatprep.subr.bf16.mxu0 %v12234_v62  ;;  %7637 = vmatprep.subr.bf16.mxu1 %v12237_v63  ;;  %v12276_v62 = vld [vmem:[%s13670_s15 + $0x148] ss:$16 sps:$4 sm:$0xff]   ;;  %v14242_v63 = vld [vmem:[%s13670_s15 + $0x16c] ss:$16 sps:$4 sm:$0xff]  }
 0x325   : > { %5180 = vmatmul.mubr.bf16.gmra.mrb[8].mxu0 %v12213_v0  ;;  %5566 = vmatmul.mubr.bf16.gmra.mrb[8].mxu1 %v12213_v0  ;;  %v14247_v0 = vld [vmem:[%s13670_s15 + $0x168] ss:$16 sps:$4 sm:$0xff]  }
 0x326   : > { %5189 = vmatprep.mubr.bf16.mxu0 %v12220_v1  ;;  %5575 = vmatprep.mubr.bf16.mxu1 %v12220_v1  ;;  %v14250_v1 = vld [vmem:[%s13670_s15 + $0x18c] ss:$16 sps:$4 sm:$0xff]  }
 0x327   : > { %7252 = vmatpush1.bf16.msra.mxu0 %v12232_v2  ;;  %7638 = vmatpush1.bf16.msra.mxu1 %v12235_v3  ;;  %v14257_v2 = vld [vmem:[%s13670_s15 + $0x188] ss:$16 sps:$4 sm:$0xff]   ;;  %v14260_v3 = vld [vmem:[%s13670_s15 + $0x1ac] ss:$16 sps:$4 sm:$0xff]  }
 0x328   : > { %7253 = vmatprep.subr.bf16.mxu0 %v12243_v4  ;;  %7639 = vmatprep.subr.bf16.mxu1 %v12246_v5  ;;  %v14267_v4 = vld [vmem:[%s13670_s15 + $0x1a8] ss:$16 sps:$4 sm:$0xff]   ;;  %v14270_v5 = vld [vmem:[%s13670_s15 + $0x1cc] ss:$16 sps:$4 sm:$0xff]  }
 0x32b   : > { %7254 = vmatpush1.bf16.msra.mxu0 %v12241_v6  ;;  %7640 = vmatpush1.bf16.msra.mxu1 %v12244_v7  ;;  %v14277_v6 = vld [vmem:[%s13670_s15 + $0x1c8] ss:$16 sps:$4 sm:$0xff]   ;;  %v14280_v7 = vld [vmem:[%s13670_s15 + $0x1ec] ss:$16 sps:$4 sm:$0xff]  }
 0x32c   : > { %7255 = vmatprep.subr.bf16.mxu0 %v12252_v8  ;;  %7641 = vmatprep.subr.bf16.mxu1 %v12255_v9  ;;  %v14287_v8 = vld [vmem:[%s13670_s15 + $0x1e8] ss:$16 sps:$4 sm:$0xff]   ;;  %v14290_v9 = vld [vmem:[%s13670_s15 + $0x20c] ss:$16 sps:$4 sm:$0xff]  }
 0x32d   : > { %5190 = vmatmul.mubr.bf16.gmra.mrb[12].mxu0 %v12222_v10  ;;  %5576 = vmatmul.mubr.bf16.gmra.mrb[12].mxu1 %v12222_v10  ;;  %v14297_v10 = vld [vmem:[%s13670_s15 + $0x208] ss:$16 sps:$4 sm:$0xff]  }
 0x32e   : > { %5199 = vmatprep.mubr.bf16.mxu0 %v12229_v11  ;;  %5585 = vmatprep.mubr.bf16.mxu1 %v12229_v11  ;;  %v12339_v11 = vld [vmem:[%s13670_s15 + $0x44] ss:$16 sps:$4 sm:$0xff]  }
 0x32f   : > { %7256 = vmatpush1.bf16.msra.mxu0 %v12250_v12  ;;  %7642 = vmatpush1.bf16.msra.mxu1 %v12253_v13  ;;  %v12337_v12 = vld [vmem:[%s13670_s15 + $0x40] ss:$16 sps:$4 sm:$0xff]  }
 0x330   : > { %7257 = vmatprep.subr.bf16.mxu0 %v12261_v14  ;;  %7643 = vmatprep.subr.bf16.mxu1 %v12264_v15  ;;  %v12340_v13 = vld [vmem:[%s13672_s16 + $0xa00] ss:$16 sps:$4 sm:$0xff]   ;;  %v12343_v14 = vld [vmem:[%s13672_s16 + $0xa08] ss:$16 sps:$4 sm:$0xff]   ;;  %v12346_v15 = vld [vmem:[%s13670_s15 + $0x64] ss:$16 sps:$4 sm:$0xff]  }
 0x333   : > { %7258 = vmatpush1.bf16.msra.mxu0 %v12259_v16  ;;  %7644 = vmatpush1.bf16.msra.mxu1 %v12262_v17  ;;  %v12351_v16 = vld [vmem:[%s13672_s16 + $0xa24] ss:$16 sps:$4 sm:$0xff]   ;;  %v12354_v17 = vld [vmem:[%s13672_s16 + $0xa2c] ss:$16 sps:$4 sm:$0xff]  }
 0x334   : > { %7259 = vmatprep.subr.bf16.mxu0 %v12270_v18  ;;  %7645 = vmatprep.subr.bf16.mxu1 %v12273_v19  ;;  %v12349_v18 = vld [vmem:[%s13672_s16 + $0xa20] ss:$16 sps:$4 sm:$0xff]   ;;  %v12352_v19 = vld [vmem:[%s13672_s16 + $0xa28] ss:$16 sps:$4 sm:$0xff]  }
 0x335   : > { %5200 = vmatmul.mubr.bf16.gmra.mrb[16].mxu0 %v12231_v20  ;;  %5586 = vmatmul.mubr.bf16.gmra.mrb[16].mxu1 %v12231_v20  ;;  %v12360_v20 = vld [vmem:[%s13672_s16 + $0xa44] ss:$16 sps:$4 sm:$0xff]  }
 0x336   : > { %5209 = vmatprep.mubr.bf16.mxu0 %v12238_v21  ;;  %5595 = vmatprep.mubr.bf16.mxu1 %v12238_v21  ;;  %v12363_v21 = vld [vmem:[%s13672_s16 + $0xa4c] ss:$16 sps:$4 sm:$0xff]  }
 0x337   : > { %7260 = vmatpush1.bf16.msra.mxu0 %v12268_v22  ;;  %7646 = vmatpush1.bf16.msra.mxu1 %v12271_v23  ;;  %v12348_v22 = vld [vmem:[%s13670_s15 + $0x60] ss:$16 sps:$4 sm:$0xff]   ;;  %v12355_v23 = vld [vmem:[%s13670_s15 + $0x84] ss:$16 sps:$4 sm:$0xff]  }
 0x338   : > { %7261 = vmatprep.subr.bf16.mxu0 %v12279_v24  ;;  %7647 = vmatprep.subr.bf16.mxu1 %v12282_v25  ;;  %v12358_v24 = vld [vmem:[%s13672_s16 + $0xa40] ss:$16 sps:$4 sm:$0xff]   ;;  %v12361_v25 = vld [vmem:[%s13672_s16 + $0xa48] ss:$16 sps:$4 sm:$0xff]  }
 0x33b   : > { %7262 = vmatpush1.bf16.msra.mxu0 %v12277_v26  ;;  %7648 = vmatpush1.bf16.msra.mxu1 %v12280_v27  ;;  %v12369_v26 = vld [vmem:[%s13672_s16 + $0xa64] ss:$16 sps:$4 sm:$0xff]   ;;  %v12372_v27 = vld [vmem:[%s13672_s16 + $0xa6c] ss:$16 sps:$4 sm:$0xff]  }
 0x33c   : > { %7263 = vmatprep.subr.bf16.mxu0 %v12288_v28  ;;  %7649 = vmatprep.subr.bf16.mxu1 %v12291_v29  ;;  %v12367_v28 = vld [vmem:[%s13672_s16 + $0xa60] ss:$16 sps:$4 sm:$0xff]   ;;  %v12370_v29 = vld [vmem:[%s13672_s16 + $0xa68] ss:$16 sps:$4 sm:$0xff]  }
 0x33d   : > { %5210 = vmatmul.mubr.bf16.gmra.mrb[20].mxu0 %v12240_v30  ;;  %5596 = vmatmul.mubr.bf16.gmra.mrb[20].mxu1 %v12240_v30  ;;  %v12378_v30 = vld [vmem:[%s13672_s16 + $0xa84] ss:$16 sps:$4 sm:$0xff]  }
 0x33e   : > { %5219 = vmatprep.mubr.bf16.mxu0 %v12247_v31  ;;  %5605 = vmatprep.mubr.bf16.mxu1 %v12247_v31  ;;  %v12381_v31 = vld [vmem:[%s13672_s16 + $0xa8c] ss:$16 sps:$4 sm:$0xff]  }
 0x33f   : > { %7264 = vmatpush1.bf16.msra.mxu0 %v12286_v32  ;;  %7650 = vmatpush1.bf16.msra.mxu1 %v12289_v33  ;;  %v12357_v32 = vld [vmem:[%s13670_s15 + $0x80] ss:$16 sps:$4 sm:$0xff]   ;;  %v12364_v33 = vld [vmem:[%s13670_s15 + $0xa4] ss:$16 sps:$4 sm:$0xff]  }
 0x340   : > { %7265 = vmatprep.subr.bf16.mxu0 %v12297_v34  ;;  %7651 = vmatprep.subr.bf16.mxu1 %v12300_v35  ;;  %v12376_v34 = vld [vmem:[%s13672_s16 + $0xa80] ss:$16 sps:$4 sm:$0xff]   ;;  %v12379_v35 = vld [vmem:[%s13672_s16 + $0xa88] ss:$16 sps:$4 sm:$0xff]  }
 0x343   : > { %7266 = vmatpush1.bf16.msra.mxu0 %v12295_v36  ;;  %7652 = vmatpush1.bf16.msra.mxu1 %v12298_v37  ;;  %v12387_v36 = vld [vmem:[%s13672_s16 + $0xaa4] ss:$16 sps:$4 sm:$0xff]   ;;  %v12390_v37 = vld [vmem:[%s13672_s16 + $0xaac] ss:$16 sps:$4 sm:$0xff]  }
 0x344   : > { %7267 = vmatprep.subr.bf16.mxu0 %v12306_v38  ;;  %7653 = vmatprep.subr.bf16.mxu1 %v12309_v39  ;;  %v12385_v38 = vld [vmem:[%s13672_s16 + $0xaa0] ss:$16 sps:$4 sm:$0xff]   ;;  %v12388_v39 = vld [vmem:[%s13672_s16 + $0xaa8] ss:$16 sps:$4 sm:$0xff]  }
 0x345   : > { %5220 = vmatmul.mubr.bf16.gmra.mrb[24].mxu0 %v12249_v40  ;;  %5606 = vmatmul.mubr.bf16.gmra.mrb[24].mxu1 %v12249_v40  ;;  %v12396_v40 = vld [vmem:[%s13672_s16 + $0xac4] ss:$16 sps:$4 sm:$0xff]  }
 0x346   : > { %5229 = vmatprep.mubr.bf16.mxu0 %v12256_v41  ;;  %5615 = vmatprep.mubr.bf16.mxu1 %v12256_v41  ;;  %v12399_v41 = vld [vmem:[%s13672_s16 + $0xacc] ss:$16 sps:$4 sm:$0xff]  }
 0x347   : > { %7268 = vmatpush1.bf16.msra.mxu0 %v12304_v42  ;;  %7654 = vmatpush1.bf16.msra.mxu1 %v12307_v43  ;;  %v12366_v42 = vld [vmem:[%s13670_s15 + $0xa0] ss:$16 sps:$4 sm:$0xff]   ;;  %v12373_v43 = vld [vmem:[%s13670_s15 + $0xc4] ss:$16 sps:$4 sm:$0xff]  }
 0x348   : > { %7269 = vmatprep.subr.bf16.mxu0 %v12315_v44  ;;  %7655 = vmatprep.subr.bf16.mxu1 %v12318_v45  ;;  %v12394_v44 = vld [vmem:[%s13672_s16 + $0xac0] ss:$16 sps:$4 sm:$0xff]   ;;  %v12397_v45 = vld [vmem:[%s13672_s16 + $0xac8] ss:$16 sps:$4 sm:$0xff]  }
 0x34b   : > { %7270 = vmatpush1.bf16.msra.mxu0 %v12313_v46  ;;  %7656 = vmatpush1.bf16.msra.mxu1 %v12316_v47  ;;  %v12405_v46 = vld [vmem:[%s13672_s16 + $0xae4] ss:$16 sps:$4 sm:$0xff]   ;;  %v12408_v47 = vld [vmem:[%s13672_s16 + $0xaec] ss:$16 sps:$4 sm:$0xff]  }
 0x34c   : > { %7271 = vmatprep.subr.bf16.mxu0 %v12324_v48  ;;  %7657 = vmatprep.subr.bf16.mxu1 %v12327_v49  ;;  %v12403_v48 = vld [vmem:[%s13672_s16 + $0xae0] ss:$16 sps:$4 sm:$0xff]   ;;  %v12406_v49 = vld [vmem:[%s13672_s16 + $0xae8] ss:$16 sps:$4 sm:$0xff]  }
 0x34d   : > { %5230 = vmatmul.mubr.bf16.gmra.mrb[28].mxu0 %v12258_v50  ;;  %5616 = vmatmul.mubr.bf16.gmra.mrb[28].mxu1 %v12258_v50  ;;  %v12414_v50 = vld [vmem:[%s13672_s16 + $0xb04] ss:$16 sps:$4 sm:$0xff]  }
 0x34e   : > { %5239 = vmatprep.mubr.bf16.mxu0 %v12265_v51  ;;  %5625 = vmatprep.mubr.bf16.mxu1 %v12265_v51  ;;  %v12417_v51 = vld [vmem:[%s13672_s16 + $0xb0c] ss:$16 sps:$4 sm:$0xff]  }
 0x34f   : > { %7272 = vmatpush1.bf16.msra.mxu0 %v12322_v52  ;;  %7658 = vmatpush1.bf16.msra.mxu1 %v12325_v53  ;;  %v12375_v52 = vld [vmem:[%s13670_s15 + $0xc0] ss:$16 sps:$4 sm:$0xff]   ;;  %v12382_v53 = vld [vmem:[%s13670_s15 + $0xe4] ss:$16 sps:$4 sm:$0xff]  }
 0x350   : > { %7273 = vmatprep.subr.bf16.mxu0 %v12333_v54  ;;  %7659 = vmatprep.subr.bf16.mxu1 %v12336_v55  ;;  %v12412_v54 = vld [vmem:[%s13672_s16 + $0xb00] ss:$16 sps:$4 sm:$0xff]   ;;  %v12415_v55 = vld [vmem:[%s13672_s16 + $0xb08] ss:$16 sps:$4 sm:$0xff]  }
 0x353   : > { %7274 = vmatpush1.bf16.msra.mxu0 %v12331_v56  ;;  %7660 = vmatpush1.bf16.msra.mxu1 %v12334_v57  ;;  %v12423_v56 = vld [vmem:[%s13672_s16 + $0xb24] ss:$16 sps:$4 sm:$0xff]   ;;  %v12426_v57 = vld [vmem:[%s13672_s16 + $0xb2c] ss:$16 sps:$4 sm:$0xff]  }
 0x354   : > { %7436 = vmatprep.subr.bf16.mxu0 %v12342_v58  ;;  %7822 = vmatprep.subr.bf16.mxu1 %v12345_v59  ;;  %v12421_v58 = vld [vmem:[%s13672_s16 + $0xb20] ss:$16 sps:$4 sm:$0xff]   ;;  %v12424_v59 = vld [vmem:[%s13672_s16 + $0xb28] ss:$16 sps:$4 sm:$0xff]  }
 0x355   : > { %5240 = vmatmul.mubr.bf16.gmra.mrb[32].mxu0 %v12267_v60  ;;  %5626 = vmatmul.mubr.bf16.gmra.mrb[32].mxu1 %v12267_v60  ;;  %v12432_v60 = vld [vmem:[%s13672_s16 + $0xb44] ss:$16 sps:$4 sm:$0xff]  }
 0x356   : > { %5249 = vmatprep.mubr.bf16.mxu0 %v12274_v61  ;;  %5635 = vmatprep.mubr.bf16.mxu1 %v12274_v61  ;;  %v12435_v61 = vld [vmem:[%s13672_s16 + $0xb4c] ss:$16 sps:$4 sm:$0xff]  }
 0x35d   : > { %5250 = vmatmul.mubr.bf16.gmra.mrb[36].mxu0 %v12276_v62  ;;  %5636 = vmatmul.mubr.bf16.gmra.mrb[36].mxu1 %v12276_v62  ;;  %v12384_v62 = vld [vmem:[%s13670_s15 + $0xe0] ss:$16 sps:$4 sm:$0xff]  }
 0x35e   : > { %5259 = vmatprep.mubr.bf16.mxu0 %v14242_v63  ;;  %5645 = vmatprep.mubr.bf16.mxu1 %v14242_v63 }
 0x365   : > { %5260 = vmatmul.mubr.bf16.gmra.mrb[40].mxu0 %v14247_v0  ;;  %5646 = vmatmul.mubr.bf16.gmra.mrb[40].mxu1 %v14247_v0 }
 0x366   : > { %5269 = vmatprep.mubr.bf16.mxu0 %v14250_v1  ;;  %5655 = vmatprep.mubr.bf16.mxu1 %v14250_v1 }
 0x36d   : > { %5270 = vmatmul.mubr.bf16.gmra.mrb[44].mxu0 %v14257_v2  ;;  %5656 = vmatmul.mubr.bf16.gmra.mrb[44].mxu1 %v14257_v2 }
 0x36e   : > { %5279 = vmatprep.mubr.bf16.mxu0 %v14260_v3  ;;  %5665 = vmatprep.mubr.bf16.mxu1 %v14260_v3 }
 0x375   : > { %5280 = vmatmul.mubr.bf16.gmra.mrb[48].mxu0 %v14267_v4  ;;  %5666 = vmatmul.mubr.bf16.gmra.mrb[48].mxu1 %v14267_v4 }
 0x376   : > { %5289 = vmatprep.mubr.bf16.mxu0 %v14270_v5  ;;  %5675 = vmatprep.mubr.bf16.mxu1 %v14270_v5 }
 0x37d   : > { %5290 = vmatmul.mubr.bf16.gmra.mrb[52].mxu0 %v14277_v6  ;;  %5676 = vmatmul.mubr.bf16.gmra.mrb[52].mxu1 %v14277_v6 }
 0x37e   : > { %5299 = vmatprep.mubr.bf16.mxu0 %v14280_v7  ;;  %5685 = vmatprep.mubr.bf16.mxu1 %v14280_v7 }
 0x385   : > { %5300 = vmatmul.mubr.bf16.gmra.mrb[56].mxu0 %v14287_v8  ;;  %5686 = vmatmul.mubr.bf16.gmra.mrb[56].mxu1 %v14287_v8 }
 0x386   : > { %5309 = vmatprep.mubr.bf16.mxu0 %v14290_v9  ;;  %5695 = vmatprep.mubr.bf16.mxu1 %v14290_v9 }
 0x38d   : > { %5310 = vmatmul.mubr.bf16.gmra.mrb[60].mxu0 %v14297_v10  ;;  %5696 = vmatmul.mubr.bf16.gmra.mrb[60].mxu1 %v14297_v10 }
 0x38e   : > { %7275 = vmatprep.mubr.bf16.mxu0 %v12339_v11  ;;  %7661 = vmatprep.mubr.bf16.mxu1 %v12339_v11  ;;  %v12391_v11 = vld [vmem:[%s13670_s15 + $0x104] ss:$16 sps:$4 sm:$0xff]  }
 0x395   : > { %7276 = vmatmul.mubr.bf16.vlgmr.msra.gmra.mrb[0].mxu0 %v12337_v12  ;;  %7662 = vmatmul.mubr.bf16.vlgmr.msra.gmra.mrb[0].mxu1 %v12337_v12  ;;  %v12430_v12 = vld [vmem:[%s13672_s16 + $0xb40] ss:$16 sps:$4 sm:$0xff]  }
 0x396   : > { %7437 = vmatpush1.bf16.msra.mxu0 %v12340_v13  ;;  %7823 = vmatpush1.bf16.msra.mxu1 %v12343_v14  ;;  %v12433_v13 = vld [vmem:[%s13672_s16 + $0xb48] ss:$16 sps:$4 sm:$0xff]   ;;  %v12441_v14 = vld [vmem:[%s13672_s16 + $0xb64] ss:$16 sps:$4 sm:$0xff]  }
 0x397   : > { %7285 = vmatprep.mubr.bf16.mxu0 %v12346_v15  ;;  %7671 = vmatprep.mubr.bf16.mxu1 %v12346_v15  ;;  %v12444_v15 = vld [vmem:[%s13672_s16 + $0xb6c] ss:$16 sps:$4 sm:$0xff]  }
 0x398   : > { %7438 = vmatprep.subr.bf16.mxu0 %v12351_v16  ;;  %7824 = vmatprep.subr.bf16.mxu1 %v12354_v17  ;;  %v12439_v16 = vld [vmem:[%s13672_s16 + $0xb60] ss:$16 sps:$4 sm:$0xff]   ;;  %v12442_v17 = vld [vmem:[%s13672_s16 + $0xb68] ss:$16 sps:$4 sm:$0xff]  }
 0x39a   : > { %7439 = vmatpush1.bf16.msra.mxu0 %v12349_v18  ;;  %7825 = vmatpush1.bf16.msra.mxu1 %v12352_v19  ;;  %v12450_v18 = vld [vmem:[%s13672_s16 + $0xb84] ss:$16 sps:$4 sm:$0xff]   ;;  %v12453_v19 = vld [vmem:[%s13672_s16 + $0xb8c] ss:$16 sps:$4 sm:$0xff]  }
 0x39b   : > { %7440 = vmatprep.subr.bf16.mxu0 %v12360_v20  ;;  %7826 = vmatprep.subr.bf16.mxu1 %v12363_v21  ;;  %v12393_v20 = vld [vmem:[%s13670_s15 + $0x100] ss:$16 sps:$4 sm:$0xff]   ;;  %v12400_v21 = vld [vmem:[%s13670_s15 + $0x124] ss:$16 sps:$4 sm:$0xff]  }
 0x39d   : > { %7286 = vmatmul.mubr.bf16.gmra.mrb[4].mxu0 %v12348_v22  ;;  %7672 = vmatmul.mubr.bf16.gmra.mrb[4].mxu1 %v12348_v22  ;;  %v12448_v22 = vld [vmem:[%s13672_s16 + $0xb80] ss:$16 sps:$4 sm:$0xff]  }
 0x39e   : > { %7295 = vmatprep.mubr.bf16.mxu0 %v12355_v23  ;;  %7681 = vmatprep.mubr.bf16.mxu1 %v12355_v23  ;;  %v12451_v23 = vld [vmem:[%s13672_s16 + $0xb88] ss:$16 sps:$4 sm:$0xff]  }
 0x39f   : > { %7441 = vmatpush1.bf16.msra.mxu0 %v12358_v24  ;;  %7827 = vmatpush1.bf16.msra.mxu1 %v12361_v25  ;;  %v12459_v24 = vld [vmem:[%s13672_s16 + $0xba4] ss:$16 sps:$4 sm:$0xff]   ;;  %v12462_v25 = vld [vmem:[%s13672_s16 + $0xbac] ss:$16 sps:$4 sm:$0xff]  }
 0x3a0   : > { %7442 = vmatprep.subr.bf16.mxu0 %v12369_v26  ;;  %7828 = vmatprep.subr.bf16.mxu1 %v12372_v27  ;;  %v12457_v26 = vld [vmem:[%s13672_s16 + $0xba0] ss:$16 sps:$4 sm:$0xff]   ;;  %v12460_v27 = vld [vmem:[%s13672_s16 + $0xba8] ss:$16 sps:$4 sm:$0xff]  }
 0x3a3   : > { %7443 = vmatpush1.bf16.msra.mxu0 %v12367_v28  ;;  %7829 = vmatpush1.bf16.msra.mxu1 %v12370_v29  ;;  %v12468_v28 = vld [vmem:[%s13672_s16 + $0xbc4] ss:$16 sps:$4 sm:$0xff]   ;;  %v12471_v29 = vld [vmem:[%s13672_s16 + $0xbcc] ss:$16 sps:$4 sm:$0xff]  }
 0x3a4   : > { %7444 = vmatprep.subr.bf16.mxu0 %v12378_v30  ;;  %7830 = vmatprep.subr.bf16.mxu1 %v12381_v31  ;;  %v12402_v30 = vld [vmem:[%s13670_s15 + $0x120] ss:$16 sps:$4 sm:$0xff]   ;;  %v12409_v31 = vld [vmem:[%s13670_s15 + $0x144] ss:$16 sps:$4 sm:$0xff]  }
 0x3a5   : > { %7296 = vmatmul.mubr.bf16.gmra.mrb[8].mxu0 %v12357_v32  ;;  %7682 = vmatmul.mubr.bf16.gmra.mrb[8].mxu1 %v12357_v32  ;;  %v12466_v32 = vld [vmem:[%s13672_s16 + $0xbc0] ss:$16 sps:$4 sm:$0xff]  }
 0x3a6   : > { %7305 = vmatprep.mubr.bf16.mxu0 %v12364_v33  ;;  %7691 = vmatprep.mubr.bf16.mxu1 %v12364_v33  ;;  %v12469_v33 = vld [vmem:[%s13672_s16 + $0xbc8] ss:$16 sps:$4 sm:$0xff]  }
 0x3a7   : > { %7445 = vmatpush1.bf16.msra.mxu0 %v12376_v34  ;;  %7831 = vmatpush1.bf16.msra.mxu1 %v12379_v35  ;;  %v12477_v34 = vld [vmem:[%s13672_s16 + $0xbe4] ss:$16 sps:$4 sm:$0xff]   ;;  %v12480_v35 = vld [vmem:[%s13672_s16 + $0xbec] ss:$16 sps:$4 sm:$0xff]  }
 0x3a8   : > { %7446 = vmatprep.subr.bf16.mxu0 %v12387_v36  ;;  %7832 = vmatprep.subr.bf16.mxu1 %v12390_v37  ;;  %v12475_v36 = vld [vmem:[%s13672_s16 + $0xbe0] ss:$16 sps:$4 sm:$0xff]   ;;  %v12478_v37 = vld [vmem:[%s13672_s16 + $0xbe8] ss:$16 sps:$4 sm:$0xff]  }
 0x3ab   : > { %7447 = vmatpush1.bf16.msra.mxu0 %v12385_v38  ;;  %7833 = vmatpush1.bf16.msra.mxu1 %v12388_v39  ;;  %v12411_v38 = vld [vmem:[%s13670_s15 + $0x140] ss:$16 sps:$4 sm:$0xff]   ;;  %v12418_v39 = vld [vmem:[%s13670_s15 + $0x164] ss:$16 sps:$4 sm:$0xff]  }
 0x3ac   : > { %7448 = vmatprep.subr.bf16.mxu0 %v12396_v40  ;;  %7834 = vmatprep.subr.bf16.mxu1 %v12399_v41  ;;  %v12420_v40 = vld [vmem:[%s13670_s15 + $0x160] ss:$16 sps:$4 sm:$0xff]   ;;  %v12427_v41 = vld [vmem:[%s13670_s15 + $0x184] ss:$16 sps:$4 sm:$0xff]  }
 0x3ad   : > { %7306 = vmatmul.mubr.bf16.gmra.mrb[12].mxu0 %v12366_v42  ;;  %7692 = vmatmul.mubr.bf16.gmra.mrb[12].mxu1 %v12366_v42  ;;  %v12429_v42 = vld [vmem:[%s13670_s15 + $0x180] ss:$16 sps:$4 sm:$0xff]  }
 0x3ae   : > { %7315 = vmatprep.mubr.bf16.mxu0 %v12373_v43  ;;  %7701 = vmatprep.mubr.bf16.mxu1 %v12373_v43  ;;  %v12436_v43 = vld [vmem:[%s13670_s15 + $0x1a4] ss:$16 sps:$4 sm:$0xff]  }
 0x3af   : > { %7449 = vmatpush1.bf16.msra.mxu0 %v12394_v44  ;;  %7835 = vmatpush1.bf16.msra.mxu1 %v12397_v45  ;;  %v12438_v44 = vld [vmem:[%s13670_s15 + $0x1a0] ss:$16 sps:$4 sm:$0xff]   ;;  %v12445_v45 = vld [vmem:[%s13670_s15 + $0x1c4] ss:$16 sps:$4 sm:$0xff]  }
 0x3b0   : > { %7450 = vmatprep.subr.bf16.mxu0 %v12405_v46  ;;  %7836 = vmatprep.subr.bf16.mxu1 %v12408_v47  ;;  %v12447_v46 = vld [vmem:[%s13670_s15 + $0x1c0] ss:$16 sps:$4 sm:$0xff]   ;;  %v12454_v47 = vld [vmem:[%s13670_s15 + $0x1e4] ss:$16 sps:$4 sm:$0xff]  }
 0x3b3   : > { %7451 = vmatpush1.bf16.msra.mxu0 %v12403_v48  ;;  %7837 = vmatpush1.bf16.msra.mxu1 %v12406_v49  ;;  %v12456_v48 = vld [vmem:[%s13670_s15 + $0x1e0] ss:$16 sps:$4 sm:$0xff]   ;;  %v12463_v49 = vld [vmem:[%s13670_s15 + $0x204] ss:$16 sps:$4 sm:$0xff]  }
 0x3b4   : > { %7452 = vmatprep.subr.bf16.mxu0 %v12414_v50  ;;  %7838 = vmatprep.subr.bf16.mxu1 %v12417_v51  ;;  %v12465_v50 = vld [vmem:[%s13670_s15 + $0x200] ss:$16 sps:$4 sm:$0xff]   ;;  %v12472_v51 = vld [vmem:[%s13670_s15 + $0x224] ss:$16 sps:$4 sm:$0xff]  }
 0x3b5   : > { %7316 = vmatmul.mubr.bf16.gmra.mrb[16].mxu0 %v12375_v52  ;;  %7702 = vmatmul.mubr.bf16.gmra.mrb[16].mxu1 %v12375_v52  ;;  %v12474_v52 = vld [vmem:[%s13670_s15 + $0x220] ss:$16 sps:$4 sm:$0xff]  }
 0x3b6   : > { %7325 = vmatprep.mubr.bf16.mxu0 %v12382_v53  ;;  %7711 = vmatprep.mubr.bf16.mxu1 %v12382_v53  ;;  %v12483_v53 = vld [vmem:[%s13670_s15 + $0x4c] ss:$16 sps:$4 sm:$0xff]  }
 0x3b7   : > { %7453 = vmatpush1.bf16.msra.mxu0 %v12412_v54  ;;  %7839 = vmatpush1.bf16.msra.mxu1 %v12415_v55  ;;  %v12481_v54 = vld [vmem:[%s13670_s15 + $0x48] ss:$16 sps:$4 sm:$0xff]   ;;  %v12484_v55 = vld [vmem:[%s13670_s15 + $0x6c] ss:$16 sps:$4 sm:$0xff]  }
 0x3b8   : > { %7454 = vmatprep.subr.bf16.mxu0 %v12423_v56  ;;  %7840 = vmatprep.subr.bf16.mxu1 %v12426_v57  ;;  %v12486_v56 = vld [vmem:[%s13670_s15 + $0x68] ss:$16 sps:$4 sm:$0xff]   ;;  %v12487_v57 = vld [vmem:[%s13670_s15 + $0x8c] ss:$16 sps:$4 sm:$0xff]  }
 0x3bb   : > { %7455 = vmatpush1.bf16.msra.mxu0 %v12421_v58  ;;  %7841 = vmatpush1.bf16.msra.mxu1 %v12424_v59  ;;  %v12489_v58 = vld [vmem:[%s13670_s15 + $0x88] ss:$16 sps:$4 sm:$0xff]   ;;  %v12490_v59 = vld [vmem:[%s13670_s15 + $0xac] ss:$16 sps:$4 sm:$0xff]  }
 0x3bc   : > { %7456 = vmatprep.subr.bf16.mxu0 %v12432_v60  ;;  %7842 = vmatprep.subr.bf16.mxu1 %v12435_v61  ;;  %v12492_v60 = vld [vmem:[%s13670_s15 + $0xa8] ss:$16 sps:$4 sm:$0xff]   ;;  %v12493_v61 = vld [vmem:[%s13670_s15 + $0xcc] ss:$16 sps:$4 sm:$0xff]  }
 0x3bd   : > { %7326 = vmatmul.mubr.bf16.gmra.mrb[20].mxu0 %v12384_v62  ;;  %7712 = vmatmul.mubr.bf16.gmra.mrb[20].mxu1 %v12384_v62  ;;  %v12495_v62 = vld [vmem:[%s13670_s15 + $0xc8] ss:$16 sps:$4 sm:$0xff]  }
 0x3be   : > { %7335 = vmatprep.mubr.bf16.mxu0 %v12391_v11  ;;  %7721 = vmatprep.mubr.bf16.mxu1 %v12391_v11  ;;  %v12496_v11 = vld [vmem:[%s13670_s15 + $0xec] ss:$16 sps:$4 sm:$0xff]  }
 0x3bf   : > { %7457 = vmatpush1.bf16.msra.mxu0 %v12430_v12  ;;  %7843 = vmatpush1.bf16.msra.mxu1 %v12433_v13  ;;  %v12498_v12 = vld [vmem:[%s13670_s15 + $0xe8] ss:$16 sps:$4 sm:$0xff]   ;;  %v12499_v13 = vld [vmem:[%s13670_s15 + $0x10c] ss:$16 sps:$4 sm:$0xff]  }
 0x3c0   : > { %7458 = vmatprep.subr.bf16.mxu0 %v12441_v14  ;;  %7844 = vmatprep.subr.bf16.mxu1 %v12444_v15  ;;  %v12501_v14 = vld [vmem:[%s13670_s15 + $0x108] ss:$16 sps:$4 sm:$0xff]   ;;  %v12502_v15 = vld [vmem:[%s13670_s15 + $0x12c] ss:$16 sps:$4 sm:$0xff]  }
 0x3c3   : > { %7459 = vmatpush1.bf16.msra.mxu0 %v12439_v16  ;;  %7845 = vmatpush1.bf16.msra.mxu1 %v12442_v17  ;;  %v12504_v16 = vld [vmem:[%s13670_s15 + $0x128] ss:$16 sps:$4 sm:$0xff]   ;;  %v12505_v17 = vld [vmem:[%s13670_s15 + $0x14c] ss:$16 sps:$4 sm:$0xff]  }
 0x3c4   : > { %7460 = vmatprep.subr.bf16.mxu0 %v12450_v18  ;;  %7846 = vmatprep.subr.bf16.mxu1 %v12453_v19  ;;  %v12507_v18 = vld [vmem:[%s13670_s15 + $0x148] ss:$16 sps:$4 sm:$0xff]  }
 0x3c5   : > { %7336 = vmatmul.mubr.bf16.gmra.mrb[24].mxu0 %v12393_v20  ;;  %7722 = vmatmul.mubr.bf16.gmra.mrb[24].mxu1 %v12393_v20 }
 0x3c6   : > { %7345 = vmatprep.mubr.bf16.mxu0 %v12400_v21  ;;  %7731 = vmatprep.mubr.bf16.mxu1 %v12400_v21 }
 0x3c7   : > { %7461 = vmatpush1.bf16.msra.mxu0 %v12448_v22  ;;  %7847 = vmatpush1.bf16.msra.mxu1 %v12451_v23  ;;  %v1350_v22 = vld [vmem:[#allocation2 + $0x28] sm:$0xff]  ;;  %v1352_v23 = vld [vmem:[#allocation2 + $0x38] sm:$0xff] }
 0x3c8   : > { %7462 = vmatprep.subr.bf16.mxu0 %v12459_v24  ;;  %7848 = vmatprep.subr.bf16.mxu1 %v12462_v25 }
 0x3cb   : > { %7463 = vmatpush1.bf16.msra.mxu0 %v12457_v26  ;;  %7849 = vmatpush1.bf16.msra.mxu1 %v12460_v27 }
 0x3cc   : > { %7464 = vmatprep.subr.bf16.mxu0 %v12468_v28  ;;  %7850 = vmatprep.subr.bf16.mxu1 %v12471_v29 }
 0x3cd   : > { %7346 = vmatmul.mubr.bf16.gmra.mrb[28].mxu0 %v12402_v30  ;;  %7732 = vmatmul.mubr.bf16.gmra.mrb[28].mxu1 %v12402_v30 }
 0x3ce   : > { %7355 = vmatprep.mubr.bf16.mxu0 %v12409_v31  ;;  %7741 = vmatprep.mubr.bf16.mxu1 %v12409_v31 }
 0x3cf   : > { %7465 = vmatpush1.bf16.msra.mxu0 %v12466_v32  ;;  %7851 = vmatpush1.bf16.msra.mxu1 %v12469_v33  ;;  %v1353_v33 = vld [vmem:[#allocation2 + $0x40] sm:$0xff] }
 0x3d0   : > { %7466 = vmatprep.subr.bf16.mxu0 %v12477_v34  ;;  %7852 = vmatprep.subr.bf16.mxu1 %v12480_v35  ;;  %v1355_v34 = vld [vmem:[#allocation2 + $0x50] sm:$0xff]  ;;  %v1354_v35 = vld [vmem:[#allocation2 + $0x48] sm:$0xff] }
 0x3d3   : > { %7467 = vmatpush1.bf16.msra.mxu0 %v12475_v36  ;;  %7853 = vmatpush1.bf16.msra.mxu1 %v12478_v37  ;;  %v1356_v36 = vld [vmem:[#allocation2 + $0x58] sm:$0xff] }
 0x3d5   : > { %7356 = vmatmul.mubr.bf16.gmra.mrb[32].mxu0 %v12411_v38  ;;  %7742 = vmatmul.mubr.bf16.gmra.mrb[32].mxu1 %v12411_v38 }
 0x3d6   : > { %7365 = vmatprep.mubr.bf16.mxu0 %v12418_v39  ;;  %7751 = vmatprep.mubr.bf16.mxu1 %v12418_v39  ;;  %v1357_v39 = vld [vmem:[#allocation2 + $0x60] sm:$0xff] }
 0x3dd   : > { %7366 = vmatmul.mubr.bf16.gmra.mrb[36].mxu0 %v12420_v40  ;;  %7752 = vmatmul.mubr.bf16.gmra.mrb[36].mxu1 %v12420_v40  ;;  %v1359_v40 = vld [vmem:[#allocation2 + $0x70] sm:$0xff] }
 0x3de   : > { %7375 = vmatprep.mubr.bf16.mxu0 %v12427_v41  ;;  %7761 = vmatprep.mubr.bf16.mxu1 %v12427_v41 }
 0x3e5   : > { %7376 = vmatmul.mubr.bf16.gmra.mrb[40].mxu0 %v12429_v42  ;;  %7762 = vmatmul.mubr.bf16.gmra.mrb[40].mxu1 %v12429_v42 }
 0x3e6   : > { %7385 = vmatprep.mubr.bf16.mxu0 %v12436_v43  ;;  %7771 = vmatprep.mubr.bf16.mxu1 %v12436_v43 }
 0x3ed   : > { %7386 = vmatmul.mubr.bf16.gmra.mrb[44].mxu0 %v12438_v44  ;;  %7772 = vmatmul.mubr.bf16.gmra.mrb[44].mxu1 %v12438_v44 }
 0x3ee   : > { %7395 = vmatprep.mubr.bf16.mxu0 %v12445_v45  ;;  %7781 = vmatprep.mubr.bf16.mxu1 %v12445_v45  ;;  %v1358_v45 = vld [vmem:[#allocation2 + $0x68] sm:$0xff] }
 0x3f5   : > { %7396 = vmatmul.mubr.bf16.gmra.mrb[48].mxu0 %v12447_v46  ;;  %7782 = vmatmul.mubr.bf16.gmra.mrb[48].mxu1 %v12447_v46  ;;  %v1360_v46 = vld [vmem:[#allocation2 + $0x78] sm:$0xff] }
 0x3f6   : > { %7405 = vmatprep.mubr.bf16.mxu0 %v12454_v47  ;;  %7791 = vmatprep.mubr.bf16.mxu1 %v12454_v47 }
 0x3fd   : > { %7406 = vmatmul.mubr.bf16.gmra.mrb[52].mxu0 %v12456_v48  ;;  %7792 = vmatmul.mubr.bf16.gmra.mrb[52].mxu1 %v12456_v48 }
 0x3fe   : > { %7415 = vmatprep.mubr.bf16.mxu0 %v12463_v49  ;;  %7801 = vmatprep.mubr.bf16.mxu1 %v12463_v49 }
 0x405   : > { %7416 = vmatmul.mubr.bf16.gmra.mrb[56].mxu0 %v12465_v50  ;;  %7802 = vmatmul.mubr.bf16.gmra.mrb[56].mxu1 %v12465_v50 }
 0x406   : > { %7425 = vmatprep.mubr.bf16.mxu0 %v12472_v51  ;;  %7811 = vmatprep.mubr.bf16.mxu1 %v12472_v51 }
 0x40d   : > { %7426 = vmatmul.mubr.bf16.gmra.mrb[60].mxu0 %v12474_v52  ;;  %7812 = vmatmul.mubr.bf16.gmra.mrb[60].mxu1 %v12474_v52 }
 0x40e   : > { %7468 = vmatprep.mubr.bf16.mxu0 %v12483_v53  ;;  %7854 = vmatprep.mubr.bf16.mxu1 %v12483_v53 }
 0x415   : > { %7469 = vmatmul.mubr.bf16.vlgmr.msra.gmra.mrb[0].mxu0 %v12481_v54  ;;  %7855 = vmatmul.mubr.bf16.vlgmr.msra.gmra.mrb[0].mxu1 %v12481_v54 }
 0x416   : > { %7478 = vmatprep.mubr.bf16.mxu0 %v12484_v55  ;;  %7864 = vmatprep.mubr.bf16.mxu1 %v12484_v55 }
 0x41d   : > { %7479 = vmatmul.mubr.bf16.gmra.mrb[4].mxu0 %v12486_v56  ;;  %7865 = vmatmul.mubr.bf16.gmra.mrb[4].mxu1 %v12486_v56 }
 0x41e   : > { %7488 = vmatprep.mubr.bf16.mxu0 %v12487_v57  ;;  %7874 = vmatprep.mubr.bf16.mxu1 %v12487_v57  ;;  %v1361_v57 = vld [vmem:[#allocation2 + $0x80] sm:$0xff] }
 0x425   : > { %7489 = vmatmul.mubr.bf16.gmra.mrb[8].mxu0 %v12489_v58  ;;  %7875 = vmatmul.mubr.bf16.gmra.mrb[8].mxu1 %v12489_v58  ;;  %v1363_v58 = vld [vmem:[#allocation2 + $0x90] sm:$0xff] }
 0x426   : > { %7498 = vmatprep.mubr.bf16.mxu0 %v12490_v59  ;;  %7884 = vmatprep.mubr.bf16.mxu1 %v12490_v59  ;;  %v1362_v59 = vld [vmem:[#allocation2 + $0x88] sm:$0xff] }
 0x42d   : > { %7499 = vmatmul.mubr.bf16.gmra.mrb[12].mxu0 %v12492_v60  ;;  %7885 = vmatmul.mubr.bf16.gmra.mrb[12].mxu1 %v12492_v60  ;;  %v1364_v60 = vld [vmem:[#allocation2 + $0x98] sm:$0xff] }
 0x42e   : > { %7508 = vmatprep.mubr.bf16.mxu0 %v12493_v61  ;;  %7894 = vmatprep.mubr.bf16.mxu1 %v12493_v61 }
 0x435   : > { %7509 = vmatmul.mubr.bf16.gmra.mrb[16].mxu0 %v12495_v62  ;;  %7895 = vmatmul.mubr.bf16.gmra.mrb[16].mxu1 %v12495_v62 }
 0x436   : > { %7518 = vmatprep.mubr.bf16.mxu0 %v12496_v11  ;;  %7904 = vmatprep.mubr.bf16.mxu1 %v12496_v11  ;;  %v1365_v11 = vld [vmem:[#allocation2 + $0xa0] sm:$0xff] }
 0x43d   : > { %7519 = vmatmul.mubr.bf16.gmra.mrb[20].mxu0 %v12498_v12  ;;  %7905 = vmatmul.mubr.bf16.gmra.mrb[20].mxu1 %v12498_v12  ;;  %v1367_v12 = vld [vmem:[#allocation2 + $0xb0] sm:$0xff] }
 0x43e   : > { %7528 = vmatprep.mubr.bf16.mxu0 %v12499_v13  ;;  %7914 = vmatprep.mubr.bf16.mxu1 %v12499_v13 }
 0x445   : > { %7529 = vmatmul.mubr.bf16.gmra.mrb[24].mxu0 %v12501_v14  ;;  %7915 = vmatmul.mubr.bf16.gmra.mrb[24].mxu1 %v12501_v14 }
 0x446   : > { %7538 = vmatprep.mubr.bf16.mxu0 %v12502_v15  ;;  %7924 = vmatprep.mubr.bf16.mxu1 %v12502_v15 }
 0x44d   : > { %7539 = vmatmul.mubr.bf16.gmra.mrb[28].mxu0 %v12504_v16  ;;  %7925 = vmatmul.mubr.bf16.gmra.mrb[28].mxu1 %v12504_v16 }
 0x44e   : > { %7548 = vmatprep.mubr.bf16.mxu0 %v12505_v17  ;;  %7934 = vmatprep.mubr.bf16.mxu1 %v12505_v17  ;;  %v1366_v17 = vld [vmem:[#allocation2 + $0xa8] sm:$0xff] }
 0x455   : > { %7549 = vmatmul.mubr.bf16.gmra.mrb[32].mxu0 %v12507_v18  ;;  %7935 = vmatmul.mubr.bf16.gmra.mrb[32].mxu1 %v12507_v18  ;;  %v1368_v18 = vld [vmem:[#allocation2 + $0xb8] sm:$0xff] }
 0x456   : > { %7558 = vmatprep.mubr.bf16.mxu0 %v14242_v63  ;;  %7944 = vmatprep.mubr.bf16.mxu1 %v14242_v63  ;;  %v12508_v63 = vld [vmem:[%s13670_s15 + $0x22c] ss:$16 sps:$4 sm:$0xff]  }
 0x45d   : > { %7559 = vmatmul.mubr.bf16.gmra.mrb[36].mxu0 %v14247_v0  ;;  %7945 = vmatmul.mubr.bf16.gmra.mrb[36].mxu1 %v14247_v0  ;;  %v12510_v0 = vld [vmem:[%s13670_s15 + $0x228] ss:$16 sps:$4 sm:$0xff]  }
 0x45e   : > { %7568 = vmatprep.mubr.bf16.mxu0 %v14250_v1  ;;  %7954 = vmatprep.mubr.bf16.mxu1 %v14250_v1  ;;  %v1345_v1 = vld [vmem:[#allocation2] sm:$0xff] }
 0x465   : > { %7569 = vmatmul.mubr.bf16.gmra.mrb[40].mxu0 %v14257_v2  ;;  %7955 = vmatmul.mubr.bf16.gmra.mrb[40].mxu1 %v14257_v2  ;;  %v1347_v2 = vld [vmem:[#allocation2 + $0x10] sm:$0xff] }
 0x466   : > { %7578 = vmatprep.mubr.bf16.mxu0 %v14260_v3  ;;  %7964 = vmatprep.mubr.bf16.mxu1 %v14260_v3  ;;  %v1346_v3 = vld [vmem:[#allocation2 + $0x8] sm:$0xff] }
 0x46d   : > { %7579 = vmatmul.mubr.bf16.gmra.mrb[44].mxu0 %v14267_v4  ;;  %7965 = vmatmul.mubr.bf16.gmra.mrb[44].mxu1 %v14267_v4  ;;  %v1348_v4 = vld [vmem:[#allocation2 + $0x18] sm:$0xff] }
 0x46e   : > { %7588 = vmatprep.mubr.bf16.mxu0 %v14270_v5  ;;  %7974 = vmatprep.mubr.bf16.mxu1 %v14270_v5 }
 0x475   : > { %7589 = vmatmul.mubr.bf16.gmra.mrb[48].mxu0 %v14277_v6  ;;  %7975 = vmatmul.mubr.bf16.gmra.mrb[48].mxu1 %v14277_v6 }
 0x476   : > { %7598 = vmatprep.mubr.bf16.mxu0 %v14280_v7  ;;  %7984 = vmatprep.mubr.bf16.mxu1 %v14280_v7  ;;  %v1349_v7 = vld [vmem:[#allocation2 + $0x20] sm:$0xff] }
 0x47d   : > { %7599 = vmatmul.mubr.bf16.gmra.mrb[52].mxu0 %v14287_v8  ;;  %7985 = vmatmul.mubr.bf16.gmra.mrb[52].mxu1 %v14287_v8  ;;  %v1351_v8 = vld [vmem:[#allocation2 + $0x30] sm:$0xff] }
 0x47e   : > { %7608 = vmatprep.mubr.bf16.mxu0 %v14290_v9  ;;  %7994 = vmatprep.mubr.bf16.mxu1 %v14290_v9 }
 0x485   : > { %7609 = vmatmul.mubr.bf16.gmra.mrb[56].mxu0 %v14297_v10  ;;  %7995 = vmatmul.mubr.bf16.gmra.mrb[56].mxu1 %v14297_v10 }
 0x486   : > { %7618 = vmatprep.mubr.bf16.mxu0 %v12508_v63  ;;  %8004 = vmatprep.mubr.bf16.mxu1 %v12508_v63 }
 0x48d   : > { %7619 = vmatmul.mubr.bf16.gmra.mrb[60].mxu0 %v12510_v0  ;;  %8005 = vmatmul.mubr.bf16.gmra.mrb[60].mxu1 %v12510_v0 }
 0x4e8   : > { %v7470_v5 = vpop.f32.mrb[0].mxu0  ;;  %v7856_v6 = vpop.f32.mrb[0].mxu1 }
 0x4e9   : > { %v10565_v19 = vadd.f32 %v7470_v5, %v1345_v1  ;;  %v10757_v9 = vadd.f32 %v7856_v6, %v1347_v2  ;;  %v7472_v20 = vpop.f32.mrb[1].mxu0  ;;  %v7858_v21 = vpop.f32.mrb[1].mxu1 }
 0x4ea   : > { %v10568_v10 = vadd.f32 %v7472_v20, %v1346_v3  ;;  %v10760_v24 = vadd.f32 %v7858_v21, %v1348_v4  ;;  %v7474_v25 = vpop.f32.mrb[2].mxu0  ;;  %v7860_v26 = vpop.f32.mrb[2].mxu1  ;;  %v1370_v20 = vld [vmem:[#allocation2 + $0xc8] sm:$0xff]  ;;  %v1372_v21 = vld [vmem:[#allocation2 + $0xd8] sm:$0xff] }
 0x4eb   : > { %8143 = vst [vmem:[#allocation2] sm:$0xff] %v10565_v19  ;;  %8145 = vst [vmem:[#allocation2 + $0x10] sm:$0xff] %v10757_v9  ;;  %v10571_v27 = vadd.f32 %v7474_v25, %v1349_v7  ;;  %v10763_v28 = vadd.f32 %v7860_v26, %v1351_v8  ;;  %v7476_v29 = vpop.f32.mrb[3].mxu0  ;;  %v7862_v30 = vpop.f32.mrb[3].mxu1  ;;  %v1369_v19 = vld [vmem:[#allocation2 + $0xc0] sm:$0xff]  ;;  %v1371_v9 = vld [vmem:[#allocation2 + $0xd0] sm:$0xff] }
 0x4ec   : > { %8144 = vst [vmem:[#allocation2 + $0x8] sm:$0xff] %v10568_v10  ;;  %8146 = vst [vmem:[#allocation2 + $0x18] sm:$0xff] %v10760_v24  ;;  %v10574_v31 = vadd.f32 %v7476_v29, %v1350_v22  ;;  %v10766_v32 = vadd.f32 %v7862_v30, %v1352_v23  ;;  %v1373_v10 = vld [vmem:[#allocation2 + $0xe0] sm:$0xff]  ;;  %v1375_v24 = vld [vmem:[#allocation2 + $0xf0] sm:$0xff] }
 0x4ed   : > { %8147 = vst [vmem:[#allocation2 + $0x20] sm:$0xff] %v10571_v27  ;;  %8149 = vst [vmem:[#allocation2 + $0x30] sm:$0xff] %v10763_v28  ;;  %v1374_v29 = vld [vmem:[#allocation2 + $0xe8] sm:$0xff]  ;;  %v1376_v30 = vld [vmem:[#allocation2 + $0xf8] sm:$0xff] }
 0x4ee   : > { %8148 = vst [vmem:[#allocation2 + $0x28] sm:$0xff] %v10574_v31  ;;  %8150 = vst [vmem:[#allocation2 + $0x38] sm:$0xff] %v10766_v32 }
 0x4f0   : > { %v7480_v37 = vpop.f32.mrb[4].mxu0  ;;  %v7866_v38 = vpop.f32.mrb[4].mxu1 }
 0x4f1   : > { %v10577_v41 = vadd.f32 %v7480_v37, %v1353_v33  ;;  %v10769_v42 = vadd.f32 %v7866_v38, %v1355_v34  ;;  %v7482_v43 = vpop.f32.mrb[5].mxu0  ;;  %v7868_v44 = vpop.f32.mrb[5].mxu1 }
 0x4f2   : > { %v10580_v47 = vadd.f32 %v7482_v43, %v1354_v35  ;;  %v10772_v48 = vadd.f32 %v7868_v44, %v1356_v36  ;;  %v7484_v49 = vpop.f32.mrb[6].mxu0  ;;  %v7870_v50 = vpop.f32.mrb[6].mxu1  ;;  %v1378_v43 = vld [vmem:[#allocation2 + $0x108] sm:$0xff]  ;;  %v1380_v44 = vld [vmem:[#allocation2 + $0x118] sm:$0xff] }
 0x4f3   : > { %8151 = vst [vmem:[#allocation2 + $0x40] sm:$0xff] %v10577_v41  ;;  %8153 = vst [vmem:[#allocation2 + $0x50] sm:$0xff] %v10769_v42  ;;  %v10583_v51 = vadd.f32 %v7484_v49, %v1357_v39  ;;  %v10775_v52 = vadd.f32 %v7870_v50, %v1359_v40  ;;  %v7486_v53 = vpop.f32.mrb[7].mxu0  ;;  %v7872_v54 = vpop.f32.mrb[7].mxu1  ;;  %v1377_v41 = vld [vmem:[#allocation2 + $0x100] sm:$0xff]  ;;  %v1379_v42 = vld [vmem:[#allocation2 + $0x110] sm:$0xff] }
 0x4f4   : > { %8152 = vst [vmem:[#allocation2 + $0x48] sm:$0xff] %v10580_v47  ;;  %8154 = vst [vmem:[#allocation2 + $0x58] sm:$0xff] %v10772_v48  ;;  %v10586_v55 = vadd.f32 %v7486_v53, %v1358_v45  ;;  %v10778_v56 = vadd.f32 %v7872_v54, %v1360_v46  ;;  %v1381_v47 = vld [vmem:[#allocation2 + $0x120] sm:$0xff]  ;;  %v1383_v48 = vld [vmem:[#allocation2 + $0x130] sm:$0xff] }
 0x4f5   : > { %8155 = vst [vmem:[#allocation2 + $0x60] sm:$0xff] %v10583_v51  ;;  %8157 = vst [vmem:[#allocation2 + $0x70] sm:$0xff] %v10775_v52  ;;  %v1382_v53 = vld [vmem:[#allocation2 + $0x128] sm:$0xff]  ;;  %v1384_v54 = vld [vmem:[#allocation2 + $0x138] sm:$0xff] }
 0x4f6   : > { %8156 = vst [vmem:[#allocation2 + $0x68] sm:$0xff] %v10586_v55  ;;  %8158 = vst [vmem:[#allocation2 + $0x78] sm:$0xff] %v10778_v56 }
 0x4f8   : > { %v7490_v61 = vpop.f32.mrb[8].mxu0  ;;  %v7876_v62 = vpop.f32.mrb[8].mxu1 }
 0x4f9   : > { %v10589_v13 = vadd.f32 %v7490_v61, %v1361_v57  ;;  %v10781_v14 = vadd.f32 %v7876_v62, %v1363_v58  ;;  %v7492_v15 = vpop.f32.mrb[9].mxu0  ;;  %v7878_v16 = vpop.f32.mrb[9].mxu1 }
 0x4fa   : > { %v10592_v63 = vadd.f32 %v7492_v15, %v1362_v59  ;;  %v10784_v0 = vadd.f32 %v7878_v16, %v1364_v60  ;;  %v7494_v1 = vpop.f32.mrb[10].mxu0  ;;  %v7880_v2 = vpop.f32.mrb[10].mxu1  ;;  %v1386_v15 = vld [vmem:[#allocation2 + $0x148] sm:$0xff]  ;;  %v1388_v16 = vld [vmem:[#allocation2 + $0x158] sm:$0xff] }
 0x4fb   : > { %8159 = vst [vmem:[#allocation2 + $0x80] sm:$0xff] %v10589_v13  ;;  %8161 = vst [vmem:[#allocation2 + $0x90] sm:$0xff] %v10781_v14  ;;  %v10595_v3 = vadd.f32 %v7494_v1, %v1365_v11  ;;  %v10787_v4 = vadd.f32 %v7880_v2, %v1367_v12  ;;  %v7496_v5 = vpop.f32.mrb[11].mxu0  ;;  %v7882_v6 = vpop.f32.mrb[11].mxu1  ;;  %v1385_v13 = vld [vmem:[#allocation2 + $0x140] sm:$0xff]  ;;  %v1387_v14 = vld [vmem:[#allocation2 + $0x150] sm:$0xff] }
 0x4fc   : > { %8160 = vst [vmem:[#allocation2 + $0x88] sm:$0xff] %v10592_v63  ;;  %8162 = vst [vmem:[#allocation2 + $0x98] sm:$0xff] %v10784_v0  ;;  %v10598_v7 = vadd.f32 %v7496_v5, %v1366_v17  ;;  %v10790_v8 = vadd.f32 %v7882_v6, %v1368_v18  ;;  %v1389_v63 = vld [vmem:[#allocation2 + $0x160] sm:$0xff]  ;;  %v1391_v0 = vld [vmem:[#allocation2 + $0x170] sm:$0xff] }
 0x4fd   : > { %8163 = vst [vmem:[#allocation2 + $0xa0] sm:$0xff] %v10595_v3  ;;  %8165 = vst [vmem:[#allocation2 + $0xb0] sm:$0xff] %v10787_v4  ;;  %v1390_v5 = vld [vmem:[#allocation2 + $0x168] sm:$0xff]  ;;  %v1392_v6 = vld [vmem:[#allocation2 + $0x178] sm:$0xff] }
 0x4fe   : > { %8164 = vst [vmem:[#allocation2 + $0xa8] sm:$0xff] %v10598_v7  ;;  %8166 = vst [vmem:[#allocation2 + $0xb8] sm:$0xff] %v10790_v8 }
 0x500   : > { %v7500_v22 = vpop.f32.mrb[12].mxu0  ;;  %v7886_v23 = vpop.f32.mrb[12].mxu1 }
 0x501   : > { %v10601_v25 = vadd.f32 %v7500_v22, %v1369_v19  ;;  %v10793_v26 = vadd.f32 %v7886_v23, %v1371_v9  ;;  %v7502_v27 = vpop.f32.mrb[13].mxu0  ;;  %v7888_v28 = vpop.f32.mrb[13].mxu1 }
 0x502   : > { %v10604_v31 = vadd.f32 %v7502_v27, %v1370_v20  ;;  %v10796_v32 = vadd.f32 %v7888_v28, %v1372_v21  ;;  %v7504_v33 = vpop.f32.mrb[14].mxu0  ;;  %v7890_v34 = vpop.f32.mrb[14].mxu1  ;;  %v1394_v27 = vld [vmem:[#allocation2 + $0x188] sm:$0xff]  ;;  %v1396_v28 = vld [vmem:[#allocation2 + $0x198] sm:$0xff] }
 0x503   : > { %8167 = vst [vmem:[#allocation2 + $0xc0] sm:$0xff] %v10601_v25  ;;  %8169 = vst [vmem:[#allocation2 + $0xd0] sm:$0xff] %v10793_v26  ;;  %v10607_v35 = vadd.f32 %v7504_v33, %v1373_v10  ;;  %v10799_v36 = vadd.f32 %v7890_v34, %v1375_v24  ;;  %v7506_v37 = vpop.f32.mrb[15].mxu0  ;;  %v7892_v38 = vpop.f32.mrb[15].mxu1  ;;  %v1393_v25 = vld [vmem:[#allocation2 + $0x180] sm:$0xff]  ;;  %v1395_v26 = vld [vmem:[#allocation2 + $0x190] sm:$0xff] }
 0x504   : > { %8168 = vst [vmem:[#allocation2 + $0xc8] sm:$0xff] %v10604_v31  ;;  %8170 = vst [vmem:[#allocation2 + $0xd8] sm:$0xff] %v10796_v32  ;;  %v10610_v39 = vadd.f32 %v7506_v37, %v1374_v29  ;;  %v10802_v40 = vadd.f32 %v7892_v38, %v1376_v30  ;;  %v1397_v31 = vld [vmem:[#allocation2 + $0x1a0] sm:$0xff]  ;;  %v1399_v32 = vld [vmem:[#allocation2 + $0x1b0] sm:$0xff] }
 0x505   : > { %8171 = vst [vmem:[#allocation2 + $0xe0] sm:$0xff] %v10607_v35  ;;  %8173 = vst [vmem:[#allocation2 + $0xf0] sm:$0xff] %v10799_v36  ;;  %v1398_v37 = vld [vmem:[#allocation2 + $0x1a8] sm:$0xff]  ;;  %v1400_v38 = vld [vmem:[#allocation2 + $0x1b8] sm:$0xff] }
 0x506   : > { %8172 = vst [vmem:[#allocation2 + $0xe8] sm:$0xff] %v10610_v39  ;;  %8174 = vst [vmem:[#allocation2 + $0xf8] sm:$0xff] %v10802_v40 }
 0x508   : > { %v7510_v45 = vpop.f32.mrb[16].mxu0  ;;  %v7896_v46 = vpop.f32.mrb[16].mxu1 }
 0x509   : > { %v10613_v49 = vadd.f32 %v7510_v45, %v1377_v41  ;;  %v10805_v50 = vadd.f32 %v7896_v46, %v1379_v42  ;;  %v7512_v51 = vpop.f32.mrb[17].mxu0  ;;  %v7898_v52 = vpop.f32.mrb[17].mxu1 }
 0x50a   : > { %v10616_v55 = vadd.f32 %v7512_v51, %v1378_v43  ;;  %v10808_v56 = vadd.f32 %v7898_v52, %v1380_v44  ;;  %v7514_v57 = vpop.f32.mrb[18].mxu0  ;;  %v7900_v58 = vpop.f32.mrb[18].mxu1  ;;  %v1402_v51 = vld [vmem:[#allocation2 + $0x1c8] sm:$0xff]  ;;  %v1404_v52 = vld [vmem:[#allocation2 + $0x1d8] sm:$0xff] }
 0x50b   : > { %8175 = vst [vmem:[#allocation2 + $0x100] sm:$0xff] %v10613_v49  ;;  %8177 = vst [vmem:[#allocation2 + $0x110] sm:$0xff] %v10805_v50  ;;  %v10619_v59 = vadd.f32 %v7514_v57, %v1381_v47  ;;  %v10811_v60 = vadd.f32 %v7900_v58, %v1383_v48  ;;  %v7516_v61 = vpop.f32.mrb[19].mxu0  ;;  %v7902_v62 = vpop.f32.mrb[19].mxu1  ;;  %v1401_v49 = vld [vmem:[#allocation2 + $0x1c0] sm:$0xff]  ;;  %v1403_v50 = vld [vmem:[#allocation2 + $0x1d0] sm:$0xff] }
 0x50c   : > { %8176 = vst [vmem:[#allocation2 + $0x108] sm:$0xff] %v10616_v55  ;;  %8178 = vst [vmem:[#allocation2 + $0x118] sm:$0xff] %v10808_v56  ;;  %v10622_v11 = vadd.f32 %v7516_v61, %v1382_v53  ;;  %v10814_v12 = vadd.f32 %v7902_v62, %v1384_v54  ;;  %v1405_v55 = vld [vmem:[#allocation2 + $0x1e0] sm:$0xff]  ;;  %v1407_v56 = vld [vmem:[#allocation2 + $0x1f0] sm:$0xff] }
 0x50d   : > { %8179 = vst [vmem:[#allocation2 + $0x120] sm:$0xff] %v10619_v59  ;;  %8181 = vst [vmem:[#allocation2 + $0x130] sm:$0xff] %v10811_v60  ;;  %v1406_v61 = vld [vmem:[#allocation2 + $0x1e8] sm:$0xff]  ;;  %v1408_v62 = vld [vmem:[#allocation2 + $0x1f8] sm:$0xff] }
 0x50e   : > { %8180 = vst [vmem:[#allocation2 + $0x128] sm:$0xff] %v10622_v11  ;;  %8182 = vst [vmem:[#allocation2 + $0x138] sm:$0xff] %v10814_v12 }
 0x510   : > { %v7520_v17 = vpop.f32.mrb[20].mxu0  ;;  %v7906_v18 = vpop.f32.mrb[20].mxu1 }
 0x511   : > { %v10625_v1 = vadd.f32 %v7520_v17, %v1385_v13  ;;  %v10817_v2 = vadd.f32 %v7906_v18, %v1387_v14  ;;  %v7522_v3 = vpop.f32.mrb[21].mxu0  ;;  %v7908_v4 = vpop.f32.mrb[21].mxu1 }
 0x512   : > { %v10628_v7 = vadd.f32 %v7522_v3, %v1386_v15  ;;  %v10820_v8 = vadd.f32 %v7908_v4, %v1388_v16  ;;  %v7524_v19 = vpop.f32.mrb[22].mxu0  ;;  %v7910_v9 = vpop.f32.mrb[22].mxu1  ;;  %v1410_v3 = vld [vmem:[#allocation2 + $0x208] sm:$0xff]  ;;  %v1412_v4 = vld [vmem:[#allocation2 + $0x218] sm:$0xff] }
 0x513   : > { %8183 = vst [vmem:[#allocation2 + $0x140] sm:$0xff] %v10625_v1  ;;  %8185 = vst [vmem:[#allocation2 + $0x150] sm:$0xff] %v10817_v2  ;;  %v10631_v20 = vadd.f32 %v7524_v19, %v1389_v63  ;;  %v10823_v21 = vadd.f32 %v7910_v9, %v1391_v0  ;;  %v7526_v22 = vpop.f32.mrb[23].mxu0  ;;  %v7912_v23 = vpop.f32.mrb[23].mxu1  ;;  %v1409_v1 = vld [vmem:[#allocation2 + $0x200] sm:$0xff]  ;;  %v1411_v2 = vld [vmem:[#allocation2 + $0x210] sm:$0xff] }
 0x514   : > { %8184 = vst [vmem:[#allocation2 + $0x148] sm:$0xff] %v10628_v7  ;;  %8186 = vst [vmem:[#allocation2 + $0x158] sm:$0xff] %v10820_v8  ;;  %v10634_v10 = vadd.f32 %v7526_v22, %v1390_v5  ;;  %v10826_v24 = vadd.f32 %v7912_v23, %v1392_v6  ;;  %v1413_v7 = vld [vmem:[#allocation2 + $0x220] sm:$0xff]  ;;  %v1415_v8 = vld [vmem:[#allocation2 + $0x230] sm:$0xff] }
 0x515   : > { %8187 = vst [vmem:[#allocation2 + $0x160] sm:$0xff] %v10631_v20  ;;  %8189 = vst [vmem:[#allocation2 + $0x170] sm:$0xff] %v10823_v21  ;;  %v1414_v22 = vld [vmem:[#allocation2 + $0x228] sm:$0xff]  ;;  %v1416_v23 = vld [vmem:[#allocation2 + $0x238] sm:$0xff] }
 0x516   : > { %8188 = vst [vmem:[#allocation2 + $0x168] sm:$0xff] %v10634_v10  ;;  %8190 = vst [vmem:[#allocation2 + $0x178] sm:$0xff] %v10826_v24 }
 0x518   : > { %v7530_v29 = vpop.f32.mrb[24].mxu0  ;;  %v7916_v30 = vpop.f32.mrb[24].mxu1 }
 0x519   : > { %v10637_v33 = vadd.f32 %v7530_v29, %v1393_v25  ;;  %v10829_v34 = vadd.f32 %v7916_v30, %v1395_v26  ;;  %v7532_v35 = vpop.f32.mrb[25].mxu0  ;;  %v7918_v36 = vpop.f32.mrb[25].mxu1 }
 0x51a   : > { %v10640_v39 = vadd.f32 %v7532_v35, %v1394_v27  ;;  %v10832_v40 = vadd.f32 %v7918_v36, %v1396_v28  ;;  %v7534_v41 = vpop.f32.mrb[26].mxu0  ;;  %v7920_v42 = vpop.f32.mrb[26].mxu1  ;;  %v1418_v35 = vld [vmem:[#allocation2 + $0x248] sm:$0xff]  ;;  %v1420_v36 = vld [vmem:[#allocation2 + $0x258] sm:$0xff] }
 0x51b   : > { %8191 = vst [vmem:[#allocation2 + $0x180] sm:$0xff] %v10637_v33  ;;  %8193 = vst [vmem:[#allocation2 + $0x190] sm:$0xff] %v10829_v34  ;;  %v10643_v43 = vadd.f32 %v7534_v41, %v1397_v31  ;;  %v10835_v44 = vadd.f32 %v7920_v42, %v1399_v32  ;;  %v7536_v45 = vpop.f32.mrb[27].mxu0  ;;  %v7922_v46 = vpop.f32.mrb[27].mxu1  ;;  %v1417_v33 = vld [vmem:[#allocation2 + $0x240] sm:$0xff]  ;;  %v1419_v34 = vld [vmem:[#allocation2 + $0x250] sm:$0xff] }
 0x51c   : > { %8192 = vst [vmem:[#allocation2 + $0x188] sm:$0xff] %v10640_v39  ;;  %8194 = vst [vmem:[#allocation2 + $0x198] sm:$0xff] %v10832_v40  ;;  %v10646_v47 = vadd.f32 %v7536_v45, %v1398_v37  ;;  %v10838_v48 = vadd.f32 %v7922_v46, %v1400_v38  ;;  %v1421_v39 = vld [vmem:[#allocation2 + $0x260] sm:$0xff]  ;;  %v1423_v40 = vld [vmem:[#allocation2 + $0x270] sm:$0xff] }
 0x51d   : > { %8195 = vst [vmem:[#allocation2 + $0x1a0] sm:$0xff] %v10643_v43  ;;  %8197 = vst [vmem:[#allocation2 + $0x1b0] sm:$0xff] %v10835_v44  ;;  %v1422_v45 = vld [vmem:[#allocation2 + $0x268] sm:$0xff]  ;;  %v1424_v46 = vld [vmem:[#allocation2 + $0x278] sm:$0xff] }
 0x51e   : > { %8196 = vst [vmem:[#allocation2 + $0x1a8] sm:$0xff] %v10646_v47  ;;  %8198 = vst [vmem:[#allocation2 + $0x1b8] sm:$0xff] %v10838_v48 }
 0x520   : > { %v7540_v53 = vpop.f32.mrb[28].mxu0  ;;  %v7926_v54 = vpop.f32.mrb[28].mxu1 }
 0x521   : > { %v10649_v57 = vadd.f32 %v7540_v53, %v1401_v49  ;;  %v10841_v58 = vadd.f32 %v7926_v54, %v1403_v50  ;;  %v7542_v59 = vpop.f32.mrb[29].mxu0  ;;  %v7928_v60 = vpop.f32.mrb[29].mxu1 }
 0x522   : > { %v10652_v11 = vadd.f32 %v7542_v59, %v1402_v51  ;;  %v10844_v12 = vadd.f32 %v7928_v60, %v1404_v52  ;;  %v7544_v13 = vpop.f32.mrb[30].mxu0  ;;  %v7930_v14 = vpop.f32.mrb[30].mxu1  ;;  %v1426_v59 = vld [vmem:[#allocation2 + $0x288] sm:$0xff]  ;;  %v1428_v60 = vld [vmem:[#allocation2 + $0x298] sm:$0xff] }
 0x523   : > { %8199 = vst [vmem:[#allocation2 + $0x1c0] sm:$0xff] %v10649_v57  ;;  %8201 = vst [vmem:[#allocation2 + $0x1d0] sm:$0xff] %v10841_v58  ;;  %v10655_v15 = vadd.f32 %v7544_v13, %v1405_v55  ;;  %v10847_v16 = vadd.f32 %v7930_v14, %v1407_v56  ;;  %v7546_v17 = vpop.f32.mrb[31].mxu0  ;;  %v7932_v18 = vpop.f32.mrb[31].mxu1  ;;  %v1425_v57 = vld [vmem:[#allocation2 + $0x280] sm:$0xff]  ;;  %v1427_v58 = vld [vmem:[#allocation2 + $0x290] sm:$0xff] }
 0x524   : > { %8200 = vst [vmem:[#allocation2 + $0x1c8] sm:$0xff] %v10652_v11  ;;  %8202 = vst [vmem:[#allocation2 + $0x1d8] sm:$0xff] %v10844_v12  ;;  %v10658_v63 = vadd.f32 %v7546_v17, %v1406_v61  ;;  %v10850_v0 = vadd.f32 %v7932_v18, %v1408_v62  ;;  %v1429_v11 = vld [vmem:[#allocation2 + $0x2a0] sm:$0xff]  ;;  %v1431_v12 = vld [vmem:[#allocation2 + $0x2b0] sm:$0xff] }
 0x525   : > { %8203 = vst [vmem:[#allocation2 + $0x1e0] sm:$0xff] %v10655_v15  ;;  %8205 = vst [vmem:[#allocation2 + $0x1f0] sm:$0xff] %v10847_v16  ;;  %v1430_v17 = vld [vmem:[#allocation2 + $0x2a8] sm:$0xff]  ;;  %v1432_v18 = vld [vmem:[#allocation2 + $0x2b8] sm:$0xff] }
 0x526   : > { %8204 = vst [vmem:[#allocation2 + $0x1e8] sm:$0xff] %v10658_v63  ;;  %8206 = vst [vmem:[#allocation2 + $0x1f8] sm:$0xff] %v10850_v0 }
 0x528   : > { %v7550_v5 = vpop.f32.mrb[32].mxu0  ;;  %v7936_v6 = vpop.f32.mrb[32].mxu1 }
 0x529   : > { %v10661_v19 = vadd.f32 %v7550_v5, %v1409_v1  ;;  %v10853_v9 = vadd.f32 %v7936_v6, %v1411_v2  ;;  %v7552_v20 = vpop.f32.mrb[33].mxu0  ;;  %v7938_v21 = vpop.f32.mrb[33].mxu1 }
 0x52a   : > { %v10664_v10 = vadd.f32 %v7552_v20, %v1410_v3  ;;  %v10856_v24 = vadd.f32 %v7938_v21, %v1412_v4  ;;  %v7554_v25 = vpop.f32.mrb[34].mxu0  ;;  %v7940_v26 = vpop.f32.mrb[34].mxu1  ;;  %v1434_v20 = vld [vmem:[#allocation2 + $0x2c8] sm:$0xff]  ;;  %v1436_v21 = vld [vmem:[#allocation2 + $0x2d8] sm:$0xff] }
 0x52b   : > { %8207 = vst [vmem:[#allocation2 + $0x200] sm:$0xff] %v10661_v19  ;;  %8209 = vst [vmem:[#allocation2 + $0x210] sm:$0xff] %v10853_v9  ;;  %v10667_v27 = vadd.f32 %v7554_v25, %v1413_v7  ;;  %v10859_v28 = vadd.f32 %v7940_v26, %v1415_v8  ;;  %v7556_v29 = vpop.f32.mrb[35].mxu0  ;;  %v7942_v30 = vpop.f32.mrb[35].mxu1  ;;  %v1433_v19 = vld [vmem:[#allocation2 + $0x2c0] sm:$0xff]  ;;  %v1435_v9 = vld [vmem:[#allocation2 + $0x2d0] sm:$0xff] }
 0x52c   : > { %8208 = vst [vmem:[#allocation2 + $0x208] sm:$0xff] %v10664_v10  ;;  %8210 = vst [vmem:[#allocation2 + $0x218] sm:$0xff] %v10856_v24  ;;  %v10670_v31 = vadd.f32 %v7556_v29, %v1414_v22  ;;  %v10862_v32 = vadd.f32 %v7942_v30, %v1416_v23  ;;  %v1437_v10 = vld [vmem:[#allocation2 + $0x2e0] sm:$0xff]  ;;  %v1439_v24 = vld [vmem:[#allocation2 + $0x2f0] sm:$0xff] }
 0x52d   : > { %8211 = vst [vmem:[#allocation2 + $0x220] sm:$0xff] %v10667_v27  ;;  %8213 = vst [vmem:[#allocation2 + $0x230] sm:$0xff] %v10859_v28  ;;  %v1438_v29 = vld [vmem:[#allocation2 + $0x2e8] sm:$0xff]  ;;  %v1440_v30 = vld [vmem:[#allocation2 + $0x2f8] sm:$0xff] }
 0x52e   : > { %8212 = vst [vmem:[#allocation2 + $0x228] sm:$0xff] %v10670_v31  ;;  %8214 = vst [vmem:[#allocation2 + $0x238] sm:$0xff] %v10862_v32 }
 0x530   : > { %v7560_v37 = vpop.f32.mrb[36].mxu0  ;;  %v7946_v38 = vpop.f32.mrb[36].mxu1 }
 0x531   : > { %v10673_v41 = vadd.f32 %v7560_v37, %v1417_v33  ;;  %v10865_v42 = vadd.f32 %v7946_v38, %v1419_v34  ;;  %v7562_v43 = vpop.f32.mrb[37].mxu0  ;;  %v7948_v44 = vpop.f32.mrb[37].mxu1 }
 0x532   : > { %v10676_v47 = vadd.f32 %v7562_v43, %v1418_v35  ;;  %v10868_v48 = vadd.f32 %v7948_v44, %v1420_v36  ;;  %v7564_v49 = vpop.f32.mrb[38].mxu0  ;;  %v7950_v50 = vpop.f32.mrb[38].mxu1  ;;  %v1442_v43 = vld [vmem:[#allocation2 + $0x308] sm:$0xff]  ;;  %v1444_v44 = vld [vmem:[#allocation2 + $0x318] sm:$0xff] }
 0x533   : > { %8215 = vst [vmem:[#allocation2 + $0x240] sm:$0xff] %v10673_v41  ;;  %8217 = vst [vmem:[#allocation2 + $0x250] sm:$0xff] %v10865_v42  ;;  %v10679_v51 = vadd.f32 %v7564_v49, %v1421_v39  ;;  %v10871_v52 = vadd.f32 %v7950_v50, %v1423_v40  ;;  %v7566_v53 = vpop.f32.mrb[39].mxu0  ;;  %v7952_v54 = vpop.f32.mrb[39].mxu1  ;;  %v1441_v41 = vld [vmem:[#allocation2 + $0x300] sm:$0xff]  ;;  %v1443_v42 = vld [vmem:[#allocation2 + $0x310] sm:$0xff] }
 0x534   : > { %8216 = vst [vmem:[#allocation2 + $0x248] sm:$0xff] %v10676_v47  ;;  %8218 = vst [vmem:[#allocation2 + $0x258] sm:$0xff] %v10868_v48  ;;  %v10682_v55 = vadd.f32 %v7566_v53, %v1422_v45  ;;  %v10874_v56 = vadd.f32 %v7952_v54, %v1424_v46  ;;  %v1445_v47 = vld [vmem:[#allocation2 + $0x320] sm:$0xff]  ;;  %v1447_v48 = vld [vmem:[#allocation2 + $0x330] sm:$0xff] }
 0x535   : > { %8219 = vst [vmem:[#allocation2 + $0x260] sm:$0xff] %v10679_v51  ;;  %8221 = vst [vmem:[#allocation2 + $0x270] sm:$0xff] %v10871_v52  ;;  %v1446_v53 = vld [vmem:[#allocation2 + $0x328] sm:$0xff]  ;;  %v1448_v54 = vld [vmem:[#allocation2 + $0x338] sm:$0xff] }
 0x536   : > { %8220 = vst [vmem:[#allocation2 + $0x268] sm:$0xff] %v10682_v55  ;;  %8222 = vst [vmem:[#allocation2 + $0x278] sm:$0xff] %v10874_v56 }
 0x538   : > { %v7570_v61 = vpop.f32.mrb[40].mxu0  ;;  %v7956_v62 = vpop.f32.mrb[40].mxu1 }
 0x539   : > { %v10685_v13 = vadd.f32 %v7570_v61, %v1425_v57  ;;  %v10877_v14 = vadd.f32 %v7956_v62, %v1427_v58  ;;  %v7572_v15 = vpop.f32.mrb[41].mxu0  ;;  %v7958_v16 = vpop.f32.mrb[41].mxu1 }
 0x53a   : > { %v10688_v63 = vadd.f32 %v7572_v15, %v1426_v59  ;;  %v10880_v0 = vadd.f32 %v7958_v16, %v1428_v60  ;;  %v7574_v1 = vpop.f32.mrb[42].mxu0  ;;  %v7960_v2 = vpop.f32.mrb[42].mxu1  ;;  %v1450_v15 = vld [vmem:[#allocation2 + $0x348] sm:$0xff]  ;;  %v1452_v16 = vld [vmem:[#allocation2 + $0x358] sm:$0xff] }
 0x53b   : > { %8223 = vst [vmem:[#allocation2 + $0x280] sm:$0xff] %v10685_v13  ;;  %8225 = vst [vmem:[#allocation2 + $0x290] sm:$0xff] %v10877_v14  ;;  %v10691_v3 = vadd.f32 %v7574_v1, %v1429_v11  ;;  %v10883_v4 = vadd.f32 %v7960_v2, %v1431_v12  ;;  %v7576_v5 = vpop.f32.mrb[43].mxu0  ;;  %v7962_v6 = vpop.f32.mrb[43].mxu1  ;;  %v1449_v13 = vld [vmem:[#allocation2 + $0x340] sm:$0xff]  ;;  %v1451_v14 = vld [vmem:[#allocation2 + $0x350] sm:$0xff] }
 0x53c   : > { %8224 = vst [vmem:[#allocation2 + $0x288] sm:$0xff] %v10688_v63  ;;  %8226 = vst [vmem:[#allocation2 + $0x298] sm:$0xff] %v10880_v0  ;;  %v10694_v7 = vadd.f32 %v7576_v5, %v1430_v17  ;;  %v10886_v8 = vadd.f32 %v7962_v6, %v1432_v18  ;;  %v1453_v63 = vld [vmem:[#allocation2 + $0x360] sm:$0xff]  ;;  %v1455_v0 = vld [vmem:[#allocation2 + $0x370] sm:$0xff] }
 0x53d   : > { %8227 = vst [vmem:[#allocation2 + $0x2a0] sm:$0xff] %v10691_v3  ;;  %8229 = vst [vmem:[#allocation2 + $0x2b0] sm:$0xff] %v10883_v4  ;;  %v1454_v5 = vld [vmem:[#allocation2 + $0x368] sm:$0xff]  ;;  %v1456_v6 = vld [vmem:[#allocation2 + $0x378] sm:$0xff] }
 0x53e   : > { %8228 = vst [vmem:[#allocation2 + $0x2a8] sm:$0xff] %v10694_v7  ;;  %8230 = vst [vmem:[#allocation2 + $0x2b8] sm:$0xff] %v10886_v8 }
 0x540   : > { %v7580_v22 = vpop.f32.mrb[44].mxu0  ;;  %v7966_v23 = vpop.f32.mrb[44].mxu1 }
 0x541   : > { %v10697_v25 = vadd.f32 %v7580_v22, %v1433_v19  ;;  %v10889_v26 = vadd.f32 %v7966_v23, %v1435_v9  ;;  %v7582_v27 = vpop.f32.mrb[45].mxu0  ;;  %v7968_v28 = vpop.f32.mrb[45].mxu1 }
 0x542   : > { %v10700_v31 = vadd.f32 %v7582_v27, %v1434_v20  ;;  %v10892_v32 = vadd.f32 %v7968_v28, %v1436_v21  ;;  %v7584_v33 = vpop.f32.mrb[46].mxu0  ;;  %v7970_v34 = vpop.f32.mrb[46].mxu1  ;;  %v1458_v27 = vld [vmem:[#allocation2 + $0x388] sm:$0xff]  ;;  %v1460_v28 = vld [vmem:[#allocation2 + $0x398] sm:$0xff] }
 0x543   : > { %8231 = vst [vmem:[#allocation2 + $0x2c0] sm:$0xff] %v10697_v25  ;;  %8233 = vst [vmem:[#allocation2 + $0x2d0] sm:$0xff] %v10889_v26  ;;  %v10703_v35 = vadd.f32 %v7584_v33, %v1437_v10  ;;  %v10895_v36 = vadd.f32 %v7970_v34, %v1439_v24  ;;  %v7586_v37 = vpop.f32.mrb[47].mxu0  ;;  %v7972_v38 = vpop.f32.mrb[47].mxu1  ;;  %v1457_v25 = vld [vmem:[#allocation2 + $0x380] sm:$0xff]  ;;  %v1459_v26 = vld [vmem:[#allocation2 + $0x390] sm:$0xff] }
 0x544   : > { %8232 = vst [vmem:[#allocation2 + $0x2c8] sm:$0xff] %v10700_v31  ;;  %8234 = vst [vmem:[#allocation2 + $0x2d8] sm:$0xff] %v10892_v32  ;;  %v10706_v39 = vadd.f32 %v7586_v37, %v1438_v29  ;;  %v10898_v40 = vadd.f32 %v7972_v38, %v1440_v30  ;;  %v1461_v31 = vld [vmem:[#allocation2 + $0x3a0] sm:$0xff]  ;;  %v1463_v32 = vld [vmem:[#allocation2 + $0x3b0] sm:$0xff] }
 0x545   : > { %8235 = vst [vmem:[#allocation2 + $0x2e0] sm:$0xff] %v10703_v35  ;;  %8237 = vst [vmem:[#allocation2 + $0x2f0] sm:$0xff] %v10895_v36  ;;  %v1462_v37 = vld [vmem:[#allocation2 + $0x3a8] sm:$0xff]  ;;  %v1464_v38 = vld [vmem:[#allocation2 + $0x3b8] sm:$0xff] }
 0x546   : > { %8236 = vst [vmem:[#allocation2 + $0x2e8] sm:$0xff] %v10706_v39  ;;  %8238 = vst [vmem:[#allocation2 + $0x2f8] sm:$0xff] %v10898_v40 }
 0x548   : > { %v7590_v45 = vpop.f32.mrb[48].mxu0  ;;  %v7976_v46 = vpop.f32.mrb[48].mxu1 }
 0x549   : > { %v10709_v49 = vadd.f32 %v7590_v45, %v1441_v41  ;;  %v10901_v50 = vadd.f32 %v7976_v46, %v1443_v42  ;;  %v7592_v51 = vpop.f32.mrb[49].mxu0  ;;  %v7978_v52 = vpop.f32.mrb[49].mxu1 }
 0x54a   : > { %v10712_v55 = vadd.f32 %v7592_v51, %v1442_v43  ;;  %v10904_v56 = vadd.f32 %v7978_v52, %v1444_v44  ;;  %v7594_v57 = vpop.f32.mrb[50].mxu0  ;;  %v7980_v58 = vpop.f32.mrb[50].mxu1  ;;  %v1466_v51 = vld [vmem:[#allocation2 + $0x3c8] sm:$0xff]  ;;  %v1468_v52 = vld [vmem:[#allocation2 + $0x3d8] sm:$0xff] }
 0x54b   : > { %8239 = vst [vmem:[#allocation2 + $0x300] sm:$0xff] %v10709_v49  ;;  %8241 = vst [vmem:[#allocation2 + $0x310] sm:$0xff] %v10901_v50  ;;  %v10715_v59 = vadd.f32 %v7594_v57, %v1445_v47  ;;  %v10907_v60 = vadd.f32 %v7980_v58, %v1447_v48  ;;  %v7596_v61 = vpop.f32.mrb[51].mxu0  ;;  %v7982_v62 = vpop.f32.mrb[51].mxu1  ;;  %v1465_v49 = vld [vmem:[#allocation2 + $0x3c0] sm:$0xff]  ;;  %v1467_v50 = vld [vmem:[#allocation2 + $0x3d0] sm:$0xff] }
 0x54c   : > { %8240 = vst [vmem:[#allocation2 + $0x308] sm:$0xff] %v10712_v55  ;;  %8242 = vst [vmem:[#allocation2 + $0x318] sm:$0xff] %v10904_v56  ;;  %v10718_v11 = vadd.f32 %v7596_v61, %v1446_v53  ;;  %v10910_v12 = vadd.f32 %v7982_v62, %v1448_v54  ;;  %v1469_v55 = vld [vmem:[#allocation2 + $0x3e0] sm:$0xff]  ;;  %v1471_v56 = vld [vmem:[#allocation2 + $0x3f0] sm:$0xff] }
 0x54d   : > { %8243 = vst [vmem:[#allocation2 + $0x320] sm:$0xff] %v10715_v59  ;;  %8245 = vst [vmem:[#allocation2 + $0x330] sm:$0xff] %v10907_v60  ;;  %v1470_v61 = vld [vmem:[#allocation2 + $0x3e8] sm:$0xff]  ;;  %v1472_v62 = vld [vmem:[#allocation2 + $0x3f8] sm:$0xff] }
 0x54e   : > { %8244 = vst [vmem:[#allocation2 + $0x328] sm:$0xff] %v10718_v11  ;;  %8246 = vst [vmem:[#allocation2 + $0x338] sm:$0xff] %v10910_v12 }
 0x550   : > { %v7600_v17 = vpop.f32.mrb[52].mxu0  ;;  %v7986_v18 = vpop.f32.mrb[52].mxu1 }
 0x551   : > { %v10721_v1 = vadd.f32 %v7600_v17, %v1449_v13  ;;  %v10913_v2 = vadd.f32 %v7986_v18, %v1451_v14  ;;  %v7602_v3 = vpop.f32.mrb[53].mxu0  ;;  %v7988_v4 = vpop.f32.mrb[53].mxu1 }
 0x552   : > { %v10724_v7 = vadd.f32 %v7602_v3, %v1450_v15  ;;  %v10916_v8 = vadd.f32 %v7988_v4, %v1452_v16  ;;  %v7604_v19 = vpop.f32.mrb[54].mxu0  ;;  %v7990_v9 = vpop.f32.mrb[54].mxu1  ;;  %v12513_v3 = vld [vmem:[%s14774_s3] sm:$0xff] (!%p10300_p1)  }
 0x553   : > { %8247 = vst [vmem:[#allocation2 + $0x340] sm:$0xff] %v10721_v1  ;;  %8249 = vst [vmem:[#allocation2 + $0x350] sm:$0xff] %v10913_v2  ;;  %v10727_v20 = vadd.f32 %v7604_v19, %v1453_v63  ;;  %v10919_v21 = vadd.f32 %v7990_v9, %v1455_v0  ;;  %v7606_v22 = vpop.f32.mrb[55].mxu0  ;;  %v7992_v23 = vpop.f32.mrb[55].mxu1  ;;  %v12511_v1 = vld [vmem:[%s14774_s3 + $0x40] sm:$0xff] (!%p10300_p1)   ;;  %v12519_v19 = vld [vmem:[%s14774_s3 + $0x50] sm:$0xff] (!%p10300_p1)  }
 0x554   : > { %8248 = vst [vmem:[#allocation2 + $0x348] sm:$0xff] %v10724_v7  ;;  %8250 = vst [vmem:[#allocation2 + $0x358] sm:$0xff] %v10916_v8  ;;  %v10730_v10 = vadd.f32 %v7606_v22, %v1454_v5  ;;  %v10922_v24 = vadd.f32 %v7992_v23, %v1456_v6  ;;  %v12512_v2 = vld [vmem:[%s14774_s3 + $0xc0] sm:$0xff] (!%p10300_p1)   ;;  %10339 = vmatprep.subr.bf16.mxu0 (!%p10300_p1), %v12511_v1  ;;  %v12515_v5 = vld [vmem:[%s14774_s3 + $0x48] sm:$0xff] (!%p10300_p1)  }
 0x555   : > { %8251 = vst [vmem:[#allocation2 + $0x360] sm:$0xff] %v10727_v20  ;;  %8253 = vst [vmem:[#allocation2 + $0x370] sm:$0xff] %v10919_v21  ;;  %10451 = vmatprep.subr.bf16.mxu1 (!%p10300_p1), %v12512_v2  ;;  %v12514_v4 = vld [vmem:[%s14774_s3 + $0x80] sm:$0xff] (!%p10300_p1)   ;;  %10340 = vmatpush3.bf16.msra.mxu0 (!%p10300_p1), %v12513_v3  ;;  %v12516_v6 = vld [vmem:[%s14774_s3 + $0xc8] sm:$0xff] (!%p10300_p1)  }
 0x556   : > { %8252 = vst [vmem:[#allocation2 + $0x368] sm:$0xff] %v10730_v10  ;;  %8254 = vst [vmem:[#allocation2 + $0x378] sm:$0xff] %v10922_v24  ;;  %10452 = vmatpush3.bf16.msra.mxu1 (!%p10300_p1), %v12514_v4  ;;  %10341 = vmatprep.subr.bf16.mxu0 (!%p10300_p1), %v12515_v5  ;;  %v12517_v7 = vld [vmem:[%s14774_s3 + $0x8] sm:$0xff] (!%p10300_p1)   ;;  %v12520_v9 = vld [vmem:[%s14774_s3 + $0xd0] sm:$0xff] (!%p10300_p1)  }
 0x557   : > { %10453 = vmatprep.subr.bf16.mxu1 (!%p10300_p1), %v12516_v6  ;;  %v12518_v8 = vld [vmem:[%s14774_s3 + $0x88] sm:$0xff] (!%p10300_p1)   ;;  %v12521_v20 = vld [vmem:[%s14774_s3 + $0x10] sm:$0xff] (!%p10300_p1)   ;;  %v12523_v22 = vld [vmem:[%s14774_s3 + $0x58] sm:$0xff] (!%p10300_p1)  }
 0x558   : > { %v7610_v29 = vpop.f32.mrb[56].mxu0  ;;  %v7996_v30 = vpop.f32.mrb[56].mxu1  ;;  %v12522_v21 = vld [vmem:[%s14774_s3 + $0x90] sm:$0xff] (!%p10300_p1)   ;;  %v12524_v23 = vld [vmem:[%s14774_s3 + $0xd8] sm:$0xff] (!%p10300_p1)  }
 0x559   : > { %v10733_v33 = vadd.f32 %v7610_v29, %v1457_v25  ;;  %v10925_v34 = vadd.f32 %v7996_v30, %v1459_v26  ;;  %v7612_v35 = vpop.f32.mrb[57].mxu0  ;;  %v7998_v36 = vpop.f32.mrb[57].mxu1  ;;  %10342 = vmatpush3.bf16.msra.mxu0 (!%p10300_p1), %v12517_v7  ;;  %v12525_v10 = vld [vmem:[%s14774_s3 + $0x18] sm:$0xff] (!%p10300_p1)   ;;  %v12527_v25 = vld [vmem:[%s14774_s3 + $0x60] sm:$0xff] (!%p10300_p1)   ;;  %v12531_v30 = vld [vmem:[%s14774_s3 + $0x68] sm:$0xff] (!%p10300_p1)  }
 0x55a   : > { %v10736_v39 = vadd.f32 %v7612_v35, %v1458_v27  ;;  %v10928_v40 = vadd.f32 %v7998_v36, %v1460_v28  ;;  %v7614_v41 = vpop.f32.mrb[58].mxu0  ;;  %v8000_v42 = vpop.f32.mrb[58].mxu1  ;;  %10454 = vmatpush3.bf16.msra.mxu1 (!%p10300_p1), %v12518_v8  ;;  %10343 = vmatprep.subr.bf16.mxu0 (!%p10300_p1), %v12519_v19  ;;  %v12526_v24 = vld [vmem:[%s14774_s3 + $0x98] sm:$0xff] (!%p10300_p1)   ;;  %v12528_v26 = vld [vmem:[%s14774_s3 + $0xe0] sm:$0xff] (!%p10300_p1)   ;;  %v8405_v28 = vlaneseq (!%p10300_p1)  ;;  %v12535_v35 = vld [vmem:[%s14774_s3 + $0x70] sm:$0xff] (!%p10300_p1)  }
 0x55b   : > { %8255 = vst [vmem:[#allocation2 + $0x380] sm:$0xff] %v10733_v33  ;;  %8257 = vst [vmem:[#allocation2 + $0x390] sm:$0xff] %v10925_v34  ;;  %v10739_v43 = vadd.f32 %v7614_v41, %v1461_v31  ;;  %v10931_v44 = vadd.f32 %v8000_v42, %v1463_v32  ;;  %v7616_v45 = vpop.f32.mrb[59].mxu0  ;;  %v8002_v46 = vpop.f32.mrb[59].mxu1  ;;  %10455 = vmatprep.subr.bf16.mxu1 (!%p10300_p1), %v12520_v9  ;;  %v12529_v27 = vld [vmem:[%s14774_s3 + $0x20] sm:$0xff] (!%p10300_p1)   ;;  %v12532_v31 = vld [vmem:[%s14774_s3 + $0xe8] sm:$0xff] (!%p10300_p1)  }
 0x55c   : > { %8256 = vst [vmem:[#allocation2 + $0x388] sm:$0xff] %v10736_v39  ;;  %8258 = vst [vmem:[#allocation2 + $0x398] sm:$0xff] %v10928_v40  ;;  %v10742_v47 = vadd.f32 %v7616_v45, %v1462_v37  ;;  %v10934_v48 = vadd.f32 %v8002_v46, %v1464_v38  ;;  %v12530_v29 = vld [vmem:[%s14774_s3 + $0xa0] sm:$0xff] (!%p10300_p1)   ;;  %v12533_v32 = vld [vmem:[%s14774_s3 + $0x28] sm:$0xff] (!%p10300_p1)   ;;  %v8406_v33 = vshrl.u32 (!%p10300_p1), %v8405_v28, 7 }
 0x55d   : > { %8259 = vst [vmem:[#allocation2 + $0x3a0] sm:$0xff] %v10739_v43  ;;  %8261 = vst [vmem:[#allocation2 + $0x3b0] sm:$0xff] %v10931_v44  ;;  %10344 = vmatpush3.bf16.msra.mxu0 (!%p10300_p1), %v12521_v20  ;;  %v12534_v34 = vld [vmem:[%s14774_s3 + $0xa8] sm:$0xff] (!%p10300_p1)   ;;  %v12536_v36 = vld [vmem:[%s14774_s3 + $0xf0] sm:$0xff] (!%p10300_p1)  }
 0x55e   : > { %8260 = vst [vmem:[#allocation2 + $0x3a8] sm:$0xff] %v10742_v47  ;;  %8262 = vst [vmem:[#allocation2 + $0x3b8] sm:$0xff] %v10934_v48  ;;  %10456 = vmatpush3.bf16.msra.mxu1 (!%p10300_p1), %v12522_v21  ;;  %10345 = vmatprep.subr.bf16.mxu0 (!%p10300_p1), %v12523_v22  ;;  %v12537_v37 = vld [vmem:[%s14774_s3 + $0x30] sm:$0xff] (!%p10300_p1)   ;;  %v8411_v38 = vsub.s32 (!%p10300_p1), 1, %v8406_v33  ;;  %v8419_v40 = vsub.s32 (!%p10300_p1), 3, %v8406_v33  ;;  %v12539_v41 = vld [vmem:[%s14774_s3 + $0x78] sm:$0xff] (!%p10300_p1)  }
 0x55f   : > { %10457 = vmatprep.subr.bf16.mxu1 (!%p10300_p1), %v12524_v23  ;;  %v12538_v39 = vld [vmem:[%s14774_s3 + $0xb0] sm:$0xff] (!%p10300_p1)   ;;  %v8407_v42 = vsub.s32 (!%p10300_p1), 0, %v8406_v33  ;;  %v12540_v43 = vld [vmem:[%s14774_s3 + $0xf8] sm:$0xff] (!%p10300_p1)   ;;  %v8415_v44 = vsub.s32 (!%p10300_p1), 2, %v8406_v33  ;;  %v8276_v47 = vld [vmem:[#allocation2 + $0x8] sm:$0xff] (!%p10300_p1) }
 0x560   : > { %v7620_v53 = vpop.f32.mrb[60].mxu0  ;;  %v8006_v54 = vpop.f32.mrb[60].mxu1  ;;  %8274 = sbr.rel (%p10300_p1) target bundleno = 1738 (0x6ca), region = 94  ;;  %v12541_v45 = vld [vmem:[%s14774_s3 + $0x38] sm:$0xff] (!%p10300_p1)   ;;  %v8280_v48 = vld [vmem:[#allocation2 + $0x28] sm:$0xff] (!%p10300_p1)  ;;  %v8283_v8 = vld [vmem:[#allocation2 + $0x40] sm:$0xff] (!%p10300_p1) }
 0x561   : > { %v10745_v57 = vadd.f32 %v7620_v53, %v1465_v49  ;;  %v10937_v58 = vadd.f32 %v8006_v54, %v1467_v50  ;;  %v7622_v59 = vpop.f32.mrb[61].mxu0  ;;  %v8008_v60 = vpop.f32.mrb[61].mxu1  ;;  %10346 = vmatpush3.bf16.msra.mxu0 (!%p10300_p1), %v12525_v10  ;;  %v12542_v46 = vld [vmem:[%s14774_s3 + $0xb8] sm:$0xff] (!%p10300_p1)   ;;  %v8403_v49 = vld [vmem:[%s14773_s2] sm:$0xf] (!%p10300_p1)  ;;  %v8285_v23 = vld [vmem:[#allocation2 + $0x50] sm:$0xff] (!%p10300_p1) }
 0x562   : > { %v10748_v11 = vadd.f32 %v7622_v59, %v1466_v51  ;;  %v10940_v12 = vadd.f32 %v8008_v60, %v1468_v52  ;;  %v7624_v13 = vpop.f32.mrb[62].mxu0  ;;  %v8010_v14 = vpop.f32.mrb[62].mxu1  ;;  %10458 = vmatpush3.bf16.msra.mxu1 (!%p10300_p1), %v12526_v24  ;;  %10347 = vmatprep.subr.bf16.mxu0 (!%p10300_p1), %v12527_v25  ;;  %v14539_v50 = vrot.slane (!%p10300_p1), %v8403_v49, %v8411_v38  ;;  %v8278_v51 = vld [vmem:[#allocation2 + $0x18] sm:$0xff] (!%p10300_p1)  ;;  %v8275_v54 = vld [vmem:[#allocation2] sm:$0xff] (!%p10300_p1)  ;;  %v8281_v59 = vld [vmem:[#allocation2 + $0x30] sm:$0xff] (!%p10300_p1) }
 0x563   : > { %8263 = vst [vmem:[#allocation2 + $0x3c0] sm:$0xff] %v10745_v57  ;;  %8265 = vst [vmem:[#allocation2 + $0x3d0] sm:$0xff] %v10937_v58  ;;  %v10751_v15 = vadd.f32 %v7624_v13, %v1469_v55  ;;  %v10943_v16 = vadd.f32 %v8010_v14, %v1471_v56  ;;  %v7626_v17 = vpop.f32.mrb[63].mxu0  ;;  %v8012_v18 = vpop.f32.mrb[63].mxu1  ;;  %10459 = vmatprep.subr.bf16.mxu1 (!%p10300_p1), %v12528_v26  ;;  %v8282_v52 = vld [vmem:[#allocation2 + $0x38] sm:$0xff] (!%p10300_p1)  ;;  %v14541_v53 = vrot.slane (!%p10300_p1), %v8403_v49, %v8419_v40  ;;  %v8279_v57 = vld [vmem:[#allocation2 + $0x20] sm:$0xff] (!%p10300_p1) }
 0x564   : > { %8264 = vst [vmem:[#allocation2 + $0x3c8] sm:$0xff] %v10748_v11  ;;  %8266 = vst [vmem:[#allocation2 + $0x3d8] sm:$0xff] %v10940_v12  ;;  %v10754_v63 = vadd.f32 %v7626_v17, %v1470_v61  ;;  %v10946_v0 = vadd.f32 %v8012_v18, %v1472_v62  ;;  %v14543_v55 = vrot.slane (!%p10300_p1), %v8403_v49, %v8407_v42  ;;  %v8277_v58 = vld [vmem:[#allocation2 + $0x10] sm:$0xff] (!%p10300_p1)  ;;  %v8288_v17 = vld [vmem:[#allocation2 + $0x68] sm:$0xff] (!%p10300_p1) }
 0x565   : > { %8267 = vst [vmem:[#allocation2 + $0x3e0] sm:$0xff] %v10751_v15  ;;  %8269 = vst [vmem:[#allocation2 + $0x3f0] sm:$0xff] %v10943_v16  ;;  %10348 = vmatpush3.bf16.msra.mxu0 (!%p10300_p1), %v12529_v27  ;;  %v14545_v56 = vrot.slane (!%p10300_p1), %v8403_v49, %v8415_v44  ;;  %v8426_v60 = vadd.f32 (!%p10300_p1), %v14539_v50, %v8276_v47  ;;  %v8430_v61 = vadd.f32 (!%p10300_p1), %v14539_v50, %v8280_v48  ;;  %v8284_v16 = vld [vmem:[#allocation2 + $0x48] sm:$0xff] (!%p10300_p1)  ;;  %v8286_v2 = vld [vmem:[#allocation2 + $0x58] sm:$0xff] (!%p10300_p1) }
 0x566   : > { %8268 = vst [vmem:[#allocation2 + $0x3e8] sm:$0xff] %v10754_v63  ;;  %8270 = vst [vmem:[#allocation2 + $0x3f8] sm:$0xff] %v10946_v0  ;;  %10460 = vmatpush3.bf16.msra.mxu1 (!%p10300_p1), %v12530_v29  ;;  %10349 = vmatprep.subr.bf16.mxu0 (!%p10300_p1), %v12531_v30  ;;  %v8428_v62 = vadd.f32 (!%p10300_p1), %v14541_v53, %v8278_v51  ;;  %v8432_v11 = vadd.f32 (!%p10300_p1), %v14541_v53, %v8282_v52  ;;  %v8290_v3 = vld [vmem:[#allocation2 + $0x78] sm:$0xff] (!%p10300_p1)  ;;  %v8287_v19 = vld [vmem:[#allocation2 + $0x60] sm:$0xff] (!%p10300_p1) }
 0x567   : > { %10461 = vmatprep.subr.bf16.mxu1 %v12532_v31  ;;  %v8425_v12 = vadd.f32 %v14543_v55, %v8275_v54  ;;  %v8429_v13 = vadd.f32 %v14543_v55, %v8279_v57  ;;  %v8427_v14 = vadd.f32 %v14545_v56, %v8277_v58  ;;  %v8431_v15 = vadd.f32 %v14545_v56, %v8281_v59  ;;  %v8289_v10 = vld [vmem:[#allocation2 + $0x70] sm:$0xff]  ;;  %v8292_v28 = vld [vmem:[#allocation2 + $0x88] sm:$0xff]  ;;  %v8294_v38 = vld [vmem:[#allocation2 + $0x98] sm:$0xff] }
 0x568   : > { %v8554_v18 = vmax.f32 %v8426_v60, 0.0  ;;  %v8558_v63 = vmax.f32 %v8430_v61, 0.0  ;;  %v8556_v0 = vmax.f32 %v8428_v62, 0.0  ;;  %v8560_v1 = vmax.f32 %v8432_v11, 0.0  ;;  %v8296_v33 = vld [vmem:[#allocation2 + $0xa8] sm:$0xff]  ;;  %v8291_v44 = vld [vmem:[#allocation2 + $0x80] sm:$0xff] }
 0x569   : > { %10350 = vmatpush3.bf16.msra.mxu0 %v12533_v32  ;;  %v8553_v4 = vmax.f32 %v8425_v12, 0.0  ;;  %v8557_v5 = vmax.f32 %v8429_v13, 0.0  ;;  %v8555_v6 = vmax.f32 %v8427_v14, 0.0  ;;  %v8559_v7 = vmax.f32 %v8431_v15, 0.0  ;;  %v8293_v51 = vld [vmem:[#allocation2 + $0x90] sm:$0xff]  ;;  %v8300_v60 = vld [vmem:[#allocation2 + $0xc8] sm:$0xff] }
 0x56a   : > { %10462 = vmatpush3.bf16.msra.mxu1 %v12534_v34  ;;  %10351 = vmatprep.subr.bf16.mxu0 %v12535_v35  ;;  %v8682_v9 = vpack.c.bf16 %v8558_v63, %v8554_v18  ;;  %v8684_v20 = vpack.c.bf16 %v8560_v1, %v8556_v0  ;;  %v8434_v21 = vadd.f32 %v14539_v50, %v8284_v16  ;;  %v8297_v52 = vld [vmem:[#allocation2 + $0xb0] sm:$0xff]  ;;  %v8304_v13 = vld [vmem:[#allocation2 + $0xe8] sm:$0xff]  ;;  %v8302_v18 = vld [vmem:[#allocation2 + $0xd8] sm:$0xff] }
 0x56b   : > { %10463 = vmatprep.subr.bf16.mxu1 %v12536_v36  ;;  %v8438_v22 = vadd.f32 %v14539_v50, %v8288_v17  ;;  %v8681_v24 = vpack.c.bf16 %v8557_v5, %v8553_v4  ;;  %v8683_v25 = vpack.c.bf16 %v8559_v7, %v8555_v6  ;;  %v8436_v26 = vadd.f32 %v14541_v53, %v8286_v2  ;;  %v8306_v63 = vld [vmem:[#allocation2 + $0xf8] sm:$0xff] }
 0x56c   : > { %v8440_v27 = vadd.f32 %v14541_v53, %v8290_v3  ;;  %9040 = vmatprep.mubr.bf16.mxu0 %v8682_v9  ;;  %9201 = vmatprep.mubr.bf16.mxu1 %v8684_v20  ;;  %v8562_v29 = vmax.f32 %v8434_v21, 0.0  ;;  %v8433_v31 = vadd.f32 %v14543_v55, %v8283_v8  ;;  %v8437_v32 = vadd.f32 %v14543_v55, %v8287_v19  ;;  %v8299_v9 = vld [vmem:[#allocation2 + $0xc0] sm:$0xff]  ;;  %v8301_v21 = vld [vmem:[#allocation2 + $0xd0] sm:$0xff] }
 0x56d   : > { %10352 = vmatpush3.bf16.msra.mxu0 %v12537_v37  ;;  %v8566_v30 = vmax.f32 %v8438_v22, 0.0  ;;  %v8564_v34 = vmax.f32 %v8436_v26, 0.0  ;;  %v8435_v36 = vadd.f32 %v14545_v56, %v8285_v23  ;;  %v8439_v37 = vadd.f32 %v14545_v56, %v8289_v10  ;;  %v8303_v20 = vld [vmem:[#allocation2 + $0xe0] sm:$0xff]  ;;  %v8305_v10 = vld [vmem:[#allocation2 + $0xf0] sm:$0xff] }
 0x56e   : > { %10464 = vmatpush3.bf16.msra.mxu1 %v12538_v39  ;;  %10353 = vmatprep.subr.bf16.mxu0 %v12539_v41  ;;  %v8568_v35 = vmax.f32 %v8440_v27, 0.0  ;;  %v8298_v39 = vld [vmem:[#allocation2 + $0xb8] sm:$0xff]  ;;  %v8561_v41 = vmax.f32 %v8433_v31, 0.0  ;;  %v8565_v42 = vmax.f32 %v8437_v32, 0.0  ;;  %v8446_v49 = vadd.f32 %v14539_v50, %v8296_v33 }
 0x56f   : > { %10465 = vmatprep.subr.bf16.mxu1 %v12540_v43  ;;  %v8686_v40 = vpack.c.bf16 %v8566_v30, %v8562_v29  ;;  %v8442_v43 = vadd.f32 %v14539_v50, %v8292_v28  ;;  %v8563_v47 = vmax.f32 %v8435_v36, 0.0  ;;  %v8567_v48 = vmax.f32 %v8439_v37, 0.0  ;;  %v8310_v28 = vld [vmem:[#allocation2 + $0x118] sm:$0xff] }
 0x570   : > { %v8685_v54 = vpack.c.bf16 %v8565_v42, %v8561_v41  ;;  %v8444_v58 = vadd.f32 %v14541_v53, %v8294_v38  ;;  %v8448_v59 = vadd.f32 %v14541_v53, %v8298_v39  ;;  %v8574_v62 = vmax.f32 %v8446_v49, 0.0  ;;  %v8314_v29 = vld [vmem:[#allocation2 + $0x138] sm:$0xff] }
 0x571   : > { %10354 = vmatpush3.bf16.msra.mxu0 %v12541_v45  ;;  %v8295_v45 = vld [vmem:[#allocation2 + $0xa0] sm:$0xff]  ;;  %v8570_v57 = vmax.f32 %v8442_v43, 0.0  ;;  %v8687_v61 = vpack.c.bf16 %v8567_v48, %v8563_v47  ;;  %v8441_v11 = vadd.f32 %v14543_v55, %v8291_v44  ;;  %v8443_v16 = vadd.f32 %v14545_v56, %v8293_v51  ;;  %v8309_v51 = vld [vmem:[#allocation2 + $0x110] sm:$0xff] }
 0x572   : > { %10466 = vmatpush3.bf16.msra.mxu1 %v12542_v46  ;;  %v8688_v46 = vpack.c.bf16 %v8568_v35, %v8564_v34  ;;  %v8445_v12 = vadd.f32 %v14543_v55, %v8295_v45  ;;  %v8572_v14 = vmax.f32 %v8444_v58, 0.0  ;;  %v8576_v15 = vmax.f32 %v8448_v59, 0.0  ;;  %v8307_v44 = vld [vmem:[#allocation2 + $0x100] sm:$0xff]  ;;  %v8316_v58 = vld [vmem:[#allocation2 + $0x148] sm:$0xff] }
 0x573   : > { %v8447_v17 = vadd.f32 %v14545_v56, %v8297_v52  ;;  %v8690_v0 = vpack.c.bf16 %v8574_v62, %v8570_v57  ;;  %v8569_v1 = vmax.f32 %v8441_v11, 0.0  ;;  %v8450_v3 = vadd.f32 %v14539_v50, %v8300_v60  ;;  %v8311_v45 = vld [vmem:[#allocation2 + $0x120] sm:$0xff]  ;;  %v8313_v52 = vld [vmem:[#allocation2 + $0x130] sm:$0xff]  ;;  %v8320_v59 = vld [vmem:[#allocation2 + $0x168] sm:$0xff] }
 0x574   : > { %9041 = vmatmul.mubr.bf16.vlgmr.msra.gmra.mrb[0].mxu0 %v8681_v24  ;;  %v8573_v2 = vmax.f32 %v8445_v12, 0.0  ;;  %v8692_v4 = vpack.c.bf16 %v8576_v15, %v8572_v14  ;;  %v8571_v5 = vmax.f32 %v8443_v16, 0.0  ;;  %v8454_v7 = vadd.f32 %v14539_v50, %v8304_v13  ;;  %v8308_v24 = vld [vmem:[#allocation2 + $0x108] sm:$0xff]  ;;  %v8318_v60 = vld [vmem:[#allocation2 + $0x158] sm:$0xff] }
 0x575   : > { %9202 = vmatmul.mubr.bf16.vlgmr.msra.gmra.mrb[0].mxu1 %v8683_v25  ;;  %9048 = vmatprep.mubr.bf16.mxu0 %v8686_v40  ;;  %v8575_v6 = vmax.f32 %v8447_v17, 0.0  ;;  %v8452_v8 = vadd.f32 %v14541_v53, %v8302_v18  ;;  %v8456_v19 = vadd.f32 %v14541_v53, %v8306_v63  ;;  %v8578_v22 = vmax.f32 %v8450_v3, 0.0  ;;  %v8312_v25 = vld [vmem:[#allocation2 + $0x128] sm:$0xff] }
 0x576   : > { %9209 = vmatprep.mubr.bf16.mxu1 %v8688_v46  ;;  %v8582_v23 = vmax.f32 %v8454_v7, 0.0  ;;  %v8689_v30 = vpack.c.bf16 %v8573_v2, %v8569_v1  ;;  %v8449_v32 = vadd.f32 %v14543_v55, %v8299_v9  ;;  %v8453_v33 = vadd.f32 %v14543_v55, %v8303_v20  ;;  %v8319_v7 = vld [vmem:[#allocation2 + $0x160] sm:$0xff] }
 0x577   : > { %v8580_v26 = vmax.f32 %v8452_v8, 0.0  ;;  %v8584_v27 = vmax.f32 %v8456_v19, 0.0  ;;  %v8691_v31 = vpack.c.bf16 %v8575_v6, %v8571_v5  ;;  %v8451_v34 = vadd.f32 %v14545_v56, %v8301_v21  ;;  %v8315_v6 = vld [vmem:[#allocation2 + $0x140] sm:$0xff]  ;;  %v8317_v8 = vld [vmem:[#allocation2 + $0x150] sm:$0xff] }
 0x578   : > { %v8455_v35 = vadd.f32 %v14545_v56, %v8305_v10  ;;  %v8458_v36 = vadd.f32 %v14539_v50, %v8308_v24  ;;  %v8462_v37 = vadd.f32 %v14539_v50, %v8312_v25  ;;  %v8694_v38 = vpack.c.bf16 %v8582_v23, %v8578_v22  ;;  %v8321_v19 = vld [vmem:[#allocation2 + $0x170] sm:$0xff]  ;;  %v8324_v23 = vld [vmem:[#allocation2 + $0x188] sm:$0xff]  ;;  %v8326_v24 = vld [vmem:[#allocation2 + $0x198] sm:$0xff] }
 0x579   : > { %v8696_v39 = vpack.c.bf16 %v8584_v27, %v8580_v26  ;;  %v8460_v40 = vadd.f32 %v14541_v53, %v8310_v28  ;;  %v8464_v41 = vadd.f32 %v14541_v53, %v8314_v29  ;;  %v8577_v42 = vmax.f32 %v8449_v32, 0.0  ;;  %v8328_v10 = vld [vmem:[#allocation2 + $0x1a8] sm:$0xff]  ;;  %v8330_v25 = vld [vmem:[#allocation2 + $0x1b8] sm:$0xff] }
 0x57a   : > { %v8581_v43 = vmax.f32 %v8453_v33, 0.0  ;;  %v8579_v46 = vmax.f32 %v8451_v34, 0.0  ;;  %v8583_v47 = vmax.f32 %v8455_v35, 0.0  ;;  %v8586_v48 = vmax.f32 %v8458_v36, 0.0 }
 0x57b   : > { %v8590_v49 = vmax.f32 %v8462_v37, 0.0  ;;  %v8592_v57 = vmax.f32 %v8464_v41, 0.0  ;;  %v8457_v62 = vadd.f32 %v14543_v55, %v8307_v44  ;;  %v8461_v11 = vadd.f32 %v14543_v55, %v8311_v45  ;;  %v8327_v41 = vld [vmem:[#allocation2 + $0x1a0] sm:$0xff] }
 0x57c   : > { %9049 = vmatmul.mubr.bf16.gmra.mrb[4].mxu0 %v8685_v54  ;;  %v8588_v54 = vmax.f32 %v8460_v40, 0.0  ;;  %v8459_v12 = vadd.f32 %v14545_v56, %v8309_v51  ;;  %v8463_v13 = vadd.f32 %v14545_v56, %v8313_v52  ;;  %v8693_v14 = vpack.c.bf16 %v8581_v43, %v8577_v42  ;;  %v8323_v40 = vld [vmem:[#allocation2 + $0x180] sm:$0xff]  ;;  %v8332_v51 = vld [vmem:[#allocation2 + $0x1c8] sm:$0xff] }
 0x57d   : > { %9210 = vmatmul.mubr.bf16.gmra.mrb[4].mxu1 %v8687_v61  ;;  %9056 = vmatprep.mubr.bf16.mxu0 %v8690_v0  ;;  %v8322_v61 = vld [vmem:[#allocation2 + $0x178] sm:$0xff]  ;;  %v8695_v15 = vpack.c.bf16 %v8583_v47, %v8579_v46  ;;  %v8698_v16 = vpack.c.bf16 %v8590_v49, %v8586_v48  ;;  %v8466_v17 = vadd.f32 %v14539_v50, %v8316_v58  ;;  %v8585_v2 = vmax.f32 %v8457_v62, 0.0  ;;  %v8325_v46 = vld [vmem:[#allocation2 + $0x190] sm:$0xff]  ;;  %v8336_v52 = vld [vmem:[#allocation2 + $0x1e8] sm:$0xff] }
 0x57e   : > { %9217 = vmatprep.mubr.bf16.mxu1 %v8692_v4  ;;  %v8700_v18 = vpack.c.bf16 %v8592_v57, %v8588_v54  ;;  %v8470_v63 = vadd.f32 %v14539_v50, %v8320_v59  ;;  %v8468_v0 = vadd.f32 %v14541_v53, %v8318_v60  ;;  %v8472_v1 = vadd.f32 %v14541_v53, %v8322_v61  ;;  %v8329_v47 = vld [vmem:[#allocation2 + $0x1b0] sm:$0xff]  ;;  %v8334_v54 = vld [vmem:[#allocation2 + $0x1d8] sm:$0xff] }
 0x57f   : > { %v8589_v3 = vmax.f32 %v8461_v11, 0.0  ;;  %v8587_v4 = vmax.f32 %v8459_v12, 0.0  ;;  %v8591_v5 = vmax.f32 %v8463_v13, 0.0  ;;  %v8594_v9 = vmax.f32 %v8466_v17, 0.0  ;;  %v8338_v57 = vld [vmem:[#allocation2 + $0x1f8] sm:$0xff] }
 0x580   : > { %v8598_v20 = vmax.f32 %v8470_v63, 0.0  ;;  %v8596_v21 = vmax.f32 %v8468_v0, 0.0  ;;  %v8600_v22 = vmax.f32 %v8472_v1, 0.0  ;;  %v8465_v28 = vadd.f32 %v14543_v55, %v8315_v6 }
 0x581   : > { %v8697_v26 = vpack.c.bf16 %v8589_v3, %v8585_v2  ;;  %v8699_v27 = vpack.c.bf16 %v8591_v5, %v8587_v4  ;;  %v8469_v29 = vadd.f32 %v14543_v55, %v8319_v7  ;;  %v8474_v32 = vadd.f32 %v14539_v50, %v8324_v23  ;;  %v8331_v2 = vld [vmem:[#allocation2 + $0x1c0] sm:$0xff]  ;;  %v8333_v4 = vld [vmem:[#allocation2 + $0x1d0] sm:$0xff] }
 0x582   : > { %v8478_v33 = vadd.f32 %v14539_v50, %v8328_v10  ;;  %v8702_v34 = vpack.c.bf16 %v8598_v20, %v8594_v9  ;;  %v8704_v35 = vpack.c.bf16 %v8600_v22, %v8596_v21  ;;  %v8476_v36 = vadd.f32 %v14541_v53, %v8326_v24  ;;  %v8335_v3 = vld [vmem:[#allocation2 + $0x1e0] sm:$0xff]  ;;  %v8337_v5 = vld [vmem:[#allocation2 + $0x1f0] sm:$0xff]  ;;  %v8340_v9 = vld [vmem:[#allocation2 + $0x208] sm:$0xff] }
 0x583   : > { %v8480_v37 = vadd.f32 %v14541_v53, %v8330_v25  ;;  %v8602_v44 = vmax.f32 %v8474_v32, 0.0  ;;  %v8473_v58 = vadd.f32 %v14543_v55, %v8323_v40  ;;  %v8477_v59 = vadd.f32 %v14543_v55, %v8327_v41  ;;  %v8344_v20 = vld [vmem:[#allocation2 + $0x228] sm:$0xff]  ;;  %v8342_v21 = vld [vmem:[#allocation2 + $0x218] sm:$0xff] }
 0x584   : > { %9057 = vmatmul.mubr.bf16.gmra.mrb[8].mxu0 %v8689_v30  ;;  %v8467_v30 = vadd.f32 %v14545_v56, %v8317_v8  ;;  %v8606_v45 = vmax.f32 %v8478_v33, 0.0  ;;  %v8604_v48 = vmax.f32 %v8476_v36, 0.0  ;;  %v8475_v60 = vadd.f32 %v14545_v56, %v8325_v46  ;;  %v8346_v22 = vld [vmem:[#allocation2 + $0x238] sm:$0xff]  ;;  %v8339_v36 = vld [vmem:[#allocation2 + $0x200] sm:$0xff]  ;;  %v8348_v46 = vld [vmem:[#allocation2 + $0x248] sm:$0xff] }
 0x585   : > { %9218 = vmatmul.mubr.bf16.gmra.mrb[8].mxu1 %v8691_v31  ;;  %9064 = vmatprep.mubr.bf16.mxu0 %v8694_v38  ;;  %v8471_v31 = vadd.f32 %v14545_v56, %v8321_v19  ;;  %v8593_v38 = vmax.f32 %v8465_v28, 0.0  ;;  %v8608_v49 = vmax.f32 %v8480_v37, 0.0  ;;  %v8479_v61 = vadd.f32 %v14545_v56, %v8329_v47  ;;  %v8343_v37 = vld [vmem:[#allocation2 + $0x220] sm:$0xff]  ;;  %v8352_v47 = vld [vmem:[#allocation2 + $0x268] sm:$0xff] }
 0x586   : > { %9225 = vmatprep.mubr.bf16.mxu1 %v8696_v39  ;;  %v8597_v39 = vmax.f32 %v8469_v29, 0.0  ;;  %v8595_v42 = vmax.f32 %v8467_v30, 0.0  ;;  %v8706_v12 = vpack.c.bf16 %v8606_v45, %v8602_v44  ;;  %v8482_v13 = vadd.f32 %v14539_v50, %v8332_v51 }
 0x587   : > { %v8599_v43 = vmax.f32 %v8471_v31, 0.0  ;;  %v8488_v17 = vadd.f32 %v14541_v53, %v8338_v57  ;;  %v8605_v63 = vmax.f32 %v8477_v59, 0.0  ;;  %v8603_v0 = vmax.f32 %v8475_v60, 0.0 }
 0x588   : > { %v8701_v62 = vpack.c.bf16 %v8597_v39, %v8593_v38  ;;  %v8607_v1 = vmax.f32 %v8479_v61, 0.0  ;;  %v8610_v6 = vmax.f32 %v8482_v13, 0.0  ;;  %v8481_v24 = vadd.f32 %v14543_v55, %v8331_v2 }
 0x589   : > { %v8703_v11 = vpack.c.bf16 %v8599_v43, %v8595_v42  ;;  %v8616_v19 = vmax.f32 %v8488_v17, 0.0  ;;  %v8485_v25 = vadd.f32 %v14543_v55, %v8335_v3  ;;  %v8490_v28 = vadd.f32 %v14539_v50, %v8340_v9  ;;  %v8341_v42 = vld [vmem:[#allocation2 + $0x210] sm:$0xff] }
 0x58a   : > { %v8707_v10 = vpack.c.bf16 %v8607_v1, %v8603_v0  ;;  %v8494_v29 = vadd.f32 %v14539_v50, %v8344_v20  ;;  %v8492_v32 = vadd.f32 %v14541_v53, %v8342_v21  ;;  %v8496_v33 = vadd.f32 %v14541_v53, %v8346_v22  ;;  %v8345_v43 = vld [vmem:[#allocation2 + $0x230] sm:$0xff] }
 0x58b   : > { %v8618_v40 = vmax.f32 %v8490_v28, 0.0  ;;  %v8489_v51 = vadd.f32 %v14543_v55, %v8339_v36  ;;  %v8495_v57 = vadd.f32 %v14545_v56, %v8345_v43  ;;  %v8498_v61 = vadd.f32 %v14539_v50, %v8348_v46  ;;  %v8349_v0 = vld [vmem:[#allocation2 + $0x250] sm:$0xff]  ;;  %v8368_v43 = vld [vmem:[#allocation2 + $0x2e8] sm:$0xff] }
 0x58c   : > { %9065 = vmatmul.mubr.bf16.gmra.mrb[12].mxu0 %v8693_v14  ;;  %v8708_v14 = vpack.c.bf16 %v8608_v49, %v8604_v48  ;;  %v8622_v41 = vmax.f32 %v8494_v29, 0.0  ;;  %v8620_v44 = vmax.f32 %v8492_v32, 0.0  ;;  %v8624_v45 = vmax.f32 %v8496_v33, 0.0  ;;  %v8350_v48 = vld [vmem:[#allocation2 + $0x258] sm:$0xff]  ;;  %v8353_v1 = vld [vmem:[#allocation2 + $0x270] sm:$0xff]  ;;  %v8355_v32 = vld [vmem:[#allocation2 + $0x280] sm:$0xff] }
 0x58d   : > { %9226 = vmatmul.mubr.bf16.gmra.mrb[12].mxu1 %v8695_v15  ;;  %9072 = vmatprep.mubr.bf16.mxu0 %v8698_v16  ;;  %v8486_v15 = vadd.f32 %v14539_v50, %v8336_v52  ;;  %v8484_v16 = vadd.f32 %v14541_v53, %v8334_v54  ;;  %v8354_v49 = vld [vmem:[#allocation2 + $0x278] sm:$0xff]  ;;  %v8493_v52 = vadd.f32 %v14543_v55, %v8343_v37  ;;  %v8623_v17 = vmax.f32 %v8495_v57, 0.0  ;;  %v8359_v33 = vld [vmem:[#allocation2 + $0x2a0] sm:$0xff] }
 0x58e   : > { %9233 = vmatprep.mubr.bf16.mxu1 %v8700_v18  ;;  %v8601_v18 = vmax.f32 %v8473_v58, 0.0  ;;  %v8491_v54 = vadd.f32 %v14545_v56, %v8341_v42  ;;  %v8714_v60 = vpack.c.bf16 %v8622_v41, %v8618_v40  ;;  %v8504_v13 = vadd.f32 %v14541_v53, %v8354_v49  ;;  %v8364_v42 = vld [vmem:[#allocation2 + $0x2c8] sm:$0xff] }
 0x58f   : > { %v8614_v7 = vmax.f32 %v8486_v15, 0.0  ;;  %v8612_v8 = vmax.f32 %v8484_v16, 0.0  ;;  %v8621_v15 = vmax.f32 %v8493_v52, 0.0  ;;  %v8626_v2 = vmax.f32 %v8498_v61, 0.0 }
 0x590   : > { %v8705_v23 = vpack.c.bf16 %v8605_v63, %v8601_v18  ;;  %v8619_v16 = vmax.f32 %v8491_v54, 0.0  ;;  %v8347_v18 = vld [vmem:[#allocation2 + $0x240] sm:$0xff]  ;;  %v8505_v46 = vadd.f32 %v14543_v55, %v8355_v32  ;;  %v8514_v57 = vadd.f32 %v14539_v50, %v8364_v42 }
 0x591   : > { %v8710_v30 = vpack.c.bf16 %v8614_v7, %v8610_v6  ;;  %v8712_v31 = vpack.c.bf16 %v8616_v19, %v8612_v8  ;;  %v8351_v63 = vld [vmem:[#allocation2 + $0x260] sm:$0xff]  ;;  %v8356_v6 = vld [vmem:[#allocation2 + $0x288] sm:$0xff]  ;;  %v8358_v8 = vld [vmem:[#allocation2 + $0x298] sm:$0xff]  ;;  %v8497_v21 = vadd.f32 %v14543_v55, %v8347_v18 }
 0x592   : > { %v8360_v7 = vld [vmem:[#allocation2 + $0x2a8] sm:$0xff]  ;;  %v8362_v19 = vld [vmem:[#allocation2 + $0x2b8] sm:$0xff]  ;;  %v8715_v20 = vpack.c.bf16 %v8623_v17, %v8619_v16  ;;  %v8501_v22 = vadd.f32 %v14543_v55, %v8351_v63  ;;  %v8508_v28 = vadd.f32 %v14541_v53, %v8358_v8  ;;  %v8365_v16 = vld [vmem:[#allocation2 + $0x2d0] sm:$0xff]  ;;  %v8642_v18 = vmax.f32 %v8514_v57, 0.0 }
 0x593   : > { %v8512_v29 = vadd.f32 %v14541_v53, %v8362_v19  ;;  %v8369_v17 = vld [vmem:[#allocation2 + $0x2f0] sm:$0xff] }
 0x594   : > { %9073 = vmatmul.mubr.bf16.gmra.mrb[16].mxu0 %v8697_v26  ;;  %v8483_v26 = vadd.f32 %v14545_v56, %v8333_v4  ;;  %v8636_v40 = vmax.f32 %v8508_v28, 0.0  ;;  %v8371_v28 = vld [vmem:[#allocation2 + $0x300] sm:$0xff] }
 0x595   : > { %9234 = vmatmul.mubr.bf16.gmra.mrb[16].mxu1 %v8699_v27  ;;  %9080 = vmatprep.mubr.bf16.mxu0 %v8702_v34  ;;  %v8487_v27 = vadd.f32 %v14545_v56, %v8337_v5  ;;  %v8609_v34 = vmax.f32 %v8481_v24, 0.0  ;;  %v8632_v5 = vmax.f32 %v8504_v13, 0.0  ;;  %v8506_v24 = vadd.f32 %v14539_v50, %v8356_v6 }
 0x596   : > { %9241 = vmatprep.mubr.bf16.mxu1 %v8704_v35  ;;  %v8613_v35 = vmax.f32 %v8485_v25, 0.0  ;;  %v8611_v38 = vmax.f32 %v8483_v26, 0.0  ;;  %v8510_v25 = vadd.f32 %v14539_v50, %v8360_v7  ;;  %v8640_v41 = vmax.f32 %v8512_v29, 0.0  ;;  %v8375_v29 = vld [vmem:[#allocation2 + $0x320] sm:$0xff] }
 0x597   : > { %v8615_v39 = vmax.f32 %v8487_v27, 0.0  ;;  %v8634_v36 = vmax.f32 %v8506_v24, 0.0  ;;  %v8521_v42 = vadd.f32 %v14543_v55, %v8371_v28 }
 0x598   : > { %v8709_v58 = vpack.c.bf16 %v8613_v35, %v8609_v34  ;;  %v8638_v37 = vmax.f32 %v8510_v25, 0.0 }
 0x599   : > { %v8711_v59 = vpack.c.bf16 %v8615_v39, %v8611_v38  ;;  %v8357_v38 = vld [vmem:[#allocation2 + $0x290] sm:$0xff] }
 0x59a   : > { %v8361_v39 = vld [vmem:[#allocation2 + $0x2b0] sm:$0xff]  ;;  %v8722_v54 = vpack.c.bf16 %v8638_v37, %v8634_v36 }
 0x59b   : > { %v8511_v49 = vadd.f32 %v14545_v56, %v8361_v39  ;;  %v8384_v39 = vld [vmem:[#allocation2 + $0x368] sm:$0xff] }
 0x59c   : > { %9081 = vmatmul.mubr.bf16.gmra.mrb[20].mxu0 %v8701_v62  ;;  %v8716_v62 = vpack.c.bf16 %v8624_v45, %v8620_v44  ;;  %v8366_v44 = vld [vmem:[#allocation2 + $0x2d8] sm:$0xff] }
 0x59d   : > { %9242 = vmatmul.mubr.bf16.gmra.mrb[20].mxu1 %v8703_v11  ;;  %9088 = vmatprep.mubr.bf16.mxu0 %v8706_v12  ;;  %v8502_v11 = vadd.f32 %v14539_v50, %v8352_v47  ;;  %v8500_v12 = vadd.f32 %v14541_v53, %v8350_v48  ;;  %v8370_v45 = vld [vmem:[#allocation2 + $0x2f8] sm:$0xff]  ;;  %v8509_v47 = vadd.f32 %v14543_v55, %v8359_v33  ;;  %v8639_v13 = vmax.f32 %v8511_v49, 0.0 }
 0x59e   : > { %9249 = vmatprep.mubr.bf16.mxu1 %v8708_v14  ;;  %v8617_v14 = vmax.f32 %v8489_v51, 0.0  ;;  %v8507_v48 = vadd.f32 %v14545_v56, %v8357_v38  ;;  %v8520_v61 = vadd.f32 %v14541_v53, %v8370_v45  ;;  %v8380_v38 = vld [vmem:[#allocation2 + $0x348] sm:$0xff] }
 0x59f   : > { %v8630_v3 = vmax.f32 %v8502_v11, 0.0  ;;  %v8628_v4 = vmax.f32 %v8500_v12, 0.0  ;;  %v8637_v11 = vmax.f32 %v8509_v47, 0.0  ;;  %v8530_v49 = vadd.f32 %v14539_v50, %v8380_v38 }
 0x5a0   : > { %v8713_v9 = vpack.c.bf16 %v8621_v15, %v8617_v14  ;;  %v8635_v12 = vmax.f32 %v8507_v48, 0.0  ;;  %v8363_v14 = vld [vmem:[#allocation2 + $0x2c0] sm:$0xff] }
 0x5a1   : > { %v8718_v26 = vpack.c.bf16 %v8630_v3, %v8626_v2  ;;  %v8720_v27 = vpack.c.bf16 %v8632_v5, %v8628_v4  ;;  %v8367_v15 = vld [vmem:[#allocation2 + $0x2e0] sm:$0xff]  ;;  %v8372_v2 = vld [vmem:[#allocation2 + $0x308] sm:$0xff]  ;;  %v8374_v4 = vld [vmem:[#allocation2 + $0x318] sm:$0xff]  ;;  %v8513_v8 = vadd.f32 %v14543_v55, %v8363_v14  ;;  %v8658_v14 = vmax.f32 %v8530_v49, 0.0 }
 0x5a2   : > { %v8376_v3 = vld [vmem:[#allocation2 + $0x328] sm:$0xff]  ;;  %v8378_v5 = vld [vmem:[#allocation2 + $0x338] sm:$0xff]  ;;  %v8723_v7 = vpack.c.bf16 %v8639_v13, %v8635_v12  ;;  %v8517_v19 = vadd.f32 %v14543_v55, %v8367_v15  ;;  %v8524_v24 = vadd.f32 %v14541_v53, %v8374_v4  ;;  %v8381_v12 = vld [vmem:[#allocation2 + $0x350] sm:$0xff] }
 0x5a3   : > { %v8528_v25 = vadd.f32 %v14541_v53, %v8378_v5  ;;  %v8385_v13 = vld [vmem:[#allocation2 + $0x370] sm:$0xff] }
 0x5a4   : > { %9089 = vmatmul.mubr.bf16.gmra.mrb[24].mxu0 %v8705_v23  ;;  %v8499_v23 = vadd.f32 %v14545_v56, %v8349_v0  ;;  %v8652_v36 = vmax.f32 %v8524_v24, 0.0  ;;  %v8387_v24 = vld [vmem:[#allocation2 + $0x380] sm:$0xff] }
 0x5a5   : > { %9250 = vmatmul.mubr.bf16.gmra.mrb[24].mxu1 %v8707_v10  ;;  %9096 = vmatprep.mubr.bf16.mxu0 %v8710_v30  ;;  %v8503_v10 = vadd.f32 %v14545_v56, %v8353_v1  ;;  %v8625_v30 = vmax.f32 %v8497_v21, 0.0  ;;  %v8648_v1 = vmax.f32 %v8520_v61, 0.0  ;;  %v8522_v21 = vadd.f32 %v14539_v50, %v8372_v2 }
 0x5a6   : > { %9257 = vmatprep.mubr.bf16.mxu1 %v8712_v31  ;;  %v8629_v31 = vmax.f32 %v8501_v22, 0.0  ;;  %v8627_v34 = vmax.f32 %v8499_v23, 0.0  ;;  %v8526_v22 = vadd.f32 %v14539_v50, %v8376_v3  ;;  %v8656_v37 = vmax.f32 %v8528_v25, 0.0  ;;  %v8391_v25 = vld [vmem:[#allocation2 + $0x3a0] sm:$0xff] }
 0x5a7   : > { %v8631_v35 = vmax.f32 %v8503_v10, 0.0  ;;  %v8650_v32 = vmax.f32 %v8522_v21, 0.0  ;;  %v8537_v38 = vadd.f32 %v14543_v55, %v8387_v24 }
 0x5a8   : > { %v8717_v51 = vpack.c.bf16 %v8629_v31, %v8625_v30  ;;  %v8654_v33 = vmax.f32 %v8526_v22, 0.0 }
 0x5a9   : > { %v8719_v52 = vpack.c.bf16 %v8631_v35, %v8627_v34  ;;  %v8373_v34 = vld [vmem:[#allocation2 + $0x310] sm:$0xff] }
 0x5aa   : > { %v8377_v35 = vld [vmem:[#allocation2 + $0x330] sm:$0xff]  ;;  %v8730_v48 = vpack.c.bf16 %v8654_v33, %v8650_v32 }
 0x5ab   : > { %v8527_v45 = vadd.f32 %v14545_v56, %v8377_v35  ;;  %v8400_v35 = vld [vmem:[#allocation2 + $0x3e8] sm:$0xff] }
 0x5ac   : > { %9097 = vmatmul.mubr.bf16.gmra.mrb[28].mxu0 %v8709_v58  ;;  %v8724_v58 = vpack.c.bf16 %v8640_v41, %v8636_v40  ;;  %v8382_v40 = vld [vmem:[#allocation2 + $0x358] sm:$0xff] }
 0x5ad   : > { %9258 = vmatmul.mubr.bf16.gmra.mrb[28].mxu1 %v8711_v59  ;;  %9104 = vmatprep.mubr.bf16.mxu0 %v8714_v60  ;;  %v8518_v59 = vadd.f32 %v14539_v50, %v8368_v43  ;;  %v8516_v60 = vadd.f32 %v14541_v53, %v8366_v44  ;;  %v8386_v41 = vld [vmem:[#allocation2 + $0x378] sm:$0xff]  ;;  %v8525_v43 = vadd.f32 %v14543_v55, %v8375_v29  ;;  %v8655_v61 = vmax.f32 %v8527_v45, 0.0 }
 0x5ae   : > { %9265 = vmatprep.mubr.bf16.mxu1 %v8716_v62  ;;  %v8633_v62 = vmax.f32 %v8505_v46, 0.0  ;;  %v8523_v44 = vadd.f32 %v14545_v56, %v8373_v34  ;;  %v8536_v57 = vadd.f32 %v14541_v53, %v8386_v41  ;;  %v8396_v34 = vld [vmem:[#allocation2 + $0x3c8] sm:$0xff] }
 0x5af   : > { %v8646_v63 = vmax.f32 %v8518_v59, 0.0  ;;  %v8644_v0 = vmax.f32 %v8516_v60, 0.0  ;;  %v8653_v59 = vmax.f32 %v8525_v43, 0.0  ;;  %v8546_v45 = vadd.f32 %v14539_v50, %v8396_v34 }
 0x5b0   : > { %v8721_v6 = vpack.c.bf16 %v8637_v11, %v8633_v62  ;;  %v8651_v60 = vmax.f32 %v8523_v44, 0.0  ;;  %v8379_v62 = vld [vmem:[#allocation2 + $0x340] sm:$0xff] }
 0x5b1   : > { %v8726_v23 = vpack.c.bf16 %v8646_v63, %v8642_v18  ;;  %v8728_v10 = vpack.c.bf16 %v8648_v1, %v8644_v0  ;;  %v8383_v11 = vld [vmem:[#allocation2 + $0x360] sm:$0xff]  ;;  %v8388_v18 = vld [vmem:[#allocation2 + $0x388] sm:$0xff]  ;;  %v8390_v0 = vld [vmem:[#allocation2 + $0x398] sm:$0xff]  ;;  %v8529_v4 = vadd.f32 %v14543_v55, %v8379_v62 }
 0x5b2   : > { %v8392_v63 = vld [vmem:[#allocation2 + $0x3a8] sm:$0xff]  ;;  %v8394_v1 = vld [vmem:[#allocation2 + $0x3b8] sm:$0xff]  ;;  %v8731_v3 = vpack.c.bf16 %v8655_v61, %v8651_v60  ;;  %v8533_v5 = vadd.f32 %v14543_v55, %v8383_v11  ;;  %v8540_v21 = vadd.f32 %v14541_v53, %v8390_v0  ;;  %v8674_v60 = vmax.f32 %v8546_v45, 0.0 }
 0x5b3   : > { %v8544_v22 = vadd.f32 %v14541_v53, %v8394_v1 }
 0x5b4   : > { %9105 = vmatmul.mubr.bf16.gmra.mrb[32].mxu0 %v8713_v9  ;;  %v8515_v9 = vadd.f32 %v14545_v56, %v8365_v16  ;;  %v8668_v32 = vmax.f32 %v8540_v21, 0.0 }
 0x5b5   : > { %9266 = vmatmul.mubr.bf16.gmra.mrb[32].mxu1 %v8715_v20  ;;  %9112 = vmatprep.mubr.bf16.mxu0 %v8718_v26  ;;  %v8519_v20 = vadd.f32 %v14545_v56, %v8369_v17  ;;  %v8641_v26 = vmax.f32 %v8513_v8, 0.0  ;;  %v8664_v17 = vmax.f32 %v8536_v57, 0.0  ;;  %v8538_v8 = vadd.f32 %v14539_v50, %v8388_v18 }
 0x5b6   : > { %9273 = vmatprep.mubr.bf16.mxu1 %v8720_v27  ;;  %v8645_v27 = vmax.f32 %v8517_v19, 0.0  ;;  %v8643_v30 = vmax.f32 %v8515_v9, 0.0  ;;  %v8542_v19 = vadd.f32 %v14539_v50, %v8392_v63  ;;  %v8672_v33 = vmax.f32 %v8544_v22, 0.0 }
 0x5b7   : > { %v8647_v31 = vmax.f32 %v8519_v20, 0.0  ;;  %v8666_v28 = vmax.f32 %v8538_v8, 0.0 }
 0x5b8   : > { %v8725_v46 = vpack.c.bf16 %v8645_v27, %v8641_v26  ;;  %v8670_v29 = vmax.f32 %v8542_v19, 0.0 }
 0x5b9   : > { %v8727_v47 = vpack.c.bf16 %v8647_v31, %v8643_v30  ;;  %v8389_v30 = vld [vmem:[#allocation2 + $0x390] sm:$0xff] }
 0x5ba   : > { %v8393_v31 = vld [vmem:[#allocation2 + $0x3b0] sm:$0xff]  ;;  %v8738_v44 = vpack.c.bf16 %v8670_v29, %v8666_v28 }
 0x5bb   : > { %v8543_v41 = vadd.f32 %v14545_v56, %v8393_v31 }
 0x5bc   : > { %9113 = vmatmul.mubr.bf16.gmra.mrb[36].mxu0 %v8717_v51  ;;  %v8732_v51 = vpack.c.bf16 %v8656_v37, %v8652_v36  ;;  %v8398_v36 = vld [vmem:[#allocation2 + $0x3d8] sm:$0xff] }
 0x5bd   : > { %9274 = vmatmul.mubr.bf16.gmra.mrb[36].mxu1 %v8719_v52  ;;  %9120 = vmatprep.mubr.bf16.mxu0 %v8722_v54  ;;  %v8534_v52 = vadd.f32 %v14539_v50, %v8384_v39  ;;  %v8532_v54 = vadd.f32 %v14541_v53, %v8382_v40  ;;  %v8402_v37 = vld [vmem:[#allocation2 + $0x3f8] sm:$0xff]  ;;  %v8541_v39 = vadd.f32 %v14543_v55, %v8391_v25  ;;  %v8671_v57 = vmax.f32 %v8543_v41, 0.0 }
 0x5be   : > { %9281 = vmatprep.mubr.bf16.mxu1 %v8724_v58  ;;  %v8649_v58 = vmax.f32 %v8521_v42, 0.0  ;;  %v8539_v40 = vadd.f32 %v14545_v56, %v8389_v30  ;;  %v8552_v49 = vadd.f32 %v14541_v53, %v8402_v37 }
 0x5bf   : > { %v8662_v15 = vmax.f32 %v8534_v52, 0.0  ;;  %v8660_v16 = vmax.f32 %v8532_v54, 0.0  ;;  %v8669_v52 = vmax.f32 %v8541_v39, 0.0 }
 0x5c0   : > { %v8729_v2 = vpack.c.bf16 %v8653_v59, %v8649_v58  ;;  %v8667_v54 = vmax.f32 %v8539_v40, 0.0  ;;  %v8395_v58 = vld [vmem:[#allocation2 + $0x3c0] sm:$0xff]  ;;  %v8680_v11 = vmax.f32 %v8552_v49, 0.0 }
 0x5c1   : > { %v8734_v9 = vpack.c.bf16 %v8662_v15, %v8658_v14  ;;  %v8736_v20 = vpack.c.bf16 %v8664_v17, %v8660_v16  ;;  %v8399_v59 = vld [vmem:[#allocation2 + $0x3e0] sm:$0xff] }
 0x5c2   : > { %v8739_v14 = vpack.c.bf16 %v8671_v57, %v8667_v54  ;;  %v8549_v15 = vadd.f32 %v14543_v55, %v8399_v59 }
 0x5c4   : > { %9121 = vmatmul.mubr.bf16.gmra.mrb[40].mxu0 %v8721_v6  ;;  %v8531_v6 = vadd.f32 %v14545_v56, %v8381_v12  ;;  %v8397_v12 = vld [vmem:[#allocation2 + $0x3d0] sm:$0xff]  ;;  %v8677_v1 = vmax.f32 %v8549_v15, 0.0 }
 0x5c5   : > { %9282 = vmatmul.mubr.bf16.gmra.mrb[40].mxu1 %v8723_v7  ;;  %9128 = vmatprep.mubr.bf16.mxu0 %v8726_v23  ;;  %v8535_v7 = vadd.f32 %v14545_v56, %v8385_v13  ;;  %v8657_v23 = vmax.f32 %v8529_v4, 0.0  ;;  %v8547_v16 = vadd.f32 %v14545_v56, %v8397_v12 }
 0x5c6   : > { %9289 = vmatprep.mubr.bf16.mxu1 %v8728_v10  ;;  %v8661_v10 = vmax.f32 %v8533_v5, 0.0  ;;  %v8659_v26 = vmax.f32 %v8531_v6, 0.0 }
 0x5c7   : > { %v8663_v27 = vmax.f32 %v8535_v7, 0.0 }
 0x5c8   : > { %v8733_v42 = vpack.c.bf16 %v8661_v10, %v8657_v23 }
 0x5c9   : > { %v8735_v43 = vpack.c.bf16 %v8663_v27, %v8659_v26 }
 0x5cc   : > { %9129 = vmatmul.mubr.bf16.gmra.mrb[44].mxu0 %v8725_v46  ;;  %v8740_v46 = vpack.c.bf16 %v8672_v33, %v8668_v32 }
 0x5cd   : > { %9290 = vmatmul.mubr.bf16.gmra.mrb[44].mxu1 %v8727_v47  ;;  %9136 = vmatprep.mubr.bf16.mxu0 %v8730_v48  ;;  %v8550_v47 = vadd.f32 %v14539_v50, %v8400_v35  ;;  %v8548_v48 = vadd.f32 %v14541_v53, %v8398_v36  ;;  %v8401_v50 = vld [vmem:[#allocation2 + $0x3f0] sm:$0xff]  ;;  %v8545_v53 = vadd.f32 %v14543_v55, %v8395_v58 }
 0x5ce   : > { %9297 = vmatprep.mubr.bf16.mxu1 %v8732_v51  ;;  %v8665_v51 = vmax.f32 %v8537_v38, 0.0  ;;  %v8551_v17 = vadd.f32 %v14545_v56, %v8401_v50  ;;  %v14678_v56 = vld [vmem:[%s14775_s4] ss:$0 sm:$0xff] }
 0x5cf   : > { %v8678_v61 = vmax.f32 %v8550_v47, 0.0  ;;  %v8676_v62 = vmax.f32 %v8548_v48, 0.0  ;;  %v8673_v0 = vmax.f32 %v8545_v53, 0.0 }
 0x5d0   : > { %v8737_v13 = vpack.c.bf16 %v8669_v52, %v8665_v51 }
 0x5d1   : > { %v8742_v18 = vpack.c.bf16 %v8678_v61, %v8674_v60  ;;  %v8744_v63 = vpack.c.bf16 %v8680_v11, %v8676_v62  ;;  %v8741_v4 = vpack.c.bf16 %v8677_v1, %v8673_v0 }
 0x5d4   : > { %9137 = vmatmul.mubr.bf16.gmra.mrb[48].mxu0 %v8729_v2  ;;  %v8675_v2 = vmax.f32 %v8547_v16, 0.0 }
 0x5d5   : > { %9298 = vmatmul.mubr.bf16.gmra.mrb[48].mxu1 %v8731_v3  ;;  %9144 = vmatprep.mubr.bf16.mxu0 %v8734_v9  ;;  %v8679_v3 = vmax.f32 %v8551_v17, 0.0 }
 0x5d6   : > { %9305 = vmatprep.mubr.bf16.mxu1 %v8736_v20 }
 0x5d7   : > { %v8743_v5 = vpack.c.bf16 %v8679_v3, %v8675_v2 }
 0x5dc   : > { %9145 = vmatmul.mubr.bf16.gmra.mrb[52].mxu0 %v8733_v42 }
 0x5dd   : > { %9306 = vmatmul.mubr.bf16.gmra.mrb[52].mxu1 %v8735_v43  ;;  %9152 = vmatprep.mubr.bf16.mxu0 %v8738_v44 }
 0x5de   : > { %9313 = vmatprep.mubr.bf16.mxu1 %v8740_v46 }
 0x5e4   : > { %9153 = vmatmul.mubr.bf16.gmra.mrb[56].mxu0 %v8737_v13 }
 0x5e5   : > { %9314 = vmatmul.mubr.bf16.gmra.mrb[56].mxu1 %v8739_v14  ;;  %9160 = vmatprep.mubr.bf16.mxu0 %v8742_v18 }
 0x5e6   : > { %9321 = vmatprep.mubr.bf16.mxu1 %v8744_v63 }
 0x5ec   : > { %9161 = vmatmul.mubr.bf16.gmra.mrb[60].mxu0 %v8741_v4 }
 0x5ed   : > { %9322 = vmatmul.mubr.bf16.gmra.mrb[60].mxu1 %v8743_v5 }
 0x647   : > { %v10355_v6 = vpop.f32.mrb[0].mxu0 }
 0x648   : > { %v10467_v55 = vpop.f32.mrb[0].mxu1  ;;  %v10356_v7 = vpop.f32.mrb[1].mxu0 }
 0x649   : > { %v10468_v8 = vpop.f32.mrb[1].mxu1  ;;  %v10357_v19 = vadd.f32 %v10356_v7, %v10355_v6  ;;  %v10358_v20 = vpop.f32.mrb[2].mxu0 }
 0x64a   : > { %v10469_v9 = vadd.f32 %v10468_v8, %v10467_v55  ;;  %v10470_v21 = vpop.f32.mrb[2].mxu1  ;;  %v10359_v22 = vpop.f32.mrb[3].mxu0 }
 0x64b   : > { %v10471_v23 = vpop.f32.mrb[3].mxu1  ;;  %v9043_v10 = vadd.f32 %v10357_v19, %v14678_v56  ;;  %v10360_v24 = vadd.f32 %v10359_v22, %v10358_v20 }
 0x64c   : > { %v10472_v25 = vadd.f32 %v10471_v23, %v10470_v21 }
 0x64d   : > { %v9204_v26 = vadd.f32 %v10469_v9, %v9043_v10  ;;  %v9046_v27 = vadd.f32 %v10360_v24, %v14678_v56 }
 0x64f   : > { %9330 = vst [vmem:[%s13668_s14] sm:$0xff] %v9204_v26  ;;  %v9207_v28 = vadd.f32 %v10472_v25, %v9046_v27  ;;  %v10361_v29 = vpop.f32.mrb[4].mxu0 }
 0x650   : > { %v10473_v30 = vpop.f32.mrb[4].mxu1  ;;  %v10362_v31 = vpop.f32.mrb[5].mxu0 }
 0x651   : > { %v10474_v32 = vpop.f32.mrb[5].mxu1  ;;  %9331 = vst [vmem:[%s13668_s14 + $0x8] sm:$0xff] %v9207_v28  ;;  %v10363_v33 = vadd.f32 %v10362_v31, %v10361_v29  ;;  %v10364_v35 = vpop.f32.mrb[6].mxu0 }
 0x652   : > { %v10475_v34 = vadd.f32 %v10474_v32, %v10473_v30  ;;  %v10476_v36 = vpop.f32.mrb[6].mxu1  ;;  %v10365_v37 = vpop.f32.mrb[7].mxu0 }
 0x653   : > { %v10477_v38 = vpop.f32.mrb[7].mxu1  ;;  %v9051_v39 = vadd.f32 %v10363_v33, %v14678_v56  ;;  %v10366_v40 = vadd.f32 %v10365_v37, %v10364_v35 }
 0x654   : > { %v10478_v41 = vadd.f32 %v10477_v38, %v10476_v36 }
 0x655   : > { %v9212_v42 = vadd.f32 %v10475_v34, %v9051_v39  ;;  %v9054_v43 = vadd.f32 %v10366_v40, %v14678_v56 }
 0x657   : > { %9332 = vst [vmem:[%s13668_s14 + $0x10] sm:$0xff] %v9212_v42  ;;  %v9215_v44 = vadd.f32 %v10478_v41, %v9054_v43  ;;  %v10367_v45 = vpop.f32.mrb[8].mxu0 }
 0x658   : > { %v10479_v46 = vpop.f32.mrb[8].mxu1  ;;  %v10368_v47 = vpop.f32.mrb[9].mxu0 }
 0x659   : > { %v10480_v48 = vpop.f32.mrb[9].mxu1  ;;  %9333 = vst [vmem:[%s13668_s14 + $0x18] sm:$0xff] %v9215_v44  ;;  %v10369_v49 = vadd.f32 %v10368_v47, %v10367_v45  ;;  %v10370_v52 = vpop.f32.mrb[10].mxu0 }
 0x65a   : > { %v10481_v51 = vadd.f32 %v10480_v48, %v10479_v46  ;;  %v10482_v54 = vpop.f32.mrb[10].mxu1  ;;  %v10371_v57 = vpop.f32.mrb[11].mxu0 }
 0x65b   : > { %v10483_v58 = vpop.f32.mrb[11].mxu1  ;;  %v9059_v59 = vadd.f32 %v10369_v49, %v14678_v56  ;;  %v10372_v60 = vadd.f32 %v10371_v57, %v10370_v52 }
 0x65c   : > { %v10484_v61 = vadd.f32 %v10483_v58, %v10482_v54 }
 0x65d   : > { %v9220_v62 = vadd.f32 %v10481_v51, %v9059_v59  ;;  %v9062_v11 = vadd.f32 %v10372_v60, %v14678_v56 }
 0x65f   : > { %9334 = vst [vmem:[%s13668_s14 + $0x20] sm:$0xff] %v9220_v62  ;;  %v9223_v12 = vadd.f32 %v10484_v61, %v9062_v11  ;;  %v10373_v50 = vpop.f32.mrb[12].mxu0 }
 0x660   : > { %v10485_v13 = vpop.f32.mrb[12].mxu1  ;;  %v10374_v14 = vpop.f32.mrb[13].mxu0 }
 0x661   : > { %v10486_v53 = vpop.f32.mrb[13].mxu1  ;;  %9335 = vst [vmem:[%s13668_s14 + $0x28] sm:$0xff] %v9223_v12  ;;  %v10375_v15 = vadd.f32 %v10374_v14, %v10373_v50  ;;  %v10376_v17 = vpop.f32.mrb[14].mxu0 }
 0x662   : > { %v10487_v16 = vadd.f32 %v10486_v53, %v10485_v13  ;;  %v10488_v18 = vpop.f32.mrb[14].mxu1  ;;  %v10377_v63 = vpop.f32.mrb[15].mxu0 }
 0x663   : > { %v10489_v0 = vpop.f32.mrb[15].mxu1  ;;  %v9067_v1 = vadd.f32 %v10375_v15, %v14678_v56  ;;  %v10378_v2 = vadd.f32 %v10377_v63, %v10376_v17 }
 0x664   : > { %v10490_v3 = vadd.f32 %v10489_v0, %v10488_v18 }
 0x665   : > { %v9228_v4 = vadd.f32 %v10487_v16, %v9067_v1  ;;  %v9070_v5 = vadd.f32 %v10378_v2, %v14678_v56 }
 0x667   : > { %9336 = vst [vmem:[%s13668_s14 + $0x30] sm:$0xff] %v9228_v4  ;;  %v9231_v6 = vadd.f32 %v10490_v3, %v9070_v5  ;;  %v10379_v55 = vpop.f32.mrb[16].mxu0 }
 0x668   : > { %v10491_v7 = vpop.f32.mrb[16].mxu1  ;;  %v10380_v8 = vpop.f32.mrb[17].mxu0 }
 0x669   : > { %v10492_v19 = vpop.f32.mrb[17].mxu1  ;;  %9337 = vst [vmem:[%s13668_s14 + $0x38] sm:$0xff] %v9231_v6  ;;  %v10381_v9 = vadd.f32 %v10380_v8, %v10379_v55  ;;  %v10382_v21 = vpop.f32.mrb[18].mxu0 }
 0x66a   : > { %v10493_v20 = vadd.f32 %v10492_v19, %v10491_v7  ;;  %v10494_v22 = vpop.f32.mrb[18].mxu1  ;;  %v10383_v23 = vpop.f32.mrb[19].mxu0 }
 0x66b   : > { %v10495_v10 = vpop.f32.mrb[19].mxu1  ;;  %v9075_v24 = vadd.f32 %v10381_v9, %v14678_v56  ;;  %v10384_v25 = vadd.f32 %v10383_v23, %v10382_v21 }
 0x66c   : > { %v10496_v26 = vadd.f32 %v10495_v10, %v10494_v22 }
 0x66d   : > { %v9236_v27 = vadd.f32 %v10493_v20, %v9075_v24  ;;  %v9078_v28 = vadd.f32 %v10384_v25, %v14678_v56 }
 0x66f   : > { %9338 = vst [vmem:[%s13668_s14 + $0x40] sm:$0xff] %v9236_v27  ;;  %v9239_v29 = vadd.f32 %v10496_v26, %v9078_v28  ;;  %v10385_v30 = vpop.f32.mrb[20].mxu0 }
 0x670   : > { %v10497_v31 = vpop.f32.mrb[20].mxu1  ;;  %v10386_v32 = vpop.f32.mrb[21].mxu0 }
 0x671   : > { %v10498_v33 = vpop.f32.mrb[21].mxu1  ;;  %9339 = vst [vmem:[%s13668_s14 + $0x48] sm:$0xff] %v9239_v29  ;;  %v10387_v34 = vadd.f32 %v10386_v32, %v10385_v30  ;;  %v10388_v36 = vpop.f32.mrb[22].mxu0 }
 0x672   : > { %v10499_v35 = vadd.f32 %v10498_v33, %v10497_v31  ;;  %v10500_v37 = vpop.f32.mrb[22].mxu1  ;;  %v10389_v38 = vpop.f32.mrb[23].mxu0 }
 0x673   : > { %v10501_v39 = vpop.f32.mrb[23].mxu1  ;;  %v9083_v40 = vadd.f32 %v10387_v34, %v14678_v56  ;;  %v10390_v41 = vadd.f32 %v10389_v38, %v10388_v36 }
 0x674   : > { %v10502_v42 = vadd.f32 %v10501_v39, %v10500_v37 }
 0x675   : > { %v9244_v43 = vadd.f32 %v10499_v35, %v9083_v40  ;;  %v9086_v44 = vadd.f32 %v10390_v41, %v14678_v56 }
 0x677   : > { %9340 = vst [vmem:[%s13668_s14 + $0x50] sm:$0xff] %v9244_v43  ;;  %v9247_v45 = vadd.f32 %v10502_v42, %v9086_v44  ;;  %v10391_v46 = vpop.f32.mrb[24].mxu0 }
 0x678   : > { %v10503_v47 = vpop.f32.mrb[24].mxu1  ;;  %v10392_v48 = vpop.f32.mrb[25].mxu0 }
 0x679   : > { %v10504_v49 = vpop.f32.mrb[25].mxu1  ;;  %9341 = vst [vmem:[%s13668_s14 + $0x58] sm:$0xff] %v9247_v45  ;;  %v10393_v51 = vadd.f32 %v10392_v48, %v10391_v46  ;;  %v10394_v54 = vpop.f32.mrb[26].mxu0 }
 0x67a   : > { %v10505_v52 = vadd.f32 %v10504_v49, %v10503_v47  ;;  %v10506_v57 = vpop.f32.mrb[26].mxu1  ;;  %v10395_v58 = vpop.f32.mrb[27].mxu0 }
 0x67b   : > { %v10507_v59 = vpop.f32.mrb[27].mxu1  ;;  %v9091_v60 = vadd.f32 %v10393_v51, %v14678_v56  ;;  %v10396_v61 = vadd.f32 %v10395_v58, %v10394_v54 }
 0x67c   : > { %v10508_v62 = vadd.f32 %v10507_v59, %v10506_v57 }
 0x67d   : > { %v9252_v11 = vadd.f32 %v10505_v52, %v9091_v60  ;;  %v9094_v12 = vadd.f32 %v10396_v61, %v14678_v56 }
 0x67f   : > { %9342 = vst [vmem:[%s13668_s14 + $0x60] sm:$0xff] %v9252_v11  ;;  %v9255_v50 = vadd.f32 %v10508_v62, %v9094_v12  ;;  %v10397_v13 = vpop.f32.mrb[28].mxu0 }
 0x680   : > { %v10509_v14 = vpop.f32.mrb[28].mxu1  ;;  %v10398_v53 = vpop.f32.mrb[29].mxu0 }
 0x681   : > { %v10510_v15 = vpop.f32.mrb[29].mxu1  ;;  %9343 = vst [vmem:[%s13668_s14 + $0x68] sm:$0xff] %v9255_v50  ;;  %v10399_v16 = vadd.f32 %v10398_v53, %v10397_v13  ;;  %v10400_v18 = vpop.f32.mrb[30].mxu0 }
 0x682   : > { %v10511_v17 = vadd.f32 %v10510_v15, %v10509_v14  ;;  %v10512_v63 = vpop.f32.mrb[30].mxu1  ;;  %v10401_v0 = vpop.f32.mrb[31].mxu0 }
 0x683   : > { %v10513_v1 = vpop.f32.mrb[31].mxu1  ;;  %v9099_v2 = vadd.f32 %v10399_v16, %v14678_v56  ;;  %v10402_v3 = vadd.f32 %v10401_v0, %v10400_v18 }
 0x684   : > { %v10514_v4 = vadd.f32 %v10513_v1, %v10512_v63 }
 0x685   : > { %v9260_v5 = vadd.f32 %v10511_v17, %v9099_v2  ;;  %v9102_v6 = vadd.f32 %v10402_v3, %v14678_v56 }
 0x687   : > { %9344 = vst [vmem:[%s13668_s14 + $0x70] sm:$0xff] %v9260_v5  ;;  %v9263_v55 = vadd.f32 %v10514_v4, %v9102_v6  ;;  %v10403_v7 = vpop.f32.mrb[32].mxu0 }
 0x688   : > { %v10515_v8 = vpop.f32.mrb[32].mxu1  ;;  %v10404_v19 = vpop.f32.mrb[33].mxu0 }
 0x689   : > { %v10516_v9 = vpop.f32.mrb[33].mxu1  ;;  %9345 = vst [vmem:[%s13668_s14 + $0x78] sm:$0xff] %v9263_v55  ;;  %v10405_v20 = vadd.f32 %v10404_v19, %v10403_v7  ;;  %v10406_v22 = vpop.f32.mrb[34].mxu0 }
 0x68a   : > { %v10517_v21 = vadd.f32 %v10516_v9, %v10515_v8  ;;  %v10518_v23 = vpop.f32.mrb[34].mxu1  ;;  %v10407_v10 = vpop.f32.mrb[35].mxu0 }
 0x68b   : > { %v10519_v24 = vpop.f32.mrb[35].mxu1  ;;  %v9107_v25 = vadd.f32 %v10405_v20, %v14678_v56  ;;  %v10408_v26 = vadd.f32 %v10407_v10, %v10406_v22 }
 0x68c   : > { %v10520_v27 = vadd.f32 %v10519_v24, %v10518_v23 }
 0x68d   : > { %v9268_v28 = vadd.f32 %v10517_v21, %v9107_v25  ;;  %v9110_v29 = vadd.f32 %v10408_v26, %v14678_v56 }
 0x68f   : > { %9346 = vst [vmem:[%s13668_s14 + $0x80] sm:$0xff] %v9268_v28  ;;  %v9271_v30 = vadd.f32 %v10520_v27, %v9110_v29  ;;  %v10409_v31 = vpop.f32.mrb[36].mxu0 }
 0x690   : > { %v10521_v32 = vpop.f32.mrb[36].mxu1  ;;  %v10410_v33 = vpop.f32.mrb[37].mxu0 }
 0x691   : > { %v10522_v34 = vpop.f32.mrb[37].mxu1  ;;  %9347 = vst [vmem:[%s13668_s14 + $0x88] sm:$0xff] %v9271_v30  ;;  %v10411_v35 = vadd.f32 %v10410_v33, %v10409_v31  ;;  %v10412_v37 = vpop.f32.mrb[38].mxu0 }
 0x692   : > { %v10523_v36 = vadd.f32 %v10522_v34, %v10521_v32  ;;  %v10524_v38 = vpop.f32.mrb[38].mxu1  ;;  %v10413_v39 = vpop.f32.mrb[39].mxu0 }
 0x693   : > { %v10525_v40 = vpop.f32.mrb[39].mxu1  ;;  %v9115_v41 = vadd.f32 %v10411_v35, %v14678_v56  ;;  %v10414_v42 = vadd.f32 %v10413_v39, %v10412_v37 }
 0x694   : > { %v10526_v43 = vadd.f32 %v10525_v40, %v10524_v38 }
 0x695   : > { %v9276_v44 = vadd.f32 %v10523_v36, %v9115_v41  ;;  %v9118_v45 = vadd.f32 %v10414_v42, %v14678_v56 }
 0x697   : > { %9348 = vst [vmem:[%s13668_s14 + $0x90] sm:$0xff] %v9276_v44  ;;  %v9279_v46 = vadd.f32 %v10526_v43, %v9118_v45  ;;  %v10415_v47 = vpop.f32.mrb[40].mxu0 }
 0x698   : > { %v10527_v48 = vpop.f32.mrb[40].mxu1  ;;  %v10416_v49 = vpop.f32.mrb[41].mxu0 }
 0x699   : > { %v10528_v51 = vpop.f32.mrb[41].mxu1  ;;  %9349 = vst [vmem:[%s13668_s14 + $0x98] sm:$0xff] %v9279_v46  ;;  %v10417_v52 = vadd.f32 %v10416_v49, %v10415_v47  ;;  %v10418_v57 = vpop.f32.mrb[42].mxu0 }
 0x69a   : > { %v10529_v54 = vadd.f32 %v10528_v51, %v10527_v48  ;;  %v10530_v58 = vpop.f32.mrb[42].mxu1  ;;  %v10419_v59 = vpop.f32.mrb[43].mxu0 }
 0x69b   : > { %v10531_v60 = vpop.f32.mrb[43].mxu1  ;;  %v9123_v61 = vadd.f32 %v10417_v52, %v14678_v56  ;;  %v10420_v62 = vadd.f32 %v10419_v59, %v10418_v57 }
 0x69c   : > { %v10532_v11 = vadd.f32 %v10531_v60, %v10530_v58 }
 0x69d   : > { %v9284_v12 = vadd.f32 %v10529_v54, %v9123_v61  ;;  %v9126_v50 = vadd.f32 %v10420_v62, %v14678_v56 }
 0x69f   : > { %9350 = vst [vmem:[%s13668_s14 + $0xa0] sm:$0xff] %v9284_v12  ;;  %v9287_v13 = vadd.f32 %v10532_v11, %v9126_v50  ;;  %v10421_v14 = vpop.f32.mrb[44].mxu0 }
 0x6a0   : > { %v10533_v53 = vpop.f32.mrb[44].mxu1  ;;  %v10422_v15 = vpop.f32.mrb[45].mxu0 }
 0x6a1   : > { %v10534_v16 = vpop.f32.mrb[45].mxu1  ;;  %9351 = vst [vmem:[%s13668_s14 + $0xa8] sm:$0xff] %v9287_v13  ;;  %v10423_v17 = vadd.f32 %v10422_v15, %v10421_v14  ;;  %v10424_v63 = vpop.f32.mrb[46].mxu0 }
 0x6a2   : > { %v10535_v18 = vadd.f32 %v10534_v16, %v10533_v53  ;;  %v10536_v0 = vpop.f32.mrb[46].mxu1  ;;  %v10425_v1 = vpop.f32.mrb[47].mxu0 }
 0x6a3   : > { %v10537_v2 = vpop.f32.mrb[47].mxu1  ;;  %v9131_v3 = vadd.f32 %v10423_v17, %v14678_v56  ;;  %v10426_v4 = vadd.f32 %v10425_v1, %v10424_v63 }
 0x6a4   : > { %v10538_v5 = vadd.f32 %v10537_v2, %v10536_v0 }
 0x6a5   : > { %v9292_v6 = vadd.f32 %v10535_v18, %v9131_v3  ;;  %v9134_v55 = vadd.f32 %v10426_v4, %v14678_v56 }
 0x6a7   : > { %9352 = vst [vmem:[%s13668_s14 + $0xb0] sm:$0xff] %v9292_v6  ;;  %v9295_v7 = vadd.f32 %v10538_v5, %v9134_v55  ;;  %v10427_v8 = vpop.f32.mrb[48].mxu0 }
 0x6a8   : > { %v10539_v19 = vpop.f32.mrb[48].mxu1  ;;  %v10428_v9 = vpop.f32.mrb[49].mxu0 }
 0x6a9   : > { %v10540_v20 = vpop.f32.mrb[49].mxu1  ;;  %9353 = vst [vmem:[%s13668_s14 + $0xb8] sm:$0xff] %v9295_v7  ;;  %v10429_v21 = vadd.f32 %v10428_v9, %v10427_v8  ;;  %v10430_v23 = vpop.f32.mrb[50].mxu0 }
 0x6aa   : > { %v10541_v22 = vadd.f32 %v10540_v20, %v10539_v19  ;;  %v10542_v10 = vpop.f32.mrb[50].mxu1  ;;  %v10431_v24 = vpop.f32.mrb[51].mxu0 }
 0x6ab   : > { %v10543_v25 = vpop.f32.mrb[51].mxu1  ;;  %v9139_v26 = vadd.f32 %v10429_v21, %v14678_v56  ;;  %v10432_v27 = vadd.f32 %v10431_v24, %v10430_v23 }
 0x6ac   : > { %v10544_v28 = vadd.f32 %v10543_v25, %v10542_v10 }
 0x6ad   : > { %v9300_v29 = vadd.f32 %v10541_v22, %v9139_v26  ;;  %v9142_v30 = vadd.f32 %v10432_v27, %v14678_v56 }
 0x6af   : > { %9354 = vst [vmem:[%s13668_s14 + $0xc0] sm:$0xff] %v9300_v29  ;;  %v9303_v31 = vadd.f32 %v10544_v28, %v9142_v30  ;;  %v10433_v32 = vpop.f32.mrb[52].mxu0 }
 0x6b0   : > { %v10545_v33 = vpop.f32.mrb[52].mxu1  ;;  %v10434_v34 = vpop.f32.mrb[53].mxu0 }
 0x6b1   : > { %v10546_v35 = vpop.f32.mrb[53].mxu1  ;;  %9355 = vst [vmem:[%s13668_s14 + $0xc8] sm:$0xff] %v9303_v31  ;;  %v10435_v36 = vadd.f32 %v10434_v34, %v10433_v32  ;;  %v10436_v38 = vpop.f32.mrb[54].mxu0 }
 0x6b2   : > { %v10547_v37 = vadd.f32 %v10546_v35, %v10545_v33  ;;  %v10548_v39 = vpop.f32.mrb[54].mxu1  ;;  %v10437_v40 = vpop.f32.mrb[55].mxu0 }
 0x6b3   : > { %v10549_v41 = vpop.f32.mrb[55].mxu1  ;;  %v9147_v42 = vadd.f32 %v10435_v36, %v14678_v56  ;;  %v10438_v43 = vadd.f32 %v10437_v40, %v10436_v38 }
 0x6b4   : > { %v10550_v44 = vadd.f32 %v10549_v41, %v10548_v39 }
 0x6b5   : > { %v9308_v45 = vadd.f32 %v10547_v37, %v9147_v42  ;;  %v9150_v46 = vadd.f32 %v10438_v43, %v14678_v56 }
 0x6b7   : > { %9356 = vst [vmem:[%s13668_s14 + $0xd0] sm:$0xff] %v9308_v45  ;;  %v9311_v47 = vadd.f32 %v10550_v44, %v9150_v46  ;;  %v10439_v48 = vpop.f32.mrb[56].mxu0 }
 0x6b8   : > { %v10551_v49 = vpop.f32.mrb[56].mxu1  ;;  %v10440_v51 = vpop.f32.mrb[57].mxu0 }
 0x6b9   : > { %v10552_v52 = vpop.f32.mrb[57].mxu1  ;;  %9357 = vst [vmem:[%s13668_s14 + $0xd8] sm:$0xff] %v9311_v47  ;;  %v10441_v54 = vadd.f32 %v10440_v51, %v10439_v48  ;;  %v10442_v58 = vpop.f32.mrb[58].mxu0 }
 0x6ba   : > { %v10553_v57 = vadd.f32 %v10552_v52, %v10551_v49  ;;  %v10554_v59 = vpop.f32.mrb[58].mxu1  ;;  %v10443_v60 = vpop.f32.mrb[59].mxu0 }
 0x6bb   : > { %v10555_v61 = vpop.f32.mrb[59].mxu1  ;;  %v9155_v62 = vadd.f32 %v10441_v54, %v14678_v56  ;;  %v10444_v11 = vadd.f32 %v10443_v60, %v10442_v58 }
 0x6bc   : > { %v10556_v12 = vadd.f32 %v10555_v61, %v10554_v59 }
 0x6bd   : > { %v9316_v50 = vadd.f32 %v10553_v57, %v9155_v62  ;;  %v9158_v13 = vadd.f32 %v10444_v11, %v14678_v56 }
 0x6bf   : > { %9358 = vst [vmem:[%s13668_s14 + $0xe0] sm:$0xff] %v9316_v50  ;;  %v9319_v14 = vadd.f32 %v10556_v12, %v9158_v13  ;;  %v10445_v53 = vpop.f32.mrb[60].mxu0 }
 0x6c0   : > { %v10557_v15 = vpop.f32.mrb[60].mxu1  ;;  %v10446_v16 = vpop.f32.mrb[61].mxu0 }
 0x6c1   : > { %v10558_v17 = vpop.f32.mrb[61].mxu1  ;;  %9359 = vst [vmem:[%s13668_s14 + $0xe8] sm:$0xff] %v9319_v14  ;;  %v10447_v18 = vadd.f32 %v10446_v16, %v10445_v53  ;;  %v10448_v0 = vpop.f32.mrb[62].mxu0 }
 0x6c2   : > { %v10559_v63 = vadd.f32 %v10558_v17, %v10557_v15  ;;  %v10560_v1 = vpop.f32.mrb[62].mxu1  ;;  %v10449_v2 = vpop.f32.mrb[63].mxu0 }
 0x6c3   : > { %v10561_v3 = vpop.f32.mrb[63].mxu1  ;;  %v9163_v4 = vadd.f32 %v10447_v18, %v14678_v56  ;;  %v10450_v5 = vadd.f32 %v10449_v2, %v10448_v0 }
 0x6c4   : > { %v10562_v6 = vadd.f32 %v10561_v3, %v10560_v1 }
 0x6c5   : > { %v9324_v55 = vadd.f32 %v10559_v63, %v9163_v4  ;;  %v9166_v7 = vadd.f32 %v10450_v5, %v14678_v56 }
 0x6c7   : > { %9360 = vst [vmem:[%s13668_s14 + $0xf0] sm:$0xff] %v9324_v55  ;;  %v9327_v8 = vadd.f32 %v10562_v6, %v9166_v7 }
 0x6c9   : > { %9361 = vst [vmem:[%s13668_s14 + $0xf8] sm:$0xff] %v9327_v8 }
 0x6ca PF: > { %s15_s26 = sadd.s32 1, %s12613_s26   ;;  %s14779_s18 = smov %s12585_s19 }
 0x6cb   : > { %p12_p2 = scmp.ge.s32.totalorder %s15_s26, 28   ;;  %s14780_s19 = smov %s12711_s7 }
 0x6cc   : > { %s14781_s20 = smov %s12593_s21  ;;  %s14782_s21 = smov %s12721_s12 }
 0x6cd   : > { %s14783_s22 = smov %s12605_s24  ;;  %s14784_s23 = smov %s12609_s25 }
 0x6ce   : > { %s14785_s24 = smov %s14788_s27  ;;  %s14786_s25 = smov %s14792_s28 }
 0x6cf   :  { %14 = sbr.rel (!%p12_p2) target bundleno = 5 (0x5), region = 139 }

</bundles_post_ra>
